<compile_context>
chip_gen: v6e
topology: v6e:2x2x1
jax: 0.10.0
libtpu: 0.0.40
codegen_flags: <defaults>
</compile_context>

<pallas_src>
import numpy as np
import jax
import jax.numpy as jnp
from jax import lax
from jax.experimental import pallas as pl
from jax.experimental.pallas import tpu as pltpu

N = 8                 # nodes per graph
IN_X = 62             # raw node feature dim (GPR_HESGAT.fc = Linear(62, 256))
IN_X_PAD = 64         # padded fc input dim (aligned MXU K)
D = 256               # hidden dim (HeatLayer in == out == 256)
MLP_H = 128
EDGE_DIM = 2
K_GPR = 2
ALPHA = 0.1
CN_SCALE = 0.55       # ContraNorm scale
OUT_PAD = 128         # lane-dense output slab width (logit lives in column 0)

NUM_GRAPHS = 32       # graphs in the example batch
GB_PER_STEP = 16      # graphs packed per grid step
ROWS_PER_STEP = GB_PER_STEP * N   # 128 rows -> full MXU sublane utilization


# ----------------------------------------------------------------------------
# Fused forward kernel: one grid step == GB_PER_STEP graphs (128 node rows)
# ----------------------------------------------------------------------------
def _gpr_hesgat_kernel(x_ref, adj_ref, wh_ref, ex0_ref, ex1_ref, blk_ref,
                       fcw_ref, fcb_ref, hw0_ref, hw1_ref, hb_ref,
                       wds_ref, wez_ref,
                       mw1_ref, mb1_ref, mw2_ref, mb2_ref,
                       scal_ref, o_ref):
    f32 = jnp.float32
    bf16 = jnp.bfloat16

    # ---- GPR front end: x1 = relu(fc(x)) -------------------------------------
    x1 = jnp.dot(x_ref[...], fcw_ref[...],
                 preferred_element_type=f32) + fcb_ref[...]
    x1 = jnp.maximum(x1, 0.0)
    H0 = x1
    hidden = scal_ref[6] * x1                     # temp[0] * x1

    # ---- masks, hoisted out of the K loop (additive -1e30 biases) ------------
    adj = adj_ref[...]                            # block-diag adjacency [R, R]
    blk = blk_ref[...]                            # block-diag "same graph" mask
    neg = f32(-1e30)
    att_bias = jnp.where(adj > 0.0, f32(0.0), neg)                       # edges only
    cn_bias = jnp.where(jnp.logical_and(blk > 0.0, adj <= 1e-5),
                        f32(0.0), neg)            # same graph & NOT a neighbor

    wh = wh_ref[...]                              # block-diag heat kernel (bf16)
    wez0 = wez_ref[0:1, :]                        # fc_eFeatsDim_to_nFeatsDim^T rows
    wez1 = wez_ref[1:2, :]
    ce0, ce1 = scal_ref[0], scal_ref[1]           # folded per-edge attention scalars
    w00, w01, w10, w11 = scal_ref[2], scal_ref[3], scal_ref[4], scal_ref[5]

    e0 = ex0_ref[...]                             # dense edge feature state [dst, src]
    e1 = ex1_ref[...]
    xk = x1

    for k in range(K_GPR):                        # static unroll (K == 2)
        # HeatLayer edge-feature update (2x2 -> VPU); state carried across iters
        n0 = e0 * w00 + e1 * w01
        n1 = e0 * w10 + e1 * w11
        e0, e1 = n0, n1

        # z = xk @ (fc^T W0) + (wheat1 @ xk) @ (fc^T W1) + bias   (wheat[0] == I elided)
        xk_bf = xk.astype(bf16)
        xh = jnp.dot(wh, xk_bf, preferred_element_type=f32)
        z = (jnp.dot(xk_bf, hw0_ref[...], preferred_element_type=f32)
             + jnp.dot(xh.astype(bf16), hw1_ref[...], preferred_element_type=f32)
             + hb_ref[...])
        z_bf = z.astype(bf16)

        # edge attention: one [R,2] matmul replaces the two degenerate matmuls
        za = jnp.dot(z_bf, wds_ref[...], preferred_element_type=f32)     # [R, 2]
        a_dst = za[:, 0:1]                                               # [R, 1]
        a_src = jnp.transpose(za[:, 1:2], (1, 0))                        # [1, R]
        scores = a_dst + a_src + e0 * ce0 + e1 * ce1
        scores = jnp.maximum(scores, 0.01 * scores)                      # leaky_relu
        masked = scores + att_bias
        m = jnp.max(masked, axis=1, keepdims=True)
        p = jnp.exp(masked - m)                                          # no NaN path
        attn = p * pl.reciprocal(jnp.sum(p, axis=1, keepdims=True), approx=True)

        h = jnp.dot(attn.astype(bf16), z_bf, preferred_element_type=f32)
        wex0 = jnp.sum(attn * e0, axis=1, keepdims=True)
        wex1 = jnp.sum(attn * e1, axis=1, keepdims=True)
        h = h + wex0 * wez0 + wex1 * wez1                                # sum_j attn*ez

        # HESGAT post: relu (dropout == identity @ inference), residual, ContraNorm
        out = jnp.maximum(h, 0.0)
        xr = 0.7 * out + 0.3 * H0
        ss = jnp.sum(xr * xr, axis=1, keepdims=True)
        norm_x = xr * lax.rsqrt(jnp.maximum(ss, 1e-24))                  # F.normalize(dim=1)
        nx_bf = norm_x.astype(bf16)
        sim = lax.dot_general(nx_bf, nx_bf, (((1,), (1,)), ((), ())),
                              preferred_element_type=f32)                # [R, R], tau = 1
        sim = sim + cn_bias                                              # mask neighbors + other graphs
        sm = jnp.max(sim, axis=1, keepdims=True)
        se = jnp.exp(sim - sm)
        sattn = se * pl.reciprocal(jnp.sum(se, axis=1, keepdims=True), approx=True)
        x_neg = jnp.dot(sattn.astype(bf16), xr.astype(bf16),
                        preferred_element_type=f32)
        xk = (1.0 + CN_SCALE) * xr - CN_SCALE * x_neg

        hidden = hidden + scal_ref[7 + k] * xk                           # temp[k+1]

    # ---- MLP head: lane-dense 128-wide slab, exact sigmoid -------------------
    hmid = jnp.dot(hidden.astype(bf16), mw1_ref[...],
                   preferred_element_type=f32) + mb1_ref[...]
    y = jnp.dot(hmid.astype(bf16), mw2_ref[...],
                preferred_element_type=f32) + mb2_ref[...]
    o_ref[...] = 1.0 / (1.0 + jnp.exp(-y))                               # exact divide


@jax.jit
def gpr_hesgat_forward(consts, x, adj_bd, wheat_bd, ex0_bd, ex1_bd):
    rows = x.shape[0]
    assert rows % ROWS_PER_STEP == 0
    steps = rows // ROWS_PER_STEP
    xp = jnp.pad(x, ((0, 0), (0, IN_X_PAD - x.shape[1]))).astype(jnp.bfloat16)

    def step_spec(last_dim):
        return pl.BlockSpec((ROWS_PER_STEP, last_dim), lambda b: (b, 0))

    def const_spec(a):                       # weight resident across the grid
        nd = a.ndim
        return pl.BlockSpec(a.shape, lambda b, _nd=nd: (0,) * _nd)

    in_specs = [
        step_spec(IN_X_PAD),                 # x            [R, 64]   bf16
        step_spec(ROWS_PER_STEP),            # adj_bd       [R, R]    f32
        step_spec(ROWS_PER_STEP),            # wheat_bd     [R, R]    bf16
        step_spec(ROWS_PER_STEP),            # ex0_bd       [R, R]    f32
        step_spec(ROWS_PER_STEP),            # ex1_bd       [R, R]    f32
        const_spec(consts['blk']),
        const_spec(consts['fc_w']), const_spec(consts['fc_b']),
        const_spec(consts['hw0']), const_spec(consts['hw1']),
        const_spec(consts['heat_bias']),
        const_spec(consts['w_ds']), const_spec(consts['wez']),
        const_spec(consts['mlp_w1']), const_spec(consts['mlp_b1']),
        const_spec(consts['mlp_w2p']), const_spec(consts['mlp_b2p']),
        pl.BlockSpec(memory_space=pltpu.MemorySpace.SMEM),   # folded scalars
    ]

    out = pl.pallas_call(
        _gpr_hesgat_kernel,
        out_shape=jax.ShapeDtypeStruct((rows, OUT_PAD), jnp.float32),
        grid=(steps,),
        in_specs=in_specs,
        out_specs=pl.BlockSpec((ROWS_PER_STEP, OUT_PAD), lambda b: (b, 0)),
        compiler_params=pltpu.CompilerParams(
            dimension_semantics=("parallel",)),        # v7x: both TensorCores
    )(xp, adj_bd, wheat_bd, ex0_bd, ex1_bd, consts['blk'],
      consts['fc_w'], consts['fc_b'], consts['hw0'], consts['hw1'],
      consts['heat_bias'], consts['w_ds'], consts['wez'],
      consts['mlp_w1'], consts['mlp_b1'], consts['mlp_w2p'], consts['mlp_b2p'],
      consts['scal'])
    return out[:, 0:1]


# ----------------------------------------------------------------------------
# Host-side (one-time) precomputation
# ----------------------------------------------------------------------------
def heat_weight1_np(adj_np, s=2.0):
    # TODO(synk): torch.linalg.eigh has no Pallas equivalent; the heat kernel of
    # the Laplacian is computed once per graph on the host (hoisted out of the hot path).
    d = np.sum(adj_np, axis=-1) ** (-0.5)
    Dm = np.diag(d)
    L = np.eye(adj_np.shape[0], dtype=np.float64) - Dm @ adj_np @ Dm
    lamb, U = np.linalg.eigh(L)
    idx = np.argsort(lamb)
    lamb, U = lamb[idx], U[:, idx]
    w1 = U @ np.diag(np.exp(-lamb * s * 1.0)) @ U.T     # HeatLayer.K == 2 -> only m = 1
    return np.asarray(w1, np.float32)


def xavier_normal(key, shape, fan_in, fan_out, gain=1.0):
    std = gain * np.sqrt(2.0 / (fan_in + fan_out))
    return (std * jax.random.normal(key, shape)).astype(jnp.float32)


def init_params(key):
    ks = jax.random.split(key, 12)
    g = float(np.sqrt(2.0))     # relu gain
    p = {}
    p['fc_w'] = xavier_normal(ks[0], (IN_X, D), IN_X, D)            # GPR fc (62->256), [in,out]
    p['fc_b'] = jnp.zeros((1, D), jnp.float32)
    p['heat_fc_w'] = xavier_normal(ks[1], (D, D), D, D, g)          # HeatLayer.fc
    attn_fc = xavier_normal(ks[2], (2 * D + EDGE_DIM,), 2 * D + EDGE_DIM, 1, g)
    p['w_src'] = attn_fc[:D].reshape(D, 1)
    p['w_dst'] = attn_fc[D:2 * D].reshape(D, 1)
    p['w_e'] = attn_fc[2 * D:]                                      # [2]
    p['fc_edge_att_w'] = xavier_normal(ks[3], (EDGE_DIM, EDGE_DIM), EDGE_DIM, EDGE_DIM, g)
    p['fc_ez_wT'] = xavier_normal(ks[4], (EDGE_DIM, D), EDGE_DIM, D, g)   # fc_eFeatsDim_to_nFeatsDim^T
    p['attn_edge'] = xavier_normal(ks[5], (D,), 1, D, g)
    p['fc_edge_w'] = xavier_normal(ks[6], (D, EDGE_DIM), EDGE_DIM, D, g)  # [out,in] = [256,2]
    p['heat_weight'] = xavier_normal(ks[7], (2, D, D), D, D)              # HeatLayer.weight
    p['heat_bias'] = jnp.zeros((1, D), jnp.float32)
    p['mlp_w1'] = xavier_normal(ks[8], (D, MLP_H), D, MLP_H)
    p['mlp_b1'] = jnp.zeros((1, MLP_H), jnp.float32)
    p['mlp_w2'] = xavier_normal(ks[9], (MLP_H, 1), MLP_H, 1)
    p['mlp_b2'] = jnp.zeros((1, 1), jnp.float32)
    temp = ALPHA * (1.0 - ALPHA) ** np.arange(K_GPR + 1)
    temp[-1] = (1.0 - ALPHA) ** K_GPR
    p['temp'] = jnp.asarray(temp, jnp.float32)
    return p


def prepare_constants(params):
    """One-time host-side folding of model weights into kernel constants."""
    bf16 = jnp.bfloat16
    c = {}
    c['fc_w'] = jnp.pad(params['fc_w'], ((0, IN_X_PAD - IN_X), (0, 0))).astype(bf16)
    c['fc_b'] = params['fc_b']
    # Pre-fold W_k = heat_fc_w @ heat_weight[k]; two separate refs (no concat in-kernel).
    c['hw0'] = (params['heat_fc_w'] @ params['heat_weight'][0]).astype(bf16)   # [D, D]
    c['hw1'] = (params['heat_fc_w'] @ params['heat_weight'][1]).astype(bf16)   # [D, D]
    c['heat_bias'] = params['heat_bias']
    # stacked attention weights: col 0 = dst, col 1 = src  (one matmul in-kernel)
    c['w_ds'] = jnp.concatenate([params['w_dst'], params['w_src']], axis=1).astype(bf16)
    c['wez'] = params['fc_ez_wT']
    # per-edge attention scalars: attn_fc edge slice + fc_edge^T @ attn_edge, folded.
    ve = jnp.sum(params['fc_edge_w'] * params['attn_edge'][:, None], axis=0)   # [2]
    sc = (params['w_e'] + ve).astype(jnp.float32)                              # [2]
    wae = params['fc_edge_att_w'].reshape(-1).astype(jnp.float32)              # [4] row-major
    c['scal'] = jnp.concatenate([sc, wae, params['temp']]).astype(jnp.float32) # [9] -> SMEM
    c['mlp_w1'] = params['mlp_w1'].astype(bf16)
    c['mlp_b1'] = params['mlp_b1']
    # MLP output padded to 128 lanes -> unmasked lane-dense stores
    w2p = jnp.zeros((MLP_H, OUT_PAD), jnp.float32).at[:, 0:1].set(params['mlp_w2'])
    b2p = jnp.zeros((1, OUT_PAD), jnp.float32).at[:, 0:1].set(params['mlp_b2'])
    c['mlp_w2p'] = w2p.astype(bf16)
    c['mlp_b2p'] = b2p
    # block-diagonal "same graph" indicator for one grid step
    c['blk'] = jnp.asarray(np.kron(np.eye(GB_PER_STEP, dtype=np.float32),
                                   np.ones((N, N), np.float32)))
    return c


def make_block_diag_slabs(per_graph_mats):
    """[B, N, N] per-graph dense matrices -> [B*N, GB_PER_STEP*N] per-step block-diag slabs."""
    Bg = per_graph_mats.shape[0]
    assert Bg % GB_PER_STEP == 0
    out = np.zeros((Bg * N, GB_PER_STEP * N), per_graph_mats.dtype)
    for g in range(Bg):
        col = (g % GB_PER_STEP) * N
        out[g * N:(g + 1) * N, col:col + N] = per_graph_mats[g]
    return out


if __name__ == "__main__":
    key = jax.random.PRNGKey(0)
    kp, kx, ke = jax.random.split(key, 3)
    params = init_params(kp)
    consts = prepare_constants(params)

    # symmetric adjacency, no self loops, every node has >= 1 neighbor
    adj_g = np.zeros((N, N), np.float32)
    for i in range(N):
        adj_g[i, (i + 1) % N] = 1.0
        adj_g[(i + 1) % N, i] = 1.0
    adj_g[0, 4] = adj_g[4, 0] = 1.0
    adj_g[2, 6] = adj_g[6, 2] = 1.0
    w1_g = heat_weight1_np(adj_g)                                     # eigh on host

    B = NUM_GRAPHS
    adj_all = np.broadcast_to(adj_g, (B, N, N)).astype(np.float32)
    w1_all = np.broadcast_to(w1_g, (B, N, N)).astype(np.float32)

    x = jax.random.normal(kx, (B * N, IN_X), dtype=jnp.float32)
    ex = np.asarray(jax.random.normal(ke, (B, N, N, EDGE_DIM), dtype=jnp.float32))

    adj_bd = jnp.asarray(make_block_diag_slabs(adj_all))
    wheat_bd = jnp.asarray(make_block_diag_slabs(w1_all)).astype(jnp.bfloat16)
    ex0_bd = jnp.asarray(make_block_diag_slabs(ex[..., 0]))
    ex1_bd = jnp.asarray(make_block_diag_slabs(ex[..., 1]))

    out = gpr_hesgat_forward(consts, x, adj_bd, wheat_bd, ex0_bd, ex1_bd)
    out = jax.block_until_ready(out).reshape(B, N, 1)
    assert out.shape == (B, N, 1)
    assert bool(jnp.all(jnp.isfinite(out)))
    print("KERNEL_OK")
</pallas_src>

<mosaic_0001>
module attributes {stable_mosaic.version = 11 : i64} {
  func.func @_gpr_hesgat_kernel(%arg0: i32, %arg1: memref<128x64xbf16, #tpu.memory_space<vmem>>, %arg2: memref<128x128xf32, #tpu.memory_space<vmem>>, %arg3: memref<128x128xbf16, #tpu.memory_space<vmem>>, %arg4: memref<128x128xf32, #tpu.memory_space<vmem>>, %arg5: memref<128x128xf32, #tpu.memory_space<vmem>>, %arg6: memref<128x128xf32, #tpu.memory_space<vmem>>, %arg7: memref<64x256xbf16, #tpu.memory_space<vmem>>, %arg8: memref<1x256xf32, #tpu.memory_space<vmem>>, %arg9: memref<256x256xbf16, #tpu.memory_space<vmem>>, %arg10: memref<256x256xbf16, #tpu.memory_space<vmem>>, %arg11: memref<1x256xf32, #tpu.memory_space<vmem>>, %arg12: memref<256x2xbf16, #tpu.memory_space<vmem>>, %arg13: memref<2x256xf32, #tpu.memory_space<vmem>>, %arg14: memref<256x128xbf16, #tpu.memory_space<vmem>>, %arg15: memref<1x128xf32, #tpu.memory_space<vmem>>, %arg16: memref<128x128xbf16, #tpu.memory_space<vmem>>, %arg17: memref<1x128xf32, #tpu.memory_space<vmem>>, %arg18: memref<9xf32, #tpu.memory_space<smem>>, %arg19: memref<128x128xf32, #tpu.memory_space<vmem>>) attributes {dimension_semantics = [#tpu.dimension_semantics<parallel>], iteration_bounds = array<i64: 2>, scalar_prefetch = 0 : i64, scratch_operands = 0 : i64, tpu.core_type = #tpu.core_type<tc>, window_params = [{transform_indices = @transform_0, window_bounds = array<i64: 128, 64>}, {transform_indices = @transform_1, window_bounds = array<i64: 128, 128>}, {transform_indices = @transform_2, window_bounds = array<i64: 128, 128>}, {transform_indices = @transform_3, window_bounds = array<i64: 128, 128>}, {transform_indices = @transform_4, window_bounds = array<i64: 128, 128>}, {pipeline_mode = #tpu.pipeline_mode<synchronous>, transform_indices = @transform_5, window_bounds = array<i64: 128, 128>}, {pipeline_mode = #tpu.pipeline_mode<synchronous>, transform_indices = @transform_6, window_bounds = array<i64: 64, 256>}, {pipeline_mode = #tpu.pipeline_mode<synchronous>, transform_indices = @transform_7, window_bounds = array<i64: 1, 256>}, {pipeline_mode = #tpu.pipeline_mode<synchronous>, transform_indices = @transform_8, window_bounds = array<i64: 256, 256>}, {pipeline_mode = #tpu.pipeline_mode<synchronous>, transform_indices = @transform_9, window_bounds = array<i64: 256, 256>}, {pipeline_mode = #tpu.pipeline_mode<synchronous>, transform_indices = @transform_10, window_bounds = array<i64: 1, 256>}, {pipeline_mode = #tpu.pipeline_mode<synchronous>, transform_indices = @transform_11, window_bounds = array<i64: 256, 2>}, {pipeline_mode = #tpu.pipeline_mode<synchronous>, transform_indices = @transform_12, window_bounds = array<i64: 2, 256>}, {pipeline_mode = #tpu.pipeline_mode<synchronous>, transform_indices = @transform_13, window_bounds = array<i64: 256, 128>}, {pipeline_mode = #tpu.pipeline_mode<synchronous>, transform_indices = @transform_14, window_bounds = array<i64: 1, 128>}, {pipeline_mode = #tpu.pipeline_mode<synchronous>, transform_indices = @transform_15, window_bounds = array<i64: 128, 128>}, {pipeline_mode = #tpu.pipeline_mode<synchronous>, transform_indices = @transform_16, window_bounds = array<i64: 1, 128>}, {transform_indices = @transform_17, window_bounds = array<i64: 9>}, {transform_indices = @transform_18, window_bounds = array<i64: 128, 128>}]} {
    %c0 = arith.constant 0 : index
    %c0_0 = arith.constant 0 : index
    %0 = vector.load %arg1[%c0, %c0_0] : memref<128x64xbf16, #tpu.memory_space<vmem>>, vector<128x64xbf16>
    %c0_1 = arith.constant 0 : index
    %c0_2 = arith.constant 0 : index
    %1 = vector.load %arg7[%c0_1, %c0_2] : memref<64x256xbf16, #tpu.memory_space<vmem>>, vector<64x256xbf16>
    %cst = arith.constant dense<0.000000e+00> : vector<128x256xf32>
    %2 = tpu.matmul %0, %1, %cst {dimension_numbers = #tpu.dot_dimension_numbers<[1], [0], [0], [1], [0, 0, 1, 1], [], []>} : vector<128x64xbf16>, vector<64x256xbf16>, vector<128x256xf32> -> vector<128x256xf32>
    %c0_3 = arith.constant 0 : index
    %c0_4 = arith.constant 0 : index
    %3 = vector.load %arg8[%c0_3, %c0_4] : memref<1x256xf32, #tpu.memory_space<vmem>>, vector<1x256xf32>
    %4 = vector.broadcast %3 : vector<1x256xf32> to vector<128x256xf32>
    %5 = arith.addf %2, %4 : vector<128x256xf32>
    %cst_5 = arith.constant 0.000000e+00 : f32
    %6 = vector.broadcast %cst_5 : f32 to vector<128x256xf32>
    %7 = arith.maximumf %5, %6 : vector<128x256xf32>
    %c6 = arith.constant 6 : index
    %8 = memref.load %arg18[%c6] : memref<9xf32, #tpu.memory_space<smem>>
    %9 = vector.broadcast %8 : f32 to vector<128x256xf32>
    %10 = arith.mulf %9, %7 : vector<128x256xf32>
    %c0_6 = arith.constant 0 : index
    %c0_7 = arith.constant 0 : index
    %11 = vector.load %arg2[%c0_6, %c0_7] : memref<128x128xf32, #tpu.memory_space<vmem>>, vector<128x128xf32>
    %c0_8 = arith.constant 0 : index
    %c0_9 = arith.constant 0 : index
    %12 = vector.load %arg6[%c0_8, %c0_9] : memref<128x128xf32, #tpu.memory_space<vmem>>, vector<128x128xf32>
    %cst_10 = arith.constant 0.000000e+00 : f32
    %13 = vector.broadcast %cst_10 : f32 to vector<128x128xf32>
    %14 = arith.cmpf ogt, %11, %13 : vector<128x128xf32>
    %cst_11 = arith.constant 0.000000e+00 : f32
    %cst_12 = arith.constant -1.000000e+30 : f32
    %15 = vector.broadcast %cst_11 : f32 to vector<128x128xf32>
    %16 = vector.broadcast %cst_12 : f32 to vector<128x128xf32>
    %17 = arith.select %14, %15, %16 : vector<128x128xi1>, vector<128x128xf32>
    %cst_13 = arith.constant 0.000000e+00 : f32
    %18 = vector.broadcast %cst_13 : f32 to vector<128x128xf32>
    %19 = arith.cmpf ogt, %12, %18 : vector<128x128xf32>
    %cst_14 = arith.constant 9.99999974E-6 : f32
    %20 = vector.broadcast %cst_14 : f32 to vector<128x128xf32>
    %21 = arith.cmpf ole, %11, %20 : vector<128x128xf32>
    %22 = arith.andi %19, %21 : vector<128x128xi1>
    %cst_15 = arith.constant 0.000000e+00 : f32
    %cst_16 = arith.constant -1.000000e+30 : f32
    %23 = vector.broadcast %cst_15 : f32 to vector<128x128xf32>
    %24 = vector.broadcast %cst_16 : f32 to vector<128x128xf32>
    %25 = arith.select %22, %23, %24 : vector<128x128xi1>, vector<128x128xf32>
    %c0_17 = arith.constant 0 : index
    %c0_18 = arith.constant 0 : index
    %26 = vector.load %arg3[%c0_17, %c0_18] : memref<128x128xbf16, #tpu.memory_space<vmem>>, vector<128x128xbf16>
    %c0_19 = arith.constant 0 : index
    %c0_20 = arith.constant 0 : index
    %27 = vector.load %arg13[%c0_19, %c0_20] : memref<2x256xf32, #tpu.memory_space<vmem>>, vector<1x256xf32>
    %c1 = arith.constant 1 : index
    %c0_21 = arith.constant 0 : index
    %28 = vector.load %arg13[%c1, %c0_21] : memref<2x256xf32, #tpu.memory_space<vmem>>, vector<1x256xf32>
    %c0_22 = arith.constant 0 : index
    %29 = memref.load %arg18[%c0_22] : memref<9xf32, #tpu.memory_space<smem>>
    %c1_23 = arith.constant 1 : index
    %30 = memref.load %arg18[%c1_23] : memref<9xf32, #tpu.memory_space<smem>>
    %c2 = arith.constant 2 : index
    %31 = memref.load %arg18[%c2] : memref<9xf32, #tpu.memory_space<smem>>
    %c3 = arith.constant 3 : index
    %32 = memref.load %arg18[%c3] : memref<9xf32, #tpu.memory_space<smem>>
    %c4 = arith.constant 4 : index
    %33 = memref.load %arg18[%c4] : memref<9xf32, #tpu.memory_space<smem>>
    %c5 = arith.constant 5 : index
    %34 = memref.load %arg18[%c5] : memref<9xf32, #tpu.memory_space<smem>>
    %c0_24 = arith.constant 0 : index
    %c0_25 = arith.constant 0 : index
    %35 = vector.load %arg4[%c0_24, %c0_25] : memref<128x128xf32, #tpu.memory_space<vmem>>, vector<128x128xf32>
    %c0_26 = arith.constant 0 : index
    %c0_27 = arith.constant 0 : index
    %36 = vector.load %arg5[%c0_26, %c0_27] : memref<128x128xf32, #tpu.memory_space<vmem>>, vector<128x128xf32>
    %37 = vector.broadcast %31 : f32 to vector<128x128xf32>
    %38 = arith.mulf %35, %37 : vector<128x128xf32>
    %39 = vector.broadcast %32 : f32 to vector<128x128xf32>
    %40 = arith.mulf %36, %39 : vector<128x128xf32>
    %41 = arith.addf %38, %40 : vector<128x128xf32>
    %42 = vector.broadcast %33 : f32 to vector<128x128xf32>
    %43 = arith.mulf %35, %42 : vector<128x128xf32>
    %44 = vector.broadcast %34 : f32 to vector<128x128xf32>
    %45 = arith.mulf %36, %44 : vector<128x128xf32>
    %46 = arith.addf %43, %45 : vector<128x128xf32>
    %47 = arith.truncf %7 : vector<128x256xf32> to vector<128x256xbf16>
    %cst_28 = arith.constant dense<0.000000e+00> : vector<128x256xf32>
    %48 = tpu.matmul %26, %47, %cst_28 {dimension_numbers = #tpu.dot_dimension_numbers<[1], [0], [0], [1], [0, 0, 1, 1], [], []>} : vector<128x128xbf16>, vector<128x256xbf16>, vector<128x256xf32> -> vector<128x256xf32>
    %c0_29 = arith.constant 0 : index
    %c0_30 = arith.constant 0 : index
    %49 = vector.load %arg9[%c0_29, %c0_30] : memref<256x256xbf16, #tpu.memory_space<vmem>>, vector<256x256xbf16>
    %cst_31 = arith.constant dense<0.000000e+00> : vector<128x256xf32>
    %50 = tpu.matmul %47, %49, %cst_31 {dimension_numbers = #tpu.dot_dimension_numbers<[1], [0], [0], [1], [0, 0, 1, 1], [], []>} : vector<128x256xbf16>, vector<256x256xbf16>, vector<128x256xf32> -> vector<128x256xf32>
    %51 = arith.truncf %48 : vector<128x256xf32> to vector<128x256xbf16>
    %c0_32 = arith.constant 0 : index
    %c0_33 = arith.constant 0 : index
    %52 = vector.load %arg10[%c0_32, %c0_33] : memref<256x256xbf16, #tpu.memory_space<vmem>>, vector<256x256xbf16>
    %cst_34 = arith.constant dense<0.000000e+00> : vector<128x256xf32>
    %53 = tpu.matmul %51, %52, %cst_34 {dimension_numbers = #tpu.dot_dimension_numbers<[1], [0], [0], [1], [0, 0, 1, 1], [], []>} : vector<128x256xbf16>, vector<256x256xbf16>, vector<128x256xf32> -> vector<128x256xf32>
    %54 = arith.addf %50, %53 : vector<128x256xf32>
    %c0_35 = arith.constant 0 : index
    %c0_36 = arith.constant 0 : index
    %55 = vector.load %arg11[%c0_35, %c0_36] : memref<1x256xf32, #tpu.memory_space<vmem>>, vector<1x256xf32>
    %56 = vector.broadcast %55 : vector<1x256xf32> to vector<128x256xf32>
    %57 = arith.addf %54, %56 : vector<128x256xf32>
    %58 = arith.truncf %57 : vector<128x256xf32> to vector<128x256xbf16>
    %c0_37 = arith.constant 0 : index
    %c0_38 = arith.constant 0 : index
    %59 = vector.load %arg12[%c0_37, %c0_38] : memref<256x2xbf16, #tpu.memory_space<vmem>>, vector<256x2xbf16>
    %cst_39 = arith.constant dense<0.000000e+00> : vector<128x2xf32>
    %60 = tpu.matmul %58, %59, %cst_39 {dimension_numbers = #tpu.dot_dimension_numbers<[1], [0], [0], [1], [0, 0, 1, 1], [], []>} : vector<128x256xbf16>, vector<256x2xbf16>, vector<128x2xf32> -> vector<128x2xf32>
    %61 = vector.extract_strided_slice %60 {offsets = [0, 0], sizes = [128, 1], strides = [1, 1]} : vector<128x2xf32> to vector<128x1xf32>
    %62 = vector.extract_strided_slice %60 {offsets = [0, 1], sizes = [128, 1], strides = [1, 1]} : vector<128x2xf32> to vector<128x1xf32>
    %63 = tpu.transpose %62, [1, 0] : vector<128x1xf32> -> vector<1x128xf32>
    %64 = vector.broadcast %61 : vector<128x1xf32> to vector<128x128xf32>
    %65 = vector.broadcast %63 : vector<1x128xf32> to vector<128x128xf32>
    %66 = arith.addf %64, %65 : vector<128x128xf32>
    %67 = vector.broadcast %29 : f32 to vector<128x128xf32>
    %68 = arith.mulf %41, %67 : vector<128x128xf32>
    %69 = arith.addf %66, %68 : vector<128x128xf32>
    %70 = vector.broadcast %30 : f32 to vector<128x128xf32>
    %71 = arith.mulf %46, %70 : vector<128x128xf32>
    %72 = arith.addf %69, %71 : vector<128x128xf32>
    %cst_40 = arith.constant 0.00999999977 : f32
    %73 = vector.broadcast %cst_40 : f32 to vector<128x128xf32>
    %74 = arith.mulf %73, %72 : vector<128x128xf32>
    %75 = arith.maximumf %72, %74 : vector<128x128xf32>
    %76 = arith.addf %75, %17 : vector<128x128xf32>
    %cst_41 = arith.constant dense<0xFF800000> : vector<128xf32>
    %77 = vector.multi_reduction <maximumf>, %76, %cst_41 [1] : vector<128x128xf32> to vector<128xf32>
    %78 = vector.shape_cast %77 : vector<128xf32> to vector<128x1xf32>
    %79 = vector.broadcast %78 : vector<128x1xf32> to vector<128x128xf32>
    %80 = arith.subf %76, %79 : vector<128x128xf32>
    %81 = math.exp %80 : vector<128x128xf32>
    %cst_42 = arith.constant dense<0.000000e+00> : vector<128xf32>
    %82 = vector.multi_reduction <add>, %81, %cst_42 [1] : vector<128x128xf32> to vector<128xf32>
    %83 = vector.shape_cast %82 : vector<128xf32> to vector<128x1xf32>
    %84 = tpu.reciprocal %83 {approx = true} : vector<128x1xf32> -> vector<128x1xf32>
    %85 = vector.broadcast %84 : vector<128x1xf32> to vector<128x128xf32>
    %86 = arith.mulf %81, %85 : vector<128x128xf32>
    %87 = arith.truncf %86 : vector<128x128xf32> to vector<128x128xbf16>
    %cst_43 = arith.constant dense<0.000000e+00> : vector<128x256xf32>
    %88 = tpu.matmul %87, %58, %cst_43 {dimension_numbers = #tpu.dot_dimension_numbers<[1], [0], [0], [1], [0, 0, 1, 1], [], []>} : vector<128x128xbf16>, vector<128x256xbf16>, vector<128x256xf32> -> vector<128x256xf32>
    %89 = arith.mulf %86, %41 : vector<128x128xf32>
    %cst_44 = arith.constant dense<0.000000e+00> : vector<128xf32>
    %90 = vector.multi_reduction <add>, %89, %cst_44 [1] : vector<128x128xf32> to vector<128xf32>
    %91 = vector.shape_cast %90 : vector<128xf32> to vector<128x1xf32>
    %92 = arith.mulf %86, %46 : vector<128x128xf32>
    %cst_45 = arith.constant dense<0.000000e+00> : vector<128xf32>
    %93 = vector.multi_reduction <add>, %92, %cst_45 [1] : vector<128x128xf32> to vector<128xf32>
    %94 = vector.shape_cast %93 : vector<128xf32> to vector<128x1xf32>
    %95 = vector.broadcast %91 : vector<128x1xf32> to vector<128x256xf32>
    %96 = vector.broadcast %27 : vector<1x256xf32> to vector<128x256xf32>
    %97 = arith.mulf %95, %96 : vector<128x256xf32>
    %98 = arith.addf %88, %97 : vector<128x256xf32>
    %99 = vector.broadcast %94 : vector<128x1xf32> to vector<128x256xf32>
    %100 = vector.broadcast %28 : vector<1x256xf32> to vector<128x256xf32>
    %101 = arith.mulf %99, %100 : vector<128x256xf32>
    %102 = arith.addf %98, %101 : vector<128x256xf32>
    %cst_46 = arith.constant 0.000000e+00 : f32
    %103 = vector.broadcast %cst_46 : f32 to vector<128x256xf32>
    %104 = arith.maximumf %102, %103 : vector<128x256xf32>
    %cst_47 = arith.constant 0.699999988 : f32
    %105 = vector.broadcast %cst_47 : f32 to vector<128x256xf32>
    %106 = arith.mulf %105, %104 : vector<128x256xf32>
    %cst_48 = arith.constant 3.000000e-01 : f32
    %107 = vector.broadcast %cst_48 : f32 to vector<128x256xf32>
    %108 = arith.mulf %107, %7 : vector<128x256xf32>
    %109 = arith.addf %106, %108 : vector<128x256xf32>
    %110 = arith.mulf %109, %109 : vector<128x256xf32>
    %cst_49 = arith.constant dense<0.000000e+00> : vector<128xf32>
    %111 = vector.multi_reduction <add>, %110, %cst_49 [1] : vector<128x256xf32> to vector<128xf32>
    %112 = vector.shape_cast %111 : vector<128xf32> to vector<128x1xf32>
    %cst_50 = arith.constant 1.000000e-24 : f32
    %113 = vector.broadcast %cst_50 : f32 to vector<128x1xf32>
    %114 = arith.maximumf %112, %113 : vector<128x1xf32>
    %115 = math.rsqrt %114 : vector<128x1xf32>
    %116 = vector.broadcast %115 : vector<128x1xf32> to vector<128x256xf32>
    %117 = arith.mulf %109, %116 : vector<128x256xf32>
    %118 = arith.truncf %117 : vector<128x256xf32> to vector<128x256xbf16>
    %cst_51 = arith.constant dense<0.000000e+00> : vector<128x128xf32>
    %119 = tpu.matmul %118, %118, %cst_51 {dimension_numbers = #tpu.dot_dimension_numbers<[1], [1], [0], [0], [0, 0, 1, 0], [], []>} : vector<128x256xbf16>, vector<128x256xbf16>, vector<128x128xf32> -> vector<128x128xf32>
    %120 = arith.addf %119, %25 : vector<128x128xf32>
    %cst_52 = arith.constant dense<0xFF800000> : vector<128xf32>
    %121 = vector.multi_reduction <maximumf>, %120, %cst_52 [1] : vector<128x128xf32> to vector<128xf32>
    %122 = vector.shape_cast %121 : vector<128xf32> to vector<128x1xf32>
    %123 = vector.broadcast %122 : vector<128x1xf32> to vector<128x128xf32>
    %124 = arith.subf %120, %123 : vector<128x128xf32>
    %125 = math.exp %124 : vector<128x128xf32>
    %cst_53 = arith.constant dense<0.000000e+00> : vector<128xf32>
    %126 = vector.multi_reduction <add>, %125, %cst_53 [1] : vector<128x128xf32> to vector<128xf32>
    %127 = vector.shape_cast %126 : vector<128xf32> to vector<128x1xf32>
    %128 = tpu.reciprocal %127 {approx = true} : vector<128x1xf32> -> vector<128x1xf32>
    %129 = vector.broadcast %128 : vector<128x1xf32> to vector<128x128xf32>
    %130 = arith.mulf %125, %129 : vector<128x128xf32>
    %131 = arith.truncf %130 : vector<128x128xf32> to vector<128x128xbf16>
    %132 = arith.truncf %109 : vector<128x256xf32> to vector<128x256xbf16>
    %cst_54 = arith.constant dense<0.000000e+00> : vector<128x256xf32>
    %133 = tpu.matmul %131, %132, %cst_54 {dimension_numbers = #tpu.dot_dimension_numbers<[1], [0], [0], [1], [0, 0, 1, 1], [], []>} : vector<128x128xbf16>, vector<128x256xbf16>, vector<128x256xf32> -> vector<128x256xf32>
    %cst_55 = arith.constant 1.550000e+00 : f32
    %134 = vector.broadcast %cst_55 : f32 to vector<128x256xf32>
    %135 = arith.mulf %134, %109 : vector<128x256xf32>
    %cst_56 = arith.constant 5.500000e-01 : f32
    %136 = vector.broadcast %cst_56 : f32 to vector<128x256xf32>
    %137 = arith.mulf %136, %133 : vector<128x256xf32>
    %138 = arith.subf %135, %137 : vector<128x256xf32>
    %c7 = arith.constant 7 : index
    %139 = memref.load %arg18[%c7] : memref<9xf32, #tpu.memory_space<smem>>
    %140 = vector.broadcast %139 : f32 to vector<128x256xf32>
    %141 = arith.mulf %140, %138 : vector<128x256xf32>
    %142 = arith.addf %10, %141 : vector<128x256xf32>
    %143 = vector.broadcast %31 : f32 to vector<128x128xf32>
    %144 = arith.mulf %41, %143 : vector<128x128xf32>
    %145 = vector.broadcast %32 : f32 to vector<128x128xf32>
    %146 = arith.mulf %46, %145 : vector<128x128xf32>
    %147 = arith.addf %144, %146 : vector<128x128xf32>
    %148 = vector.broadcast %33 : f32 to vector<128x128xf32>
    %149 = arith.mulf %41, %148 : vector<128x128xf32>
    %150 = vector.broadcast %34 : f32 to vector<128x128xf32>
    %151 = arith.mulf %46, %150 : vector<128x128xf32>
    %152 = arith.addf %149, %151 : vector<128x128xf32>
    %153 = arith.truncf %138 : vector<128x256xf32> to vector<128x256xbf16>
    %cst_57 = arith.constant dense<0.000000e+00> : vector<128x256xf32>
    %154 = tpu.matmul %26, %153, %cst_57 {dimension_numbers = #tpu.dot_dimension_numbers<[1], [0], [0], [1], [0, 0, 1, 1], [], []>} : vector<128x128xbf16>, vector<128x256xbf16>, vector<128x256xf32> -> vector<128x256xf32>
    %c0_58 = arith.constant 0 : index
    %c0_59 = arith.constant 0 : index
    %155 = vector.load %arg9[%c0_58, %c0_59] : memref<256x256xbf16, #tpu.memory_space<vmem>>, vector<256x256xbf16>
    %cst_60 = arith.constant dense<0.000000e+00> : vector<128x256xf32>
    %156 = tpu.matmul %153, %155, %cst_60 {dimension_numbers = #tpu.dot_dimension_numbers<[1], [0], [0], [1], [0, 0, 1, 1], [], []>} : vector<128x256xbf16>, vector<256x256xbf16>, vector<128x256xf32> -> vector<128x256xf32>
    %157 = arith.truncf %154 : vector<128x256xf32> to vector<128x256xbf16>
    %c0_61 = arith.constant 0 : index
    %c0_62 = arith.constant 0 : index
    %158 = vector.load %arg10[%c0_61, %c0_62] : memref<256x256xbf16, #tpu.memory_space<vmem>>, vector<256x256xbf16>
    %cst_63 = arith.constant dense<0.000000e+00> : vector<128x256xf32>
    %159 = tpu.matmul %157, %158, %cst_63 {dimension_numbers = #tpu.dot_dimension_numbers<[1], [0], [0], [1], [0, 0, 1, 1], [], []>} : vector<128x256xbf16>, vector<256x256xbf16>, vector<128x256xf32> -> vector<128x256xf32>
    %160 = arith.addf %156, %159 : vector<128x256xf32>
    %c0_64 = arith.constant 0 : index
    %c0_65 = arith.constant 0 : index
    %161 = vector.load %arg11[%c0_64, %c0_65] : memref<1x256xf32, #tpu.memory_space<vmem>>, vector<1x256xf32>
    %162 = vector.broadcast %161 : vector<1x256xf32> to vector<128x256xf32>
    %163 = arith.addf %160, %162 : vector<128x256xf32>
    %164 = arith.truncf %163 : vector<128x256xf32> to vector<128x256xbf16>
    %c0_66 = arith.constant 0 : index
    %c0_67 = arith.constant 0 : index
    %165 = vector.load %arg12[%c0_66, %c0_67] : memref<256x2xbf16, #tpu.memory_space<vmem>>, vector<256x2xbf16>
    %cst_68 = arith.constant dense<0.000000e+00> : vector<128x2xf32>
    %166 = tpu.matmul %164, %165, %cst_68 {dimension_numbers = #tpu.dot_dimension_numbers<[1], [0], [0], [1], [0, 0, 1, 1], [], []>} : vector<128x256xbf16>, vector<256x2xbf16>, vector<128x2xf32> -> vector<128x2xf32>
    %167 = vector.extract_strided_slice %166 {offsets = [0, 0], sizes = [128, 1], strides = [1, 1]} : vector<128x2xf32> to vector<128x1xf32>
    %168 = vector.extract_strided_slice %166 {offsets = [0, 1], sizes = [128, 1], strides = [1, 1]} : vector<128x2xf32> to vector<128x1xf32>
    %169 = tpu.transpose %168, [1, 0] : vector<128x1xf32> -> vector<1x128xf32>
    %170 = vector.broadcast %167 : vector<128x1xf32> to vector<128x128xf32>
    %171 = vector.broadcast %169 : vector<1x128xf32> to vector<128x128xf32>
    %172 = arith.addf %170, %171 : vector<128x128xf32>
    %173 = vector.broadcast %29 : f32 to vector<128x128xf32>
    %174 = arith.mulf %147, %173 : vector<128x128xf32>
    %175 = arith.addf %172, %174 : vector<128x128xf32>
    %176 = vector.broadcast %30 : f32 to vector<128x128xf32>
    %177 = arith.mulf %152, %176 : vector<128x128xf32>
    %178 = arith.addf %175, %177 : vector<128x128xf32>
    %cst_69 = arith.constant 0.00999999977 : f32
    %179 = vector.broadcast %cst_69 : f32 to vector<128x128xf32>
    %180 = arith.mulf %179, %178 : vector<128x128xf32>
    %181 = arith.maximumf %178, %180 : vector<128x128xf32>
    %182 = arith.addf %181, %17 : vector<128x128xf32>
    %cst_70 = arith.constant dense<0xFF800000> : vector<128xf32>
    %183 = vector.multi_reduction <maximumf>, %182, %cst_70 [1] : vector<128x128xf32> to vector<128xf32>
    %184 = vector.shape_cast %183 : vector<128xf32> to vector<128x1xf32>
    %185 = vector.broadcast %184 : vector<128x1xf32> to vector<128x128xf32>
    %186 = arith.subf %182, %185 : vector<128x128xf32>
    %187 = math.exp %186 : vector<128x128xf32>
    %cst_71 = arith.constant dense<0.000000e+00> : vector<128xf32>
    %188 = vector.multi_reduction <add>, %187, %cst_71 [1] : vector<128x128xf32> to vector<128xf32>
    %189 = vector.shape_cast %188 : vector<128xf32> to vector<128x1xf32>
    %190 = tpu.reciprocal %189 {approx = true} : vector<128x1xf32> -> vector<128x1xf32>
    %191 = vector.broadcast %190 : vector<128x1xf32> to vector<128x128xf32>
    %192 = arith.mulf %187, %191 : vector<128x128xf32>
    %193 = arith.truncf %192 : vector<128x128xf32> to vector<128x128xbf16>
    %cst_72 = arith.constant dense<0.000000e+00> : vector<128x256xf32>
    %194 = tpu.matmul %193, %164, %cst_72 {dimension_numbers = #tpu.dot_dimension_numbers<[1], [0], [0], [1], [0, 0, 1, 1], [], []>} : vector<128x128xbf16>, vector<128x256xbf16>, vector<128x256xf32> -> vector<128x256xf32>
    %195 = arith.mulf %192, %147 : vector<128x128xf32>
    %cst_73 = arith.constant dense<0.000000e+00> : vector<128xf32>
    %196 = vector.multi_reduction <add>, %195, %cst_73 [1] : vector<128x128xf32> to vector<128xf32>
    %197 = vector.shape_cast %196 : vector<128xf32> to vector<128x1xf32>
    %198 = arith.mulf %192, %152 : vector<128x128xf32>
    %cst_74 = arith.constant dense<0.000000e+00> : vector<128xf32>
    %199 = vector.multi_reduction <add>, %198, %cst_74 [1] : vector<128x128xf32> to vector<128xf32>
    %200 = vector.shape_cast %199 : vector<128xf32> to vector<128x1xf32>
    %201 = vector.broadcast %197 : vector<128x1xf32> to vector<128x256xf32>
    %202 = vector.broadcast %27 : vector<1x256xf32> to vector<128x256xf32>
    %203 = arith.mulf %201, %202 : vector<128x256xf32>
    %204 = arith.addf %194, %203 : vector<128x256xf32>
    %205 = vector.broadcast %200 : vector<128x1xf32> to vector<128x256xf32>
    %206 = vector.broadcast %28 : vector<1x256xf32> to vector<128x256xf32>
    %207 = arith.mulf %205, %206 : vector<128x256xf32>
    %208 = arith.addf %204, %207 : vector<128x256xf32>
    %cst_75 = arith.constant 0.000000e+00 : f32
    %209 = vector.broadcast %cst_75 : f32 to vector<128x256xf32>
    %210 = arith.maximumf %208, %209 : vector<128x256xf32>
    %cst_76 = arith.constant 0.699999988 : f32
    %211 = vector.broadcast %cst_76 : f32 to vector<128x256xf32>
    %212 = arith.mulf %211, %210 : vector<128x256xf32>
    %cst_77 = arith.constant 3.000000e-01 : f32
    %213 = vector.broadcast %cst_77 : f32 to vector<128x256xf32>
    %214 = arith.mulf %213, %7 : vector<128x256xf32>
    %215 = arith.addf %212, %214 : vector<128x256xf32>
    %216 = arith.mulf %215, %215 : vector<128x256xf32>
    %cst_78 = arith.constant dense<0.000000e+00> : vector<128xf32>
    %217 = vector.multi_reduction <add>, %216, %cst_78 [1] : vector<128x256xf32> to vector<128xf32>
    %218 = vector.shape_cast %217 : vector<128xf32> to vector<128x1xf32>
    %cst_79 = arith.constant 1.000000e-24 : f32
    %219 = vector.broadcast %cst_79 : f32 to vector<128x1xf32>
    %220 = arith.maximumf %218, %219 : vector<128x1xf32>
    %221 = math.rsqrt %220 : vector<128x1xf32>
    %222 = vector.broadcast %221 : vector<128x1xf32> to vector<128x256xf32>
    %223 = arith.mulf %215, %222 : vector<128x256xf32>
    %224 = arith.truncf %223 : vector<128x256xf32> to vector<128x256xbf16>
    %cst_80 = arith.constant dense<0.000000e+00> : vector<128x128xf32>
    %225 = tpu.matmul %224, %224, %cst_80 {dimension_numbers = #tpu.dot_dimension_numbers<[1], [1], [0], [0], [0, 0, 1, 0], [], []>} : vector<128x256xbf16>, vector<128x256xbf16>, vector<128x128xf32> -> vector<128x128xf32>
    %226 = arith.addf %225, %25 : vector<128x128xf32>
    %cst_81 = arith.constant dense<0xFF800000> : vector<128xf32>
    %227 = vector.multi_reduction <maximumf>, %226, %cst_81 [1] : vector<128x128xf32> to vector<128xf32>
    %228 = vector.shape_cast %227 : vector<128xf32> to vector<128x1xf32>
    %229 = vector.broadcast %228 : vector<128x1xf32> to vector<128x128xf32>
    %230 = arith.subf %226, %229 : vector<128x128xf32>
    %231 = math.exp %230 : vector<128x128xf32>
    %cst_82 = arith.constant dense<0.000000e+00> : vector<128xf32>
    %232 = vector.multi_reduction <add>, %231, %cst_82 [1] : vector<128x128xf32> to vector<128xf32>
    %233 = vector.shape_cast %232 : vector<128xf32> to vector<128x1xf32>
    %234 = tpu.reciprocal %233 {approx = true} : vector<128x1xf32> -> vector<128x1xf32>
    %235 = vector.broadcast %234 : vector<128x1xf32> to vector<128x128xf32>
    %236 = arith.mulf %231, %235 : vector<128x128xf32>
    %237 = arith.truncf %236 : vector<128x128xf32> to vector<128x128xbf16>
    %238 = arith.truncf %215 : vector<128x256xf32> to vector<128x256xbf16>
    %cst_83 = arith.constant dense<0.000000e+00> : vector<128x256xf32>
    %239 = tpu.matmul %237, %238, %cst_83 {dimension_numbers = #tpu.dot_dimension_numbers<[1], [0], [0], [1], [0, 0, 1, 1], [], []>} : vector<128x128xbf16>, vector<128x256xbf16>, vector<128x256xf32> -> vector<128x256xf32>
    %cst_84 = arith.constant 1.550000e+00 : f32
    %240 = vector.broadcast %cst_84 : f32 to vector<128x256xf32>
    %241 = arith.mulf %240, %215 : vector<128x256xf32>
    %cst_85 = arith.constant 5.500000e-01 : f32
    %242 = vector.broadcast %cst_85 : f32 to vector<128x256xf32>
    %243 = arith.mulf %242, %239 : vector<128x256xf32>
    %244 = arith.subf %241, %243 : vector<128x256xf32>
    %c8 = arith.constant 8 : index
    %245 = memref.load %arg18[%c8] : memref<9xf32, #tpu.memory_space<smem>>
    %246 = vector.broadcast %245 : f32 to vector<128x256xf32>
    %247 = arith.mulf %246, %244 : vector<128x256xf32>
    %248 = arith.addf %142, %247 : vector<128x256xf32>
    %249 = arith.truncf %248 : vector<128x256xf32> to vector<128x256xbf16>
    %c0_86 = arith.constant 0 : index
    %c0_87 = arith.constant 0 : index
    %250 = vector.load %arg14[%c0_86, %c0_87] : memref<256x128xbf16, #tpu.memory_space<vmem>>, vector<256x128xbf16>
    %cst_88 = arith.constant dense<0.000000e+00> : vector<128x128xf32>
    %251 = tpu.matmul %249, %250, %cst_88 {dimension_numbers = #tpu.dot_dimension_numbers<[1], [0], [0], [1], [0, 0, 1, 1], [], []>} : vector<128x256xbf16>, vector<256x128xbf16>, vector<128x128xf32> -> vector<128x128xf32>
    %c0_89 = arith.constant 0 : index
    %c0_90 = arith.constant 0 : index
    %252 = vector.load %arg15[%c0_89, %c0_90] : memref<1x128xf32, #tpu.memory_space<vmem>>, vector<1x128xf32>
    %253 = vector.broadcast %252 : vector<1x128xf32> to vector<128x128xf32>
    %254 = arith.addf %251, %253 : vector<128x128xf32>
    %255 = arith.truncf %254 : vector<128x128xf32> to vector<128x128xbf16>
    %c0_91 = arith.constant 0 : index
    %c0_92 = arith.constant 0 : index
    %256 = vector.load %arg16[%c0_91, %c0_92] : memref<128x128xbf16, #tpu.memory_space<vmem>>, vector<128x128xbf16>
    %cst_93 = arith.constant dense<0.000000e+00> : vector<128x128xf32>
    %257 = tpu.matmul %255, %256, %cst_93 {dimension_numbers = #tpu.dot_dimension_numbers<[1], [0], [0], [1], [0, 0, 1, 1], [], []>} : vector<128x128xbf16>, vector<128x128xbf16>, vector<128x128xf32> -> vector<128x128xf32>
    %c0_94 = arith.constant 0 : index
    %c0_95 = arith.constant 0 : index
    %258 = vector.load %arg17[%c0_94, %c0_95] : memref<1x128xf32, #tpu.memory_space<vmem>>, vector<1x128xf32>
    %259 = vector.broadcast %258 : vector<1x128xf32> to vector<128x128xf32>
    %260 = arith.addf %257, %259 : vector<128x128xf32>
    %cst_96 = arith.constant 0.000000e+00 : f32
    %261 = vector.broadcast %cst_96 : f32 to vector<128x128xf32>
    %262 = arith.subf %261, %260 : vector<128x128xf32>
    %263 = math.exp %262 : vector<128x128xf32>
    %cst_97 = arith.constant 1.000000e+00 : f32
    %264 = vector.broadcast %cst_97 : f32 to vector<128x128xf32>
    %265 = arith.addf %264, %263 : vector<128x128xf32>
    %cst_98 = arith.constant 1.000000e+00 : f32
    %266 = vector.broadcast %cst_98 : f32 to vector<128x128xf32>
    %267 = arith.divf %266, %265 : vector<128x128xf32>
    %c0_99 = arith.constant 0 : index
    %c0_100 = arith.constant 0 : index
    %268 = vector.load %arg19[%c0_99, %c0_100] : memref<128x128xf32, #tpu.memory_space<vmem>>, vector<128x128xf32>
    tpu.vector_store %arg19[%c0_99, %c0_100], %267 {strides = array<i32>} : memref<128x128xf32, #tpu.memory_space<vmem>>, vector<128x128xf32>,
    return
  }
  func.func @transform_0(%arg0: i32) -> (i32, i32) {
    %c0_i32 = arith.constant 0 : i32
    %c0_i32_0 = arith.constant 0 : i32
    return %arg0, %c0_i32 : i32, i32
  }
  func.func @transform_1(%arg0: i32) -> (i32, i32) {
    %c0_i32 = arith.constant 0 : i32
    %c0_i32_0 = arith.constant 0 : i32
    return %arg0, %c0_i32 : i32, i32
  }
  func.func @transform_2(%arg0: i32) -> (i32, i32) {
    %c0_i32 = arith.constant 0 : i32
    %c0_i32_0 = arith.constant 0 : i32
    return %arg0, %c0_i32 : i32, i32
  }
  func.func @transform_3(%arg0: i32) -> (i32, i32) {
    %c0_i32 = arith.constant 0 : i32
    %c0_i32_0 = arith.constant 0 : i32
    return %arg0, %c0_i32 : i32, i32
  }
  func.func @transform_4(%arg0: i32) -> (i32, i32) {
    %c0_i32 = arith.constant 0 : i32
    %c0_i32_0 = arith.constant 0 : i32
    return %arg0, %c0_i32 : i32, i32
  }
  func.func @transform_5(%arg0: i32) -> (i32, i32) {
    %c0_i32 = arith.constant 0 : i32
    %c0_i32_0 = arith.constant 0 : i32
    %c0_i32_1 = arith.constant 0 : i32
    return %c0_i32, %c0_i32_0 : i32, i32
  }
  func.func @transform_6(%arg0: i32) -> (i32, i32) {
    %c0_i32 = arith.constant 0 : i32
    %c0_i32_0 = arith.constant 0 : i32
    %c0_i32_1 = arith.constant 0 : i32
    return %c0_i32, %c0_i32_0 : i32, i32
  }
  func.func @transform_7(%arg0: i32) -> (i32, i32) {
    %c0_i32 = arith.constant 0 : i32
    %c0_i32_0 = arith.constant 0 : i32
    %c0_i32_1 = arith.constant 0 : i32
    return %c0_i32, %c0_i32_0 : i32, i32
  }
  func.func @transform_8(%arg0: i32) -> (i32, i32) {
    %c0_i32 = arith.constant 0 : i32
    %c0_i32_0 = arith.constant 0 : i32
    %c0_i32_1 = arith.constant 0 : i32
    return %c0_i32, %c0_i32_0 : i32, i32
  }
  func.func @transform_9(%arg0: i32) -> (i32, i32) {
    %c0_i32 = arith.constant 0 : i32
    %c0_i32_0 = arith.constant 0 : i32
    %c0_i32_1 = arith.constant 0 : i32
    return %c0_i32, %c0_i32_0 : i32, i32
  }
  func.func @transform_10(%arg0: i32) -> (i32, i32) {
    %c0_i32 = arith.constant 0 : i32
    %c0_i32_0 = arith.constant 0 : i32
    %c0_i32_1 = arith.constant 0 : i32
    return %c0_i32, %c0_i32_0 : i32, i32
  }
  func.func @transform_11(%arg0: i32) -> (i32, i32) {
    %c0_i32 = arith.constant 0 : i32
    %c0_i32_0 = arith.constant 0 : i32
    %c0_i32_1 = arith.constant 0 : i32
    return %c0_i32, %c0_i32_0 : i32, i32
  }
  func.func @transform_12(%arg0: i32) -> (i32, i32) {
    %c0_i32 = arith.constant 0 : i32
    %c0_i32_0 = arith.constant 0 : i32
    %c0_i32_1 = arith.constant 0 : i32
    return %c0_i32, %c0_i32_0 : i32, i32
  }
  func.func @transform_13(%arg0: i32) -> (i32, i32) {
    %c0_i32 = arith.constant 0 : i32
    %c0_i32_0 = arith.constant 0 : i32
    %c0_i32_1 = arith.constant 0 : i32
    return %c0_i32, %c0_i32_0 : i32, i32
  }
  func.func @transform_14(%arg0: i32) -> (i32, i32) {
    %c0_i32 = arith.constant 0 : i32
    %c0_i32_0 = arith.constant 0 : i32
    %c0_i32_1 = arith.constant 0 : i32
    return %c0_i32, %c0_i32_0 : i32, i32
  }
  func.func @transform_15(%arg0: i32) -> (i32, i32) {
    %c0_i32 = arith.constant 0 : i32
    %c0_i32_0 = arith.constant 0 : i32
    %c0_i32_1 = arith.constant 0 : i32
    return %c0_i32, %c0_i32_0 : i32, i32
  }
  func.func @transform_16(%arg0: i32) -> (i32, i32) {
    %c0_i32 = arith.constant 0 : i32
    %c0_i32_0 = arith.constant 0 : i32
    %c0_i32_1 = arith.constant 0 : i32
    return %c0_i32, %c0_i32_0 : i32, i32
  }
  func.func @transform_17(%arg0: i32) -> i32 {
    %c0_i32 = arith.constant 0 : i32
    %c0_i32_0 = arith.constant 0 : i32
    return %c0_i32 : i32
  }
  func.func @transform_18(%arg0: i32) -> (i32, i32) {
    %c0_i32 = arith.constant 0 : i32
    %c0_i32_0 = arith.constant 0 : i32
    return %arg0, %c0_i32 : i32, i32
  }
}

</mosaic_0001>

<bundles_post_ra>
// kernel: gpr_hesgat_forward.1
= control target key start
LH: loop header
LB: loop body
LE: loop exit
PB: predicated region body
PF: predicated region fallthrough
CT: control target
= control target key end

     0   :  { %s12533_s0 = inlined_call_operand.vmem [shape: bf16[256,64], index: 0, kind: input, shape index: {}]   ;;  %s12534_s1 = inlined_call_operand.vmem [shape: f32[256,128], index: 1, kind: input, shape index: {}]   ;;  %s12535_s2 = inlined_call_operand.hbm [shape: bf16[256,128], index: 2, kind: input, shape index: {}]   ;;  %s12536_s3 = inlined_call_operand.vmem [shape: f32[256,128], index: 3, kind: input, shape index: {}]   ;;  %s12537_s4 = inlined_call_operand.vmem [shape: f32[256,128], index: 4, kind: input, shape index: {}]   ;;  %s12538_s5 = inlined_call_operand.hbm [shape: f32[128,128], index: 5, kind: input, shape index: {}]   ;;  %s12539_s6 = inlined_call_operand.hbm [shape: bf16[64,256], index: 6, kind: input, shape index: {}]   ;;  %s12540_s7 = inlined_call_operand.vmem [shape: f32[1,256], index: 7, kind: input, shape index: {}]   ;;  %s12541_s8 = inlined_call_operand.hbm [shape: bf16[256,256], index: 8, kind: input, shape index: {}]   ;;  %s12542_s9 = inlined_call_operand.hbm [shape: bf16[256,256], index: 9, kind: input, shape index: {}]   ;;  %s12543_s10 = inlined_call_operand.hbm [shape: f32[1,256], index: 10, kind: input, shape index: {}]   ;;  %s12544_s11 = inlined_call_operand.vmem [shape: bf16[256,2], index: 11, kind: input, shape index: {}]   ;;  %s12545_s12 = inlined_call_operand.vmem [shape: f32[2,256], index: 12, kind: input, shape index: {}]   ;;  %s12546_s13 = inlined_call_operand.hbm [shape: bf16[256,128], index: 13, kind: input, shape index: {}]   ;;  %s12547_s14 = inlined_call_operand.vmem [shape: f32[1,128], index: 14, kind: input, shape index: {}]   ;;  %s12548_s15 = inlined_call_operand.hbm [shape: bf16[128,128], index: 15, kind: input, shape index: {}]   ;;  %s12549_s16 = inlined_call_operand.vmem [shape: f32[1,128], index: 16, kind: input, shape index: {}]   ;;  %s12550_s17 = inlined_call_operand.vmem [shape: f32[9], index: 17, kind: input, shape index: {}]   ;;  %s12551_s18 = inlined_call_operand.vmem [shape: f32[256,128], index: 18, kind: output, shape index: {}]  }
   0x1   :  { %12800 = sst [smem:[#allocation172_spill]] %s12533_s0 }
   0x2   :  { %12801 = sst [smem:[#allocation173_spill]] %s12534_s1 }
   0x3   :  { %12802 = sst [smem:[#allocation174_spill]] %s12535_s2 }
   0x4   :  { %12803 = sst [smem:[#allocation175_spill]] %s12538_s5 }
   0x5   :  { %12804 = sst [smem:[#allocation176_spill]] %s12539_s6 }
   0x6   :  { %12805 = sst [smem:[#allocation177_spill]] %s12541_s8 }
   0x7   :  { %12806 = sst [smem:[#allocation178_spill]] %s12542_s9 }
   0x8   :  { %12807 = sst [smem:[#allocation179_spill]] %s12543_s10 }
   0x9   :  { %12808 = sst [smem:[#allocation180_spill]] %s12549_s16 }
   0xa   :  { %12809 = sst [smem:[#allocation181_spill]] %s12551_s18 }
   0xb   :  { %23 = vsyncpa [#allocation3], 0 }
   0xc   :  { %25 = vsyncpa [#allocation3 + $0x1], 0 }
   0xd   :  { %26 = vsyncpa [#allocation6], 0 }
   0xe   :  { %27 = vsyncpa [#allocation9], 0 }
   0xf   :  { %28 = vsyncpa [#allocation12], 0 }
  0x10   :  { %29 = vsyncpa [#allocation15], 0 }
  0x11   :  { %30 = vsyncpa [#allocation4], 0  ;;  %s8596_s27 = smov 0   ;;  %s8598_s28 = smov 0  }
  0x12   :  { %s8600_s29 = smov 0   ;;  %s8602_s30 = smov 0  }
  0x13 LB: > { %s8485_s0 = smov [#allocation5]   ;;  %s12553_s1 = sadd.s32 4294967295, %s8483_s30   ;;  %s8483_s30 = sphi %s8602_s30, %s13354_s30   ;;  %s8479_s29 = sphi %s8600_s29, %s13353_s29   ;;  %s8475_s28 = sphi %s8598_s28, %s13352_s28   ;;  %s8471_s27 = sphi %s8596_s27, %s13351_s27  }
  0x14   : > { %s482_s19 = sshll.u32 %s8485_s0, 4  ;;  %p6984_p0 = scmp.ge.s32.totalorder %s8483_s30, 1  ;;  %s483_s19 = int_to_ptr.vmem [resolvable:$true] %s482_s19 }
  0x15   : > { %p8620_p1 = scmp.eq.s32.totalorder %s12553_s1, 0  ;;  %p470_p2 = scmp.lt.s32.totalorder %s8483_s30, 3 }
  0x16   : > { %s8486_s22 = smov [#allocation8]   ;;  %s8487_s24 = smov [#allocation11]  }
  0x17   : > { %s12810_s20 = scalar_select %p8620_p1, 1, 0 }
  0x18   : > { %p8625_p3 = pnand %p6984_p0, %p470_p2  ;;  %s511_s2 = sshll.u32 %s8486_s22, 4  ;;  %s8637_s2 = int_to_ptr.vmem [resolvable:$true] %s511_s2 }
  0x19   : > { %s538_s25 = sshll.u32 %s8487_s24, 4  ;;  %s8215_s0 = scalar_lea.vmem %s483_s19, 2048  ;;  %s8639_s25 = int_to_ptr.vmem [resolvable:$true] %s538_s25 }
  0x1a   : > { %s12811_s21 = scalar_select %p8625_p3, 1, 0 }
  0x1b   : > { %p7457_p4 = pneg %p8625_p3  ;;  %p8216_p7 = scmp.ne.s32.totalorder %s483_s19, %s8215_s0 }
  0x1c   : > { %p8223_p10 = scmp.lt.s32.totalorder %s483_s19, %s483_s19  ;;  %p8224_p11 = scmp.lt.s32.totalorder %s8215_s0, %s8215_s0 }
  0x1d   : > { %p8633_p5 = pnand %p7457_p4, %p8620_p1 }
  0x1e   : > { %p8225_p12 = por %p8224_p11, %p8223_p10 }
  0x1f   : > { %p8643_p6 = pneg %p8633_p5 }
  0x21   : > { %p8218_p8 = pnand %p8216_p7, %p8643_p6 }
  0x23   : > { %p8219_p9 = pneg %p8218_p8 }
  0x25   : > { %p8226_p13 = pnand %p8225_p12, %p8219_p9 }
  0x27   : > { %8229 = shalt.err (!%p8226_p13)
}
  0x28   : > { %s12554_s22 = smov 128   ;;  %s12556_s24 = smov 8  }
  0x29   : > { %s12814_s5 = sld [smem:[#allocation175_spill]]  ;;  %s8241_s16 = scalar_lea.vmem %s8637_s2, 4096 }
  0x2a   : > { %p8242_p0 = scmp.ne.s32.totalorder %s8637_s2, %s8241_s16  ;;  %p8249_p7 = scmp.lt.s32.totalorder %s8637_s2, %s8637_s2 }
  0x2b   : > { %p8250_p8 = scmp.lt.s32.totalorder %s8241_s16, %s8241_s16 }
  0x2c   : > { %p8244_p2 = pnand %p8242_p0, %p8643_p6 }
  0x2d   : > { %p8251_p9 = por %p8250_p8, %p8249_p7 }
  0x2e   : > { %p8245_p4 = pneg %p8244_p2 }
  0x2f   : > { %7460 = dma.hbm_to_vmem [thread:$0]  (!%p8633_p5), %s12814_s5, 2048, %s483_s19, [#allocation6], %s12554_s22, %s12554_s22, %s12556_s24  }
  0x30   : > { %p8252_p10 = pnand %p8251_p9, %p8245_p4 }
  0x32   : > { %8255 = shalt.err (!%p8252_p10)
}
  0x33   : > { %s12815_s8 = sld [smem:[#allocation177_spill]]  ;;  %s8267_s19 = scalar_lea.vmem %s8639_s25, 32 }
  0x34   : > { %p8268_p11 = scmp.ne.s32.totalorder %s8639_s25, %s8267_s19  ;;  %p8275_p0 = scmp.lt.s32.totalorder %s8639_s25, %s8639_s25 }
  0x35   : > { %p8276_p2 = scmp.lt.s32.totalorder %s8267_s19, %s8267_s19 }
  0x36   : > { %p8270_p12 = pnand %p8268_p11, %p8643_p6 }
  0x37   : > { %p8277_p4 = por %p8276_p2, %p8275_p0 }
  0x38   : > { %p8271_p13 = pneg %p8270_p12 }
  0x39   : > { %7466 = dma.hbm_to_vmem [thread:$0]  (!%p8633_p5), %s12815_s8, 4096, %s8637_s2, [#allocation9], %s12554_s22, %s12554_s22, %s12556_s24  }
  0x3a   : > { %p8278_p7 = pnand %p8277_p4, %p8271_p13 }
  0x3c   : > { %8281 = shalt.err (!%p8278_p7)
}
  0x3d   : > { %s12816_s10 = sld [smem:[#allocation179_spill]]  ;;  %s8490_s2 = smov [#allocation7]  }
  0x3e   : > { %s495_s0 = sshll.u32 %s8490_s2, 4  ;;  %s8491_s18 = smov [#allocation10]   ;;  %s496_s0 = int_to_ptr.vmem [resolvable:$true] %s495_s0 }
  0x3f   : > { %s524_s22 = sshll.u32 %s8491_s18, 4  ;;  %s8293_s24 = scalar_lea.vmem %s496_s0, 1024  ;;  %s525_s22 = int_to_ptr.vmem [resolvable:$true] %s524_s22 }
  0x40   : > { %p8294_p8 = scmp.ne.s32.totalorder %s496_s0, %s8293_s24  ;;  %p8301_p11 = scmp.lt.s32.totalorder %s496_s0, %s496_s0 }
  0x41   : > { %p8302_p12 = scmp.lt.s32.totalorder %s8293_s24, %s8293_s24 }
  0x42   : > { %p8296_p9 = pnand %p8294_p8, %p8643_p6 }
  0x43   : > { %7472 = dma.hbm_to_vmem [thread:$0]  (!%p8633_p5), %s12816_s10, 32, %s8639_s25, [#allocation12]  }
  0x44   : > { %p8297_p10 = pneg %p8296_p9  ;;  %p8303_p13 = por %p8302_p12, %p8301_p11 }
  0x46   : > { %p8304_p0 = pnand %p8303_p13, %p8297_p10 }
  0x48   : > { %8307 = shalt.err (!%p8304_p0)
}
  0x49   : > { %s12817_s19 = smov 8   ;;  %s12818_s16 = smov 128  }
  0x4a   : > { %s12819_s6 = sld [smem:[#allocation176_spill]]  ;;  %s8319_s2 = scalar_lea.vmem %s525_s22, 4096 }
  0x4b   : > { %p8320_p2 = scmp.ne.s32.totalorder %s525_s22, %s8319_s2  ;;  %p8327_p8 = scmp.lt.s32.totalorder %s525_s22, %s525_s22 }
  0x4c   : > { %p8328_p9 = scmp.lt.s32.totalorder %s8319_s2, %s8319_s2 }
  0x4d   : > { %p8322_p4 = pnand %p8320_p2, %p8643_p6 }
  0x4e   : > { %p8329_p10 = por %p8328_p9, %p8327_p8 }
  0x4f   : > { %p8323_p7 = pneg %p8322_p4 }
  0x50   : > { %7463 = dma.hbm_to_vmem [thread:$0]  (!%p8633_p5), %s12819_s6, 1024, %s496_s0, [#allocation6], %s12818_s16, %s12818_s16, %s12817_s19  }
  0x51   : > { %p8330_p11 = pnand %p8329_p10, %p8323_p7 }
  0x53   : > { %8333 = shalt.err (!%p8330_p11)
}
  0x54   : > { %s12820_s9 = sld [smem:[#allocation178_spill]]  ;;  %s8492_s0 = smov [#allocation13]  }
  0x55   : > { %s554_s25 = sshll.u32 %s8492_s0, 4  ;;  %s555_s25 = int_to_ptr.vmem [resolvable:$true] %s554_s25 }
  0x56   : > { %s8345_s1 = scalar_lea.vmem %s555_s25, 2048  ;;  %p8353_p2 = scmp.lt.s32.totalorder %s555_s25, %s555_s25 }
  0x57   : > { %p8346_p12 = scmp.ne.s32.totalorder %s555_s25, %s8345_s1  ;;  %p8354_p4 = scmp.lt.s32.totalorder %s8345_s1, %s8345_s1 }
  0x59   : > { %p8348_p13 = pnand %p8346_p12, %p8643_p6  ;;  %p8355_p7 = por %p8354_p4, %p8353_p2 }
  0x5a   : > { %7469 = dma.hbm_to_vmem [thread:$0]  (!%p8633_p5), %s12820_s9, 4096, %s525_s22, [#allocation9], %s12818_s16, %s12818_s16, %s12817_s19  }
  0x5b   : > { %p8349_p0 = pneg %p8348_p13 }
  0x5d   : > { %p8356_p8 = pnand %p8355_p7, %p8349_p0 }
  0x5f   : > { %8359 = shalt.err (!%p8356_p8)
}
  0x60   : > { %s12558_s2 = smov 64   ;;  %s12559_s5 = smov 4  }
  0x61   : > { %7475 = dma.hbm_to_vmem [thread:$0]  (!%p8633_p5), %s12546_s13, 2048, %s555_s25, [#allocation12], %s12558_s2, %s12558_s2, %s12559_s5  }
  0x62   : > { %s587_s18 = sshll.u32 %s12550_s17, 4  ;;  %s8495_s0 = smov [#allocation14]   ;;  %s588_s18 = int_to_ptr.vmem [resolvable:$true] %s587_s18 }
  0x63   : > { %s570_s1 = sshll.u32 %s8495_s0, 4  ;;  %s571_s1 = int_to_ptr.vmem [resolvable:$true] %s570_s1 }
  0x64   : > { %s8371_s6 = scalar_lea.vmem %s571_s1, 1024  ;;  %p8379_p12 = scmp.lt.s32.totalorder %s571_s1, %s571_s1 }
  0x65   : > { %p8372_p9 = scmp.ne.s32.totalorder %s571_s1, %s8371_s6  ;;  %p8380_p13 = scmp.lt.s32.totalorder %s8371_s6, %s8371_s6 }
  0x67   : > { %p8374_p10 = pnand %p8372_p9, %p8643_p6  ;;  %p8381_p0 = por %p8380_p13, %p8379_p12 }
  0x69   : > { %p8375_p11 = pneg %p8374_p10 }
  0x6b   : > { %p8382_p2 = pnand %p8381_p0, %p8375_p11 }
  0x6d   : > { %8385 = shalt.err (!%p8382_p2)
}
  0x6e   : > { %7478 = dma.hbm_to_vmem [thread:$0]  (!%p8633_p5), %s12548_s15, 1024, %s571_s1, [#allocation15], %s12558_s2, %s12558_s2, %s12559_s5  }
  0x6f   : > { %s8386_s19 = scalar_lea.vmem %s588_s18, 16  ;;  %p8394_p9 = scmp.lt.s32.totalorder %s588_s18, %s588_s18 }
  0x70   : > { %p8387_p4 = scmp.ne.s32.totalorder %s588_s18, %s8386_s19  ;;  %p8395_p10 = scmp.lt.s32.totalorder %s8386_s19, %s8386_s19 }
  0x72   : > { %p8389_p7 = pnand %p8387_p4, %p8643_p6  ;;  %p8396_p12 = por %p8395_p10, %p8394_p9 }
  0x74   : > { %p8390_p8 = pneg %p8389_p7 }
  0x76   : > { %p8397_p11 = pnand %p8396_p12, %p8390_p8 }
  0x78   : > { %8400 = shalt.err (!%p8397_p11)
}
  0x79   : > { %s8496_s6 = smov [#allocation16]   ;;  %s8732_s26 = sadd.s32 1, %s8483_s30  }
  0x7a   : > { %7481 = dma.vmem_to_smem (!%p8633_p5), %s588_s18, 16, %s8496_s6, [#allocation4]  }
  0x7b   : > { %s95_s16 = sadd.s32 1, %s8479_s29  ;;  %s92_s24 = ssub.s32 %s8483_s30, %s8732_s26 }
  0x7c   : > { %p102_p6 = scmp.ne.s32.totalorder %s8479_s29, %s8475_s28  ;;  %p93_p13 = scmp.eq.s32.totalorder %s92_s24, 0 }
  0x7d   : > { %p103_p0 = scmp.eq.s32.totalorder %s8483_s30, 0  ;;  %p108_p2 = scmp.ne.s32.totalorder %s8475_s28, %s8471_s27 }
  0x7e   : > { %p7494_p4 = scmp.lt.s32.totalorder %s8483_s30, 2  ;;  %s616_s1 = sand.u32 1, %s8479_s29  }
  0x7f   : > { %s8744_s23 = scalar_select %p93_p13, %s8479_s29, %s95_s16  }
  0x80   : > { %p104_p7 = por %p103_p0, %p102_p6  ;;  %p8748_p8 = por %p8620_p1, %p108_p2 }
  0x81   : > { %s7166_s18 = sshll.u32 %s8483_s30, 10  ;;  %s6994_s25 = sshll.u32 %s616_s1, 6 }
  0x82   : > { %s12821_s0 = scalar_select %p8748_p8, 1, 0 }
  0x83   : > { %s12822_s6 = sld [smem:[#allocation174_spill]]  ;;  %s620_s27 = scalar_lea.vmem [#allocation2], %s6994_s25 }
  0x84   : > { %s627_s16 = sshll.u32 %s620_s27, 4  ;;  %p8759_p5 = pnand %p7494_p4, %p104_p7  ;;  %s8763_s16 = int_to_ptr.vmem [resolvable:$true] %s627_s16 }
  0x85   : > { %s8765_s5 = scalar_lea.sflag [#allocation3], %s616_s1 }
  0x86   : > { %p8403_p10 = pneg %p8759_p5 }
  0x89   : > { %s8757_s2 = scalar_lea.hbm %s12822_s6, %s7166_s18  ;;  %s8406_s25 = scalar_lea.hbm %s12822_s6, 2048 }
  0x8a   : > { %s8401_s8 = scalar_lea.hbm %s8757_s2, 1024  ;;  %p8407_p6 = scmp.lt.s32.totalorder %s8757_s2, %s12822_s6 }
  0x8b   : > { %p8402_p9 = scmp.ne.s32.totalorder %s8757_s2, %s8401_s8  ;;  %p8408_p13 = scmp.lt.s32.totalorder %s8406_s25, %s8401_s8 }
  0x8d   : > { %p8404_p12 = pnand %p8403_p10, %p8402_p9  ;;  %p8409_p0 = por %p8408_p13, %p8407_p6 }
  0x8f   : > { %p8405_p11 = pneg %p8404_p12 }
  0x91   : > { %p8410_p2 = pnand %p8409_p0, %p8405_p11 }
  0x93   : > { %8413 = shalt.err (!%p8410_p2)
}
  0x94   : > { %s8414_s1 = scalar_lea.vmem %s8763_s16, 1024  ;;  %s8497_s9 = smov [#allocation2]  }
  0x95   : > { %p8415_p4 = scmp.ne.s32.totalorder %s8763_s16, %s8414_s1  ;;  %s8419_s10 = sshll.u32 %s8497_s9, 4  ;;  %s8420_s10 = int_to_ptr.vmem [resolvable:$false] %s8419_s10 }
  0x96   : > { %s8421_s18 = scalar_lea.vmem %s8420_s10, 2048  ;;  %p8422_p12 = scmp.lt.s32.totalorder %s8763_s16, %s8420_s10 }
  0x97   : > { %p8417_p7 = pnand %p8415_p4, %p8403_p10  ;;  %p8423_p1 = scmp.lt.s32.totalorder %s8421_s18, %s8414_s1 }
  0x99   : > { %p8418_p9 = pneg %p8417_p7  ;;  %p8424_p8 = por %p8423_p1, %p8422_p12 }
  0x9b   : > { %p8425_p3 = pnand %p8424_p8, %p8418_p9 }
  0x9d   : > { %8428 = shalt.err (!%p8425_p3)
}
  0x9e   : > { %s12824_s8 = smov 4   ;;  %s12825_s22 = smov 64  }
  0x9f   : > { %7485 = dma.hbm_to_vmem [thread:$0]  (!%p8759_p5), %s8757_s2, 1024, %s8763_s16, %s8765_s5, %s12825_s22, %s12825_s22, %s12824_s8  }
  0xa0   : > { %p12826_p10 = scmp.ne.s32.totalorder %s12811_s21, 0 }
  0xa2   : > { %657 = sbr.rel (%p12826_p10) target bundleno = 5873 (0x16f1), region = 92 }
  0xa7   : > { %s659_s9 = sand.u32 1, %s8475_s28   ;;  %p12827_p1 = scmp.ne.s32.totalorder %s12821_s0, 0 }
  0xa8   : > { %s6998_s10 = sshll.u32 %s659_s9, 6  ;;  %s660_s25 = scalar_lea.sflag [#allocation3], %s659_s9 }
  0xa9   : > { %s8792_s19 = scalar_lea.vmem [#allocation2], %s6998_s10 }
  0xaa   : > { %8446 = dma.done.wait (%p12827_p1), %s660_s25, 1024  }
  0xab   : > { %8448 = vsyncadd (%p12827_p1), %s660_s25, 4294966272  ;;  %p12828_p3 = scmp.ne.s32.totalorder %s12810_s20, 0 }
  0xad   : > { %8450 = dma.done.wait (%p12828_p3), [#allocation6], 3072  }
  0xae   : > { %8452 = vsyncadd (%p12828_p3), [#allocation6], 4294964224 }
  0xaf   : > { %8454 = dma.done.wait (%p12828_p3), [#allocation9], 8192  }
  0xb0   : > { %8456 = vsyncadd (%p12828_p3), [#allocation9], 4294959104 }
  0xb1   : > { %8458 = dma.done.wait (%p12828_p3), [#allocation12], 2080  }
  0xb2   : > { %8460 = vsyncadd (%p12828_p3), [#allocation12], 4294965216 }
  0xb3   : > { %8462 = dma.done.wait (%p12828_p3), [#allocation15], 1024  }
  0xb4   : > { %8464 = vsyncadd (%p12828_p3), [#allocation15], 4294966272 }
  0xb5   : > { %8466 = dma.done.wait (%p12828_p3), [#allocation4], 16  }
  0xb6   : > { %8468 = vsyncadd (%p12828_p3), [#allocation4], 4294967280 }
  0xb7   : > { %700 = sfence }
  0xb8   : > { %v7552_v0 = vld [vmem:[#allocation7 + $0x34] ss:$8 sps:$4 sm:$0xff]   ;;  %s12829_s5 = sadd.s32 4294967295, %s8483_s30   ;;  %v7554_v1 = vld [vmem:[#allocation7 + $0x30] ss:$8 sps:$4 sm:$0xff]   ;;  %v12564_v2 = vmov 0   ;;  %v827_v17 = vlaneseq }
  0xb9   : > { %s7007_s21 = sshll.u32 %s12829_s5, 4  ;;  %974 = vmatprep.mubr.bf16.mxu0 %v12564_v2  ;;  %1502 = vmatprep.mubr.bf16.mxu1 %v12564_v2  ;;  %v7555_v3 = vld [vmem:[#allocation7 + $0x24] ss:$8 sps:$4 sm:$0xff]   ;;  %v7557_v4 = vld [vmem:[#allocation7 + $0x20] ss:$8 sps:$4 sm:$0xff]   ;;  %s12830_s0 = sld [smem:[#allocation172_spill]] }
  0xba   : > { %p770_p8 = scmp.lt.s32.totalorder %s7007_s21, 31  ;;  %950 = vmatprep.subr.bf16.mxu0 %v7552_v0  ;;  %7551 = vset.pattern.permute.xlu1 %v12564_v2  ;;  %v7558_v5 = vld [vmem:[#allocation7 + $0x14] ss:$8 sps:$4 sm:$0xff]   ;;  %v7560_v6 = vld [vmem:[#allocation7 + $0x10] ss:$8 sps:$4 sm:$0xff]   ;;  %vm917_vm0 = vcmask 523264  }
  0xbb   : > { %951 = vmatpush1.bf16.msra.mxu0 %v7554_v1  ;;  %7550 = vset.pattern.permute.xlu0 %v12564_v2  ;;  %v7561_v7 = vld [vmem:[#allocation7 + $0x4] ss:$8 sps:$4 sm:$0xff]   ;;  %v7563_v8 = vld [vmem:[#allocation7] ss:$8 sps:$4 sm:$0xff]   ;;  %v828_v18 = vshrl.u32 %v827_v17, 7  ;;  %s8499_s8 = smov 127  }
  0xbc   : > { %s13356_s21 = smov (!%p770_p8, %s7007_s21), 31  ;;  %952 = vmatprep.subr.bf16.mxu0 %v7555_v3  ;;  %v825_v20 = vld [vmem:[%s12540_s7] sm:$0x3]  ;;  %s7044_s22 = sld [smem:[#allocation16 + $0x2]] }
  0xbd   : > { %s7008_s30 = sshll.u32 %s13356_s21, 2  ;;  %v8855_v19 = vsub.s32 0, %v828_v18  ;;  %v8901_v60 = vsub.s32 1, %v828_v18  ;;  %s7045_s9 = sld [smem:[#allocation16 + $0x3]] }
  0xbe   : > { %s9267_s10 = sshll.u32 %s13356_s21, 3  ;;  %s7046_s25 = sld [smem:[#allocation16 + $0x4]] }
  0xbf   : > { %s8830_s16 = scalar_lea.vmem %s12830_s0, %s7008_s30  ;;  %953 = vmatpush1.bf16.msra.mxu0 %v7557_v4  ;;  %12831 = vst [vmem:[#allocation23_spill] sm:$0xff] %v8855_v19  ;;  %v8861_v21 = vrot.slane %v825_v20, %v8855_v19  ;;  %12836 = vst [vmem:[#allocation28_spill] sm:$0xff] %v8901_v60  ;;  %v8904_v63 = vrot.slane %v825_v20, %v8901_v60  ;;  %s7047_s5 = sld [smem:[#allocation16 + $0x5]] }
  0xc0   : > { %954 = vmatprep.subr.bf16.mxu0 %v7558_v5  ;;  %v7564_v9 = vld [vmem:[%s8830_s16] sm:$0xff]   ;;  %v7565_v10 = vld [vmem:[%s8830_s16 + $0x8] sm:$0xff]   ;;  %v7566_v11 = vld [vmem:[%s8830_s16 + $0x10] sm:$0xff]   ;;  %s9273_s2 = scalar_lea.vmem %s12536_s3, %s9267_s10  ;;  %s9279_s24 = scalar_lea.vmem %s12537_s4, %s9267_s10 }
  0xc1   : > { %v7567_v12 = vld [vmem:[%s8830_s16 + $0x18] sm:$0xff]   ;;  %v7568_v13 = vld [vmem:[%s8830_s16 + $0x20] sm:$0xff]   ;;  %v7569_v14 = vld [vmem:[%s8830_s16 + $0x28] sm:$0xff]   ;;  %s9283_s21 = sld [smem:[#allocation16]] }
  0xc2   : > { %v7570_v15 = vld [vmem:[%s8830_s16 + $0x30] sm:$0xff]   ;;  %v7571_v16 = vld [vmem:[%s8830_s16 + $0x38] sm:$0xff]   ;;  %s12869_s18 = sld [smem:[#allocation173_spill]] }
  0xc3   : > { %955 = vmatpush1.bf16.msra.mxu0 %v7560_v6  ;;  %s7041_s16 = sld [smem:[#allocation16 + $0x6]] }
  0xc4   : > { %956 = vmatprep.subr.bf16.mxu0 %v7561_v7 }
  0xc7   : > { %957 = vmatpush1.bf16.msra.mxu0 %v7563_v8 }
  0xc8   : > { %s9295_s30 = scalar_lea.vmem %s12869_s18, %s9267_s10  ;;  %s13349_s18 = sld [smem:[#allocation180_spill]] }
  0xca   : > { %7033 = vmatmul.mubr.msk.bf16.vlgmr.msra.gmra.mxu0 %vm917_vm0, %v7564_v9 }
  0xcb   : > { %984 = vmatprep.mubr.bf16.mxu0 %v12564_v2 }
  0xd2   : > { %7034 = vmatmul.mubr.msk.bf16.gmra.mxu0 %vm917_vm0, %v7565_v10 }
  0xd3   : > { %994 = vmatprep.mubr.bf16.mxu0 %v12564_v2 }
  0xda   : > { %7035 = vmatmul.mubr.msk.bf16.gmra.mxu0 %vm917_vm0, %v7566_v11 }
  0xdb   : > { %1004 = vmatprep.mubr.bf16.mxu0 %v12564_v2 }
  0xe2   : > { %7036 = vmatmul.mubr.msk.bf16.gmra.mxu0 %vm917_vm0, %v7567_v12 }
  0xe3   : > { %1014 = vmatprep.mubr.bf16.mxu0 %v12564_v2 }
  0xea   : > { %7037 = vmatmul.mubr.msk.bf16.gmra.mxu0 %vm917_vm0, %v7568_v13 }
  0xeb   : > { %1024 = vmatprep.mubr.bf16.mxu0 %v12564_v2 }
  0xf2   : > { %7038 = vmatmul.mubr.msk.bf16.gmra.mxu0 %vm917_vm0, %v7569_v14 }
  0xf3   : > { %1034 = vmatprep.mubr.bf16.mxu0 %v12564_v2 }
  0xfa   : > { %7039 = vmatmul.mubr.msk.bf16.gmra.mxu0 %vm917_vm0, %v7570_v15 }
  0xfb   : > { %1044 = vmatprep.mubr.bf16.mxu0 %v12564_v2 }
 0x102   : > { %7040 = vmatmul.mubr.msk.bf16.gmra.mxu0 %vm917_vm0, %v7571_v16 }
 0x18a   : > { %v976_v22 = vpop.f32.mrf.mxu0 }
 0x18b   : > { %v977_v24 = vadd.f32 %v976_v22, %v8861_v21 }
 0x18c   : > { %v8863_v23 = vpop.f32.mrf.mxu0 }
 0x18d   : > { %v8871_v29 = vmax.f32 %v977_v24, 0.0 }
 0x18e   : > { %v980_v25 = vpop.f32.mrf.mxu0 }
 0x18f   : > { %v981_v26 = vadd.f32 %v980_v25, %v8861_v21  ;;  %12833 = vst [vmem:[#allocation25_spill] sm:$0xff] %v8871_v29 }
 0x190   : > { %v8867_v27 = vpop.f32.mrf.mxu0 }
 0x191   : > { %v8869_v28 = vmax.f32 %v981_v26, 0.0 }
 0x192   : > { %v986_v30 = vpop.f32.mrf.mxu0 }
 0x193   : > { %12832 = vst [vmem:[#allocation24_spill] sm:$0xff] %v8869_v28  ;;  %v8877_v32 = vpack.c.bf16 %v8869_v28, %v8871_v29  ;;  %v987_v33 = vadd.f32 %v986_v30, %v8861_v21 }
 0x194   : > { %v8873_v31 = vpop.f32.mrf.mxu0 }
 0x195   : > { %v8885_v38 = vmax.f32 %v987_v33, 0.0 }
 0x196   : > { %v990_v34 = vpop.f32.mrf.mxu0 }
 0x197   : > { %v991_v35 = vadd.f32 %v990_v34, %v8861_v21  ;;  %12835 = vst [vmem:[#allocation27_spill] sm:$0xff] %v8885_v38 }
 0x198   : > { %v8881_v36 = vpop.f32.mrf.mxu0 }
 0x199   : > { %v8883_v37 = vmax.f32 %v991_v35, 0.0 }
 0x19a   : > { %v8887_v39 = vpop.f32.mrf.mxu0 }
 0x19b   : > { %12834 = vst [vmem:[#allocation26_spill] sm:$0xff] %v8883_v37  ;;  %v8893_v41 = vpack.c.bf16 %v8883_v37, %v8885_v38 }
 0x19c   : > { %v8889_v40 = vpop.f32.mrf.mxu0 }
 0x19e   : > { %v8895_v42 = vpop.f32.mrf.mxu0 }
 0x1a0   : > { %v8897_v43 = vpop.f32.mrf.mxu0 }
 0x1a2   : > { %v8899_v44 = vpop.f32.mrf.mxu0 }
 0x1a4   : > { %v1008_v45 = vpop.f32.mrf.mxu0 }
 0x1a6   : > { %v1010_v46 = vpop.f32.mrf.mxu0 }
 0x1a8   : > { %v1012_v47 = vpop.f32.mrf.mxu0 }
 0x1aa   : > { %v1016_v48 = vpop.f32.mrf.mxu0 }
 0x1ac   : > { %v1018_v49 = vpop.f32.mrf.mxu0 }
 0x1ae   : > { %v1020_v50 = vpop.f32.mrf.mxu0 }
 0x1b0   : > { %v1022_v51 = vpop.f32.mrf.mxu0 }
 0x1b1   : > { %v1023_v26 = vadd.f32 %v1022_v51, %v8904_v63  ;;  %v1021_v51 = vadd.f32 %v1020_v50, %v8861_v21  ;;  %v1009_v50 = vadd.f32 %v1008_v45, %v8904_v63 }
 0x1b2   : > { %v1026_v52 = vpop.f32.mrf.mxu0 }
 0x1b3   : > { %v1027_v34 = vadd.f32 %v1026_v52, %v8861_v21  ;;  %v1013_v52 = vadd.f32 %v1012_v47, %v8904_v63  ;;  %v1011_v47 = vadd.f32 %v1010_v46, %v8861_v21  ;;  %v999_v46 = vadd.f32 %v8889_v40, %v8904_v63 }
 0x1b4   : > { %v1028_v53 = vpop.f32.mrf.mxu0 }
 0x1b5   : > { %v1029_v17 = vadd.f32 %v1028_v53, %v8904_v63  ;;  %v1019_v53 = vadd.f32 %v1018_v49, %v8904_v63  ;;  %v1017_v49 = vadd.f32 %v1016_v48, %v8861_v21  ;;  %v1003_v48 = vadd.f32 %v8897_v43, %v8904_v63 }
 0x1b6   : > { %v1030_v54 = vpop.f32.mrf.mxu0  ;;  %v1001_v43 = vadd.f32 %v8895_v42, %v8861_v21  ;;  %v989_v42 = vadd.f32 %v8873_v31, %v8904_v63 }
 0x1b7   : > { %v1031_v22 = vadd.f32 %v1030_v54, %v8861_v21  ;;  %v8952_v54 = vmax.f32 %v1029_v17, 0.0 }
 0x1b8   : > { %v1032_v55 = vpop.f32.mrf.mxu0 }
 0x1b9   : > { %v1033_v11 = vadd.f32 %v1032_v55, %v8904_v63  ;;  %12846 = vst [vmem:[#allocation38_spill] sm:$0xff] %v8952_v54  ;;  %v8956_v55 = vmax.f32 %v1031_v22, 0.0 }
 0x1ba   : > { %v1036_v56 = vpop.f32.mrf.mxu0 }
 0x1bb   : > { %v1037_v15 = vadd.f32 %v1036_v56, %v8861_v21  ;;  %v8940_v30 = vmax.f32 %v1033_v11, 0.0  ;;  %12847 = vst [vmem:[#allocation39_spill] sm:$0xff] %v8956_v55 }
 0x1bc   : > { %v1038_v57 = vpop.f32.mrf.mxu0 }
 0x1bd   : > { %v1039_v7 = vadd.f32 %v1038_v57, %v8904_v63  ;;  %12844 = vst [vmem:[#allocation36_spill] sm:$0xff] %v8940_v30  ;;  %v8948_v35 = vmax.f32 %v1037_v15, 0.0  ;;  %v8963_v57 = vmax.f32 %v1023_v26, 0.0  ;;  %v9025_v15 = vmax.f32 %v999_v46, 0.0  ;;  %v7636_v46 = vld [vmem:[#allocation10 + $0x54] ss:$8 sps:$4 sm:$0xff]  }
 0x1be   : > { %v1040_v58 = vpop.f32.mrf.mxu0  ;;  %v979_v26 = vadd.f32 %v8863_v23, %v8904_v63 }
 0x1bf   : > { %v1041_v9 = vadd.f32 %v1040_v58, %v8861_v21  ;;  %v8926_v18 = vmax.f32 %v1039_v7, 0.0  ;;  %12845 = vst [vmem:[#allocation37_spill] sm:$0xff] %v8948_v35  ;;  %12848 = vst [vmem:[#allocation40_spill] sm:$0xff] %v8963_v57  ;;  %v8967_v58 = vpack.c.bf16 %v8940_v30, %v8952_v54  ;;  %v1278_v30 = vld [vmem:[%s9273_s2 + $0x20] sm:$0xff] }
 0x1c0   : > { %v1042_v59 = vpop.f32.mrf.mxu0  ;;  %12858 = vst [vmem:[#allocation50_spill] sm:$0xff] %v9025_v15 }
 0x1c1   : > { %v1043_v1 = vadd.f32 %v1042_v59, %v8904_v63  ;;  %12842 = vst [vmem:[#allocation34_spill] sm:$0xff] %v8926_v18  ;;  %v8933_v24 = vmax.f32 %v1041_v9, 0.0  ;;  %v8970_v59 = vmax.f32 %v1027_v34, 0.0  ;;  %v997_v9 = vadd.f32 %v8887_v39, %v8861_v21 }
 0x1c2   : > { %v1046_v61 = vpop.f32.mrf.mxu0  ;;  %v9047_v34 = vmax.f32 %v989_v42, 0.0  ;;  %v7639_v42 = vld [vmem:[#allocation10 + $0x44] ss:$8 sps:$4 sm:$0xff]  }
 0x1c3   : > { %v1047_v5 = vadd.f32 %v1046_v61, %v8861_v21  ;;  %v8916_v12 = vmax.f32 %v1043_v1, 0.0  ;;  %12843 = vst [vmem:[#allocation35_spill] sm:$0xff] %v8933_v24  ;;  %v8960_v56 = vpack.c.bf16 %v8933_v24, %v8948_v35  ;;  %12849 = vst [vmem:[#allocation41_spill] sm:$0xff] %v8970_v59  ;;  %v8974_v61 = vmax.f32 %v1019_v53, 0.0 }
 0x1c4   : > { %v1048_v62 = vpop.f32.mrf.mxu0  ;;  %v8986_v1 = vmax.f32 %v1013_v52, 0.0  ;;  %v9042_v31 = vmax.f32 %v997_v9, 0.0  ;;  %12862 = vst [vmem:[#allocation54_spill] sm:$0xff] %v9047_v34  ;;  %v9061_v52 = vmax.f32 %v979_v26, 0.0  ;;  %v7634_v9 = vld [vmem:[#allocation10 + $0x50] ss:$8 sps:$4 sm:$0xff]  }
 0x1c5   : > { %v1049_v3 = vadd.f32 %v1048_v62, %v8904_v63  ;;  %12838 = vst [vmem:[#allocation30_spill] sm:$0xff] %v8916_v12  ;;  %v8923_v16 = vmax.f32 %v1047_v5, 0.0  ;;  %v8945_v33 = vpack.c.bf16 %v8916_v12, %v8926_v18  ;;  %12850 = vst [vmem:[#allocation42_spill] sm:$0xff] %v8974_v61  ;;  %v8978_v62 = vmax.f32 %v1021_v51, 0.0  ;;  %v7582_v26 = vld [vmem:[#allocation8 + $0x54] ss:$8 sps:$4 sm:$0xff]  }
 0x1c6   : > { %v1050_v0 = vpop.f32.mrf.mxu0  ;;  %12852 = vst [vmem:[#allocation44_spill] sm:$0xff] %v8986_v1  ;;  %v8990_v45 = vpack.c.bf16 %v8963_v57, %v8974_v61  ;;  %v8999_v5 = vmax.f32 %v1009_v50, 0.0  ;;  %12861 = vst [vmem:[#allocation53_spill] sm:$0xff] %v9042_v31  ;;  %v7633_v50 = vld [vmem:[#allocation10 + $0x64] ss:$8 sps:$4 sm:$0xff]  }
 0x1c7   : > { %v1051_v4 = vadd.f32 %v1050_v0, %v8861_v21  ;;  %v8918_v13 = vmax.f32 %v1049_v3, 0.0  ;;  %12841 = vst [vmem:[#allocation33_spill] sm:$0xff] %v8923_v16  ;;  %12851 = vst [vmem:[#allocation43_spill] sm:$0xff] %v8978_v62  ;;  %v8982_v0 = vpack.c.bf16 %v8956_v55, %v8970_v59  ;;  %v1007_v3 = vadd.f32 %v8899_v44, %v8861_v21  ;;  %v1131_v55 = vld [vmem:[%s9295_s30 + $0x50] sm:$0xff]  ;;  %v1279_v61 = vld [vmem:[%s9273_s2 + $0x28] sm:$0xff] }
 0x1c8   : > { %v1052_v6 = vpop.f32.mrf.mxu0  ;;  %12854 = vst [vmem:[#allocation46_spill] sm:$0xff] %v8999_v5  ;;  %v993_v44 = vadd.f32 %v8881_v36, %v8904_v63  ;;  %v9016_v40 = vpack.c.bf16 %v8986_v1, %v8999_v5  ;;  %v9028_v36 = vmax.f32 %v1001_v43, 0.0  ;;  %v983_v21 = vadd.f32 %v8867_v27, %v8904_v63  ;;  %12864 = vst [vmem:[#allocation56_spill] sm:$0xff] %v9061_v52  ;;  %v7573_v43 = vld [vmem:[#allocation8 + $0x70] ss:$8 sps:$4 sm:$0xff]  }
 0x1c9   : > { %v1053_v8 = vadd.f32 %v1052_v6, %v8904_v63  ;;  %v8913_v10 = vmax.f32 %v1051_v4, 0.0  ;;  %12839 = vst [vmem:[#allocation31_spill] sm:$0xff] %v8918_v13  ;;  %v8994_v4 = vmax.f32 %v1017_v49, 0.0  ;;  %v9004_v6 = vmax.f32 %v1011_v47, 0.0  ;;  %v7628_v63 = vld [vmem:[#allocation10 + $0x70] ss:$8 sps:$4 sm:$0xff]  }
 0x1ca   : > { %v9020_v11 = vmax.f32 %v1007_v3, 0.0  ;;  %12859 = vst [vmem:[#allocation51_spill] sm:$0xff] %v9028_v36  ;;  %v9036_v39 = vmax.f32 %v993_v44, 0.0  ;;  %v9052_v27 = vpack.c.bf16 %v9028_v36, %v9042_v31  ;;  %v9054_v53 = vmax.f32 %v983_v21, 0.0  ;;  %v7630_v49 = vld [vmem:[#allocation10 + $0x74] ss:$8 sps:$4 sm:$0xff]  }
 0x1cb   : > { %12837 = vst [vmem:[#allocation29_spill] sm:$0xff] %v8913_v10  ;;  %v8920_v14 = vmax.f32 %v1053_v8, 0.0  ;;  %v8937_v25 = vpack.c.bf16 %v8913_v10, %v8923_v16  ;;  %12853 = vst [vmem:[#allocation45_spill] sm:$0xff] %v8994_v4  ;;  %v9008_v7 = vpack.c.bf16 %v8978_v62, %v8994_v4  ;;  %v9012_v8 = vmax.f32 %v1003_v48, 0.0  ;;  %v7575_v47 = vld [vmem:[#allocation8 + $0x74] ss:$8 sps:$4 sm:$0xff]   ;;  %1823 = vmatprep.subr.bf16.mxu0 %v7630_v49 }
 0x1cc   : > { %12855 = vst [vmem:[#allocation47_spill] sm:$0xff] %v9004_v6  ;;  %12857 = vst [vmem:[#allocation49_spill] sm:$0xff] %v9020_v11  ;;  %v9032_v17 = vpack.c.bf16 %v9004_v6, %v9020_v11  ;;  %v9058_v51 = vpack.c.bf16 %v9036_v39, %v9047_v34  ;;  %v9066_v23 = vpack.c.bf16 %v9054_v53, %v9061_v52  ;;  %1824 = vmatpush1.bf16.msra.mxu0 %v7628_v63  ;;  %v7631_v48 = vld [vmem:[#allocation10 + $0x60] ss:$8 sps:$4 sm:$0xff]   ;;  %v7578_v44 = vld [vmem:[#allocation8 + $0x64] ss:$8 sps:$4 sm:$0xff]  }
 0x1cd   : > { %12840 = vst [vmem:[#allocation32_spill] sm:$0xff] %v8920_v14  ;;  %v8930_v20 = vpack.c.bf16 %v8920_v14, %v8918_v13  ;;  %12856 = vst [vmem:[#allocation48_spill] sm:$0xff] %v9012_v8  ;;  %v9040_v22 = vpack.c.bf16 %v9012_v8, %v9025_v15  ;;  %v7572_v3 = vld [vmem:[%s8792_s19] sm:$0xff]   ;;  %1825 = vmatprep.subr.bf16.mxu0 %v7633_v50  ;;  %v7579_v49 = vld [vmem:[%s8792_s19 + $0x8] sm:$0xff]   ;;  %vm1163_vm2 = vcmp.gt.f32.partialorder %v1131_v55, 0.0 }
 0x1ce   : > { %12860 = vst [vmem:[#allocation52_spill] sm:$0xff] %v9036_v39  ;;  %12863 = vst [vmem:[#allocation55_spill] sm:$0xff] %v9054_v53  ;;  %v7576_v21 = vld [vmem:[#allocation8 + $0x60] ss:$8 sps:$4 sm:$0xff]   ;;  %v7642_v50 = vld [vmem:[#allocation10 + $0x34] ss:$8 sps:$4 sm:$0xff]  }
 0x1cf   : > { %1470 = vmatprep.subr.bf16.mxu1 %v8930_v20  ;;  %v7637_v63 = vld [vmem:[#allocation10 + $0x40] ss:$8 sps:$4 sm:$0xff]   ;;  %v9385_v55 = vld [vmem:[%s9295_s30 + $0x10] sm:$0xff] }
 0x1d0   : > { %1471 = vmatpush1.bf16.msra.mxu1 %v8937_v25  ;;  %1826 = vmatpush1.bf16.msra.mxu0 %v7631_v48  ;;  %v7585_v48 = vld [vmem:[#allocation8 + $0x44] ss:$8 sps:$4 sm:$0xff]   ;;  %vm1155_vm4 = vcmp.gt.f32.partialorder %v9385_v55, 0.0  ;;  %v1280_v8 = vld [vmem:[%s9273_s2 + $0x30] sm:$0xff] }
 0x1d1   : > { %1472 = vmatprep.subr.bf16.mxu1 %v8945_v33  ;;  %1827 = vmatprep.subr.bf16.mxu0 %v7636_v46  ;;  %v7645_v46 = vld [vmem:[#allocation10 + $0x24] ss:$8 sps:$4 sm:$0xff]   ;;  %v1296_v36 = vld [vmem:[%s9279_s24 + $0x30] sm:$0xff] }
 0x1d2   : > { %v1295_v4 = vld [vmem:[%s9279_s24 + $0x28] sm:$0xff] }
 0x1d4   : > { %1473 = vmatpush1.bf16.msra.mxu1 %v8960_v56  ;;  %1828 = vmatpush1.bf16.msra.mxu0 %v7634_v9  ;;  %v7643_v9 = vld [vmem:[#allocation10 + $0x20] ss:$8 sps:$4 sm:$0xff]  }
 0x1d5   : > { %1474 = vmatprep.subr.bf16.mxu1 %v8967_v58  ;;  %1829 = vmatprep.subr.bf16.mxu0 %v7639_v42  ;;  %v7586_v42 = vld [vmem:[%s8792_s19 + $0x10] sm:$0xff]  }
 0x1d8   : > { %1475 = vmatpush1.bf16.msra.mxu1 %v8982_v0  ;;  %1830 = vmatpush1.bf16.msra.mxu0 %v7637_v63  ;;  %v7592_v63 = vld [vmem:[#allocation8 + $0x24] ss:$8 sps:$4 sm:$0xff]  }
 0x1d9   : > { %1476 = vmatprep.subr.bf16.mxu1 %v8990_v45  ;;  %1831 = vmatprep.subr.bf16.mxu0 %v7642_v50  ;;  %v7651_v50 = vld [vmem:[#allocation10 + $0x4] ss:$8 sps:$4 sm:$0xff]  }
 0x1dc   : > { %1477 = vmatpush1.bf16.msra.mxu1 %v9008_v7 }
 0x1dd   : > { %1478 = vmatprep.subr.bf16.mxu1 %v9016_v40 }
 0x1e0   : > { %1479 = vmatpush1.bf16.msra.mxu1 %v9032_v17 }
 0x1e1   : > { %1480 = vmatprep.subr.bf16.mxu1 %v9040_v22 }
 0x1e4   : > { %1481 = vmatpush1.bf16.msra.mxu1 %v9052_v27 }
 0x1e5   : > { %1482 = vmatprep.subr.bf16.mxu1 %v9058_v51 }
 0x1e8   : > { %1483 = vmatpush1.bf16.msra.mxu1 %v8893_v41 }
 0x1e9   : > { %1484 = vmatprep.subr.bf16.mxu1 %v9066_v23 }
 0x1ec   : > { %1485 = vmatpush1.bf16.msra.mxu1 %v8877_v32 }
 0x1ed   : > { %2096 = vmatprep.subr.bf16.mxu1 %v7575_v47  ;;  %v7580_v47 = vld [vmem:[#allocation8 + $0x50] ss:$8 sps:$4 sm:$0xff]  }
 0x1ef   : > { %1503 = vmatmul.mubr.bf16.vlgmr.msra.gmra.mxu1 %v7572_v3  ;;  %v7640_v3 = vld [vmem:[#allocation10 + $0x30] ss:$8 sps:$4 sm:$0xff]  }
 0x1f0   : > { %2097 = vmatpush1.bf16.msra.mxu1 %v7573_v43  ;;  %1512 = vmatprep.mubr.bf16.mxu1 %v12564_v2  ;;  %v7583_v43 = vld [vmem:[#allocation8 + $0x40] ss:$8 sps:$4 sm:$0xff]  }
 0x1f1   : > { %2098 = vmatprep.subr.bf16.mxu1 %v7578_v44  ;;  %v7589_v44 = vld [vmem:[#allocation8 + $0x34] ss:$8 sps:$4 sm:$0xff]   ;;  %1832 = vmatpush1.bf16.msra.mxu0 %v7640_v3  ;;  %v7649_v3 = vld [vmem:[#allocation10] ss:$8 sps:$4 sm:$0xff]  }
 0x1f2   : > { %1833 = vmatprep.subr.bf16.mxu0 %v7645_v46  ;;  %v7593_v46 = vld [vmem:[%s8792_s19 + $0x18] sm:$0xff]  }
 0x1f4   : > { %2099 = vmatpush1.bf16.msra.mxu1 %v7576_v21  ;;  %v7648_v21 = vld [vmem:[#allocation10 + $0x14] ss:$8 sps:$4 sm:$0xff]  }
 0x1f5   : > { %2100 = vmatprep.subr.bf16.mxu1 %v7582_v26  ;;  %v7587_v26 = vld [vmem:[#allocation8 + $0x30] ss:$8 sps:$4 sm:$0xff]   ;;  %1834 = vmatpush1.bf16.msra.mxu0 %v7643_v9  ;;  %v7599_v9 = vld [vmem:[#allocation8 + $0x4] ss:$8 sps:$4 sm:$0xff]  }
 0x1f6   : > { %1835 = vmatprep.subr.bf16.mxu0 %v7648_v21  ;;  %v7657_v21 = vld [vmem:[#allocation10 + $0xe4] ss:$8 sps:$4 sm:$0xff]  }
 0x1f7   : > { %1513 = vmatmul.mubr.bf16.gmra.mxu1 %v7579_v49  ;;  %v7646_v49 = vld [vmem:[#allocation10 + $0x10] ss:$8 sps:$4 sm:$0xff]  }
 0x1f8   : > { %2101 = vmatpush1.bf16.msra.mxu1 %v7580_v47  ;;  %1522 = vmatprep.mubr.bf16.mxu1 %v12564_v2  ;;  %v7590_v47 = vld [vmem:[#allocation8 + $0x20] ss:$8 sps:$4 sm:$0xff]  }
 0x1f9   : > { %2102 = vmatprep.subr.bf16.mxu1 %v7585_v48  ;;  %v7596_v48 = vld [vmem:[#allocation8 + $0x14] ss:$8 sps:$4 sm:$0xff]   ;;  %1836 = vmatpush1.bf16.msra.mxu0 %v7646_v49  ;;  %v7655_v49 = vld [vmem:[#allocation10 + $0xe0] ss:$8 sps:$4 sm:$0xff]  }
 0x1fa   : > { %1837 = vmatprep.subr.bf16.mxu0 %v7651_v50  ;;  %v7600_v50 = vld [vmem:[%s8792_s19 + $0x20] sm:$0xff]  }
 0x1fc   : > { %2103 = vmatpush1.bf16.msra.mxu1 %v7583_v43  ;;  %v7654_v43 = vld [vmem:[#allocation10 + $0xf4] ss:$8 sps:$4 sm:$0xff]  }
 0x1fd   : > { %2104 = vmatprep.subr.bf16.mxu1 %v7589_v44  ;;  %v7594_v44 = vld [vmem:[#allocation8 + $0x10] ss:$8 sps:$4 sm:$0xff]   ;;  %1838 = vmatpush1.bf16.msra.mxu0 %v7649_v3  ;;  %v7606_v3 = vld [vmem:[#allocation8 + $0xe4] ss:$8 sps:$4 sm:$0xff]  }
 0x1fe   : > { %1839 = vmatprep.subr.bf16.mxu0 %v7654_v43  ;;  %v7663_v43 = vld [vmem:[#allocation10 + $0xc4] ss:$8 sps:$4 sm:$0xff]  }
 0x1ff   : > { %1523 = vmatmul.mubr.bf16.gmra.mxu1 %v7586_v42  ;;  %v7652_v42 = vld [vmem:[#allocation10 + $0xf0] ss:$8 sps:$4 sm:$0xff]  }
 0x200   : > { %2105 = vmatpush1.bf16.msra.mxu1 %v7587_v26  ;;  %1532 = vmatprep.mubr.bf16.mxu1 %v12564_v2  ;;  %v7597_v26 = vld [vmem:[#allocation8] ss:$8 sps:$4 sm:$0xff]  }
 0x201   : > { %2106 = vmatprep.subr.bf16.mxu1 %v7592_v63  ;;  %v7603_v63 = vld [vmem:[#allocation8 + $0xf4] ss:$8 sps:$4 sm:$0xff]   ;;  %1840 = vmatpush2.bf16.msra.mxu0 %v7652_v42  ;;  %v7661_v42 = vld [vmem:[#allocation10 + $0xc0] ss:$8 sps:$4 sm:$0xff]  }
 0x202   : > { %1841 = vmatprep.subr.bf16.mxu0 %v7657_v21  ;;  %v7607_v21 = vld [vmem:[%s8792_s19 + $0x28] sm:$0xff]  }
 0x204   : > { %2107 = vmatpush1.bf16.msra.mxu1 %v7590_v47  ;;  %v7660_v47 = vld [vmem:[#allocation10 + $0xd4] ss:$8 sps:$4 sm:$0xff]  }
 0x205   : > { %2108 = vmatprep.subr.bf16.mxu1 %v7596_v48  ;;  %v7601_v48 = vld [vmem:[#allocation8 + $0xf0] ss:$8 sps:$4 sm:$0xff]   ;;  %1842 = vmatpush2.bf16.msra.mxu0 %v7655_v49  ;;  %v7613_v49 = vld [vmem:[#allocation8 + $0xc4] ss:$8 sps:$4 sm:$0xff]  }
 0x206   : > { %1843 = vmatprep.subr.bf16.mxu0 %v7660_v47  ;;  %v7669_v47 = vld [vmem:[#allocation10 + $0xa4] ss:$8 sps:$4 sm:$0xff]  }
 0x207   : > { %1533 = vmatmul.mubr.bf16.gmra.mxu1 %v7593_v46  ;;  %v7658_v46 = vld [vmem:[#allocation10 + $0xd0] ss:$8 sps:$4 sm:$0xff]  }
 0x208   : > { %2109 = vmatpush1.bf16.msra.mxu1 %v7594_v44  ;;  %1542 = vmatprep.mubr.bf16.mxu1 %v12564_v2  ;;  %v7604_v44 = vld [vmem:[#allocation8 + $0xe0] ss:$8 sps:$4 sm:$0xff]  }
 0x209   : > { %2110 = vmatprep.subr.bf16.mxu1 %v7599_v9  ;;  %v7610_v9 = vld [vmem:[#allocation8 + $0xd4] ss:$8 sps:$4 sm:$0xff]   ;;  %1844 = vmatpush2.bf16.msra.mxu0 %v7658_v46  ;;  %v7667_v46 = vld [vmem:[#allocation10 + $0xa0] ss:$8 sps:$4 sm:$0xff]  }
 0x20a   : > { %1845 = vmatprep.subr.bf16.mxu0 %v7663_v43  ;;  %v7614_v43 = vld [vmem:[%s8792_s19 + $0x30] sm:$0xff]  }
 0x20c   : > { %2111 = vmatpush1.bf16.msra.mxu1 %v7597_v26  ;;  %v7666_v26 = vld [vmem:[#allocation10 + $0xb4] ss:$8 sps:$4 sm:$0xff]  }
 0x20d   : > { %2112 = vmatprep.subr.bf16.mxu1 %v7603_v63  ;;  %v7608_v63 = vld [vmem:[#allocation8 + $0xd0] ss:$8 sps:$4 sm:$0xff]   ;;  %1846 = vmatpush2.bf16.msra.mxu0 %v7661_v42  ;;  %v7618_v42 = vld [vmem:[#allocation8 + $0xa0] ss:$8 sps:$4 sm:$0xff]  }
 0x20e   : > { %1847 = vmatprep.subr.bf16.mxu0 %v7666_v26  ;;  %v7621_v26 = vld [vmem:[%s8792_s19 + $0x38] sm:$0xff]  }
 0x20f   : > { %1543 = vmatmul.mubr.bf16.gmra.mxu1 %v7600_v50  ;;  %v7664_v50 = vld [vmem:[#allocation10 + $0xb0] ss:$8 sps:$4 sm:$0xff]  }
 0x210   : > { %2113 = vmatpush2.bf16.msra.mxu1 %v7601_v48  ;;  %1552 = vmatprep.mubr.bf16.mxu1 %v12564_v2  ;;  %v7611_v48 = vld [vmem:[#allocation8 + $0xc0] ss:$8 sps:$4 sm:$0xff]  }
 0x211   : > { %2114 = vmatprep.subr.bf16.mxu1 %v7606_v3  ;;  %v7617_v3 = vld [vmem:[#allocation8 + $0xb4] ss:$8 sps:$4 sm:$0xff]   ;;  %1848 = vmatpush2.bf16.msra.mxu0 %v7664_v50  ;;  %v7625_v50 = vld [vmem:[#allocation8 + $0x80] ss:$8 sps:$4 sm:$0xff]  }
 0x212   : > { %1849 = vmatprep.subr.bf16.mxu0 %v7669_v47  ;;  %v7672_v47 = vld [vmem:[#allocation10 + $0x94] ss:$8 sps:$4 sm:$0xff]  }
 0x214   : > { %2115 = vmatpush2.bf16.msra.mxu1 %v7604_v44  ;;  %v7615_v44 = vld [vmem:[#allocation8 + $0xb0] ss:$8 sps:$4 sm:$0xff]  }
 0x215   : > { %2116 = vmatprep.subr.bf16.mxu1 %v7610_v9  ;;  %v7620_v9 = vld [vmem:[#allocation8 + $0xa4] ss:$8 sps:$4 sm:$0xff]   ;;  %1850 = vmatpush2.bf16.msra.mxu0 %v7667_v46  ;;  %v7673_v46 = vld [vmem:[#allocation10 + $0x80] ss:$8 sps:$4 sm:$0xff]  }
 0x216   : > { %1851 = vmatprep.subr.bf16.mxu0 %v7672_v47 }
 0x217   : > { %1553 = vmatmul.mubr.bf16.gmra.mxu1 %v7607_v21  ;;  %v7624_v21 = vld [vmem:[#allocation8 + $0x94] ss:$8 sps:$4 sm:$0xff]  }
 0x218   : > { %2117 = vmatpush2.bf16.msra.mxu1 %v7608_v63  ;;  %1562 = vmatprep.mubr.bf16.mxu1 %v12564_v2  ;;  %v7622_v63 = vld [vmem:[#allocation8 + $0x90] ss:$8 sps:$4 sm:$0xff]  }
 0x219   : > { %2118 = vmatprep.subr.bf16.mxu1 %v7613_v49  ;;  %v7627_v49 = vld [vmem:[#allocation8 + $0x84] ss:$8 sps:$4 sm:$0xff]  }
 0x21c   : > { %2119 = vmatpush2.bf16.msra.mxu1 %v7611_v48  ;;  %v7670_v48 = vld [vmem:[#allocation10 + $0x90] ss:$8 sps:$4 sm:$0xff]  }
 0x21d   : > { %2120 = vmatprep.subr.bf16.mxu1 %v7617_v3  ;;  %1852 = vmatpush2.bf16.msra.mxu0 %v7670_v48  ;;  %v7675_v3 = vld [vmem:[#allocation10 + $0x84] ss:$8 sps:$4 sm:$0xff]   ;;  %v7685_v48 = vld [vmem:[%s12544_s11 + $0x18] sm:$0xff]  }
 0x21e   : > { %1853 = vmatprep.subr.bf16.mxu0 %v7675_v3 }
 0x21f   : > { %1563 = vmatmul.mubr.bf16.gmra.mxu1 %v7614_v43  ;;  %v7681_v43 = vld [vmem:[%s12544_s11 + $0x28] sm:$0xff]  }
 0x220   : > { %2121 = vmatpush2.bf16.msra.mxu1 %v7615_v44  ;;  %1572 = vmatprep.mubr.bf16.mxu1 %v12564_v2 }
 0x221   : > { %2122 = vmatprep.subr.bf16.mxu1 %v7620_v9  ;;  %1854 = vmatpush2.bf16.msra.mxu0 %v7673_v46 }
 0x224   : > { %2123 = vmatpush2.bf16.msra.mxu1 %v7618_v42  ;;  %v7682_v42 = vld [vmem:[%s12544_s11 + $0x60] sm:$0xff]  }
 0x225   : > { %2124 = vmatprep.subr.bf16.mxu1 %v7624_v21 }
 0x227   : > { %1573 = vmatmul.mubr.bf16.gmra.mxu1 %v7621_v26  ;;  %v7683_v26 = vld [vmem:[%s12544_s11 + $0x20] sm:$0xff]  }
 0x228   : > { %2125 = vmatpush2.bf16.msra.mxu1 %v7622_v63  ;;  %2128 = vmatprep.mubr.bf16.mxu1 %v9066_v23 }
 0x229   : > { %2126 = vmatprep.subr.bf16.mxu1 %v7627_v49  ;;  %v7684_v49 = vld [vmem:[%s12544_s11 + $0x58] sm:$0xff]  }
 0x22c   : > { %2127 = vmatpush2.bf16.msra.mxu1 %v7625_v50 }
 0x22f   : > { %2129 = vmatmul.mubr.bf16.vlgmr.msra.gmra.mxu1 %v8877_v32  ;;  %v7676_v32 = vld [vmem:[%s12544_s11 + $0x78] sm:$0xff]  }
 0x230   : > { %2138 = vmatprep.mubr.bf16.mxu1 %v9058_v51  ;;  %7167 = vmatprep.subr.bf16.mxu0 %v7676_v32 }
 0x237   : > { %2139 = vmatmul.mubr.bf16.gmra.mxu1 %v8893_v41 }
 0x238   : > { %2148 = vmatprep.mubr.bf16.mxu1 %v9040_v22 }
 0x23f   : > { %2149 = vmatmul.mubr.bf16.gmra.mxu1 %v9052_v27  ;;  %v7680_v27 = vld [vmem:[%s12544_s11 + $0x68] sm:$0xff]  }
 0x240   : > { %2158 = vmatprep.mubr.bf16.mxu1 %v9016_v40 }
 0x247   : > { %2159 = vmatmul.mubr.bf16.gmra.mxu1 %v9032_v17  ;;  %v7679_v17 = vld [vmem:[%s12544_s11 + $0x30] sm:$0xff]  }
 0x248   : > { %2168 = vmatprep.mubr.bf16.mxu1 %v8990_v45 }
 0x24f   : > { %2169 = vmatmul.mubr.bf16.gmra.mxu1 %v9008_v7 }
 0x250   : > { %2178 = vmatprep.mubr.bf16.mxu1 %v8967_v58 }
 0x257   : > { %2179 = vmatmul.mubr.bf16.gmra.mxu1 %v8982_v0 }
 0x258   : > { %2188 = vmatprep.mubr.bf16.mxu1 %v8945_v33  ;;  %v7677_v33 = vld [vmem:[%s12544_s11 + $0x38] sm:$0xff]  }
 0x25f   : > { %2189 = vmatmul.mubr.bf16.gmra.mxu1 %v8960_v56 }
 0x260   : > { %2198 = vmatprep.mubr.bf16.mxu1 %v8930_v20 }
 0x267   : > { %2199 = vmatmul.mubr.bf16.gmra.mxu1 %v8937_v25  ;;  %v7678_v25 = vld [vmem:[%s12544_s11 + $0x70] sm:$0xff]  }
 0x268   : > { %3111 = vmatprep.mubr.bf16.mxu1 %v12564_v2 }
 0x2af   : > { %v1504_v41 = vpop.f32.mrf.mxu1 }
 0x2b1   : > { %v1506_v45 = vpop.f32.mrf.mxu1 }
 0x2b3   : > { %v1508_v58 = vpop.f32.mrf.mxu1 }
 0x2b4   : > { %v1615_v56 = vpack.c.bf16 %v1508_v58, %v1504_v41 }
 0x2b5   : > { %v1510_v7 = vpop.f32.mrf.mxu1 }
 0x2b6   : > { %v1616_v0 = vpack.c.bf16 %v1510_v7, %v1506_v45 }
 0x2b7   : > { %v1514_v20 = vpop.f32.mrf.mxu1 }
 0x2b8   : > { %1855 = vmatprep.mubr.bf16.mxu0 %v1616_v0 }
 0x2b9   : > { %v1516_v40 = vpop.f32.mrf.mxu1  ;;  %1856 = vmatmul.mubr.bf16.vlgmr.msra.gmra.mxu0 %v1615_v56 }
 0x2ba   : > { %7168 = vmatpush3.bf16.msra.mxu0 %v7677_v33 }
 0x2bb   : > { %v1518_v22 = vpop.f32.mrf.mxu1  ;;  %7169 = vmatprep.subr.bf16.mxu0 %v7678_v25 }
 0x2bc   : > { %v1617_v44 = vpack.c.bf16 %v1518_v22, %v1514_v20 }
 0x2bd   : > { %v1520_v51 = vpop.f32.mrf.mxu1 }
 0x2be   : > { %v1618_v23 = vpack.c.bf16 %v1520_v51, %v1516_v40  ;;  %7170 = vmatpush3.bf16.msra.mxu0 %v7679_v17 }
 0x2bf   : > { %v1524_v9 = vpop.f32.mrf.mxu1  ;;  %7171 = vmatprep.subr.bf16.mxu0 %v7680_v27 }
 0x2c0   : > { %1865 = vmatprep.mubr.bf16.mxu0 %v1618_v23 }
 0x2c1   : > { %v1526_v21 = vpop.f32.mrf.mxu1  ;;  %1866 = vmatmul.mubr.bf16.gmra.mxu0 %v1617_v44 }
 0x2c2   : > { %7172 = vmatpush3.bf16.msra.mxu0 %v7681_v43 }
 0x2c3   : > { %v1528_v63 = vpop.f32.mrf.mxu1  ;;  %7173 = vmatprep.subr.bf16.mxu0 %v7682_v42 }
 0x2c4   : > { %v1619_v3 = vpack.c.bf16 %v1528_v63, %v1524_v9 }
 0x2c5   : > { %v1530_v50 = vpop.f32.mrf.mxu1 }
 0x2c6   : > { %v1620_v47 = vpack.c.bf16 %v1530_v50, %v1526_v21  ;;  %7174 = vmatpush3.bf16.msra.mxu0 %v7683_v26 }
 0x2c7   : > { %v1534_v46 = vpop.f32.mrf.mxu1  ;;  %7175 = vmatprep.subr.bf16.mxu0 %v7684_v49 }
 0x2c8   : > { %1875 = vmatprep.mubr.bf16.mxu0 %v1620_v47 }
 0x2c9   : > { %v1536_v32 = vpop.f32.mrf.mxu1  ;;  %1876 = vmatmul.mubr.bf16.gmra.mxu0 %v1619_v3 }
 0x2ca   : > { %7176 = vmatpush3.bf16.msra.mxu0 %v7685_v48 }
 0x2cb   : > { %v1538_v41 = vpop.f32.mrf.mxu1 }
 0x2cc   : > { %v1621_v7 = vpack.c.bf16 %v1538_v41, %v1534_v46  ;;  %v7687_v41 = vld [vmem:[%s12544_s11 + $0x10] sm:$0xff]  }
 0x2cd   : > { %v1540_v45 = vpop.f32.mrf.mxu1 }
 0x2ce   : > { %v1622_v58 = vpack.c.bf16 %v1540_v45, %v1536_v32  ;;  %v7686_v32 = vld [vmem:[%s12544_s11 + $0x50] sm:$0xff]   ;;  %v7688_v45 = vld [vmem:[%s12544_s11 + $0x48] sm:$0xff]  }
 0x2cf   : > { %v1544_v0 = vpop.f32.mrf.mxu1  ;;  %7177 = vmatprep.subr.bf16.mxu0 %v7686_v32 }
 0x2d0   : > { %1885 = vmatprep.mubr.bf16.mxu0 %v1622_v58  ;;  %7178 = vmatpush3.bf16.msra.mxu0 %v7687_v41  ;;  %v7689_v58 = vld [vmem:[%s12544_s11 + $0x8] sm:$0xff]  }
 0x2d1   : > { %v1546_v33 = vpop.f32.mrf.mxu1  ;;  %1886 = vmatmul.mubr.bf16.gmra.mxu0 %v1621_v7  ;;  %7179 = vmatprep.subr.bf16.mxu0 %v7688_v45  ;;  %v7690_v7 = vld [vmem:[%s12544_s11 + $0x40] sm:$0xff]  }
 0x2d3   : > { %v1548_v56 = vpop.f32.mrf.mxu1 }
 0x2d4   : > { %v1623_v40 = vpack.c.bf16 %v1548_v56, %v1544_v0  ;;  %7180 = vmatpush3.bf16.msra.mxu0 %v7689_v58  ;;  %v7691_v0 = vld [vmem:[%s12544_s11] sm:$0xff]  }
 0x2d5   : > { %v1550_v20 = vpop.f32.mrf.mxu1  ;;  %7181 = vmatprep.subr.bf16.mxu0 %v7690_v7 }
 0x2d6   : > { %v1624_v25 = vpack.c.bf16 %v1550_v20, %v1546_v33 }
 0x2d7   : > { %v1554_v17 = vpop.f32.mrf.mxu1 }
 0x2d8   : > { %1895 = vmatprep.mubr.bf16.mxu0 %v1624_v25  ;;  %7182 = vmatpush3.bf16.msra.mxu0 %v7691_v0 }
 0x2d9   : > { %v1556_v22 = vpop.f32.mrf.mxu1  ;;  %1896 = vmatmul.mubr.bf16.gmra.mxu0 %v1623_v40 }
 0x2db   : > { %v1558_v27 = vpop.f32.mrf.mxu1 }
 0x2dc   : > { %v1625_v43 = vpack.c.bf16 %v1558_v27, %v1554_v17 }
 0x2dd   : > { %v1560_v51 = vpop.f32.mrf.mxu1 }
 0x2de   : > { %v1626_v23 = vpack.c.bf16 %v1560_v51, %v1556_v22 }
 0x2df   : > { %v1564_v44 = vpop.f32.mrf.mxu1 }
 0x2e0   : > { %1905 = vmatprep.mubr.bf16.mxu0 %v1626_v23 }
 0x2e1   : > { %v1566_v9 = vpop.f32.mrf.mxu1  ;;  %1906 = vmatmul.mubr.bf16.gmra.mxu0 %v1625_v43 }
 0x2e3   : > { %v1568_v42 = vpop.f32.mrf.mxu1 }
 0x2e4   : > { %v1627_v63 = vpack.c.bf16 %v1568_v42, %v1564_v44 }
 0x2e5   : > { %v1570_v21 = vpop.f32.mrf.mxu1 }
 0x2e6   : > { %v1628_v26 = vpack.c.bf16 %v1570_v21, %v1566_v9 }
 0x2e7   : > { %v1574_v49 = vpop.f32.mrf.mxu1 }
 0x2e8   : > { %1915 = vmatprep.mubr.bf16.mxu0 %v1628_v26 }
 0x2e9   : > { %v1576_v50 = vpop.f32.mrf.mxu1  ;;  %1916 = vmatmul.mubr.bf16.gmra.mxu0 %v1627_v63 }
 0x2eb   : > { %v1578_v47 = vpop.f32.mrf.mxu1 }
 0x2ec   : > { %v1629_v48 = vpack.c.bf16 %v1578_v47, %v1574_v49  ;;  %v2209_v47 = vld [vmem:[#allocation11] sm:$0x3] }
 0x2ed   : > { %v1580_v3 = vpop.f32.mrf.mxu1  ;;  %v9161_v41 = vrot.slane %v2209_v47, %v8855_v19 }
 0x2ee   : > { %v1630_v46 = vpack.c.bf16 %v1580_v3, %v1576_v50  ;;  %v9158_v3 = vrot.slane %v2209_v47, %v8901_v60 }
 0x2ef   : > { %v2130_v33 = vpop.f32.mrf.mxu1  ;;  %12866 = vst [vmem:[#allocation58_spill] sm:$0xff] %v9161_v41 }
 0x2f0   : > { %1925 = vmatprep.mubr.bf16.mxu0 %v1630_v46  ;;  %12865 = vst [vmem:[#allocation57_spill] sm:$0xff] %v9158_v3 }
 0x2f1   : > { %1926 = vmatmul.mubr.bf16.gmra.mxu0 %v1629_v48  ;;  %v2132_v56 = vpop.f32.mrf.mxu1 }
 0x2f3   : > { %v2134_v20 = vpop.f32.mrf.mxu1 }
 0x2f5   : > { %v2136_v25 = vpop.f32.mrf.mxu1 }
 0x2f7   : > { %v2140_v40 = vpop.f32.mrf.mxu1 }
 0x2f9   : > { %v2142_v17 = vpop.f32.mrf.mxu1 }
 0x2fb   : > { %v2144_v22 = vpop.f32.mrf.mxu1 }
 0x2fd   : > { %v2146_v27 = vpop.f32.mrf.mxu1 }
 0x2ff   : > { %v2150_v51 = vpop.f32.mrf.mxu1 }
 0x301   : > { %v2152_v23 = vpop.f32.mrf.mxu1 }
 0x303   : > { %v2154_v43 = vpop.f32.mrf.mxu1 }
 0x305   : > { %v2156_v44 = vpop.f32.mrf.mxu1 }
 0x307   : > { %v9151_v9 = vpop.f32.mrf.mxu1 }
 0x309   : > { %v2162_v42 = vpop.f32.mrf.mxu1 }
 0x30b   : > { %v2164_v21 = vpop.f32.mrf.mxu1 }
 0x30d   : > { %v9153_v26 = vpop.f32.mrf.mxu1 }
 0x30f   : > { %v9155_v49 = vpop.f32.mrf.mxu1 }
 0x311   : > { %v9163_v45 = vpop.f32.mrf.mxu1 }
 0x313   : > { %v2174_v13 = vpop.f32.mrf.mxu1 }
 0x379   : > { %v1857_v63 = vpop.f32.mrf.mxu0 }
 0x37a   : > { %v2131_v58 = vadd.f32 %v2130_v33, %v1857_v63 }
 0x37b   : > { %v1859_v50 = vpop.f32.mrf.mxu0 }
 0x37c   : > { %v2133_v46 = vadd.f32 %v2132_v56, %v1859_v50  ;;  %v2221_v16 = vadd.f32 %v9161_v41, %v2131_v58 }
 0x37d   : > { %v1861_v48 = vpop.f32.mrf.mxu0 }
 0x37e   : > { %v2135_v32 = vadd.f32 %v2134_v20, %v1861_v48  ;;  %v2222_v14 = vadd.f32 %v9158_v3, %v2133_v46 }
 0x37f   : > { %v1863_v7 = vpop.f32.mrf.mxu0 }
 0x380   : > { %v2137_v0 = vadd.f32 %v2136_v25, %v1863_v7  ;;  %v2223_v2 = vadd.f32 %v9161_v41, %v2135_v32  ;;  %v2176_v25 = vpop.f32.mrf.mxu1 }
 0x381   : > { %v1867_v39 = vpop.f32.mrf.mxu0 }
 0x382   : > { %v2224_v10 = vadd.f32 %v9158_v3, %v2137_v0  ;;  %v9171_v50 = vpack.c.bf16 %v2223_v2, %v2221_v16  ;;  %v2141_v63 = vadd.f32 %v2140_v40, %v1867_v39  ;;  %v9178_v2 = vpop.f32.mrf.mxu1 }
 0x383   : > { %v1869_v56 = vpop.f32.mrf.mxu0 }
 0x384   : > { %v9169_v20 = vpack.c.bf16 %v2224_v10, %v2222_v14  ;;  %v2143_v48 = vadd.f32 %v2142_v17, %v1869_v56  ;;  %v2225_v14 = vadd.f32 %v9161_v41, %v2141_v63 }
 0x385   : > { %v1871_v47 = vpop.f32.mrf.mxu0 }
 0x386   : > { %v2145_v33 = vadd.f32 %v2144_v22, %v1871_v47  ;;  %2429 = vmatprep.mubr.bf16.mxu0 %v9169_v20  ;;  %v2226_v58 = vadd.f32 %v9158_v3, %v2143_v48 }
 0x387   : > { %v1873_v32 = vpop.f32.mrf.mxu0  ;;  %2430 = vmatmul.mubr.bf16.vlgmr.msra.gmra.mxu0 %v9171_v50 }
 0x388   : > { %v2147_v46 = vadd.f32 %v2146_v27, %v1873_v32  ;;  %v2227_v7 = vadd.f32 %v9161_v41, %v2145_v33  ;;  %v2182_v27 = vpop.f32.mrf.mxu1 }
 0x389   : > { %v1877_v0 = vpop.f32.mrf.mxu0 }
 0x38a   : > { %v2228_v10 = vadd.f32 %v9158_v3, %v2147_v46  ;;  %v9183_v39 = vpack.c.bf16 %v2227_v7, %v2225_v14  ;;  %v2151_v47 = vadd.f32 %v2150_v51, %v1877_v0 }
 0x38b   : > { %v1879_v16 = vpop.f32.mrf.mxu0 }
 0x38c   : > { %v9181_v17 = vpack.c.bf16 %v2228_v10, %v2226_v58  ;;  %v2153_v40 = vadd.f32 %v2152_v23, %v1879_v16  ;;  %v2184_v10 = vpop.f32.mrf.mxu1  ;;  %v2229_v7 = vadd.f32 %v9161_v41, %v2151_v47 }
 0x38d   : > { %v1881_v22 = vpop.f32.mrf.mxu0 }
 0x38e   : > { %v2155_v56 = vadd.f32 %v2154_v43, %v1881_v22  ;;  %2437 = vmatprep.mubr.bf16.mxu0 %v9181_v17  ;;  %v2230_v63 = vadd.f32 %v9158_v3, %v2153_v40 }
 0x38f   : > { %v1883_v33 = vpop.f32.mrf.mxu0  ;;  %2438 = vmatmul.mubr.bf16.gmra.mxu0 %v9183_v39 }
 0x390   : > { %v2157_v48 = vadd.f32 %v2156_v44, %v1883_v33  ;;  %v2231_v32 = vadd.f32 %v9161_v41, %v2155_v56  ;;  %v2186_v44 = vpop.f32.mrf.mxu1 }
 0x391   : > { %v1887_v46 = vpop.f32.mrf.mxu0 }
 0x392   : > { %v2232_v58 = vadd.f32 %v9158_v3, %v2157_v48  ;;  %v9193_v16 = vpack.c.bf16 %v2231_v32, %v2229_v7  ;;  %v2161_v22 = vadd.f32 %v9151_v9, %v1887_v46 }
 0x393   : > { %v1889_v23 = vpop.f32.mrf.mxu0 }
 0x394   : > { %v9191_v43 = vpack.c.bf16 %v2232_v58, %v2230_v63  ;;  %v2163_v51 = vadd.f32 %v2162_v42, %v1889_v23  ;;  %v2190_v63 = vpop.f32.mrf.mxu1  ;;  %v2233_v42 = vadd.f32 %v9161_v41, %v2161_v22 }
 0x395   : > { %v1891_v14 = vpop.f32.mrf.mxu0 }
 0x396   : > { %v2165_v0 = vadd.f32 %v2164_v21, %v1891_v14  ;;  %2445 = vmatprep.mubr.bf16.mxu0 %v9191_v43  ;;  %v2234_v48 = vadd.f32 %v9158_v3, %v2163_v51 }
 0x397   : > { %v1893_v56 = vpop.f32.mrf.mxu0  ;;  %2446 = vmatmul.mubr.bf16.gmra.mxu0 %v9193_v16 }
 0x398   : > { %v2167_v40 = vadd.f32 %v9153_v26, %v1893_v56  ;;  %v2235_v47 = vadd.f32 %v9161_v41, %v2165_v0  ;;  %v2192_v26 = vpop.f32.mrf.mxu1 }
 0x399   : > { %v1897_v33 = vpop.f32.mrf.mxu0 }
 0x39a   : > { %v2236_v32 = vadd.f32 %v9158_v3, %v2167_v40  ;;  %v9205_v9 = vpack.c.bf16 %v2235_v47, %v2233_v42  ;;  %v2171_v14 = vadd.f32 %v9155_v49, %v1897_v33 }
 0x39b   : > { %v1899_v21 = vpop.f32.mrf.mxu0 }
 0x39c   : > { %v9203_v58 = vpack.c.bf16 %v2236_v32, %v2234_v48  ;;  %v2173_v46 = vadd.f32 %v9163_v45, %v1899_v21  ;;  %v2194_v48 = vpop.f32.mrf.mxu1  ;;  %v2237_v45 = vadd.f32 %v9161_v41, %v2171_v14 }
 0x39d   : > { %v1901_v7 = vpop.f32.mrf.mxu0 }
 0x39e   : > { %v2175_v23 = vadd.f32 %v2174_v13, %v1901_v7  ;;  %2453 = vmatprep.mubr.bf16.mxu0 %v9203_v58  ;;  %v2238_v40 = vadd.f32 %v9158_v3, %v2173_v46  ;;  %v2196_v33 = vpop.f32.mrf.mxu1 }
 0x39f   : > { %v1903_v51 = vpop.f32.mrf.mxu0  ;;  %2454 = vmatmul.mubr.bf16.gmra.mxu0 %v9205_v9 }
 0x3a0   : > { %v2177_v0 = vadd.f32 %v2176_v25, %v1903_v51  ;;  %v2239_v22 = vadd.f32 %v9161_v41, %v2175_v23  ;;  %v2200_v24 = vpop.f32.mrf.mxu1 }
 0x3a1   : > { %v1907_v56 = vpop.f32.mrf.mxu0 }
 0x3a2   : > { %v2240_v47 = vadd.f32 %v9158_v3, %v2177_v0  ;;  %v2261_v21 = vpack.c.bf16 %v2239_v22, %v2237_v45  ;;  %v2181_v25 = vadd.f32 %v9178_v2, %v1907_v56  ;;  %v2202_v2 = vpop.f32.mrf.mxu1 }
 0x3a3   : > { %v1909_v13 = vpop.f32.mrf.mxu0 }
 0x3a4   : > { %v2262_v32 = vpack.c.bf16 %v2240_v47, %v2238_v40  ;;  %v2183_v7 = vadd.f32 %v2182_v27, %v1909_v13  ;;  %v2241_v40 = vadd.f32 %v9161_v41, %v2181_v25  ;;  %v2204_v25 = vpop.f32.mrf.mxu1 }
 0x3a5   : > { %v1911_v42 = vpop.f32.mrf.mxu0 }
 0x3a6   : > { %v2185_v49 = vadd.f32 %v2184_v10, %v1911_v42  ;;  %2461 = vmatprep.mubr.bf16.mxu0 %v2262_v32  ;;  %v2242_v0 = vadd.f32 %v9158_v3, %v2183_v7 }
 0x3a7   : > { %v1913_v51 = vpop.f32.mrf.mxu0  ;;  %2462 = vmatmul.mubr.bf16.gmra.mxu0 %v2261_v21 }
 0x3a8   : > { %v2187_v23 = vadd.f32 %v2186_v44, %v1913_v51  ;;  %v2243_v46 = vadd.f32 %v9161_v41, %v2185_v49 }
 0x3a9   : > { %v1917_v12 = vpop.f32.mrf.mxu0 }
 0x3aa   : > { %v2244_v14 = vadd.f32 %v9158_v3, %v2187_v23  ;;  %v2263_v47 = vpack.c.bf16 %v2243_v46, %v2241_v40  ;;  %v2191_v56 = vadd.f32 %v2190_v63, %v1917_v12  ;;  %v2206_v12 = vpop.f32.mrf.mxu1 }
 0x3ab   : > { %v1919_v22 = vpop.f32.mrf.mxu0 }
 0x3ac   : > { %v2264_v27 = vpack.c.bf16 %v2244_v14, %v2242_v0  ;;  %v2193_v45 = vadd.f32 %v2192_v26, %v1919_v22  ;;  %v2245_v0 = vadd.f32 %v9161_v41, %v2191_v56 }
 0x3ad   : > { %v1921_v10 = vpop.f32.mrf.mxu0 }
 0x3ae   : > { %v2195_v13 = vadd.f32 %v2194_v48, %v1921_v10  ;;  %2469 = vmatprep.mubr.bf16.mxu0 %v2264_v27  ;;  %v2246_v51 = vadd.f32 %v9158_v3, %v2193_v45 }
 0x3af   : > { %v1923_v44 = vpop.f32.mrf.mxu0  ;;  %2470 = vmatmul.mubr.bf16.gmra.mxu0 %v2263_v47 }
 0x3b0   : > { %v2197_v42 = vadd.f32 %v2196_v33, %v1923_v44  ;;  %v2247_v49 = vadd.f32 %v9161_v41, %v2195_v13 }
 0x3b1   : > { %v1927_v7 = vpop.f32.mrf.mxu0 }
 0x3b2   : > { %v2248_v23 = vadd.f32 %v9158_v3, %v2197_v42  ;;  %v2265_v48 = vpack.c.bf16 %v2247_v49, %v2245_v0  ;;  %v2201_v63 = vadd.f32 %v2200_v24, %v1927_v7 }
 0x3b3   : > { %v1929_v14 = vpop.f32.mrf.mxu0 }
 0x3b4   : > { %v2266_v46 = vpack.c.bf16 %v2248_v23, %v2246_v51  ;;  %v2203_v40 = vadd.f32 %v2202_v2, %v1929_v14  ;;  %v2249_v56 = vadd.f32 %v9161_v41, %v2201_v63 }
 0x3b5   : > { %v1931_v26 = vpop.f32.mrf.mxu0 }
 0x3b6   : > { %v2205_v22 = vadd.f32 %v2204_v25, %v1931_v26  ;;  %2477 = vmatprep.mubr.bf16.mxu0 %v2266_v46  ;;  %v2250_v45 = vadd.f32 %v9158_v3, %v2203_v40 }
 0x3b7   : > { %v1933_v33 = vpop.f32.mrf.mxu0  ;;  %2478 = vmatmul.mubr.bf16.gmra.mxu0 %v2265_v48 }
 0x3b8   : > { %v2207_v10 = vadd.f32 %v2206_v12, %v1933_v33  ;;  %v2251_v13 = vadd.f32 %v9161_v41, %v2205_v22 }
 0x3ba   : > { %v2252_v44 = vadd.f32 %v9158_v3, %v2207_v10  ;;  %v2267_v51 = vpack.c.bf16 %v2251_v13, %v2249_v56 }
 0x3bc   : > { %v2268_v42 = vpack.c.bf16 %v2252_v44, %v2250_v45 }
 0x3be   : > { %2485 = vmatprep.mubr.bf16.mxu0 %v2268_v42  ;;  %3079 = vmatprep.subr.bf16.mxu1 %v2268_v42 }
 0x3bf   : > { %2486 = vmatmul.mubr.bf16.gmra.mxu0 %v2267_v51  ;;  %3080 = vmatpush1.bf16.msra.mxu1 %v2267_v51 }
 0x3c0   : > { %3081 = vmatprep.subr.bf16.mxu1 %v2266_v46 }
 0x3c3   : > { %3082 = vmatpush1.bf16.msra.mxu1 %v2265_v48 }
 0x3c4   : > { %3083 = vmatprep.subr.bf16.mxu1 %v2264_v27 }
 0x3c7   : > { %3084 = vmatpush1.bf16.msra.mxu1 %v2263_v47 }
 0x3c8   : > { %3085 = vmatprep.subr.bf16.mxu1 %v2262_v32 }
 0x3cb   : > { %3086 = vmatpush1.bf16.msra.mxu1 %v2261_v21 }
 0x3cc   : > { %3087 = vmatprep.subr.bf16.mxu1 %v9203_v58 }
 0x3cf   : > { %3088 = vmatpush1.bf16.msra.mxu1 %v9205_v9 }
 0x3d0   : > { %3089 = vmatprep.subr.bf16.mxu1 %v9191_v43 }
 0x3d3   : > { %3090 = vmatpush1.bf16.msra.mxu1 %v9193_v16 }
 0x3d4   : > { %3091 = vmatprep.subr.bf16.mxu1 %v9181_v17 }
 0x3d7   : > { %3092 = vmatpush1.bf16.msra.mxu1 %v9183_v39 }
 0x3d8   : > { %3093 = vmatprep.subr.bf16.mxu1 %v9169_v20 }
 0x3db   : > { %3094 = vmatpush1.bf16.msra.mxu1 %v9171_v50 }
 0x447   : > { %v7183_v24 = vpop.f32.mrf.mxu0 }
 0x449   : > { %v7184_v27 = vpop.f32.mrf.mxu0 }
 0x44a   : > { %v7185_v32 = vadd.f32 %v7184_v27, %v7183_v24 }
 0x44b   : > { %v7186_v21 = vpop.f32.mrf.mxu0 }
 0x44c   : > { %2510 = vrot.lane.b32.xlu0 %v7185_v32, %s8499_s8 }
 0x44d   : > { %v7187_v58 = vpop.f32.mrf.mxu0 }
 0x44e   : > { %v7188_v9 = vadd.f32 %v7187_v58, %v7186_v21 }
 0x44f   : > { %v7189_v43 = vpop.f32.mrf.mxu0 }
 0x450   : > { %2512 = vrot.lane.b32.xlu0 %v7188_v9, %s8499_s8 }
 0x451   : > { %v7190_v16 = vpop.f32.mrf.mxu0 }
 0x452   : > { %v7191_v17 = vadd.f32 %v7190_v16, %v7189_v43 }
 0x453   : > { %v7192_v47 = vpop.f32.mrf.mxu0 }
 0x454   : > { %2514 = vrot.lane.b32.xlu1 %v7191_v17, %s8499_s8 }
 0x455   : > { %v7193_v20 = vpop.f32.mrf.mxu0 }
 0x456   : > { %v7194_v39 = vadd.f32 %v7193_v20, %v7192_v47 }
 0x457   : > { %v7195_v50 = vpop.f32.mrf.mxu0 }
 0x458   : > { %2516 = vrot.lane.b32.xlu1 %v7194_v39, %s8499_s8 }
 0x459   : > { %v7196_v2 = vpop.f32.mrf.mxu0 }
 0x45a   : > { %v7197_v49 = vadd.f32 %v7196_v2, %v7195_v50 }
 0x45b   : > { %v7198_v7 = vpop.f32.mrf.mxu0 }
 0x45c   : > { %2518 = vrot.lane.b32.xlu0 %v7197_v49, %s8499_s8 }
 0x45d   : > { %v7199_v23 = vpop.f32.mrf.mxu0 }
 0x45e   : > { %v7200_v25 = vadd.f32 %v7199_v23, %v7198_v7 }
 0x45f   : > { %v7201_v0 = vpop.f32.mrf.mxu0 }
 0x460   : > { %2520 = vrot.lane.b32.xlu1 %v7200_v25, %s8499_s8 }
 0x461   : > { %v7202_v14 = vpop.f32.mrf.mxu0 }
 0x462   : > { %v7203_v46 = vadd.f32 %v7202_v14, %v7201_v0 }
 0x463   : > { %v7204_v26 = vpop.f32.mrf.mxu0 }
 0x464   : > { %2522 = vrot.lane.b32.xlu0 %v7203_v46, %s8499_s8 }
 0x465   : > { %v7205_v48 = vpop.f32.mrf.mxu0 }
 0x466   : > { %v7206_v40 = vadd.f32 %v7205_v48, %v7204_v26 }
 0x467   : > { %v7207_v22 = vpop.f32.mrf.mxu0 }
 0x468   : > { %2524 = vrot.lane.b32.xlu1 %v7206_v40, %s8499_s8 }
 0x469   : > { %v7208_v12 = vpop.f32.mrf.mxu0 }
 0x46a   : > { %v7209_v63 = vadd.f32 %v7208_v12, %v7207_v22 }
 0x46b   : > { %v7210_v33 = vpop.f32.mrf.mxu0 }
 0x46c   : > { %2526 = vrot.lane.b32.xlu0 %v7209_v63, %s8499_s8 }
 0x46d   : > { %v7211_v10 = vpop.f32.mrf.mxu0 }
 0x46e   : > { %v7212_v13 = vadd.f32 %v7211_v10, %v7210_v33 }
 0x46f   : > { %v7213_v45 = vpop.f32.mrf.mxu0 }
 0x470   : > { %2528 = vrot.lane.b32.xlu1 %v7212_v13, %s8499_s8 }
 0x471   : > { %v7214_v44 = vpop.f32.mrf.mxu0 }
 0x472   : > { %v7215_v56 = vadd.f32 %v7214_v44, %v7213_v45 }
 0x473   : > { %v7216_v42 = vpop.f32.mrf.mxu0 }
 0x474   : > { %2530 = vrot.lane.b32.xlu0 %v7215_v56, %s8499_s8 }
 0x475   : > { %v7217_v51 = vpop.f32.mrf.mxu0 }
 0x476   : > { %v7218_v24 = vadd.f32 %v7217_v51, %v7216_v42 }
 0x477   : > { %v7219_v27 = vpop.f32.mrf.mxu0 }
 0x478   : > { %2532 = vrot.lane.b32.xlu1 %v7218_v24, %s8499_s8 }
 0x479   : > { %v7220_v21 = vpop.f32.mrf.mxu0 }
 0x47a   : > { %v7221_v58 = vadd.f32 %v7220_v21, %v7219_v27  ;;  %v1274_v21 = vld [vmem:[%s9273_s2] sm:$0xff] }
 0x47b   : > { %v7222_v43 = vpop.f32.mrf.mxu0 }
 0x47c   : > { %2534 = vrot.lane.b32.xlu0 %v7221_v58, %s8499_s8 }
 0x47d   : > { %v7223_v16 = vpop.f32.mrf.mxu0 }
 0x47e   : > { %v7224_v47 = vadd.f32 %v7223_v16, %v7222_v43  ;;  %v9287_v43 = vstv %s7044_s22  ;;  %v9289_v16 = vstv %s7045_s9  ;;  %s9305_s22 = sld [smem:[#allocation16 + $0x1]] }
 0x47f   : > { %v7225_v20 = vpop.f32.mrf.mxu0  ;;  %12867 = vst [vmem:[#allocation59_spill] sm:$0xff] %v9287_v43  ;;  %12868 = vst [vmem:[#allocation60_spill] sm:$0xff] %v9289_v16  ;;  %v1313_v38 = vmul.f32 %v9287_v43, %v1280_v8  ;;  %s13350_s9 = sld [smem:[#allocation181_spill]] }
 0x480   : > { %2536 = vrot.lane.b32.xlu1 %v7224_v47, %s8499_s8 }
 0x481   : > { %v7226_v50 = vpop.f32.mrf.mxu0 }
 0x482   : > { %v7227_v2 = vadd.f32 %v7226_v50, %v7225_v20  ;;  %v1307_v20 = vmul.f32 %v9287_v43, %v1274_v21 }
 0x483   : > { %v7228_v7 = vpop.f32.mrf.mxu0 }
 0x484   : > { %2595 = vperm.xlu1 %7551, %v7188_v9   ;;  %2538 = vrot.lane.b32.xlu0 %v7227_v2, %s8499_s8  ;;  %v9355_v60 = vstv %s9305_s22 }
 0x485   : > { %v7229_v23 = vpop.f32.mrf.mxu0  ;;  %12878 = vst [vmem:[#allocation69_spill] sm:$0xff] %v9355_v60 }
 0x486   : > { %v7230_v0 = vadd.f32 %v7229_v23, %v7228_v7  ;;  %v1300_v7 = vld [vmem:[%s9279_s24 + $0x50] sm:$0xff]  ;;  %v1275_v23 = vld [vmem:[%s9273_s2 + $0x8] sm:$0xff] }
 0x488   : > { %2599 = vperm.xlu1 %7551, %v7191_v17   ;;  %2591 = vperm.xlu0 %7550, %v7185_v32  }
 0x48c   : > { %2607 = vperm.xlu1 %7551, %v7197_v49   ;;  %2603 = vperm.xlu0 %7550, %v7194_v39  }
 0x490   : > { %2615 = vperm.xlu1 %7551, %v7203_v46   ;;  %2611 = vperm.xlu0 %7550, %v7200_v25  }
 0x494   : > { %2540 = vrot.lane.b32.xlu1 %v7230_v0, %s8499_s8  ;;  %2619 = vperm.xlu0 %7550, %v7206_v40  }
 0x498   : > { %2623 = vperm.xlu0 %7550, %v7209_v63  }
 0x49c   : > { %2627 = vperm.xlu0 %7550, %v7212_v13  }
 0x4a0   : > { %2631 = vperm.xlu0 %7550, %v7215_v56  }
 0x4a4   : > { %2635 = vperm.xlu0 %7550, %v7218_v24  }
 0x4a8   : > { %2639 = vperm.xlu0 %7550, %v7221_v58   ;;  %v1290_v58 = vld [vmem:[%s9279_s24] sm:$0xff] }
 0x4a9   : > { %v1324_v50 = vmul.f32 %v9289_v16, %v1290_v58 }
 0x4ac   : > { %2643 = vperm.xlu0 %7550, %v7224_v47   ;;  %v1284_v47 = vld [vmem:[%s9273_s2 + $0x50] sm:$0xff] }
 0x4b0   : > { %2647 = vperm.xlu0 %7550, %v7227_v2   ;;  %v9300_v2 = vstv %s7046_s25  ;;  %s12495_s25 = scalar_lea.vmem %s13350_s9, %s9267_s10 }
 0x4b1   : > { %12870 = vst [vmem:[#allocation61_spill] sm:$0xff] %v9300_v2  ;;  %v1362_v34 = vmul.f32 %v9300_v2, %v1279_v61 }
 0x4b4   : > { %2651 = vperm.xlu0 %7550, %v7230_v0   ;;  %v1121_v0 = vld [vmem:[%s9295_s30] sm:$0xff] }
 0x4b5   : > { %vm1153_vm1 = vcmp.gt.f32.partialorder %v1121_v0, 0.0 }
 0x4be   : > { %v2511_v9 = vpop.permute.xlu0 %2510 }
 0x4bf   : > { %2558 = vxpose.xlu1.b32.start [1/16] (narrow) %v2511_v9, 8  ;;  %v9307_v9 = vstv %s7047_s5 }
 0x4c0   : > { %12871 = vst [vmem:[#allocation62_spill] sm:$0xff] %v9307_v9 }
 0x4c2   : > { %v2513_v32 = vpop.permute.xlu0 %2512 }
 0x4c3   : > { %2559 = vxpose.xlu1.b32.cont [2/16] (narrow) %v2513_v32, 8  ;;  %v1317_v32 = vmul.f32 %v9287_v43, %v1284_v47 }
 0x4c6   : > { %v2515_v17 = vpop.permute.xlu1 %2514 }
 0x4c7   : > { %2560 = vxpose.xlu1.b32.cont [3/16] (narrow) %v2515_v17, 8  ;;  %v1291_v17 = vld [vmem:[%s9279_s24 + $0x8] sm:$0xff] }
 0x4c8   : > { %v1375_v3 = vmul.f32 %v9307_v9, %v1291_v17 }
 0x4ca   : > { %v2517_v39 = vpop.permute.xlu1 %2516 }
 0x4cb   : > { %2561 = vxpose.xlu1.b32.cont [4/16] (narrow) %v2517_v39, 8 }
 0x4ce   : > { %v2519_v49 = vpop.permute.xlu0 %2518 }
 0x4cf   : > { %2562 = vxpose.xlu1.b32.cont [5/16] (narrow) %v2519_v49, 8  ;;  %v1357_v49 = vmul.f32 %v9300_v2, %v1274_v21  ;;  %v1325_v21 = vmul.f32 %v9289_v16, %v1291_v17 }
 0x4d2   : > { %v2521_v25 = vpop.permute.xlu1 %2520 }
 0x4d3   : > { %2563 = vxpose.xlu1.b32.cont [6/16] (narrow) %v2521_v25, 8  ;;  %v1334_v25 = vmul.f32 %v9289_v16, %v1300_v7 }
 0x4d5   : > { %v9343_v54 = vadd.f32 %v1334_v25, %v1317_v32 }
 0x4d6   : > { %v2523_v14 = vpop.permute.xlu0 %2522 }
 0x4d7   : > { %2564 = vxpose.xlu1.b32.cont [7/16] (narrow) %v2523_v14, 8  ;;  %v1367_v14 = vmul.f32 %v9300_v2, %v1284_v47  ;;  %v1358_v47 = vmul.f32 %v9300_v2, %v1275_v23  ;;  %12875 = vst [vmem:[#allocation66_spill] sm:$0xff] %v9343_v54 }
 0x4da   : > { %v2525_v46 = vpop.permute.xlu1 %2524 }
 0x4db   : > { %2565 = vxpose.xlu1.b32.cont [8/16] (narrow) %v2525_v46, 8  ;;  %v1308_v46 = vmul.f32 %v9287_v43, %v1275_v23 }
 0x4de   : > { %v2527_v26 = vpop.permute.xlu0 %2526 }
 0x4df   : > { %2566 = vxpose.xlu1.b32.cont [9/16] (narrow) %v2527_v26, 8  ;;  %v1276_v26 = vld [vmem:[%s9273_s2 + $0x10] sm:$0xff] }
 0x4e2   : > { %v2529_v48 = vpop.permute.xlu1 %2528 }
 0x4e3   : > { %2567 = vxpose.xlu1.b32.cont [10/16] (narrow) %v2529_v48, 8  ;;  %v1292_v48 = vld [vmem:[%s9279_s24 + $0x10] sm:$0xff] }
 0x4e6   : > { %v2531_v40 = vpop.permute.xlu0 %2530 }
 0x4e7   : > { %2568 = vxpose.xlu1.b32.cont [11/16] (narrow) %v2531_v40, 8  ;;  %v9319_v40 = vadd.f32 %v1324_v50, %v1307_v20  ;;  %v1309_v20 = vmul.f32 %v9287_v43, %v1276_v26  ;;  %v1326_v50 = vmul.f32 %v9289_v16, %v1292_v48 }
 0x4e9   : > { %12872 = vst [vmem:[#allocation63_spill] sm:$0xff] %v9319_v40  ;;  %v9364_v25 = vadd.f32 %v1326_v50, %v1309_v20 }
 0x4ea   : > { %v2533_v22 = vpop.permute.xlu1 %2532 }
 0x4eb   : > { %2569 = vxpose.xlu1.b32.cont [12/16] (narrow) %v2533_v22, 8  ;;  %v1374_v22 = vmul.f32 %v9307_v9, %v1290_v58  ;;  %v1359_v58 = vmul.f32 %v9300_v2, %v1276_v26  ;;  %v1294_v26 = vld [vmem:[%s9279_s24 + $0x20] sm:$0xff]  ;;  %12881 = vst [vmem:[#allocation72_spill] sm:$0xff] %v9364_v25 }
 0x4ec   : > { %v1378_v50 = vmul.f32 %v9307_v9, %v1294_v26 }
 0x4ed   : > { %v9340_v17 = vadd.f32 %v1374_v22, %v1357_v49  ;;  %v9360_v49 = vadd.f32 %v1375_v3, %v1358_v47  ;;  %v1311_v22 = vmul.f32 %v9287_v43, %v1278_v30 }
 0x4ee   : > { %v2535_v12 = vpop.permute.xlu0 %2534 }
 0x4ef   : > { %2570 = vxpose.xlu1.b32.cont [13/16] (narrow) %v2535_v12, 8  ;;  %v1384_v12 = vmul.f32 %v9307_v9, %v1300_v7  ;;  %v1376_v7 = vmul.f32 %v9307_v9, %v1292_v48  ;;  %12874 = vst [vmem:[#allocation65_spill] sm:$0xff] %v9340_v17  ;;  %v12616_v48 = vmov -1e+30   ;;  %12880 = vst [vmem:[#allocation71_spill] sm:$0xff] %v9360_v49  ;;  %v2708_v3 = vmul.f32 %v9355_v60, %v9340_v17  ;;  %v1287_v17 = vld [vmem:[%s9273_s2 + $0x68] sm:$0xff] }
 0x4f0   : > { %v9352_v62 = vsel %vm1153_vm1, 0.0, %v12616_v48 }
 0x4f1   : > { %v9345_v59 = vadd.f32 %v1384_v12, %v1367_v14  ;;  %12877 = vst [vmem:[#allocation68_spill] sm:$0xff] %v9352_v62  ;;  %v9366_v14 = vadd.f32 %v1376_v7, %v1359_v58  ;;  %v9393_v7 = vsel %vm1163_vm2, 0.0, %v12616_v48 }
 0x4f2   : > { %v2537_v63 = vpop.permute.xlu1 %2536  ;;  %12885 = vst [vmem:[#allocation76_spill] sm:$0xff] %v9393_v7 }
 0x4f3   : > { %2571 = vxpose.xlu1.b32.cont [14/16] (narrow) %v2537_v63, 8  ;;  %v1277_v63 = vld [vmem:[%s9273_s2 + $0x18] sm:$0xff]  ;;  %12876 = vst [vmem:[#allocation67_spill] sm:$0xff] %v9345_v59  ;;  %12882 = vst [vmem:[#allocation73_spill] sm:$0xff] %v9366_v14  ;;  %v2718_v47 = vmul.f32 %v9355_v60, %v9345_v59 }
 0x4f4   : > { %v1310_v41 = vmul.f32 %v9287_v43, %v1277_v63  ;;  %v1360_v35 = vmul.f32 %v9300_v2, %v1277_v63  ;;  %v1122_v63 = vld [vmem:[%s9295_s30 + $0x8] sm:$0xff] }
 0x4f5   : > { %vm1154_vm3 = vcmp.gt.f32.partialorder %v1122_v63, 0.0  ;;  %v2710_v63 = vmul.f32 %v9355_v60, %v9366_v14 }
 0x4f6   : > { %v2539_v33 = vpop.permute.xlu0 %2538 }
 0x4f7   : > { %2572 = vxpose.xlu1.b32.cont [15/16] (narrow) %v2539_v33, 8  ;;  %v1293_v33 = vld [vmem:[%s9279_s24 + $0x18] sm:$0xff] }
 0x4f8   : > { %v1327_v18 = vmul.f32 %v9289_v16, %v1293_v33  ;;  %v1377_v23 = vmul.f32 %v9307_v9, %v1293_v33  ;;  %v9358_v33 = vadd.f32 %v1325_v21, %v1308_v46  ;;  %v1328_v46 = vmul.f32 %v9289_v16, %v1294_v26 }
 0x4fa   : > { %12879 = vst [vmem:[#allocation70_spill] sm:$0xff] %v9358_v33  ;;  %v9369_v0 = vadd.f32 %v1327_v18, %v1310_v41  ;;  %v9371_v12 = vadd.f32 %v1377_v23, %v1360_v35  ;;  %v2709_v35 = vmul.f32 %v9355_v60, %v9360_v49  ;;  %v1361_v41 = vmul.f32 %v9300_v2, %v1278_v30 }
 0x4fb   : > { %v9402_v30 = vsel %vm1154_vm3, 0.0, %v12616_v48  ;;  %v9408_v6 = vadd.f32 %v1328_v46, %v1311_v22  ;;  %v1312_v46 = vmul.f32 %v9287_v43, %v1279_v61 }
 0x4fc   : > { %12883 = vst [vmem:[#allocation74_spill] sm:$0xff] %v9369_v0  ;;  %12884 = vst [vmem:[#allocation75_spill] sm:$0xff] %v9371_v12  ;;  %v9422_v22 = vadd.f32 %v1378_v50, %v1361_v41 }
 0x4fd   : > { %12886 = vst [vmem:[#allocation77_spill] sm:$0xff] %v9402_v30  ;;  %12887 = vst [vmem:[#allocation78_spill] sm:$0xff] %v9408_v6 }
 0x4fe   : > { %12888 = vst [vmem:[#allocation79_spill] sm:$0xff] %v9422_v22 }
 0x4ff   : > { %v9252_v10 = vpop.permute.xlu1 %2595 }
 0x503   : > { %v9254_v13 = vpop.permute.xlu1 %2599  ;;  %v9260_v42 = vpop.permute.xlu0 %2591 }
 0x507   : > { %v9256_v45 = vpop.permute.xlu1 %2607  ;;  %v9262_v51 = vpop.permute.xlu0 %2603 }
 0x50b   : > { %v9258_v44 = vpop.permute.xlu1 %2615  ;;  %v9264_v24 = vpop.permute.xlu0 %2611 }
 0x50f   : > { %v2541_v56 = vpop.permute.xlu1 %2540  ;;  %v9281_v27 = vpop.permute.xlu0 %2619 }
 0x510   : > { %2573 = vxpose.xlu1.b32.end [16/16] (narrow) %v2541_v56, 8  ;;  %v9326_v56 = vstv %s9283_s21 }
 0x511   : > { %12873 = vst [vmem:[#allocation64_spill] sm:$0xff] %v9326_v56  ;;  %v2675_v32 = vmul.f32 %v9326_v56, %v9319_v40  ;;  %v2685_v21 = vmul.f32 %v9326_v56, %v9343_v54  ;;  %v2676_v18 = vmul.f32 %v9326_v56, %v9358_v33  ;;  %v2677_v23 = vmul.f32 %v9326_v56, %v9364_v25 }
 0x512   : > { %v2678_v26 = vmul.f32 %v9326_v56, %v9369_v0  ;;  %v2679_v28 = vmul.f32 %v9326_v56, %v9408_v6 }
 0x513   : > { %v9311_v39 = vpop.permute.xlu0 %2623 }
 0x517   : > { %v9348_v57 = vpop.permute.xlu0 %2627 }
 0x51b   : > { %v2632_v1 = vpop.permute.xlu0 %2631 }
 0x550   : > { %v2574_v20 = vpop.trf.xlu1 }
 0x551   : > { %v9390_v58 = vrot.slane %v2574_v20, %v8855_v19  ;;  %v2711_v20 = vmul.f32 %v9355_v60, %v9371_v12 }
 0x553   : > { %v2658_v5 = vadd.f32 %v9390_v58, %v9260_v42  ;;  %v2668_v11 = vadd.f32 %v9390_v58, %v2632_v1  ;;  %v2659_v19 = vadd.f32 %v9390_v58, %v9252_v10  ;;  %v2660_v48 = vadd.f32 %v9390_v58, %v9254_v13 }
 0x554   : > { %v2661_v15 = vadd.f32 %v9390_v58, %v9262_v51  ;;  %v1329_v42 = vmul.f32 %v9289_v16, %v1295_v4  ;;  %v1379_v13 = vmul.f32 %v9307_v9, %v1295_v4  ;;  %v1330_v51 = vmul.f32 %v9289_v16, %v1296_v36  ;;  %v1281_v4 = vld [vmem:[%s9273_s2 + $0x38] sm:$0xff] }
 0x555   : > { %v2691_v1 = vadd.f32 %v2675_v32, %v2658_v5  ;;  %v2701_v31 = vadd.f32 %v2685_v21, %v2668_v11  ;;  %v2692_v10 = vadd.f32 %v2676_v18, %v2659_v19  ;;  %v2693_v37 = vadd.f32 %v2677_v23, %v2660_v48  ;;  %v1297_v48 = vld [vmem:[%s9279_s24 + $0x38] sm:$0xff] }
 0x556   : > { %v2694_v5 = vadd.f32 %v2678_v26, %v2661_v15  ;;  %v2662_v11 = vadd.f32 %v9390_v58, %v9256_v45  ;;  %v2712_v19 = vmul.f32 %v9355_v60, %v9422_v22  ;;  %v9436_v61 = vadd.f32 %v1329_v42, %v1312_v46  ;;  %v1124_v42 = vld [vmem:[%s9295_s30 + $0x18] sm:$0xff] }
 0x557   : > { %v2724_v41 = vadd.f32 %v2708_v3, %v2691_v1  ;;  %v2734_v50 = vadd.f32 %v2718_v47, %v2701_v31  ;;  %v2725_v53 = vadd.f32 %v2709_v35, %v2692_v10  ;;  %v2726_v31 = vadd.f32 %v2710_v63, %v2693_v37 }
 0x558   : > { %12889 = vst [vmem:[#allocation80_spill] sm:$0xff] %v9436_v61  ;;  %v9440_v47 = vadd.f32 %v1379_v13, %v1362_v34  ;;  %v9442_v18 = vadd.f32 %v1330_v51, %v1313_v38  ;;  %v1363_v15 = vmul.f32 %v9300_v2, %v1280_v8  ;;  %v1380_v45 = vmul.f32 %v9307_v9, %v1296_v36  ;;  %v1282_v13 = vld [vmem:[%s9273_s2 + $0x40] sm:$0xff] }
 0x559   : > { %v2740_v32 = vmul.f32 0.01, %v2724_v41  ;;  %v2750_v21 = vmul.f32 0.01, %v2734_v50  ;;  %v2741_v3 = vmul.f32 0.01, %v2725_v53  ;;  %v1314_v26 = vmul.f32 %v9287_v43, %v1281_v4 }
 0x55a   : > { %12890 = vst [vmem:[#allocation81_spill] sm:$0xff] %v9440_v47  ;;  %12891 = vst [vmem:[#allocation82_spill] sm:$0xff] %v9442_v18  ;;  %v1331_v46 = vmul.f32 %v9289_v16, %v1297_v48  ;;  %v9449_v1 = vadd.f32 %v2711_v20, %v2694_v5  ;;  %v2695_v37 = vadd.f32 %v2679_v28, %v2662_v11  ;;  %v2742_v10 = vmul.f32 0.01, %v2726_v31  ;;  %v1298_v51 = vld [vmem:[%s9279_s24 + $0x40] sm:$0xff] }
 0x55b   : > { %v2756_v35 = vmax.f32 %v2724_v41, %v2740_v32  ;;  %v2766_v23 = vmax.f32 %v2734_v50, %v2750_v21  ;;  %v2663_v38 = vadd.f32 %v9390_v58, %v9264_v24  ;;  %v2680_v8 = vmul.f32 %v9326_v56, %v9436_v61 }
 0x55c   : > { %v2757_v63 = vmax.f32 %v2725_v53, %v2741_v3  ;;  %v12892_v20 = vmov -1e+30   ;;  %v2713_v24 = vmul.f32 %v9355_v60, %v9440_v47  ;;  %v9470_v41 = vadd.f32 %v1380_v45, %v1363_v15  ;;  %v1125_v53 = vld [vmem:[%s9295_s30 + $0x20] sm:$0xff]  ;;  %v1283_v45 = vld [vmem:[%s9273_s2 + $0x48] sm:$0xff] }
 0x55d   : > { %v9456_v34 = vadd.f32 %v2756_v35, %v9352_v62  ;;  %v9459_v36 = vadd.f32 %v2766_v23, %v9393_v7  ;;  %v9466_v28 = vsel %vm1155_vm4, 0.0, %v12892_v20  ;;  %v2681_v50 = vmul.f32 %v9326_v56, %v9442_v18  ;;  %v1299_v35 = vld [vmem:[%s9279_s24 + $0x48] sm:$0xff]  ;;  %v1301_v62 = vld [vmem:[%s9279_s24 + $0x58] sm:$0xff] }
 0x55e   : > { %12893 = vst [vmem:[#allocation83_spill] sm:$0xff] %v9466_v28  ;;  %12894 = vst [vmem:[#allocation84_spill] sm:$0xff] %v9470_v41  ;;  %vm1156_vm5 = vcmp.gt.f32.partialorder %v1124_v42, 0.0  ;;  %v9477_v5 = vadd.f32 %v1331_v46, %v1314_v26  ;;  %v1364_v55 = vmul.f32 %v9300_v2, %v1281_v4  ;;  %v1381_v11 = vmul.f32 %v9307_v9, %v1297_v48 }
 0x55f   : > { %2788 = vmax.xlane.f32.xlu0 %v9456_v34  ;;  %2808 = vmax.xlane.f32.xlu1 %v9459_v36  ;;  %v2696_v32 = vadd.f32 %v2680_v8, %v2663_v38  ;;  %v2664_v21 = vadd.f32 %v9390_v58, %v9258_v44  ;;  %v1315_v3 = vmul.f32 %v9287_v43, %v1282_v13  ;;  %v2743_v46 = vmul.f32 0.01, %v9449_v1 }
 0x560   : > { %12895 = vst [vmem:[#allocation85_spill] sm:$0xff] %v9477_v5  ;;  %v1332_v15 = vmul.f32 %v9289_v16, %v1298_v51  ;;  %v9488_v23 = vadd.f32 %v2757_v63, %v9402_v30  ;;  %v2758_v26 = vmax.f32 %v2726_v31, %v2742_v10  ;;  %v2728_v4 = vadd.f32 %v2712_v19, %v2695_v37  ;;  %v1126_v37 = vld [vmem:[%s9295_s30 + $0x28] sm:$0xff] }
 0x561   : > { %v9492_v48 = vsel %vm1156_vm5, 0.0, %v12892_v20  ;;  %vm1157_vm6 = vcmp.gt.f32.partialorder %v1125_v53, 0.0  ;;  %v1365_v44 = vmul.f32 %v9300_v2, %v1282_v13  ;;  %v1382_v42 = vmul.f32 %v9307_v9, %v1298_v51  ;;  %v1285_v51 = vld [vmem:[%s9273_s2 + $0x58] sm:$0xff] }
 0x562   : > { %12896 = vst [vmem:[#allocation86_spill] sm:$0xff] %v9492_v48  ;;  %v2714_v38 = vmul.f32 %v9355_v60, %v9470_v41  ;;  %v9499_v8 = vadd.f32 %v1381_v11, %v1364_v55  ;;  %v1316_v31 = vmul.f32 %v9287_v43, %v1283_v45  ;;  %v1333_v19 = vmul.f32 %v9289_v16, %v1299_v35 }
 0x563   : > { %2790 = vmax.xlane.f32.xlu0 %v9488_v23  ;;  %v2729_v63 = vadd.f32 %v2713_v24, %v2696_v32  ;;  %v2697_v10 = vadd.f32 %v2681_v50, %v2664_v21  ;;  %v2682_v13 = vmul.f32 %v9326_v56, %v9477_v5  ;;  %v9506_v30 = vadd.f32 %v1332_v15, %v1315_v3  ;;  %v2636_v3 = vpop.permute.xlu0 %2635 }
 0x564   : > { %12897 = vst [vmem:[#allocation87_spill] sm:$0xff] %v9499_v8  ;;  %v9511_v7 = vadd.f32 %v2758_v26, %v9466_v28  ;;  %v2759_v55 = vmax.f32 %v9449_v1, %v2743_v46  ;;  %v2744_v11 = vmul.f32 0.01, %v2728_v4  ;;  %v2665_v52 = vadd.f32 %v9390_v58, %v9281_v27  ;;  %v1127_v1 = vld [vmem:[%s9295_s30 + $0x30] sm:$0xff]  ;;  %v1302_v28 = vld [vmem:[%s9279_s24 + $0x60] sm:$0xff] }
 0x565   : > { %12898 = vst [vmem:[#allocation88_spill] sm:$0xff] %v9506_v30  ;;  %v9518_v24 = vsel %vm1157_vm6, 0.0, %v12892_v20  ;;  %v9520_v50 = vadd.f32 %v1382_v42, %v1365_v44  ;;  %v1366_v32 = vmul.f32 %v9300_v2, %v1283_v45  ;;  %v1383_v21 = vmul.f32 %v9307_v9, %v1299_v35 }
 0x566   : > { %12899 = vst [vmem:[#allocation89_spill] sm:$0xff] %v9518_v24  ;;  %vm1158_vm7 = vcmp.gt.f32.partialorder %v1126_v37, 0.0  ;;  %v9526_v15 = vadd.f32 %v1333_v19, %v1316_v31  ;;  %v1318_v27 = vmul.f32 %v9287_v43, %v1285_v51  ;;  %v1335_v53 = vmul.f32 %v9289_v16, %v1301_v62  ;;  %v1286_v19 = vld [vmem:[%s9273_s2 + $0x60] sm:$0xff] }
 0x567   : > { %12900 = vst [vmem:[#allocation90_spill] sm:$0xff] %v9520_v50  ;;  %2792 = vmax.xlane.f32.xlu0 %v9511_v7  ;;  %v2745_v26 = vmul.f32 0.01, %v2729_v63  ;;  %v2730_v46 = vadd.f32 %v2714_v38, %v2697_v10  ;;  %v2715_v45 = vmul.f32 %v9355_v60, %v9499_v8  ;;  %v2683_v35 = vmul.f32 %v9326_v56, %v9506_v30 }
 0x568   : > { %12901 = vst [vmem:[#allocation91_spill] sm:$0xff] %v9526_v15  ;;  %v9535_v44 = vadd.f32 %v2759_v55, %v9492_v48  ;;  %v2760_v42 = vmax.f32 %v2728_v4, %v2744_v11  ;;  %v2698_v37 = vadd.f32 %v2682_v13, %v2665_v52  ;;  %v2666_v31 = vadd.f32 %v9390_v58, %v9311_v39 }
 0x569   : > { %v9542_v38 = vsel %vm1158_vm7, 0.0, %v12892_v20  ;;  %vm1159_vm8 = vcmp.gt.f32.partialorder %v1127_v1, 0.0  ;;  %v2716_v10 = vmul.f32 %v9355_v60, %v9520_v50  ;;  %v9546_v29 = vadd.f32 %v1383_v21, %v1366_v32  ;;  %v1303_v32 = vld [vmem:[%s9279_s24 + $0x68] sm:$0xff]  ;;  %v2640_v21 = vpop.permute.xlu0 %2639 }
 0x56a   : > { %12902 = vst [vmem:[#allocation92_spill] sm:$0xff] %v9542_v38  ;;  %v2684_v52 = vmul.f32 %v9326_v56, %v9526_v15  ;;  %v9551_v4 = vadd.f32 %v1335_v53, %v1318_v27  ;;  %v1368_v39 = vmul.f32 %v9300_v2, %v1285_v51  ;;  %v1385_v13 = vmul.f32 %v9307_v9, %v1301_v62 }
 0x56b   : > { %12903 = vst [vmem:[#allocation93_spill] sm:$0xff] %v9546_v29  ;;  %2794 = vmax.xlane.f32.xlu0 %v9535_v44  ;;  %v2761_v55 = vmax.f32 %v2729_v63, %v2745_v26  ;;  %v2746_v11 = vmul.f32 0.01, %v2730_v46  ;;  %v1319_v48 = vmul.f32 %v9287_v43, %v1286_v19  ;;  %v1336_v49 = vmul.f32 %v9289_v16, %v1302_v28 }
 0x56c   : > { %12904 = vst [vmem:[#allocation94_spill] sm:$0xff] %v9551_v4  ;;  %v9560_v33 = vadd.f32 %v2760_v42, %v9518_v24  ;;  %v2731_v40 = vadd.f32 %v2715_v45, %v2698_v37  ;;  %v2699_v27 = vadd.f32 %v2683_v35, %v2666_v31  ;;  %v2667_v62 = vadd.f32 %v9390_v58, %v9348_v57  ;;  %v1128_v37 = vld [vmem:[%s9295_s30 + $0x38] sm:$0xff]  ;;  %v1304_v24 = vld [vmem:[%s9279_s24 + $0x70] sm:$0xff] }
 0x56d   : > { %v9566_v63 = vsel %vm1159_vm8, 0.0, %v12892_v20  ;;  %v1369_v51 = vmul.f32 %v9300_v2, %v1286_v19  ;;  %v1386_v53 = vmul.f32 %v9307_v9, %v1302_v28  ;;  %v2717_v26 = vmul.f32 %v9355_v60, %v9546_v29  ;;  %v1288_v19 = vld [vmem:[%s9273_s2 + $0x70] sm:$0xff] }
 0x56e   : > { %12905 = vst [vmem:[#allocation95_spill] sm:$0xff] %v9566_v63  ;;  %v9573_v45 = vadd.f32 %v1385_v13, %v1368_v39  ;;  %v1320_v35 = vmul.f32 %v9287_v43, %v1287_v17  ;;  %v1337_v42 = vmul.f32 %v9289_v16, %v1303_v32  ;;  %v9578_v57 = vadd.f32 %v2761_v55, %v9542_v38 }
 0x56f   : > { %2796 = vmax.xlane.f32.xlu0 %v9560_v33  ;;  %v2762_v1 = vmax.f32 %v2730_v46, %v2746_v11  ;;  %v2686_v28 = vmul.f32 %v9326_v56, %v9551_v4  ;;  %v9583_v31 = vadd.f32 %v1336_v49, %v1319_v48  ;;  %v2747_v12 = vmul.f32 0.01, %v2731_v40  ;;  %v2644_v11 = vpop.permute.xlu0 %2643  ;;  %v1129_v49 = vld [vmem:[%s9295_s30 + $0x40] sm:$0xff] }
 0x570   : > { %12906 = vst [vmem:[#allocation96_spill] sm:$0xff] %v9573_v45  ;;  %v2732_v39 = vadd.f32 %v2716_v10, %v2699_v27  ;;  %v2700_v13 = vadd.f32 %v2684_v52, %v2667_v62  ;;  %v2669_v14 = vadd.f32 %v9390_v58, %v2636_v3  ;;  %v9588_v0 = vadd.f32 %v1386_v53, %v1369_v51 }
 0x571   : > { %12907 = vst [vmem:[#allocation97_spill] sm:$0xff] %v9583_v31  ;;  %v1370_v55 = vmul.f32 %v9300_v2, %v1287_v17  ;;  %v1387_v46 = vmul.f32 %v9307_v9, %v1303_v32  ;;  %vm1160_vm9 = vcmp.gt.f32.partialorder %v1128_v37, 0.0  ;;  %v9594_v48 = vadd.f32 %v1337_v42, %v1320_v35  ;;  %v1289_v42 = vld [vmem:[%s9273_s2 + $0x78] sm:$0xff] }
 0x572   : > { %12908 = vst [vmem:[#allocation98_spill] sm:$0xff] %v9588_v0  ;;  %v1321_v10 = vmul.f32 %v9287_v43, %v1288_v19  ;;  %v1338_v52 = vmul.f32 %v9289_v16, %v1304_v24  ;;  %v9599_v3 = vadd.f32 %v2762_v1, %v9566_v63  ;;  %v2719_v17 = vmul.f32 %v9355_v60, %v9573_v45  ;;  %v1305_v37 = vld [vmem:[%s9279_s24 + $0x78] sm:$0xff]  ;;  %s7136_s24 = sld [smem:[#allocation16 + $0x7]] }
 0x573   : > { %2798 = vmax.xlane.f32.xlu0 %v9578_v57  ;;  %12909 = vst [vmem:[#allocation99_spill] sm:$0xff] %v9594_v48  ;;  %v2670_v32 = vadd.f32 %v9390_v58, %v2640_v21  ;;  %v2687_v27 = vmul.f32 %v9326_v56, %v9583_v31  ;;  %v2763_v62 = vmax.f32 %v2731_v40, %v2747_v12  ;;  %v2748_v51 = vmul.f32 0.01, %v2732_v39  ;;  %v1130_v21 = vld [vmem:[%s9295_s30 + $0x48] sm:$0xff] }
 0x574   : > { %v2733_v53 = vadd.f32 %v2717_v26, %v2700_v13  ;;  %v2702_v35 = vadd.f32 %v2686_v28, %v2669_v14  ;;  %v9609_v38 = vsel %vm1160_vm9, 0.0, %v12892_v20  ;;  %vm1161_vm10 = vcmp.gt.f32.partialorder %v1129_v49, 0.0 }
 0x575   : > { %12910 = vst [vmem:[#allocation100_spill] sm:$0xff] %v9609_v38  ;;  %v2720_v1 = vmul.f32 %v9355_v60, %v9588_v0  ;;  %v9613_v63 = vadd.f32 %v1387_v46, %v1370_v55  ;;  %v2688_v40 = vmul.f32 %v9326_v56, %v9594_v48  ;;  %v9619_v12 = vadd.f32 %v1338_v52, %v1321_v10  ;;  %v2648_v46 = vpop.permute.xlu0 %2647 }
 0x576   : > { %v1371_v14 = vmul.f32 %v9300_v2, %v1288_v19  ;;  %v1388_v26 = vmul.f32 %v9307_v9, %v1304_v24  ;;  %v2703_v28 = vadd.f32 %v2687_v27, %v2670_v32  ;;  %v2671_v13 = vadd.f32 %v9390_v58, %v2644_v11  ;;  %v1132_v32 = vld [vmem:[%s9295_s30 + $0x58] sm:$0xff] }
 0x577   : > { %12911 = vst [vmem:[#allocation101_spill] sm:$0xff] %v9613_v63  ;;  %2800 = vmax.xlane.f32.xlu0 %v9599_v3  ;;  %12912 = vst [vmem:[#allocation102_spill] sm:$0xff] %v9619_v12  ;;  %v1322_v25 = vmul.f32 %v9287_v43, %v1289_v42  ;;  %v1339_v55 = vmul.f32 %v9289_v16, %v1305_v37  ;;  %v9627_v47 = vadd.f32 %v2763_v62, %v9609_v38 }
 0x578   : > { %v2764_v22 = vmax.f32 %v2732_v39, %v2748_v51  ;;  %v2749_v61 = vmul.f32 0.01, %v2733_v53  ;;  %v2735_v10 = vadd.f32 %v2719_v17, %v2702_v35  ;;  %v9631_v19 = vsel %vm1161_vm10, 0.0, %v12892_v20 }
 0x579   : > { %12913 = vst [vmem:[#allocation103_spill] sm:$0xff] %v9631_v19  ;;  %vm1162_vm11 = vcmp.gt.f32.partialorder %v1130_v21, 0.0  ;;  %v2721_v24 = vmul.f32 %v9355_v60, %v9613_v63  ;;  %v9636_v11 = vadd.f32 %v1388_v26, %v1371_v14  ;;  %v2689_v52 = vmul.f32 %v9326_v56, %v9619_v12  ;;  %v2652_v38 = vpop.permute.xlu0 %2651 }
 0x57a   : > { %v1372_v39 = vmul.f32 %v9300_v2, %v1289_v42  ;;  %v2704_v17 = vadd.f32 %v2688_v40, %v2671_v13  ;;  %v2672_v49 = vadd.f32 %v9390_v58, %v2648_v46  ;;  %v9643_v27 = vadd.f32 %v1339_v55, %v1322_v25  ;;  %v1133_v42 = vld [vmem:[%s9295_s30 + $0x60] sm:$0xff]  ;;  %v1134_v46 = vld [vmem:[%s9295_s30 + $0x68] sm:$0xff] }
 0x57b   : > { %2802 = vmax.xlane.f32.xlu0 %v9627_v47  ;;  %12914 = vst [vmem:[#allocation104_spill] sm:$0xff] %v9636_v11  ;;  %v1389_v62 = vmul.f32 %v9307_v9, %v1305_v37  ;;  %v9647_v51 = vadd.f32 %v2764_v22, %v9631_v19  ;;  %v2765_v35 = vmax.f32 %v2733_v53, %v2749_v61  ;;  %v2751_v21 = vmul.f32 0.01, %v2735_v10  ;;  %v12964_v9 = vld [vmem:[#allocation23_spill] sm:$0xff] }
 0x57c   : > { %12915 = vst [vmem:[#allocation105_spill] sm:$0xff] %v9643_v27  ;;  %v2736_v14 = vadd.f32 %v2720_v1, %v2703_v28  ;;  %v9650_v26 = vsel %vm1162_vm11, 0.0, %v12892_v20  ;;  %vm1164_vm12 = vcmp.gt.f32.partialorder %v1132_v32, 0.0  ;;  %v2722_v25 = vmul.f32 %v9355_v60, %v9636_v11 }
 0x57d   : > { %12916 = vst [vmem:[#allocation106_spill] sm:$0xff] %v9650_v26  ;;  %v2705_v40 = vadd.f32 %v2689_v52, %v2672_v49  ;;  %v9656_v37 = vadd.f32 %v1389_v62, %v1372_v39  ;;  %v2673_v22 = vadd.f32 %v9390_v58, %v2652_v38  ;;  %v2690_v61 = vmul.f32 %v9326_v56, %v9643_v27  ;;  %v12956_v56 = vld [vmem:[#allocation53_spill] sm:$0xff] }
 0x57e   : > { %v9662_v53 = vadd.f32 %v2765_v35, %v9650_v26  ;;  %v2767_v1 = vmax.f32 %v2735_v10, %v2751_v21  ;;  %v2752_v28 = vmul.f32 0.01, %v2736_v14  ;;  %v2737_v13 = vadd.f32 %v2721_v24, %v2704_v17  ;;  %v1135_v17 = vld [vmem:[%s9295_s30 + $0x70] sm:$0xff] }
 0x57f   : > { %2804 = vmax.xlane.f32.xlu0 %v9647_v51  ;;  %12917 = vst [vmem:[#allocation107_spill] sm:$0xff] %v9656_v37  ;;  %v9665_v55 = vsel %vm1164_vm12, 0.0, %v12892_v20  ;;  %vm1165_vm13 = vcmp.gt.f32.partialorder %v1133_v42, 0.0  ;;  %v2706_v52 = vadd.f32 %v2690_v61, %v2673_v22  ;;  %v2723_v58 = vmul.f32 %v9355_v60, %v9656_v37 }
 0x580   : > { %12918 = vst [vmem:[#allocation108_spill] sm:$0xff] %v9665_v55  ;;  %v9672_v38 = vadd.f32 %v2767_v1, %v9665_v55  ;;  %v2768_v39 = vmax.f32 %v2736_v14, %v2752_v28  ;;  %v2753_v10 = vmul.f32 0.01, %v2737_v13  ;;  %v2738_v32 = vadd.f32 %v2722_v25, %v2705_v40  ;;  %v1136_v14 = vld [vmem:[%s9295_s30 + $0x78] sm:$0xff] }
 0x581   : > { %v9675_v24 = vsel %vm1165_vm13, 0.0, %v12892_v20  ;;  %vm1166_vm14 = vcmp.gt.f32.partialorder %v1134_v46, 0.0  ;;  %v2739_v21 = vadd.f32 %v2723_v58, %v2706_v52  ;;  %vm1167_vm15 = vcmp.gt.f32.partialorder %v1135_v17, 0.0 }
 0x582   : > { %12919 = vst [vmem:[#allocation109_spill] sm:$0xff] %v9675_v24  ;;  %v9680_v49 = vadd.f32 %v2768_v39, %v9675_v24  ;;  %v2769_v62 = vmax.f32 %v2737_v13, %v2753_v10  ;;  %v2754_v35 = vmul.f32 0.01, %v2738_v32  ;;  %v9683_v42 = vsel %vm1166_vm14, 0.0, %v12892_v20 }
 0x583   : > { %2806 = vmax.xlane.f32.xlu0 %v9662_v53  ;;  %12920 = vst [vmem:[#allocation110_spill] sm:$0xff] %v9683_v42  ;;  %v2755_v22 = vmul.f32 0.01, %v2739_v21  ;;  %v9691_v61 = vsel %vm1167_vm15, 0.0, %v12892_v20  ;;  %vm1168_vm0 = vcmp.gt.f32.partialorder %v1136_v14, 0.0 }
 0x584   : > { %v9688_v25 = vadd.f32 %v2769_v62, %v9683_v42  ;;  %v2770_v40 = vmax.f32 %v2738_v32, %v2754_v35  ;;  %12921 = vst [vmem:[#allocation111_spill] sm:$0xff] %v9691_v61  ;;  %v9698_v13 = vsel %vm1168_vm0, 0.0, %v12892_v20 }
 0x585   : > { %v2771_v28 = vmax.f32 %v2739_v21, %v2755_v22  ;;  %12922 = vst [vmem:[#allocation112_spill] sm:$0xff] %v9698_v13 }
 0x586   : > { %v9695_v1 = vadd.f32 %v2770_v40, %v9691_v61 }
 0x587   : > { %2810 = vmax.xlane.f32.xlu0 %v9672_v38  ;;  %v9702_v46 = vadd.f32 %v2771_v28, %v9698_v13 }
 0x58b   : > { %2812 = vmax.xlane.f32.xlu0 %v9680_v49 }
 0x58f   : > { %2814 = vmax.xlane.f32.xlu0 %v9688_v25 }
 0x593   : > { %2816 = vmax.xlane.f32.xlu0 %v9695_v1 }
 0x597   : > { %2818 = vmax.xlane.f32.xlu0 %v9702_v46 }
 0x5e8   : > { %v2789_v52 = vpop.xlane.xlu0 %2788 }
 0x5e9   : > { %v2820_v58 = vsub.f32 %v9456_v34, %v2789_v52 }
 0x5eb   : > { %v2836_v39 = vmul.f32 1.442695, %v2820_v58 }
 0x5ec   : > { %v2791_v10 = vpop.xlane.xlu0 %2790 }
 0x5ed   : > { %v2821_v32 = vsub.f32 %v9488_v23, %v2791_v10  ;;  %7716 = vpow2.f32 %v2836_v39 }
 0x5ef   : > { %v2838_v17 = vmul.f32 1.442695, %v2821_v32 }
 0x5f0   : > { %v2793_v62 = vpop.xlane.xlu0 %2792 }
 0x5f1   : > { %7718 = vpow2.f32 %v2838_v17  ;;  %v2822_v35 = vsub.f32 %v9511_v7, %v2793_v62 }
 0x5f3   : > { %v2840_v21 = vmul.f32 1.442695, %v2822_v35  ;;  %v2809_v35 = vpop.xlane.xlu1 %2808 }
 0x5f4   : > { %v2795_v14 = vpop.xlane.xlu0 %2794 }
 0x5f5   : > { %7720 = vpow2.f32 %v2840_v21  ;;  %v2823_v40 = vsub.f32 %v9535_v44, %v2795_v14 }
 0x5f7   : > { %v2842_v22 = vmul.f32 1.442695, %v2823_v40  ;;  %v2830_v40 = vsub.f32 %v9459_v36, %v2809_v35 }
 0x5f8   : > { %v2797_v28 = vpop.xlane.xlu0 %2796 }
 0x5f9   : > { %7722 = vpow2.f32 %v2842_v22  ;;  %v2824_v34 = vsub.f32 %v9560_v33, %v2797_v28 }
 0x5fa   : > { %v9710_v52 = vpop.eup %7716 }
 0x5fb   : > { %v2844_v58 = vmul.f32 1.442695, %v2824_v34  ;;  %2868 = vadd.xlane.f32.xlu0 %v9710_v52 }
 0x5fc   : > { %v2799_v23 = vpop.xlane.xlu0 %2798 }
 0x5fd   : > { %7724 = vpow2.f32 %v2844_v58  ;;  %v2825_v39 = vsub.f32 %v9578_v57, %v2799_v23  ;;  %v2856_v58 = vmul.f32 1.442695, %v2830_v40 }
 0x5fe   : > { %v9714_v7 = vpop.eup %7718 }
 0x5ff   : > { %v2846_v10 = vmul.f32 1.442695, %v2825_v39  ;;  %2870 = vadd.xlane.f32.xlu0 %v9714_v7 }
 0x600   : > { %v2801_v44 = vpop.xlane.xlu0 %2800 }
 0x601   : > { %7726 = vpow2.f32 %v2846_v10  ;;  %v2826_v32 = vsub.f32 %v9599_v3, %v2801_v44 }
 0x602   : > { %v9718_v17 = vpop.eup %7720 }
 0x603   : > { %v2848_v33 = vmul.f32 1.442695, %v2826_v32  ;;  %2872 = vadd.xlane.f32.xlu0 %v9718_v17 }
 0x604   : > { %v2803_v62 = vpop.xlane.xlu0 %2802 }
 0x605   : > { %7728 = vpow2.f32 %v2848_v33  ;;  %v2827_v21 = vsub.f32 %v9627_v47, %v2803_v62 }
 0x606   : > { %v9722_v57 = vpop.eup %7722 }
 0x607   : > { %v2850_v14 = vmul.f32 1.442695, %v2827_v21  ;;  %2874 = vadd.xlane.f32.xlu0 %v9722_v57 }
 0x608   : > { %v2805_v22 = vpop.xlane.xlu0 %2804 }
 0x609   : > { %7730 = vpow2.f32 %v2850_v14  ;;  %v2828_v3 = vsub.f32 %v9647_v51, %v2805_v22 }
 0x60a   : > { %v9727_v28 = vpop.eup %7724 }
 0x60b   : > { %v2852_v34 = vmul.f32 1.442695, %v2828_v3  ;;  %2876 = vadd.xlane.f32.xlu0 %v9727_v28 }
 0x60c   : > { %v2807_v23 = vpop.xlane.xlu0 %2806 }
 0x60d   : > { %7732 = vpow2.f32 %v2852_v34  ;;  %v2829_v47 = vsub.f32 %v9662_v53, %v2807_v23 }
 0x60e   : > { %v9731_v39 = vpop.eup %7726  ;;  %7734 = vpow2.f32 %v2856_v58 }
 0x60f   : > { %v2854_v10 = vmul.f32 1.442695, %v2829_v47  ;;  %2878 = vadd.xlane.f32.xlu1 %v9731_v39 }
 0x610   : > { %v2811_v36 = vpop.xlane.xlu0 %2810 }
 0x611   : > { %7736 = vpow2.f32 %v2854_v10  ;;  %v2831_v51 = vsub.f32 %v9672_v38, %v2811_v36 }
 0x612   : > { %v9735_v44 = vpop.eup %7728 }
 0x613   : > { %v2858_v32 = vmul.f32 1.442695, %v2831_v51  ;;  %2880 = vadd.xlane.f32.xlu0 %v9735_v44 }
 0x614   : > { %v2813_v33 = vpop.xlane.xlu0 %2812 }
 0x615   : > { %7738 = vpow2.f32 %v2858_v32  ;;  %v2832_v62 = vsub.f32 %v9680_v49, %v2813_v33 }
 0x616   : > { %v9739_v53 = vpop.eup %7730 }
 0x617   : > { %v2860_v35 = vmul.f32 1.442695, %v2832_v62  ;;  %2882 = vadd.xlane.f32.xlu1 %v9739_v53 }
 0x618   : > { %v2815_v21 = vpop.xlane.xlu0 %2814 }
 0x619   : > { %7740 = vpow2.f32 %v2860_v35  ;;  %v2833_v14 = vsub.f32 %v9688_v25, %v2815_v21 }
 0x61a   : > { %v9743_v40 = vpop.eup %7732 }
 0x61b   : > { %v2862_v38 = vmul.f32 1.442695, %v2833_v14  ;;  %2884 = vadd.xlane.f32.xlu0 %v9743_v40  ;;  %v9746_v3 = vpop.eup %7734 }
 0x61c   : > { %v2817_v22 = vpop.xlane.xlu0 %2816 }
 0x61d   : > { %7742 = vpow2.f32 %v2862_v38  ;;  %v2834_v49 = vsub.f32 %v9695_v1, %v2817_v22 }
 0x61e   : > { %v9749_v34 = vpop.eup %7736 }
 0x61f   : > { %v2864_v58 = vmul.f32 1.442695, %v2834_v49  ;;  %2888 = vadd.xlane.f32.xlu0 %v9746_v3  ;;  %2886 = vadd.xlane.f32.xlu1 %v9749_v34 }
 0x620   : > { %v2819_v23 = vpop.xlane.xlu0 %2818 }
 0x621   : > { %7744 = vpow2.f32 %v2864_v58  ;;  %v2835_v25 = vsub.f32 %v9702_v46, %v2819_v23 }
 0x622   : > { %v9754_v47 = vpop.eup %7738 }
 0x623   : > { %v2866_v10 = vmul.f32 1.442695, %v2835_v25  ;;  %2890 = vadd.xlane.f32.xlu1 %v9754_v47 }
 0x625   : > { %7746 = vpow2.f32 %v2866_v10 }
 0x626   : > { %v9757_v36 = vpop.eup %7740 }
 0x627   : > { %2892 = vadd.xlane.f32.xlu0 %v9757_v36 }
 0x62a   : > { %v9760_v1 = vpop.eup %7742 }
 0x62b   : > { %2894 = vadd.xlane.f32.xlu1 %v9760_v1 }
 0x62e   : > { %v9763_v51 = vpop.eup %7744 }
 0x62f   : > { %2896 = vadd.xlane.f32.xlu0 %v9763_v51 }
 0x632   : > { %v9766_v32 = vpop.eup %7746 }
 0x633   : > { %2898 = vadd.xlane.f32.xlu1 %v9766_v32 }
 0x684   : > { %v2869_v46 = vpop.xlane.xlu0 %2868 }
 0x685   : > { %7748 = vrcp.f32 %v2869_v46  ;;  %v12923_v46 = vmov 0  }
 0x688   : > { %v2871_v33 = vpop.xlane.xlu0 %2870 }
 0x689   : > { %7750 = vrcp.f32 %v2871_v33 }
 0x68c   : > { %v2873_v62 = vpop.xlane.xlu0 %2872 }
 0x68d   : > { %7752 = vrcp.f32 %v2873_v62 }
 0x690   : > { %v2875_v35 = vpop.xlane.xlu0 %2874 }
 0x691   : > { %7754 = vrcp.f32 %v2875_v35 }
 0x692   : > { %v7749_v21 = vpop.eup %7748 }
 0x693   : > { %v9770_v22 = vmul.f32 %v7749_v21, %v9710_v52 }
 0x694   : > { %v2877_v14 = vpop.xlane.xlu0 %2876 }
 0x695   : > { %7756 = vrcp.f32 %v2877_v14 }
 0x696   : > { %v7751_v38 = vpop.eup %7750 }
 0x697   : > { %v9773_v49 = vmul.f32 %v7751_v38, %v9714_v7 }
 0x698   : > { %v2879_v58 = vpop.xlane.xlu1 %2878 }
 0x699   : > { %7758 = vrcp.f32 %v2879_v58  ;;  %v2932_v23 = vpack.c.bf16 %v9773_v49, %v9770_v22 }
 0x69a   : > { %v7753_v10 = vpop.eup %7752 }
 0x69b   : > { %3112 = vmatmul.mubr.bf16.vlgmr.msra.gmra.mxu1 %v2932_v23  ;;  %v9779_v35 = vmul.f32 %v7753_v10, %v9718_v17 }
 0x69c   : > { %v2881_v25 = vpop.xlane.xlu0 %2880  ;;  %3121 = vmatprep.mubr.bf16.mxu1 %v12923_v46 }
 0x69d   : > { %7760 = vrcp.f32 %v2881_v25 }
 0x69e   : > { %v7755_v33 = vpop.eup %7754 }
 0x69f   : > { %v9782_v52 = vmul.f32 %v7755_v33, %v9722_v57 }
 0x6a0   : > { %v2883_v62 = vpop.xlane.xlu1 %2882 }
 0x6a1   : > { %7762 = vrcp.f32 %v2883_v62  ;;  %v2933_v7 = vpack.c.bf16 %v9782_v52, %v9779_v35 }
 0x6a2   : > { %v7757_v21 = vpop.eup %7756 }
 0x6a3   : > { %3122 = vmatmul.mubr.bf16.gmra.mxu1 %v2933_v7  ;;  %v9788_v58 = vmul.f32 %v7757_v21, %v9727_v28 }
 0x6a4   : > { %v2885_v14 = vpop.xlane.xlu0 %2884  ;;  %3131 = vmatprep.mubr.bf16.mxu1 %v12923_v46 }
 0x6a5   : > { %7764 = vrcp.f32 %v2885_v14 }
 0x6a6   : > { %v7759_v38 = vpop.eup %7758 }
 0x6a7   : > { %v9791_v17 = vmul.f32 %v7759_v38, %v9731_v39 }
 0x6a8   : > { %v2887_v23 = vpop.xlane.xlu1 %2886  ;;  %v2889_v33 = vpop.xlane.xlu0 %2888 }
 0x6a9   : > { %7766 = vrcp.f32 %v2887_v23  ;;  %v2934_v57 = vpack.c.bf16 %v9791_v17, %v9788_v58 }
 0x6aa   : > { %v7761_v25 = vpop.eup %7760 }
 0x6ab   : > { %3132 = vmatmul.mubr.bf16.gmra.mxu1 %v2934_v57  ;;  %v9797_v7 = vmul.f32 %v7761_v25, %v9735_v44 }
 0x6ac   : > { %v2891_v10 = vpop.xlane.xlu1 %2890  ;;  %3141 = vmatprep.mubr.bf16.mxu1 %v12923_v46 }
 0x6ad   : > { %7768 = vrcp.f32 %v2891_v10 }
 0x6ae   : > { %v7763_v62 = vpop.eup %7762  ;;  %7770 = vrcp.f32 %v2889_v33 }
 0x6af   : > { %v9800_v28 = vmul.f32 %v7763_v62, %v9739_v53 }
 0x6b0   : > { %v2893_v14 = vpop.xlane.xlu0 %2892 }
 0x6b1   : > { %v2935_v39 = vpack.c.bf16 %v9800_v28, %v9797_v7 }
 0x6b2   : > { %v7765_v21 = vpop.eup %7764 }
 0x6b3   : > { %3142 = vmatmul.mubr.bf16.gmra.mxu1 %v2935_v39  ;;  %v2924_v57 = vmul.f32 %v7765_v21, %v9743_v40 }
 0x6b4   : > { %v2895_v38 = vpop.xlane.xlu1 %2894  ;;  %3151 = vmatprep.mubr.bf16.mxu1 %v12923_v46 }
 0x6b5   : > { %7772 = vrcp.f32 %v2895_v38 }
 0x6b6   : > { %v7767_v23 = vpop.eup %7766  ;;  %7774 = vrcp.f32 %v2893_v14 }
 0x6b7   : > { %v2925_v44 = vmul.f32 %v7767_v23, %v9749_v34 }
 0x6b8   : > { %v2897_v25 = vpop.xlane.xlu0 %2896 }
 0x6b9   : > { %7776 = vrcp.f32 %v2897_v25  ;;  %v2936_v53 = vpack.c.bf16 %v2925_v44, %v2924_v57 }
 0x6ba   : > { %v7769_v10 = vpop.eup %7768 }
 0x6bb   : > { %3152 = vmatmul.mubr.bf16.gmra.mxu1 %v2936_v53  ;;  %v7771_v62 = vpop.eup %7770  ;;  %v2927_v39 = vmul.f32 %v7769_v10, %v9754_v47 }
 0x6bc   : > { %v2899_v33 = vpop.xlane.xlu1 %2898  ;;  %3161 = vmatprep.mubr.bf16.mxu1 %v12923_v46  ;;  %v2926_v13 = vmul.f32 %v7771_v62, %v9746_v3 }
 0x6bd   : > { %7778 = vrcp.f32 %v2899_v33 }
 0x6be   : > { %v2937_v38 = vpack.c.bf16 %v2927_v39, %v2926_v13 }
 0x6c2   : > { %v7773_v61 = vpop.eup %7772 }
 0x6c3   : > { %3162 = vmatmul.mubr.bf16.gmra.mxu1 %v2937_v38  ;;  %v7775_v40 = vpop.eup %7774  ;;  %v2929_v21 = vmul.f32 %v7773_v61, %v9760_v1  ;;  %v2950_v38 = vmul.f32 %v2926_v13, %v9343_v54  ;;  %v12968_v54 = vld [vmem:[#allocation46_spill] sm:$0xff] }
 0x6c4   : > { %3171 = vmatprep.mubr.bf16.mxu1 %v12923_v46  ;;  %v2928_v23 = vmul.f32 %v7775_v40, %v9757_v36  ;;  %v2951_v40 = vmul.f32 %v2927_v39, %v9551_v4  ;;  %v12944_v4 = vld [vmem:[#allocation56_spill] sm:$0xff]  ;;  %v9975_v43 = vmul.f32 0.3, %v12968_v54 }
 0x6c5   : > { %v3001_v62 = vmul.f32 %v2929_v21, %v9613_v63  ;;  %v1265_v63 = vld [vmem:[%s12545_s12] ss:$2 sm:$0x3]  ;;  %v12979_v54 = vld [vmem:[#allocation28_spill] sm:$0xff] }
 0x6c6   : > { %v7777_v34 = vpop.eup %7776  ;;  %v2938_v33 = vpack.c.bf16 %v2929_v21, %v2928_v23  ;;  %v2952_v36 = vmul.f32 %v2928_v23, %v9583_v31  ;;  %v12942_v31 = vld [vmem:[#allocation25_spill] sm:$0xff]  ;;  %v9969_v2 = vrot.slane %v1265_v63, %v12964_v9  ;;  %12969 = vst [vmem:[#allocation133_spill] sm:$0xff] %v9975_v43 }
 0x6c7   : > { %v2930_v14 = vmul.f32 %v7777_v34, %v9763_v51  ;;  %v2953_v51 = vmul.f32 %v2929_v21, %v9594_v48  ;;  %v2998_v34 = vmul.f32 %v2926_v13, %v9345_v59  ;;  %v2996_v21 = vmul.f32 %v2924_v57, %v9520_v50  ;;  %v12966_v59 = vld [vmem:[#allocation49_spill] sm:$0xff] }
 0x6c8   : > { %v2947_v13 = vmul.f32 %v9800_v28, %v9477_v5  ;;  %v12948_v5 = vld [vmem:[#allocation55_spill] sm:$0xff]  ;;  %12965 = vst [vmem:[#allocation131_spill] sm:$0xff] %v9969_v2  ;;  %v9972_v16 = vmul.f32 0.3, %v12966_v59 }
 0x6c9   : > { %v2954_v25 = vmul.f32 %v2930_v14, %v9619_v12  ;;  %v3002_v10 = vmul.f32 %v2930_v14, %v9636_v11 }
 0x6ca   : > { %v7779_v53 = vpop.eup %7778  ;;  %12967 = vst [vmem:[#allocation132_spill] sm:$0xff] %v9972_v16 }
 0x6cb   : > { %2984 = vadd.xlane.f32.xlu0 %v2954_v25  ;;  %v2931_v3 = vmul.f32 %v7779_v53, %v9766_v32  ;;  %3172 = vmatmul.mubr.bf16.gmra.mxu1 %v2938_v33  ;;  %v3000_v32 = vmul.f32 %v2928_v23, %v9588_v0  ;;  %v2948_v23 = vmul.f32 %v2924_v57, %v9506_v30  ;;  %v7042_v0 = vld [vmem:[%s12545_s12 + $0x1] ss:$2 sm:$0x3]  ;;  %v12946_v30 = vld [vmem:[#allocation24_spill] sm:$0xff] }
 0x6cc   : > { %3181 = vmatprep.mubr.bf16.mxu1 %v12923_v46  ;;  %v2949_v25 = vmul.f32 %v2925_v44, %v9526_v15  ;;  %v2997_v53 = vmul.f32 %v2925_v44, %v9546_v29  ;;  %v2946_v33 = vmul.f32 %v9797_v7, %v9442_v18  ;;  %v2995_v57 = vmul.f32 %v9800_v28, %v9499_v8  ;;  %v12924_v44 = vld [vmem:[#allocation80_spill] sm:$0xff]  ;;  %v12928_v28 = vld [vmem:[#allocation74_spill] sm:$0xff]  ;;  %v12950_v18 = vld [vmem:[#allocation27_spill] sm:$0xff] }
 0x6cd   : > { %v2955_v47 = vmul.f32 %v2931_v3, %v9643_v27  ;;  %v3003_v61 = vmul.f32 %v2931_v3, %v9656_v37  ;;  %v2939_v1 = vpack.c.bf16 %v2931_v3, %v2930_v14  ;;  %v2999_v14 = vmul.f32 %v2927_v39, %v9573_v45 }
 0x6ce   : > { %v2994_v39 = vmul.f32 %v9797_v7, %v9470_v41  ;;  %v2944_v3 = vmul.f32 %v9788_v58, %v9408_v6  ;;  %v9930_v45 = vmul.f32 0.3, %v12942_v31  ;;  %v9933_v29 = vmul.f32 0.3, %v12944_v4  ;;  %v12954_v6 = vld [vmem:[#allocation26_spill] sm:$0xff] }
 0x6cf   : > { %2986 = vadd.xlane.f32.xlu1 %v2955_v47  ;;  %3032 = vadd.xlane.f32.xlu0 %v3002_v10  ;;  %v2945_v47 = vmul.f32 %v9791_v17, %v12924_v44  ;;  %v12925_v10 = vld [vmem:[#allocation79_spill] sm:$0xff]  ;;  %v9940_v8 = vmul.f32 0.3, %v12946_v30  ;;  %v9943_v41 = vmul.f32 0.3, %v12948_v5  ;;  %v12952_v44 = vld [vmem:[#allocation54_spill] sm:$0xff]  ;;  %v9995_v31 = vrot.slane %v1265_v63, %v12979_v54 }
 0x6d0   : > { %12943 = vst [vmem:[#allocation120_spill] sm:$0xff] %v9930_v45  ;;  %12945 = vst [vmem:[#allocation121_spill] sm:$0xff] %v9933_v29  ;;  %v9952_v60 = vmul.f32 0.3, %v12954_v6  ;;  %v12977_v30 = vld [vmem:[#allocation42_spill] sm:$0xff] }
 0x6d1   : > { %12947 = vst [vmem:[#allocation122_spill] sm:$0xff] %v9940_v8  ;;  %12949 = vst [vmem:[#allocation123_spill] sm:$0xff] %v9943_v41  ;;  %v9992_v59 = vmul.f32 0.3, %v12977_v30  ;;  %v12988_v30 = vld [vmem:[#allocation38_spill] sm:$0xff] }
 0x6d2   : > { %12955 = vst [vmem:[#allocation126_spill] sm:$0xff] %v9952_v60  ;;  %12980 = vst [vmem:[#allocation28_spill] sm:$0xff] %v9995_v31  ;;  %v10010_v45 = vmul.f32 0.3, %v12988_v30  ;;  %v12990_v60 = vld [vmem:[#allocation39_spill] sm:$0xff]  ;;  %v13002_v30 = vld [vmem:[#allocation33_spill] sm:$0xff] }
 0x6d3   : > { %3034 = vadd.xlane.f32.xlu1 %v3003_v61  ;;  %2980 = vadd.xlane.f32.xlu0 %v2952_v36  ;;  %v2992_v61 = vmul.f32 %v9788_v58, %v12925_v10  ;;  %v12926_v36 = vld [vmem:[#allocation81_spill] sm:$0xff]  ;;  %v9949_v10 = vmul.f32 0.3, %v12952_v44  ;;  %v12973_v44 = vld [vmem:[#allocation44_spill] sm:$0xff]  ;;  %12978 = vst [vmem:[#allocation138_spill] sm:$0xff] %v9992_v59 }
 0x6d4   : > { %3182 = vmatmul.mubr.bf16.gmra.mxu1 %v2939_v1  ;;  %v2993_v7 = vmul.f32 %v9791_v17, %v12926_v36  ;;  %v12927_v1 = vld [vmem:[#allocation72_spill] sm:$0xff]  ;;  %v12932_v17 = vld [vmem:[#allocation70_spill] sm:$0xff]  ;;  %v9946_v36 = vmul.f32 0.3, %v12950_v18  ;;  %v12975_v18 = vld [vmem:[#allocation45_spill] sm:$0xff]  ;;  %12989 = vst [vmem:[#allocation143_spill] sm:$0xff] %v10010_v45 }
 0x6d5   : > { %3852 = vmatprep.mubr.bf16.mxu1 %v12923_v46  ;;  %12953 = vst [vmem:[#allocation125_spill] sm:$0xff] %v9949_v10  ;;  %v9989_v5 = vmul.f32 0.3, %v12975_v18  ;;  %v12983_v46 = vld [vmem:[#allocation40_spill] sm:$0xff]  ;;  %v10007_v18 = vrot.slane %v7042_v0, %v12979_v54  ;;  %v10013_v63 = vmul.f32 0.3, %v12990_v60 }
 0x6d6   : > { %12951 = vst [vmem:[#allocation124_spill] sm:$0xff] %v9946_v36  ;;  %v10001_v41 = vmul.f32 0.3, %v12983_v46  ;;  %v12992_v10 = vld [vmem:[#allocation36_spill] sm:$0xff]  ;;  %v12994_v36 = vld [vmem:[#allocation37_spill] sm:$0xff]  ;;  %v13004_v60 = vld [vmem:[#allocation31_spill] sm:$0xff] }
 0x6d7   : > { %2982 = vadd.xlane.f32.xlu1 %v2953_v51  ;;  %3028 = vadd.xlane.f32.xlu0 %v3000_v32  ;;  %v2942_v51 = vmul.f32 %v9779_v35, %v12927_v1  ;;  %v2943_v32 = vmul.f32 %v9782_v52, %v12928_v28  ;;  %12976 = vst [vmem:[#allocation137_spill] sm:$0xff] %v9989_v5  ;;  %12987 = vst [vmem:[#allocation142_spill] sm:$0xff] %v10007_v18  ;;  %v10019_v46 = vmul.f32 0.3, %v12994_v36  ;;  %v13008_v36 = vld [vmem:[#allocation32_spill] sm:$0xff] }
 0x6d8   : > { %12984 = vst [vmem:[#allocation140_spill] sm:$0xff] %v10001_v41  ;;  %12991 = vst [vmem:[#allocation144_spill] sm:$0xff] %v10013_v63  ;;  %v10031_v45 = vmul.f32 0.3, %v13002_v30  ;;  %v10034_v63 = vmul.f32 0.3, %v13004_v60 }
 0x6d9   : > { %12995 = vst [vmem:[#allocation146_spill] sm:$0xff] %v10019_v46  ;;  %v10040_v46 = vmul.f32 0.3, %v13008_v36 }
 0x6da   : > { %13003 = vst [vmem:[#allocation150_spill] sm:$0xff] %v10031_v45  ;;  %13005 = vst [vmem:[#allocation151_spill] sm:$0xff] %v10034_v63 }
 0x6db   : > { %3030 = vadd.xlane.f32.xlu1 %v3001_v62  ;;  %2976 = vadd.xlane.f32.xlu0 %v2950_v38  ;;  %v12929_v62 = vld [vmem:[#allocation73_spill] sm:$0xff]  ;;  %13009 = vst [vmem:[#allocation153_spill] sm:$0xff] %v10040_v46 }
 0x6dc   : > { %v2990_v38 = vmul.f32 %v9779_v35, %v12929_v62  ;;  %v12958_v62 = vld [vmem:[#allocation50_spill] sm:$0xff] }
 0x6dd   : > { %v9960_v1 = vmul.f32 0.3, %v12958_v62 }
 0x6df   : > { %2978 = vadd.xlane.f32.xlu1 %v2951_v40  ;;  %3024 = vadd.xlane.f32.xlu0 %v2998_v34  ;;  %v12930_v40 = vld [vmem:[#allocation75_spill] sm:$0xff]  ;;  %12959 = vst [vmem:[#allocation128_spill] sm:$0xff] %v9960_v1 }
 0x6e0   : > { %v2991_v58 = vmul.f32 %v9782_v52, %v12930_v40  ;;  %v12931_v34 = vld [vmem:[#allocation63_spill] sm:$0xff]  ;;  %v9955_v40 = vmul.f32 0.3, %v12956_v56 }
 0x6e1   : > { %v12970_v56 = vld [vmem:[#allocation47_spill] sm:$0xff] }
 0x6e2   : > { %12957 = vst [vmem:[#allocation127_spill] sm:$0xff] %v9955_v40  ;;  %v9978_v6 = vmul.f32 0.3, %v12970_v56  ;;  %v12981_v56 = vld [vmem:[#allocation43_spill] sm:$0xff] }
 0x6e3   : > { %3026 = vadd.xlane.f32.xlu1 %v2999_v14  ;;  %2972 = vadd.xlane.f32.xlu0 %v2948_v23  ;;  %v2940_v14 = vmul.f32 %v9770_v22, %v12931_v34  ;;  %v2941_v23 = vmul.f32 %v9773_v49, %v12932_v17  ;;  %v9998_v20 = vmul.f32 0.3, %v12981_v56  ;;  %v10016_v56 = vmul.f32 0.3, %v12992_v10  ;;  %v13006_v10 = vld [vmem:[#allocation29_spill] sm:$0xff] }
 0x6e4   : > { %12971 = vst [vmem:[#allocation134_spill] sm:$0xff] %v9978_v6 }
 0x6e5   : > { %12982 = vst [vmem:[#allocation139_spill] sm:$0xff] %v9998_v20  ;;  %12993 = vst [vmem:[#allocation145_spill] sm:$0xff] %v10016_v56  ;;  %v10037_v56 = vmul.f32 0.3, %v13006_v10 }
 0x6e7   : > { %2974 = vadd.xlane.f32.xlu1 %v2949_v25  ;;  %3020 = vadd.xlane.f32.xlu0 %v2996_v21  ;;  %v12933_v25 = vld [vmem:[#allocation65_spill] sm:$0xff]  ;;  %13007 = vst [vmem:[#allocation152_spill] sm:$0xff] %v10037_v56 }
 0x6e8   : > { %v2988_v21 = vmul.f32 %v9770_v22, %v12933_v25  ;;  %v12962_v25 = vld [vmem:[#allocation48_spill] sm:$0xff] }
 0x6e9   : > { %v9966_v34 = vmul.f32 0.3, %v12962_v25  ;;  %v9986_v25 = vmul.f32 0.3, %v12973_v44 }
 0x6eb   : > { %3022 = vadd.xlane.f32.xlu1 %v2997_v53  ;;  %2968 = vadd.xlane.f32.xlu0 %v2946_v33  ;;  %v12934_v53 = vld [vmem:[#allocation71_spill] sm:$0xff]  ;;  %12963 = vst [vmem:[#allocation130_spill] sm:$0xff] %v9966_v34  ;;  %12974 = vst [vmem:[#allocation136_spill] sm:$0xff] %v9986_v25 }
 0x6ec   : > { %v2989_v35 = vmul.f32 %v9773_v49, %v12934_v53  ;;  %v12960_v53 = vld [vmem:[#allocation51_spill] sm:$0xff] }
 0x6ed   : > { %v9963_v17 = vmul.f32 0.3, %v12960_v53  ;;  %v9983_v53 = vrot.slane %v7042_v0, %v12964_v9  ;;  %v12985_v9 = vld [vmem:[#allocation41_spill] sm:$0xff]  ;;  %v13000_v0 = vld [vmem:[#allocation30_spill] sm:$0xff] }
 0x6ee   : > { %v10004_v8 = vmul.f32 0.3, %v12985_v9 }
 0x6ef   : > { %2970 = vadd.xlane.f32.xlu1 %v2947_v13  ;;  %3016 = vadd.xlane.f32.xlu0 %v2994_v39  ;;  %12961 = vst [vmem:[#allocation129_spill] sm:$0xff] %v9963_v17  ;;  %12972 = vst [vmem:[#allocation135_spill] sm:$0xff] %v9983_v53 }
 0x6f0   : > { %12986 = vst [vmem:[#allocation141_spill] sm:$0xff] %v10004_v8 }
 0x6f3   : > { %3018 = vadd.xlane.f32.xlu1 %v2995_v57  ;;  %2964 = vadd.xlane.f32.xlu0 %v2944_v3 }
 0x6f7   : > { %2966 = vadd.xlane.f32.xlu1 %v2945_v47  ;;  %3012 = vadd.xlane.f32.xlu0 %v2992_v61 }
 0x6fb   : > { %3014 = vadd.xlane.f32.xlu1 %v2993_v7  ;;  %2960 = vadd.xlane.f32.xlu0 %v2942_v51 }
 0x6ff   : > { %2962 = vadd.xlane.f32.xlu1 %v2943_v32  ;;  %3008 = vadd.xlane.f32.xlu0 %v2990_v38 }
 0x703   : > { %3010 = vadd.xlane.f32.xlu1 %v2991_v58  ;;  %2956 = vadd.xlane.f32.xlu0 %v2940_v14 }
 0x707   : > { %2958 = vadd.xlane.f32.xlu1 %v2941_v23  ;;  %3004 = vadd.xlane.f32.xlu0 %v2988_v21 }
 0x70b   : > { %3006 = vadd.xlane.f32.xlu1 %v2989_v35 }
 0x754   : > { %v9865_v33 = vpop.xlane.xlu0 %2984 }
 0x758   : > { %v9867_v52 = vpop.xlane.xlu1 %2986  ;;  %v9869_v13 = vpop.xlane.xlu0 %3032 }
 0x759   : > { %v10052_v30 = vmul.f32 %v9995_v31, %v9867_v52  ;;  %v10056_v10 = vmul.f32 %v9983_v53, %v9869_v13  ;;  %v10060_v36 = vmul.f32 %v10007_v18, %v9869_v13 }
 0x75b   : > { %v9871_v39 = vpop.f32.mrf.mxu1  ;;  %13012 = vst [vmem:[#allocation156_spill] sm:$0xff] %v10052_v30  ;;  %13013 = vst [vmem:[#allocation157_spill] sm:$0xff] %v10056_v10 }
 0x75c   : > { %12935 = vst [vmem:[#allocation113_spill] sm:$0xff] %v9871_v39  ;;  %v9873_v57 = vpop.xlane.xlu1 %3034  ;;  %v9875_v3 = vpop.xlane.xlu0 %2980  ;;  %v10028_v39 = vmul.f32 0.3, %v13000_v0  ;;  %v10048_v0 = vmul.f32 %v9995_v31, %v9865_v33  ;;  %13014 = vst [vmem:[#allocation158_spill] sm:$0xff] %v10060_v36 }
 0x75d   : > { %v9877_v47 = vpop.f32.mrf.mxu1  ;;  %v10072_v46 = vmul.f32 %v10007_v18, %v9873_v57  ;;  %v10078_v13 = vmul.f32 %v9969_v2, %v9875_v3  ;;  %v10082_v63 = vmul.f32 %v9995_v31, %v9875_v3 }
 0x75e   : > { %12936 = vst [vmem:[#allocation114_spill] sm:$0xff] %v9877_v47  ;;  %13001 = vst [vmem:[#allocation149_spill] sm:$0xff] %v10028_v39 }
 0x75f   : > { %v9879_v22 = vpop.f32.mrf.mxu1  ;;  %13011 = vst [vmem:[#allocation155_spill] sm:$0xff] %v10048_v0  ;;  %13017 = vst [vmem:[#allocation161_spill] sm:$0xff] %v10072_v46 }
 0x760   : > { %12937 = vst [vmem:[#allocation115_spill] sm:$0xff] %v9879_v22  ;;  %v9881_v61 = vpop.xlane.xlu1 %2982  ;;  %v9883_v49 = vpop.xlane.xlu0 %3028  ;;  %v12998_v22 = vld [vmem:[#allocation35_spill] sm:$0xff]  ;;  %13018 = vst [vmem:[#allocation162_spill] sm:$0xff] %v10078_v13 }
 0x761   : > { %v9885_v7 = vpop.f32.mrf.mxu1  ;;  %v10025_v47 = vmul.f32 0.3, %v12998_v22  ;;  %v10044_v22 = vmul.f32 %v9969_v2, %v9865_v33  ;;  %v10068_v33 = vmul.f32 %v9983_v53, %v9873_v57  ;;  %13019 = vst [vmem:[#allocation163_spill] sm:$0xff] %v10082_v63  ;;  %v10096_v45 = vmul.f32 %v9969_v2, %v9881_v61 }
 0x762   : > { %12938 = vst [vmem:[#allocation116_spill] sm:$0xff] %v9885_v7  ;;  %v12996_v7 = vld [vmem:[#allocation34_spill] sm:$0xff]  ;;  %v10100_v46 = vmul.f32 %v10007_v18, %v9883_v49 }
 0x763   : > { %v9887_v51 = vpop.f32.mrf.mxu1  ;;  %v10022_v9 = vmul.f32 0.3, %v12996_v7  ;;  %12999 = vst [vmem:[#allocation148_spill] sm:$0xff] %v10025_v47  ;;  %13010 = vst [vmem:[#allocation154_spill] sm:$0xff] %v10044_v22  ;;  %v10064_v47 = vmul.f32 %v9969_v2, %v9867_v52  ;;  %v10086_v52 = vmul.f32 %v9995_v31, %v9881_v61 }
 0x764   : > { %v9889_v32 = vpop.xlane.xlu1 %3030  ;;  %v9891_v38 = vpop.xlane.xlu0 %2976  ;;  %13016 = vst [vmem:[#allocation160_spill] sm:$0xff] %v10068_v33  ;;  %13022 = vst [vmem:[#allocation166_spill] sm:$0xff] %v10096_v45 }
 0x765   : > { %v9893_v58 = vpop.f32.mrf.mxu1  ;;  %12997 = vst [vmem:[#allocation147_spill] sm:$0xff] %v10022_v9  ;;  %13015 = vst [vmem:[#allocation159_spill] sm:$0xff] %v10064_v47  ;;  %v10090_v9 = vmul.f32 %v9983_v53, %v9883_v49  ;;  %v10104_v3 = vmul.f32 %v9983_v53, %v9889_v32  ;;  %v10108_v33 = vmul.f32 %v10007_v18, %v9889_v32 }
 0x766   : > { %12939 = vst [vmem:[#allocation117_spill] sm:$0xff] %v9893_v58  ;;  %13020 = vst [vmem:[#allocation164_spill] sm:$0xff] %v10086_v52  ;;  %v3067_v36 = vmul.f32 %v9969_v2, %v9891_v38  ;;  %v10119_v49 = vmul.f32 %v9995_v31, %v9891_v38 }
 0x767   : > { %v9895_v14 = vpop.f32.mrf.mxu1  ;;  %13021 = vst [vmem:[#allocation165_spill] sm:$0xff] %v10090_v9  ;;  %13023 = vst [vmem:[#allocation167_spill] sm:$0xff] %v10100_v46 }
 0x768   : > { %12940 = vst [vmem:[#allocation118_spill] sm:$0xff] %v9895_v14  ;;  %v9897_v23 = vpop.xlane.xlu1 %2978  ;;  %v9899_v21 = vpop.xlane.xlu0 %3024  ;;  %13024 = vst [vmem:[#allocation168_spill] sm:$0xff] %v10104_v3 }
 0x769   : > { %v9901_v35 = vpop.f32.mrf.mxu1  ;;  %13025 = vst [vmem:[#allocation169_spill] sm:$0xff] %v10108_v33  ;;  %v10114_v61 = vmul.f32 %v9995_v31, %v9897_v23  ;;  %v10123_v0 = vmul.f32 %v9969_v2, %v9897_v23  ;;  %v10127_v32 = vmul.f32 %v9983_v53, %v9899_v21  ;;  %v10131_v3 = vmul.f32 %v10007_v18, %v9899_v21 }
 0x76a   : > { %12941 = vst [vmem:[#allocation119_spill] sm:$0xff] %v9901_v35 }
 0x76b   : > { %v9903_v42 = vpop.f32.mrf.mxu1  ;;  %13026 = vst [vmem:[#allocation170_spill] sm:$0xff] %v10114_v61 }
 0x76c   : > { %v9905_v24 = vpop.xlane.xlu1 %3026  ;;  %v9907_v55 = vpop.xlane.xlu0 %2972 }
 0x76d   : > { %v9909_v26 = vpop.f32.mrf.mxu1  ;;  %v3063_v14 = vmul.f32 %v9969_v2, %v9907_v55  ;;  %v3064_v9 = vmul.f32 %v9995_v31, %v9907_v55 }
 0x76f   : > { %v9911_v19 = vpop.f32.mrf.mxu1 }
 0x770   : > { %v9913_v37 = vpop.xlane.xlu1 %2974  ;;  %v9915_v27 = vpop.xlane.xlu0 %3020 }
 0x771   : > { %v9917_v11 = vpop.f32.mrf.mxu1  ;;  %v3066_v23 = vmul.f32 %v9995_v31, %v9913_v37  ;;  %v3065_v21 = vmul.f32 %v9969_v2, %v9913_v37 }
 0x773   : > { %v9919_v12 = vpop.f32.mrf.mxu1 }
 0x774   : > { %v9924_v48 = vpop.xlane.xlu1 %3022  ;;  %v9935_v15 = vpop.xlane.xlu0 %2968 }
 0x775   : > { %v9937_v50 = vpop.f32.mrf.mxu1  ;;  %v3059_v57 = vmul.f32 %v9969_v2, %v9935_v15  ;;  %v3060_v35 = vmul.f32 %v9995_v31, %v9935_v15  ;;  %v3219_v15 = vmul.f32 %v9983_v53, %v9915_v27 }
 0x777   : > { %v9957_v28 = vpop.f32.mrf.mxu1  ;;  %v3144_v33 = vadd.f32 %v9919_v12, %v3059_v57  ;;  %v3220_v12 = vmul.f32 %v10007_v18, %v9915_v27  ;;  %v3146_v45 = vadd.f32 %v9937_v50, %v3060_v35 }
 0x778   : > { %v2971_v4 = vpop.xlane.xlu1 %2970  ;;  %v3017_v44 = vpop.xlane.xlu0 %3016 }
 0x779   : > { %v9980_v62 = vpop.f32.mrf.mxu1  ;;  %v3215_v47 = vmul.f32 %v9983_v53, %v3017_v44  ;;  %v3061_v17 = vmul.f32 %v9969_v2, %v2971_v4  ;;  %v3062_v46 = vmul.f32 %v9995_v31, %v2971_v4  ;;  %v3216_v8 = vmul.f32 %v10007_v18, %v3017_v44 }
 0x77a   : > { %v3221_v44 = vmul.f32 %v9983_v53, %v9924_v48 }
 0x77b   : > { %v3153_v29 = vpop.f32.mrf.mxu1  ;;  %v3247_v55 = vadd.f32 %v3215_v47, %v3144_v33  ;;  %v3148_v50 = vadd.f32 %v9957_v28, %v3061_v17  ;;  %v3248_v47 = vadd.f32 %v3216_v8, %v3146_v45 }
 0x77c   : > { %v3019_v60 = vpop.xlane.xlu1 %3018  ;;  %v2965_v39 = vpop.xlane.xlu0 %2964  ;;  %v3154_v57 = vadd.f32 %v3153_v29, %v3063_v14  ;;  %v3222_v29 = vmul.f32 %v10007_v18, %v9924_v48  ;;  %v3150_v14 = vadd.f32 %v9980_v62, %v3062_v46 }
 0x77d   : > { %v3155_v54 = vpop.f32.mrf.mxu1  ;;  %v3055_v37 = vmul.f32 %v9969_v2, %v2965_v39  ;;  %v3217_v22 = vmul.f32 %v9983_v53, %v3019_v60  ;;  %v3218_v52 = vmul.f32 %v10007_v18, %v3019_v60  ;;  %v3056_v58 = vmul.f32 %v9995_v31, %v2965_v39 }
 0x77e   : > { %v3156_v13 = vadd.f32 %v3155_v54, %v3064_v9  ;;  %v3279_v9 = vmax.f32 %v3247_v55, 0.0  ;;  %v3251_v35 = vadd.f32 %v3219_v15, %v3154_v57  ;;  %v3280_v62 = vmax.f32 %v3248_v47, 0.0 }
 0x77f   : > { %v3157_v7 = vpop.f32.mrf.mxu1  ;;  %v3134_v54 = vadd.f32 %v9903_v42, %v3055_v37  ;;  %v3136_v8 = vadd.f32 %v9909_v26, %v3056_v58 }
 0x780   : > { %v2967_v34 = vpop.xlane.xlu1 %2966  ;;  %v3013_v41 = vpop.xlane.xlu0 %3012  ;;  %v3158_v63 = vadd.f32 %v3157_v7, %v3065_v21  ;;  %v3249_v7 = vadd.f32 %v3217_v22, %v3148_v50  ;;  %v3250_v21 = vadd.f32 %v3218_v52, %v3150_v14  ;;  %v3311_v22 = vmul.f32 0.7, %v3279_v9 }
 0x781   : > { %v10074_v56 = vpop.f32.mrf.mxu1  ;;  %v3211_v27 = vmul.f32 %v9983_v53, %v3013_v41  ;;  %v3212_v33 = vmul.f32 %v10007_v18, %v3013_v41  ;;  %v3057_v61 = vmul.f32 %v9969_v2, %v2967_v34  ;;  %v3058_v46 = vmul.f32 %v9995_v31, %v2967_v34 }
 0x782   : > { %v3253_v45 = vadd.f32 %v3221_v44, %v3158_v63  ;;  %v3160_v17 = vadd.f32 %v10074_v56, %v3066_v23  ;;  %v3281_v55 = vmax.f32 %v3249_v7, 0.0  ;;  %v3282_v57 = vmax.f32 %v3250_v21, 0.0 }
 0x783   : > { %v3163_v30 = vpop.f32.mrf.mxu1  ;;  %v3243_v28 = vadd.f32 %v3211_v27, %v3134_v54  ;;  %v3244_v52 = vadd.f32 %v3212_v33, %v3136_v8  ;;  %v3138_v58 = vadd.f32 %v9911_v19, %v3057_v61  ;;  %v3225_v34 = vmul.f32 %v9983_v53, %v9905_v24 }
 0x784   : > { %v3015_v39 = vpop.xlane.xlu1 %3014  ;;  %v3164_v42 = vadd.f32 %v3163_v30, %v3067_v36  ;;  %v3285_v63 = vmax.f32 %v3253_v45, 0.0  ;;  %v3140_v56 = vadd.f32 %v9917_v11, %v3058_v46  ;;  %v3226_v23 = vmul.f32 %v10007_v18, %v9905_v24  ;;  %v2961_v50 = vpop.xlane.xlu0 %2960 }
 0x785   : > { %v10137_v38 = vpop.f32.mrf.mxu1  ;;  %v3213_v41 = vmul.f32 %v9983_v53, %v3015_v39  ;;  %v3275_v30 = vmax.f32 %v3243_v28, 0.0  ;;  %v3254_v37 = vadd.f32 %v3222_v29, %v3160_v17  ;;  %v3312_v47 = vmul.f32 0.7, %v3280_v62 }
 0x786   : > { %v3255_v44 = vadd.f32 %v10127_v32, %v3164_v42  ;;  %v3276_v14 = vmax.f32 %v3244_v52, 0.0  ;;  %v10191_v61 = vadd.f32 %v9972_v16, %v3311_v22  ;;  %v3313_v9 = vmul.f32 0.7, %v3281_v55 }
 0x787   : > { %v10151_v10 = vpop.f32.mrf.mxu1  ;;  %v3245_v27 = vadd.f32 %v3213_v41, %v3138_v58  ;;  %v3317_v54 = vmul.f32 0.7, %v3285_v63  ;;  %v3307_v33 = vmul.f32 0.7, %v3275_v30  ;;  %v3166_v24 = vadd.f32 %v10137_v38, %v10119_v49  ;;  %v13028_v30 = vld [vmem:[#allocation170_spill] sm:$0xff] }
 0x788   : > { %v3286_v29 = vmax.f32 %v3254_v37, 0.0  ;;  %v3287_v7 = vmax.f32 %v3255_v44, 0.0  ;;  %v3168_v8 = vadd.f32 %v10151_v10, %v10123_v0  ;;  %v10199_v45 = vadd.f32 %v9975_v43, %v3312_v47  ;;  %v3009_v58 = vpop.xlane.xlu0 %3008 }
 0x789   : > { %v10159_v4 = vpop.f32.mrf.mxu1  ;;  %v3277_v21 = vmax.f32 %v3245_v27, 0.0  ;;  %v3308_v28 = vmul.f32 0.7, %v3276_v14  ;;  %v10205_v17 = vadd.f32 %v9978_v6, %v3313_v9  ;;  %v3052_v42 = vmul.f32 %v9995_v31, %v2961_v50  ;;  %v13030_v27 = vld [vmem:[#allocation163_spill] sm:$0xff]  ;;  %v13033_v14 = vld [vmem:[#allocation164_spill] sm:$0xff] }
 0x78a   : > { %13027 = vst [vmem:[#allocation171_spill] sm:$0xff] %v10159_v4  ;;  %v3252_v4 = vadd.f32 %v3220_v12, %v3156_v13  ;;  %v3283_v13 = vmax.f32 %v3251_v35, 0.0  ;;  %v3214_v12 = vmul.f32 %v10007_v18, %v3015_v39  ;;  %v3314_v35 = vmul.f32 0.7, %v3282_v57 }
 0x78b   : > { %v10169_v60 = vpop.f32.mrf.mxu1  ;;  %v3051_v39 = vmul.f32 %v9969_v2, %v2961_v50  ;;  %v10215_v10 = vadd.f32 %v9998_v20, %v3317_v54  ;;  %v10218_v0 = vadd.f32 %v9955_v40, %v3307_v33  ;;  %v3256_v22 = vadd.f32 %v10131_v3, %v3166_v24  ;;  %v13032_v3 = vld [vmem:[#allocation162_spill] sm:$0xff] }
 0x78c   : > { %v3284_v26 = vmax.f32 %v3252_v4, 0.0  ;;  %v3315_v4 = vmul.f32 0.7, %v3283_v13  ;;  %v3246_v19 = vadd.f32 %v3214_v12, %v3140_v56  ;;  %v10208_v49 = vadd.f32 %v9986_v25, %v3314_v35 }
 0x78d   : > { %v10174_v48 = vpop.f32.mrf.mxu1  ;;  %v3124_v41 = vadd.f32 %v9887_v51, %v3051_v39  ;;  %v3318_v52 = vmul.f32 0.7, %v3286_v29  ;;  %v3319_v12 = vmul.f32 0.7, %v3287_v7  ;;  %v3309_v55 = vmul.f32 0.7, %v3277_v21 }
 0x78e   : > { %v3316_v11 = vmul.f32 0.7, %v3284_v26  ;;  %v10202_v46 = vadd.f32 %v9989_v5, %v3315_v4  ;;  %v3278_v62 = vmax.f32 %v3246_v19, 0.0  ;;  %v3257_v57 = vadd.f32 %v3225_v34, %v3168_v8  ;;  %v2963_v26 = vpop.xlane.xlu1 %2962  ;;  %v13031_v51 = vld [vmem:[#allocation117_spill] sm:$0xff]  ;;  %v13034_v34 = vld [vmem:[#allocation154_spill] sm:$0xff]  ;;  %v13037_v8 = vld [vmem:[#allocation140_spill] sm:$0xff] }
 0x78f   : > { %v10180_v15 = vpop.f32.mrf.mxu1  ;;  %v10223_v63 = vadd.f32 %v9960_v1, %v3308_v28  ;;  %v3176_v50 = vadd.f32 %v10174_v48, %v13030_v27  ;;  %v3126_v47 = vadd.f32 %v13031_v51, %v3052_v42  ;;  %v3174_v4 = vadd.f32 %v10169_v60, %v13032_v3  ;;  %v13035_v29 = vld [vmem:[#allocation166_spill] sm:$0xff]  ;;  %v13036_v21 = vld [vmem:[#allocation157_spill] sm:$0xff]  ;;  %v13039_v42 = vld [vmem:[#allocation167_spill] sm:$0xff] }
 0x790   : > { %v10211_v38 = vadd.f32 %v9992_v59, %v3316_v11  ;;  %v3310_v56 = vmul.f32 0.7, %v3278_v62  ;;  %v3288_v35 = vmax.f32 %v3256_v22, 0.0  ;;  %v3053_v11 = vmul.f32 %v9969_v2, %v2963_v26 }
 0x791   : > { %v3179_v36 = vpop.f32.mrf.mxu1  ;;  %v13029_v37 = vld [vmem:[#allocation171_spill] sm:$0xff]  ;;  %v3054_v54 = vmul.f32 %v9995_v31, %v2963_v26  ;;  %v3207_v33 = vmul.f32 %v9983_v53, %v3009_v58  ;;  %v3289_v24 = vmax.f32 %v3257_v57, 0.0  ;;  %v3208_v48 = vmul.f32 %v10007_v18, %v3009_v58  ;;  %v13040_v26 = vld [vmem:[#allocation129_spill] sm:$0xff]  ;;  %v13041_v57 = vld [vmem:[#allocation130_spill] sm:$0xff] }
 0x792   : > { %v3170_v44 = vadd.f32 %v13029_v37, %v13028_v30  ;;  %v3180_v19 = vadd.f32 %v3179_v36, %v13033_v14  ;;  %v3178_v7 = vadd.f32 %v10180_v15, %v13035_v29  ;;  %v10242_v36 = vadd.f32 %v13037_v8, %v3318_v52  ;;  %v13042_v58 = vld [vmem:[#allocation165_spill] sm:$0xff]  ;;  %v13044_v14 = vld [vmem:[#allocation118_spill] sm:$0xff] }
 0x793   : > { %v3260_v22 = vadd.f32 %v13039_v42, %v3176_v50  ;;  %v10249_v30 = vadd.f32 %v13040_v26, %v3309_v55  ;;  %v10252_v37 = vadd.f32 %v13041_v57, %v3310_v56  ;;  %v3259_v27 = vadd.f32 %v13042_v58, %v3174_v4  ;;  %v13043_v15 = vld [vmem:[#allocation169_spill] sm:$0xff]  ;;  %v13047_v4 = vld [vmem:[#allocation155_spill] sm:$0xff] }
 0x794   : > { %v3183_v32 = vpop.f32.mrf.mxu1  ;;  %v3258_v62 = vadd.f32 %v3226_v23, %v3170_v44  ;;  %v3262_v51 = vadd.f32 %v13043_v15, %v3180_v19  ;;  %v3320_v3 = vmul.f32 0.7, %v3288_v35  ;;  %v3128_v52 = vadd.f32 %v13044_v14, %v3053_v11  ;;  %v13048_v19 = vld [vmem:[#allocation159_spill] sm:$0xff]  ;;  %v13049_v14 = vld [vmem:[#allocation156_spill] sm:$0xff] }
 0x795   : > { %v3184_v9 = vadd.f32 %v3183_v32, %v13034_v34  ;;  %v13038_v32 = vld [vmem:[#allocation141_spill] sm:$0xff]  ;;  %v13045_v34 = vld [vmem:[#allocation119_spill] sm:$0xff]  ;;  %v3321_v44 = vmul.f32 0.7, %v3289_v24  ;;  %v10258_v50 = vadd.f32 %v3207_v33, %v3124_v41  ;;  %v10260_v55 = vadd.f32 %v3208_v48, %v3126_v47  ;;  %v2957_v41 = vpop.xlane.xlu0 %2956  ;;  %v13050_v47 = vld [vmem:[#allocation158_spill] sm:$0xff] }
 0x796   : > { %v3185_v13 = vpop.f32.mrf.mxu1  ;;  %v10245_v28 = vadd.f32 %v13038_v32, %v3319_v12  ;;  %v3011_v12 = vpop.xlane.xlu1 %3010  ;;  %v3290_v42 = vmax.f32 %v3258_v62, 0.0  ;;  %v3292_v57 = vmax.f32 %v3260_v22, 0.0  ;;  %v3291_v15 = vmax.f32 %v3259_v27, 0.0  ;;  %v13052_v62 = vld [vmem:[#allocation143_spill] sm:$0xff]  ;;  %v13053_v27 = vld [vmem:[#allocation161_spill] sm:$0xff] }
 0x797   : > { %v3263_v60 = vadd.f32 %v13036_v21, %v3184_v9  ;;  %v3130_v9 = vadd.f32 %v13045_v34, %v3054_v54  ;;  %v13046_v21 = vld [vmem:[#allocation168_spill] sm:$0xff]  ;;  %v3186_v58 = vadd.f32 %v3185_v13, %v13047_v4  ;;  %v3209_v11 = vmul.f32 %v9983_v53, %v3011_v12 }
 0x798   : > { %v3187_v39 = vpop.f32.mrf.mxu1  ;;  %v3261_v56 = vadd.f32 %v13046_v21, %v3178_v7  ;;  %v3294_v54 = vmax.f32 %v3262_v51, 0.0  ;;  %v3210_v24 = vmul.f32 %v10007_v18, %v3011_v12  ;;  %v13051_v34 = vld [vmem:[#allocation160_spill] sm:$0xff]  ;;  %v10271_v22 = vadd.f32 %v13052_v62, %v3320_v3 }
 0x799   : > { %v3295_v29 = vmax.f32 %v3263_v60, 0.0  ;;  %v3188_v35 = vadd.f32 %v3187_v39, %v13048_v19  ;;  %v3264_v48 = vadd.f32 %v13050_v47, %v3186_v58  ;;  %v3322_v4 = vmul.f32 0.7, %v3290_v42  ;;  %v13054_v47 = vld [vmem:[#allocation150_spill] sm:$0xff] }
 0x79a   : > { %v3189_v23 = vpop.f32.mrf.mxu1  ;;  %v3293_v39 = vmax.f32 %v3261_v56, 0.0  ;;  %v3324_v51 = vmul.f32 0.7, %v3292_v57  ;;  %v3047_v12 = vmul.f32 %v9969_v2, %v2957_v41  ;;  %v3048_v58 = vmul.f32 %v9995_v31, %v2957_v41  ;;  %v13055_v56 = vld [vmem:[#allocation144_spill] sm:$0xff] }
 0x79b   : > { %v3190_v60 = vadd.f32 %v3189_v23, %v13049_v14  ;;  %v3327_v33 = vmul.f32 0.7, %v3295_v29  ;;  %v3265_v7 = vadd.f32 %v13051_v34, %v3188_v35  ;;  %v3296_v19 = vmax.f32 %v3264_v48, 0.0  ;;  %v2959_v35 = vpop.xlane.xlu1 %2958  ;;  %v13056_v48 = vld [vmem:[#allocation147_spill] sm:$0xff] }
 0x79c   : > { %v3323_v14 = vmul.f32 0.7, %v3291_v15  ;;  %v3326_v29 = vmul.f32 0.7, %v3294_v54  ;;  %v10281_v62 = vadd.f32 %v13055_v56, %v3321_v44  ;;  %v10283_v42 = vadd.f32 %v3209_v11, %v3128_v52  ;;  %v13060_v44 = vld [vmem:[#allocation113_spill] sm:$0xff] }
 0x79d   : > { %v3266_v21 = vadd.f32 %v13053_v27, %v3190_v60  ;;  %v3297_v23 = vmax.f32 %v3265_v7, 0.0  ;;  %v10278_v3 = vadd.f32 %v13054_v47, %v3327_v33  ;;  %v3328_v34 = vmul.f32 0.7, %v3296_v19  ;;  %v13057_v7 = vld [vmem:[#allocation151_spill] sm:$0xff]  ;;  %v13058_v27 = vld [vmem:[#allocation152_spill] sm:$0xff]  ;;  %v13061_v52 = vld [vmem:[#allocation149_spill] sm:$0xff] }
 0x79e   : > { %v3325_v57 = vmul.f32 0.7, %v3293_v39  ;;  %v10285_v15 = vadd.f32 %v3210_v24, %v3130_v9  ;;  %v10288_v54 = vadd.f32 %v13056_v48, %v3324_v51  ;;  %v10301_v11 = vadd.f32 %v13061_v52, %v3326_v29  ;;  %v13063_v24 = vld [vmem:[#allocation146_spill] sm:$0xff] }
 0x79f   : > { %v3298_v26 = vmax.f32 %v3266_v21, 0.0  ;;  %v3329_v13 = vmul.f32 0.7, %v3297_v23  ;;  %v10291_v41 = vadd.f32 %v13057_v7, %v3328_v34  ;;  %v13059_v21 = vld [vmem:[#allocation145_spill] sm:$0xff]  ;;  %v3114_v23 = vadd.f32 %v13060_v44, %v3047_v12  ;;  %v13064_v51 = vld [vmem:[#allocation114_spill] sm:$0xff]  ;;  %v3005_v12 = vpop.xlane.xlu0 %3004  ;;  %v3007_v44 = vpop.xlane.xlu1 %3006 }
 0x7a0   : > { %v10297_v19 = vadd.f32 %v13059_v21, %v3322_v4  ;;  %v10307_v39 = vadd.f32 %v13063_v24, %v3323_v14  ;;  %v3116_v34 = vadd.f32 %v13064_v51, %v3048_v58  ;;  %v13065_v21 = vld [vmem:[#allocation148_spill] sm:$0xff]  ;;  %v3049_v58 = vmul.f32 %v9969_v2, %v2959_v35  ;;  %v13206_v2 = vld [vmem:[#allocation98_spill] sm:$0xff] }
 0x7a1   : > { %v3330_v60 = vmul.f32 0.7, %v3298_v26  ;;  %v10294_v33 = vadd.f32 %v13058_v27, %v3329_v13  ;;  %v13062_v26 = vld [vmem:[#allocation153_spill] sm:$0xff]  ;;  %v3423_v13 = vmul.f32 %v10278_v3, %v10278_v3  ;;  %v3424_v4 = vmul.f32 %v10291_v41, %v10291_v41 }
 0x7a2   : > { %v10315_v27 = vadd.f32 %v13065_v21, %v3325_v57  ;;  %v3420_v57 = vmul.f32 %v10288_v54, %v10288_v54  ;;  %v3050_v21 = vmul.f32 %v9995_v31, %v2959_v35  ;;  %v3817_v52 = vpack.c.bf16 %v10301_v11, %v10288_v54 }
 0x7a3   : > { %v10304_v9 = vadd.f32 %v13062_v26, %v3330_v60  ;;  %v3425_v60 = vmul.f32 %v10294_v33, %v10294_v33  ;;  %v3469_v51 = vadd.f32 %v3424_v4, %v3423_v13  ;;  %v3818_v24 = vpack.c.bf16 %v10294_v33, %v10278_v3 }
 0x7a4   : > { %v3422_v7 = vmul.f32 %v10301_v11, %v10301_v11  ;;  %v3272_v48 = vmax.f32 %v10260_v55, 0.0  ;;  %v3203_v13 = vmul.f32 %v9983_v53, %v3005_v12  ;;  %v3204_v4 = vmul.f32 %v10007_v18, %v3005_v12 }
 0x7a5   : > { %v3819_v29 = vpack.c.bf16 %v10304_v9, %v10291_v41  ;;  %v3426_v14 = vmul.f32 %v10304_v9, %v10304_v9  ;;  %3470 = vadd.xlane.f32.xlu0 %v3469_v51  ;;  %v3419_v56 = vmul.f32 %v10307_v39, %v10307_v39  ;;  %v3273_v35 = vmax.f32 %v10283_v42, 0.0  ;;  %v13067_v51 = vld [vmem:[#allocation116_spill] sm:$0xff] }
 0x7a6   : > { %v3421_v55 = vmul.f32 %v10315_v27, %v10315_v27  ;;  %v3416_v12 = vmul.f32 %v10271_v22, %v10271_v22  ;;  %v3120_v42 = vadd.f32 %v13067_v51, %v3050_v21  ;;  %v3235_v1 = vadd.f32 %v3203_v13, %v3114_v23 }
 0x7a7   : > { %3820 = vmatprep.subr.bf16.mxu1 %v3819_v29  ;;  %v3472_v26 = vadd.f32 %v3426_v14, %v3425_v60  ;;  %v3205_v29 = vmul.f32 %v9983_v53, %v3007_v44  ;;  %v3206_v60 = vmul.f32 %v10007_v18, %v3007_v44  ;;  %v13066_v14 = vld [vmem:[#allocation115_spill] sm:$0xff]  ;;  %v3463_v32 = vadd.f32 %v3420_v57, %v3419_v56  ;;  %v13068_v57 = vld [vmem:[#allocation52_spill] sm:$0xff] }
 0x7a8   : > { %3821 = vmatpush1.bf16.msra.mxu1 %v3818_v24  ;;  %v3118_v47 = vadd.f32 %v13066_v14, %v3049_v58  ;;  %v3816_v24 = vpack.c.bf16 %v10315_v27, %v10307_v39  ;;  %v3466_v8 = vadd.f32 %v3422_v7, %v3421_v55  ;;  %v3815_v44 = vpack.c.bf16 %v10297_v19, %v10271_v22 }
 0x7a9   : > { %3473 = vadd.xlane.f32.xlu1 %v3472_v26  ;;  %3822 = vmatprep.subr.bf16.mxu1 %v3817_v52  ;;  %v3418_v52 = vmul.f32 %v10297_v19, %v10297_v19  ;;  %v3274_v26 = vmax.f32 %v10285_v15, 0.0  ;;  %v3236_v58 = vadd.f32 %v3204_v4, %v3116_v34  ;;  %v3415_v56 = vmul.f32 %v10245_v28, %v10245_v28 }
 0x7aa   : > { %3464 = vadd.xlane.f32.xlu0 %v3463_v32  ;;  %v10357_v14 = vmul.f32 0.3, %v13068_v57  ;;  %v3237_v21 = vadd.f32 %v3205_v29, %v3118_v47  ;;  %v3238_v7 = vadd.f32 %v3206_v60, %v3120_v42  ;;  %v3417_v55 = vmul.f32 %v10281_v62, %v10281_v62 }
 0x7ab   : > { %v13070_v51 = vmax.f32 %v10258_v50, 0.0  ;;  %v3457_v23 = vadd.f32 %v3416_v12, %v3415_v56  ;;  %v3814_v32 = vpack.c.bf16 %v10281_v62, %v10245_v28  ;;  %v3412_v34 = vmul.f32 %v10211_v38, %v10211_v38 }
 0x7ac   : > { %3823 = vmatpush1.bf16.msra.mxu1 %v3816_v24  ;;  %13069 = vst [vmem:[#allocation170_spill] sm:$0xff] %v10357_v14  ;;  %v3304_v13 = vmul.f32 0.7, %v3272_v48  ;;  %v3460_v4 = vadd.f32 %v3418_v52, %v3417_v55  ;;  %v3813_v47 = vpack.c.bf16 %v10242_v36, %v10211_v38  ;;  %v3305_v29 = vmul.f32 0.7, %v3273_v35  ;;  %v13071_v55 = vld [vmem:[#allocation124_spill] sm:$0xff] }
 0x7ad   : > { %3467 = vadd.xlane.f32.xlu1 %v3466_v8  ;;  %3824 = vmatprep.subr.bf16.mxu1 %v3815_v44  ;;  %v3303_v15 = vmul.f32 0.7, %v13070_v51  ;;  %v3414_v8 = vmul.f32 %v10242_v36, %v10242_v36  ;;  %v3306_v60 = vmul.f32 0.7, %v3274_v26  ;;  %v3267_v24 = vmax.f32 %v3235_v1, 0.0 }
 0x7ae   : > { %3458 = vadd.xlane.f32.xlu0 %v3457_v23  ;;  %v3411_v50 = vmul.f32 %v10202_v46, %v10202_v46  ;;  %v3268_v12 = vmax.f32 %v3236_v58, 0.0  ;;  %v3269_v42 = vmax.f32 %v3237_v21, 0.0  ;;  %v3270_v44 = vmax.f32 %v3238_v7, 0.0  ;;  %v13072_v23 = vld [vmem:[#allocation125_spill] sm:$0xff] }
 0x7af   : > { %v3413_v48 = vmul.f32 %v10215_v10, %v10215_v10  ;;  %v3812_v56 = vpack.c.bf16 %v10215_v10, %v10202_v46  ;;  %v3407_v1 = vmul.f32 %v10191_v61, %v10191_v61  ;;  %v3408_v35 = vmul.f32 %v10199_v45, %v10199_v45 }
 0x7b0   : > { %3825 = vmatpush1.bf16.msra.mxu1 %v3814_v32  ;;  %v3451_v52 = vadd.f32 %v3412_v34, %v3411_v50  ;;  %v3811_v58 = vpack.c.bf16 %v10208_v49, %v10199_v45  ;;  %v3409_v21 = vmul.f32 %v10205_v17, %v10205_v17  ;;  %v3410_v7 = vmul.f32 %v10208_v49, %v10208_v49  ;;  %v13073_v34 = vld [vmem:[#allocation126_spill] sm:$0xff] }
 0x7b1   : > { %3461 = vadd.xlane.f32.xlu1 %v3460_v4  ;;  %3826 = vmatprep.subr.bf16.mxu1 %v3813_v47  ;;  %v3454_v26 = vadd.f32 %v3414_v8, %v3413_v48  ;;  %v10388_v51 = vadd.f32 %v13071_v55, %v3303_v15  ;;  %v10391_v32 = vadd.f32 %v13072_v23, %v3304_v13  ;;  %v3299_v47 = vmul.f32 0.7, %v3267_v24 }
 0x7b2   : > { %v10394_v4 = vadd.f32 %v13073_v34, %v3305_v29  ;;  %3452 = vadd.xlane.f32.xlu0 %v3451_v52  ;;  %v10397_v8 = vadd.f32 %v10357_v14, %v3306_v60  ;;  %v3300_v50 = vmul.f32 0.7, %v3268_v12  ;;  %v3301_v48 = vmul.f32 0.7, %v3269_v42 }
 0x7b3   : > { %v3302_v40 = vmul.f32 0.7, %v3270_v44  ;;  %v3445_v20 = vadd.f32 %v3408_v35, %v3407_v1  ;;  %v3810_v15 = vpack.c.bf16 %v10205_v17, %v10191_v61  ;;  %v3403_v13 = vmul.f32 %v10218_v0, %v10218_v0  ;;  %v13074_v44 = vld [vmem:[#allocation120_spill] sm:$0xff]  ;;  %v13076_v35 = vld [vmem:[#allocation122_spill] sm:$0xff] }
 0x7b4   : > { %3827 = vmatpush1.bf16.msra.mxu1 %v3812_v56  ;;  %v3404_v29 = vmul.f32 %v10223_v63, %v10223_v63  ;;  %v3448_v24 = vadd.f32 %v3410_v7, %v3409_v21  ;;  %v3809_v60 = vpack.c.bf16 %v10252_v37, %v10223_v63  ;;  %v3405_v12 = vmul.f32 %v10249_v30, %v10249_v30  ;;  %v13075_v56 = vld [vmem:[#allocation121_spill] sm:$0xff] }
 0x7b5   : > { %3455 = vadd.xlane.f32.xlu1 %v3454_v26  ;;  %3828 = vmatprep.subr.bf16.mxu1 %v3811_v58  ;;  %v3406_v42 = vmul.f32 %v10252_v37, %v10252_v37  ;;  %v10412_v52 = vadd.f32 %v13074_v44, %v3299_v47  ;;  %v10415_v1 = vadd.f32 %v13075_v56, %v3300_v50  ;;  %v13077_v58 = vld [vmem:[#allocation123_spill] sm:$0xff] }
 0x7b6   : > { %3446 = vadd.xlane.f32.xlu0 %v3445_v20  ;;  %v10418_v26 = vadd.f32 %v13076_v35, %v3301_v48  ;;  %v10421_v21 = vadd.f32 %v13077_v58, %v3302_v40  ;;  %v3439_v7 = vadd.f32 %v3404_v29, %v3403_v13  ;;  %v3808_v14 = vpack.c.bf16 %v10249_v30, %v10218_v0 }
 0x7b7   : > { %v3399_v47 = vmul.f32 %v10388_v51, %v10388_v51  ;;  %v3400_v20 = vmul.f32 %v10391_v32, %v10391_v32  ;;  %v3442_v50 = vadd.f32 %v3406_v42, %v3405_v12  ;;  %v3807_v48 = vpack.c.bf16 %v10397_v8, %v10391_v32 }
 0x7b8   : > { %3829 = vmatpush1.bf16.msra.mxu1 %v3810_v15  ;;  %v3401_v40 = vmul.f32 %v10394_v4, %v10394_v4  ;;  %v3402_v15 = vmul.f32 %v10397_v8, %v10397_v8  ;;  %v3806_v29 = vpack.c.bf16 %v10394_v4, %v10388_v51  ;;  %v3805_v42 = vpack.c.bf16 %v10421_v21, %v10415_v1 }
 0x7b9   : > { %3449 = vadd.xlane.f32.xlu1 %v3448_v24  ;;  %3830 = vmatprep.subr.bf16.mxu1 %v3809_v60  ;;  %v3433_v13 = vadd.f32 %v3400_v20, %v3399_v47  ;;  %v3395_v24 = vmul.f32 %v10412_v52, %v10412_v52  ;;  %v3396_v60 = vmul.f32 %v10415_v1, %v10415_v1 }
 0x7ba   : > { %3440 = vadd.xlane.f32.xlu0 %v3439_v7  ;;  %v3436_v12 = vadd.f32 %v3402_v15, %v3401_v40  ;;  %v3397_v7 = vmul.f32 %v10418_v26, %v10418_v26  ;;  %v3804_v20 = vpack.c.bf16 %v10418_v26, %v10412_v52 }
 0x7bb   : > { %v3427_v47 = vadd.f32 %v3396_v60, %v3395_v24 }
 0x7bc   : > { %3831 = vmatpush1.bf16.msra.mxu1 %v3808_v14  ;;  %v3398_v14 = vmul.f32 %v10421_v21, %v10421_v21 }
 0x7bd   : > { %3443 = vadd.xlane.f32.xlu1 %v3442_v50  ;;  %3832 = vmatprep.subr.bf16.mxu1 %v3807_v48  ;;  %v8100_v48 = vld [vmem:[#allocation10 + $0x74] ss:$8 sps:$4 sm:$0xff]  }
 0x7be   : > { %3434 = vadd.xlane.f32.xlu0 %v3433_v13  ;;  %v3430_v50 = vadd.f32 %v3398_v14, %v3397_v7 }
 0x7c0   : > { %3833 = vmatpush1.bf16.msra.mxu1 %v3806_v29 }
 0x7c1   : > { %3437 = vadd.xlane.f32.xlu1 %v3436_v12  ;;  %3834 = vmatprep.subr.bf16.mxu1 %v3805_v42 }
 0x7c2   : > { %3428 = vadd.xlane.f32.xlu0 %v3427_v47 }
 0x7c4   : > { %3835 = vmatpush1.bf16.msra.mxu1 %v3804_v20 }
 0x7c5   : > { %3431 = vadd.xlane.f32.xlu1 %v3430_v50  ;;  %4336 = vmatprep.subr.bf16.mxu1 %v8100_v48 }
 0x82e   : > { %v3471_v40 = vpop.xlane.xlu0 %3470 }
 0x82f   : > { %v3489_v15 = vmax.f32 %v3471_v40, 1e-24 }
 0x831   : > { %7780 = vrsqrt.f32 %v3489_v15 }
 0x832   : > { %v3474_v58 = vpop.xlane.xlu1 %3473 }
 0x833   : > { %v3490_v35 = vmax.f32 %v3474_v58, 1e-24  ;;  %v3465_v13 = vpop.xlane.xlu0 %3464 }
 0x834   : > { %v3487_v29 = vmax.f32 %v3465_v13, 1e-24 }
 0x835   : > { %7782 = vrsqrt.f32 %v3490_v35 }
 0x836   : > { %v3468_v12 = vpop.xlane.xlu1 %3467  ;;  %7784 = vrsqrt.f32 %v3487_v29 }
 0x837   : > { %v3488_v42 = vmax.f32 %v3468_v12, 1e-24  ;;  %v3459_v24 = vpop.xlane.xlu0 %3458 }
 0x838   : > { %v3485_v60 = vmax.f32 %v3459_v24, 1e-24 }
 0x839   : > { %7786 = vrsqrt.f32 %v3488_v42 }
 0x83a   : > { %v3462_v7 = vpop.xlane.xlu1 %3461  ;;  %7788 = vrsqrt.f32 %v3485_v60 }
 0x83b   : > { %v3486_v14 = vmax.f32 %v3462_v7, 1e-24  ;;  %v3453_v47 = vpop.xlane.xlu0 %3452 }
 0x83c   : > { %v3483_v40 = vmax.f32 %v3453_v47, 1e-24 }
 0x83d   : > { %7790 = vrsqrt.f32 %v3486_v14 }
 0x83e   : > { %v3456_v20 = vpop.xlane.xlu1 %3455  ;;  %v7781_v48 = vpop.eup %7780 }
 0x83f   : > { %v3484_v50 = vmax.f32 %v3456_v20, 1e-24  ;;  %v3447_v58 = vpop.xlane.xlu0 %3446  ;;  %v3536_v13 = vmul.f32 %v7781_v48, %v10291_v41  ;;  %v3535_v12 = vmul.f32 %v7781_v48, %v10278_v3 }
 0x841   : > { %7792 = vrsqrt.f32 %v3484_v50 }
 0x842   : > { %v7783_v15 = vpop.eup %7782  ;;  %v3450_v35 = vpop.xlane.xlu1 %3449  ;;  %7794 = vrsqrt.f32 %v3483_v40 }
 0x843   : > { %v3538_v29 = vmul.f32 %v7783_v15, %v10304_v9  ;;  %v3537_v42 = vmul.f32 %v7783_v15, %v10294_v33  ;;  %v7785_v24 = vpop.eup %7784  ;;  %v3441_v60 = vpop.xlane.xlu0 %3440  ;;  %v3482_v56 = vmax.f32 %v3450_v35, 1e-24  ;;  %v3481_v15 = vmax.f32 %v3447_v58, 1e-24 }
 0x844   : > { %v3532_v50 = vmul.f32 %v7785_v24, %v10288_v54 }
 0x845   : > { %v10453_v7 = vpack.c.bf16 %v3538_v29, %v3536_v13  ;;  %v10455_v14 = vpack.c.bf16 %v3537_v42, %v3535_v12  ;;  %7796 = vrsqrt.f32 %v3482_v56  ;;  %v3531_v42 = vmul.f32 %v7785_v24, %v10307_v39 }
 0x846   : > { %v7787_v47 = vpop.eup %7786  ;;  %v3444_v20 = vpop.xlane.xlu1 %3443  ;;  %7798 = vrsqrt.f32 %v3481_v15  ;;  %v3479_v56 = vmax.f32 %v3441_v60, 1e-24 }
 0x847   : > { %3555 = vmatprep.subr.bf16.mxu0 %v10453_v7  ;;  %v3534_v44 = vmul.f32 %v7787_v47, %v10301_v11  ;;  %v7789_v48 = vpop.eup %7788  ;;  %v3435_v34 = vpop.xlane.xlu0 %3434  ;;  %v3533_v12 = vmul.f32 %v7787_v47, %v10315_v27 }
 0x848   : > { %3556 = vmatpush1.bf16.xpose.msra.mxu0 %v10455_v14  ;;  %v3528_v55 = vmul.f32 %v7789_v48, %v10271_v22  ;;  %v3527_v15 = vmul.f32 %v7789_v48, %v10245_v28  ;;  %v3477_v60 = vmax.f32 %v3435_v34, 1e-24 }
 0x849   : > { %v10461_v40 = vpack.c.bf16 %v3534_v44, %v3532_v50  ;;  %v10468_v25 = vpack.c.bf16 %v3533_v12, %v3531_v42  ;;  %v3480_v50 = vmax.f32 %v3444_v20, 1e-24 }
 0x84a   : > { %v7791_v13 = vpop.eup %7790  ;;  %v3438_v29 = vpop.xlane.xlu1 %3437 }
 0x84b   : > { %3557 = vmatprep.subr.bf16.mxu0 %v10461_v40  ;;  %v3530_v35 = vmul.f32 %v7791_v13, %v10297_v19  ;;  %v3429_v23 = vpop.xlane.xlu0 %3428  ;;  %v3529_v47 = vmul.f32 %v7791_v13, %v10281_v62  ;;  %v3478_v12 = vmax.f32 %v3438_v29, 1e-24 }
 0x84c   : > { %v3475_v59 = vmax.f32 %v3429_v23, 1e-24 }
 0x84d   : > { %v10470_v5 = vpack.c.bf16 %v3530_v35, %v3528_v55  ;;  %v3549_v55 = vpack.c.bf16 %v3529_v47, %v3527_v15 }
 0x84e   : > { %v3432_v58 = vpop.xlane.xlu1 %3431  ;;  %v7793_v44 = vpop.eup %7792  ;;  %7800 = vrsqrt.f32 %v3475_v59 }
 0x84f   : > { %v3476_v6 = vmax.f32 %v3432_v58, 1e-24  ;;  %v7795_v24 = vpop.eup %7794  ;;  %v3526_v23 = vmul.f32 %v7793_v44, %v10242_v36  ;;  %v3525_v42 = vmul.f32 %v7793_v44, %v10215_v10 }
 0x850   : > { %3558 = vmatpush1.bf16.xpose.msra.mxu0 %v10468_v25  ;;  %v3524_v20 = vmul.f32 %v7795_v24, %v10211_v38  ;;  %v3523_v58 = vmul.f32 %v7795_v24, %v10202_v46 }
 0x851   : > { %7802 = vrsqrt.f32 %v3476_v6  ;;  %3559 = vmatprep.subr.bf16.mxu0 %v10470_v5 }
 0x852   : > { %7804 = vrsqrt.f32 %v3480_v50  ;;  %v3548_v59 = vpack.c.bf16 %v3526_v23, %v3524_v20  ;;  %v7797_v35 = vpop.eup %7796  ;;  %v3547_v47 = vpack.c.bf16 %v3525_v42, %v3523_v58 }
 0x853   : > { %7806 = vrsqrt.f32 %v3479_v56  ;;  %v7799_v6 = vpop.eup %7798  ;;  %v3522_v13 = vmul.f32 %v7797_v35, %v10208_v49 }
 0x854   : > { %7808 = vrsqrt.f32 %v3478_v12  ;;  %v3520_v48 = vmul.f32 %v7799_v6, %v10199_v45  ;;  %v3521_v12 = vmul.f32 %v7797_v35, %v10205_v17 }
 0x855   : > { %7810 = vrsqrt.f32 %v3477_v60  ;;  %v3519_v60 = vmul.f32 %v7799_v6, %v10191_v61 }
 0x856   : > { %v3546_v29 = vpack.c.bf16 %v3522_v13, %v3520_v48 }
 0x857   : > { %v3545_v42 = vpack.c.bf16 %v3521_v12, %v3519_v60 }
 0x858   : > { %3560 = vmatpush1.bf16.xpose.msra.mxu0 %v3549_v55 }
 0x859   : > { %3561 = vmatprep.subr.bf16.mxu0 %v3548_v59 }
 0x85b   : > { %v7801_v50 = vpop.eup %7800 }
 0x85c   : > { %v3508_v23 = vmul.f32 %v7801_v50, %v10415_v1 }
 0x85e   : > { %v7803_v56 = vpop.eup %7802 }
 0x85f   : > { %v3510_v34 = vmul.f32 %v7803_v56, %v10421_v21  ;;  %v7805_v15 = vpop.eup %7804 }
 0x860   : > { %3562 = vmatpush1.bf16.xpose.msra.mxu0 %v3547_v47  ;;  %v7807_v20 = vpop.eup %7806  ;;  %v3518_v24 = vmul.f32 %v7805_v15, %v10252_v37  ;;  %v3517_v16 = vmul.f32 %v7805_v15, %v10249_v30  ;;  %v3507_v15 = vmul.f32 %v7801_v50, %v10412_v52 }
 0x861   : > { %3563 = vmatprep.subr.bf16.mxu0 %v3546_v29  ;;  %v3540_v44 = vpack.c.bf16 %v3510_v34, %v3508_v23  ;;  %v3516_v43 = vmul.f32 %v7807_v20, %v10223_v63  ;;  %v7809_v58 = vpop.eup %7808  ;;  %v3515_v34 = vmul.f32 %v7807_v20, %v10218_v0  ;;  %v8104_v20 = vld [vmem:[%s9295_s30 + $0x18] sm:$0xff] }
 0x862   : > { %v7811_v48 = vpop.eup %7810  ;;  %v3514_v23 = vmul.f32 %v7809_v58, %v10397_v8  ;;  %v3513_v6 = vmul.f32 %v7809_v58, %v10394_v4  ;;  %vm1204_vm11 = vcmp.le.f32.partialorder %v8104_v20, 1e-05  ;;  %v8108_v20 = vld [vmem:[%s9295_s30 + $0x38] sm:$0xff] }
 0x863   : > { %3587 = vmatprep.mubr.bf16.mxu0 %v3540_v44  ;;  %v3544_v13 = vpack.c.bf16 %v3518_v24, %v3516_v43  ;;  %v3512_v35 = vmul.f32 %v7811_v48, %v10391_v32  ;;  %v3543_v18 = vpack.c.bf16 %v3517_v16, %v3515_v34  ;;  %v3511_v43 = vmul.f32 %v7811_v48, %v10388_v51  ;;  %v8105_v34 = vld [vmem:[%s9295_s30 + $0x20] sm:$0xff] }
 0x864   : > { %v3509_v24 = vmul.f32 %v7803_v56, %v10418_v26  ;;  %v13078_v16 = vmov 0   ;;  %v1140_v56 = vld [vmem:[#allocation5 + $0x18] sm:$0xff]  ;;  %vm1205_vm14 = vcmp.le.f32.partialorder %v8105_v34, 1e-05 }
 0x865   : > { %v3542_v53 = vpack.c.bf16 %v3514_v23, %v3512_v35  ;;  %v3541_v12 = vpack.c.bf16 %v3513_v6, %v3511_v43  ;;  %vm1188_vm10 = vcmp.gt.f32.partialorder %v1140_v56, 0.0  ;;  %v1142_v6 = vld [vmem:[#allocation5 + $0x28] sm:$0xff] }
 0x866   : > { %v3539_v60 = vpack.c.bf16 %v3509_v24, %v3507_v15  ;;  %vm1220_vm12 = vmand %vm1188_vm10, %vm1204_vm11  ;;  %vm1190_vm0 = vcmp.gt.f32.partialorder %v1142_v6, 0.0  ;;  %v8106_v15 = vld [vmem:[%s9295_s30 + $0x28] sm:$0xff] }
 0x868   : > { %3564 = vmatpush1.bf16.xpose.msra.mxu0 %v3545_v42 }
 0x869   : > { %3565 = vmatprep.subr.bf16.mxu0 %v3544_v13 }
 0x870   : > { %3566 = vmatpush1.bf16.xpose.msra.mxu0 %v3543_v18 }
 0x871   : > { %3567 = vmatprep.subr.bf16.mxu0 %v3542_v53 }
 0x878   : > { %3568 = vmatpush1.bf16.xpose.msra.mxu0 %v3541_v12 }
 0x879   : > { %3569 = vmatprep.subr.bf16.mxu0 %v3540_v44 }
 0x880   : > { %3570 = vmatpush1.bf16.xpose.msra.mxu0 %v3539_v60 }
 0x887   : > { %3588 = vmatmul.mubr.bf16.vlgmr.msra.gmra.mxu0 %v3539_v60 }
 0x888   : > { %3595 = vmatprep.mubr.bf16.mxu0 %v3542_v53  ;;  %v8101_v53 = vld [vmem:[%s9295_s30] sm:$0xff] }
 0x889   : > { %vm1201_vm2 = vcmp.le.f32.partialorder %v8101_v53, 1e-05 }
 0x88f   : > { %3596 = vmatmul.mubr.bf16.gmra.mxu0 %v3541_v12 }
 0x890   : > { %3603 = vmatprep.mubr.bf16.mxu0 %v3544_v13  ;;  %v1141_v13 = vld [vmem:[#allocation5 + $0x20] sm:$0xff] }
 0x891   : > { %vm1189_vm13 = vcmp.gt.f32.partialorder %v1141_v13, 0.0 }
 0x892   : > { %vm1221_vm15 = vmand %vm1189_vm13, %vm1205_vm14 }
 0x897   : > { %3604 = vmatmul.mubr.bf16.gmra.mxu0 %v3543_v18  ;;  %v1137_v18 = vld [vmem:[#allocation5] sm:$0xff] }
 0x898   : > { %3611 = vmatprep.mubr.bf16.mxu0 %v3546_v29  ;;  %vm1185_vm1 = vcmp.gt.f32.partialorder %v1137_v18, 0.0  ;;  %v1143_v18 = vld [vmem:[#allocation5 + $0x30] sm:$0xff] }
 0x899   : > { %vm1217_vm3 = vmand %vm1185_vm1, %vm1201_vm2  ;;  %vm1206_vm1 = vcmp.le.f32.partialorder %v8106_v15, 1e-05  ;;  %v1146_v15 = vld [vmem:[#allocation5 + $0x48] sm:$0xff] }
 0x89a   : > { %vm1222_vm2 = vmand %vm1190_vm0, %vm1206_vm1 }
 0x89f   : > { %3612 = vmatmul.mubr.bf16.gmra.mxu0 %v3545_v42 }
 0x8a0   : > { %3619 = vmatprep.mubr.bf16.mxu0 %v3548_v59  ;;  %v1138_v59 = vld [vmem:[#allocation5 + $0x8] sm:$0xff] }
 0x8a1   : > { %vm1186_vm4 = vcmp.gt.f32.partialorder %v1138_v59, 0.0 }
 0x8a7   : > { %3620 = vmatmul.mubr.bf16.gmra.mxu0 %v3547_v47 }
 0x8a8   : > { %3627 = vmatprep.mubr.bf16.mxu0 %v10470_v5  ;;  %v8102_v5 = vld [vmem:[%s9295_s30 + $0x8] sm:$0xff] }
 0x8a9   : > { %vm1202_vm5 = vcmp.le.f32.partialorder %v8102_v5, 1e-05 }
 0x8aa   : > { %vm1218_vm6 = vmand %vm1186_vm4, %vm1202_vm5 }
 0x8af   : > { %3628 = vmatmul.mubr.bf16.gmra.mxu0 %v3549_v55  ;;  %v13079_v55 = vmov -1e+30  }
 0x8b0   : > { %3635 = vmatprep.mubr.bf16.mxu0 %v10461_v40  ;;  %v1139_v40 = vld [vmem:[#allocation5 + $0x10] sm:$0xff]  ;;  %v10512_v29 = vsel %vm1218_vm6, 0.0, %v13079_v55  ;;  %v10528_v12 = vsel %vm1220_vm12, 0.0, %v13079_v55  ;;  %v10536_v59 = vsel %vm1221_vm15, 0.0, %v13079_v55  ;;  %vm1194_vm12 = vcmp.gt.f32.partialorder %v1146_v15, 0.0 }
 0x8b1   : > { %vm1187_vm7 = vcmp.gt.f32.partialorder %v1139_v40, 0.0  ;;  %13081 = vst [vmem:[#allocation163_spill] sm:$0xff] %v10512_v29  ;;  %13083 = vst [vmem:[#allocation162_spill] sm:$0xff] %v10528_v12  ;;  %v8107_v40 = vld [vmem:[%s9295_s30 + $0x30] sm:$0xff] }
 0x8b2   : > { %13084 = vst [vmem:[#allocation164_spill] sm:$0xff] %v10536_v59  ;;  %vm1207_vm4 = vcmp.le.f32.partialorder %v8107_v40, 1e-05  ;;  %v8110_v40 = vld [vmem:[%s9295_s30 + $0x48] sm:$0xff] }
 0x8b3   : > { %vm1210_vm13 = vcmp.le.f32.partialorder %v8110_v40, 1e-05  ;;  %v8112_v40 = vld [vmem:[%s9295_s30 + $0x58] sm:$0xff] }
 0x8b4   : > { %vm1226_vm14 = vmand %vm1194_vm12, %vm1210_vm13 }
 0x8b7   : > { %3636 = vmatmul.mubr.bf16.gmra.mxu0 %v10468_v25  ;;  %v10505_v25 = vsel %vm1217_vm3, 0.0, %v13079_v55  ;;  %vm1191_vm3 = vcmp.gt.f32.partialorder %v1143_v18, 0.0 }
 0x8b8   : > { %3643 = vmatprep.mubr.bf16.mxu0 %v10453_v7  ;;  %13080 = vst [vmem:[#allocation171_spill] sm:$0xff] %v10505_v25  ;;  %vm1223_vm5 = vmand %vm1191_vm3, %vm1207_vm4  ;;  %vm1212_vm3 = vcmp.le.f32.partialorder %v8112_v40, 1e-05  ;;  %v1150_v40 = vld [vmem:[#allocation5 + $0x68] sm:$0xff] }
 0x8b9   : > { %v10552_v34 = vsel %vm1223_vm5, 0.0, %v13079_v55 }
 0x8ba   : > { %13086 = vst [vmem:[#allocation166_spill] sm:$0xff] %v10552_v34 }
 0x8bf   : > { %3644 = vmatmul.mubr.bf16.gmra.mxu0 %v10455_v14  ;;  %v8103_v14 = vld [vmem:[%s9295_s30 + $0x10] sm:$0xff] }
 0x8c0   : > { %4239 = vmatprep.mubr.bf16.mxu0 %v13078_v16  ;;  %vm1203_vm8 = vcmp.le.f32.partialorder %v8103_v14, 1e-05  ;;  %v1144_v14 = vld [vmem:[#allocation5 + $0x38] sm:$0xff] }
 0x8c1   : > { %vm1219_vm9 = vmand %vm1187_vm7, %vm1203_vm8  ;;  %vm1192_vm6 = vcmp.gt.f32.partialorder %v1144_v14, 0.0  ;;  %vm1208_vm7 = vcmp.le.f32.partialorder %v8108_v20, 1e-05 }
 0x8c2   : > { %v10520_v48 = vsel %vm1219_vm9, 0.0, %v13079_v55  ;;  %vm1224_vm8 = vmand %vm1192_vm6, %vm1208_vm7 }
 0x8c3   : > { %13082 = vst [vmem:[#allocation117_spill] sm:$0xff] %v10520_v48 }
 0x947   : > { %v3589_v7 = vpop.f32.mrf.mxu0 }
 0x948   : > { %v10509_v50 = vadd.f32 %v3589_v7, %v10505_v25 }
 0x949   : > { %v3591_v47 = vpop.f32.mrf.mxu0 }
 0x94a   : > { %3652 = vmax.xlane.f32.xlu0 %v10509_v50  ;;  %v10544_v47 = vsel %vm1222_vm2, 0.0, %v13079_v55 }
 0x94b   : > { %v3592_v44 = vpop.f32.mrf.mxu0  ;;  %13085 = vst [vmem:[#allocation154_spill] sm:$0xff] %v10544_v47 }
 0x94c   : > { %v10517_v42 = vadd.f32 %v3592_v44, %v10512_v29 }
 0x94d   : > { %v3594_v58 = vpop.f32.mrf.mxu0 }
 0x94e   : > { %3654 = vmax.xlane.f32.xlu1 %v10517_v42  ;;  %v1145_v58 = vld [vmem:[#allocation5 + $0x40] sm:$0xff] }
 0x94f   : > { %v3597_v23 = vpop.f32.mrf.mxu0  ;;  %vm1193_vm9 = vcmp.gt.f32.partialorder %v1145_v58, 0.0 }
 0x950   : > { %v10525_v35 = vadd.f32 %v3597_v23, %v10520_v48 }
 0x951   : > { %v3599_v43 = vpop.f32.mrf.mxu0 }
 0x952   : > { %3656 = vmax.xlane.f32.xlu0 %v10525_v35  ;;  %v8109_v43 = vld [vmem:[%s9295_s30 + $0x40] sm:$0xff] }
 0x953   : > { %v3600_v24 = vpop.f32.mrf.mxu0  ;;  %vm1209_vm10 = vcmp.le.f32.partialorder %v8109_v43, 1e-05  ;;  %v1148_v43 = vld [vmem:[#allocation5 + $0x58] sm:$0xff] }
 0x954   : > { %v10533_v60 = vadd.f32 %v3600_v24, %v10528_v12  ;;  %vm1225_vm11 = vmand %vm1193_vm9, %vm1209_vm10  ;;  %vm1196_vm2 = vcmp.gt.f32.partialorder %v1148_v43, 0.0 }
 0x955   : > { %v3602_v53 = vpop.f32.mrf.mxu0  ;;  %v10568_v20 = vsel %vm1225_vm11, 0.0, %v13079_v55  ;;  %vm1228_vm4 = vmand %vm1196_vm2, %vm1212_vm3 }
 0x956   : > { %3658 = vmax.xlane.f32.xlu1 %v10533_v60  ;;  %v10560_v53 = vsel %vm1224_vm8, 0.0, %v13079_v55  ;;  %13088 = vst [vmem:[#allocation167_spill] sm:$0xff] %v10568_v20  ;;  %vm1198_vm8 = vcmp.gt.f32.partialorder %v1150_v40, 0.0 }
 0x957   : > { %v3605_v5 = vpop.f32.mrf.mxu0  ;;  %13087 = vst [vmem:[#allocation157_spill] sm:$0xff] %v10560_v53 }
 0x958   : > { %v10541_v7 = vadd.f32 %v3605_v5, %v10536_v59 }
 0x959   : > { %v3607_v56 = vpop.f32.mrf.mxu0 }
 0x95a   : > { %3660 = vmax.xlane.f32.xlu0 %v10541_v7  ;;  %v1147_v56 = vld [vmem:[#allocation5 + $0x50] sm:$0xff] }
 0x95b   : > { %v3608_v44 = vpop.f32.mrf.mxu0  ;;  %vm1195_vm15 = vcmp.gt.f32.partialorder %v1147_v56, 0.0 }
 0x95c   : > { %v10549_v13 = vadd.f32 %v3608_v44, %v10544_v47 }
 0x95d   : > { %v3610_v23 = vpop.f32.mrf.mxu0 }
 0x95e   : > { %3662 = vmax.xlane.f32.xlu1 %v10549_v13  ;;  %v8111_v23 = vld [vmem:[%s9295_s30 + $0x50] sm:$0xff] }
 0x95f   : > { %v3613_v6 = vpop.f32.mrf.mxu0  ;;  %vm1211_vm0 = vcmp.le.f32.partialorder %v8111_v23, 1e-05 }
 0x960   : > { %v10557_v24 = vadd.f32 %v3613_v6, %v10552_v34  ;;  %vm1227_vm1 = vmand %vm1195_vm15, %vm1211_vm0 }
 0x961   : > { %v3615_v18 = vpop.f32.mrf.mxu0 }
 0x962   : > { %3664 = vmax.xlane.f32.xlu0 %v10557_v24  ;;  %v10576_v18 = vsel %vm1226_vm14, 0.0, %v13079_v55 }
 0x963   : > { %v3616_v5 = vpop.f32.mrf.mxu0  ;;  %13089 = vst [vmem:[#allocation165_spill] sm:$0xff] %v10576_v18 }
 0x964   : > { %v10565_v14 = vadd.f32 %v3616_v5, %v10560_v53 }
 0x965   : > { %v3618_v44 = vpop.f32.mrf.mxu0 }
 0x966   : > { %3666 = vmax.xlane.f32.xlu1 %v10565_v14  ;;  %v1149_v44 = vld [vmem:[#allocation5 + $0x60] sm:$0xff] }
 0x967   : > { %v3621_v58 = vpop.f32.mrf.mxu0  ;;  %vm1197_vm5 = vcmp.gt.f32.partialorder %v1149_v44, 0.0 }
 0x968   : > { %v10573_v6 = vadd.f32 %v3621_v58, %v10568_v20  ;;  %v10584_v58 = vsel %vm1227_vm1, 0.0, %v13079_v55  ;;  %v8113_v20 = vld [vmem:[%s9295_s30 + $0x60] sm:$0xff] }
 0x969   : > { %v3623_v15 = vpop.f32.mrf.mxu0  ;;  %13090 = vst [vmem:[#allocation169_spill] sm:$0xff] %v10584_v58  ;;  %vm1213_vm6 = vcmp.le.f32.partialorder %v8113_v20, 1e-05  ;;  %v1151_v20 = vld [vmem:[#allocation5 + $0x70] sm:$0xff] }
 0x96a   : > { %3668 = vmax.xlane.f32.xlu0 %v10573_v6  ;;  %vm1229_vm7 = vmand %vm1197_vm5, %vm1213_vm6  ;;  %vm1199_vm11 = vcmp.gt.f32.partialorder %v1151_v20, 0.0 }
 0x96b   : > { %v3624_v5 = vpop.f32.mrf.mxu0 }
 0x96c   : > { %v10581_v56 = vadd.f32 %v3624_v5, %v10576_v18  ;;  %v10592_v5 = vsel %vm1228_vm4, 0.0, %v13079_v55  ;;  %v8114_v18 = vld [vmem:[%s9295_s30 + $0x68] sm:$0xff] }
 0x96d   : > { %v3626_v23 = vpop.f32.mrf.mxu0  ;;  %13091 = vst [vmem:[#allocation118_spill] sm:$0xff] %v10592_v5  ;;  %vm1214_vm9 = vcmp.le.f32.partialorder %v8114_v18, 1e-05  ;;  %v1152_v18 = vld [vmem:[#allocation5 + $0x78] sm:$0xff] }
 0x96e   : > { %3670 = vmax.xlane.f32.xlu1 %v10581_v56  ;;  %vm1230_vm10 = vmand %vm1198_vm8, %vm1214_vm9  ;;  %vm1200_vm14 = vcmp.gt.f32.partialorder %v1152_v18, 0.0 }
 0x96f   : > { %v3629_v15 = vpop.f32.mrf.mxu0 }
 0x970   : > { %v10589_v43 = vadd.f32 %v3629_v15, %v10584_v58  ;;  %v10600_v15 = vsel %vm1229_vm7, 0.0, %v13079_v55  ;;  %v8115_v58 = vld [vmem:[%s9295_s30 + $0x70] sm:$0xff] }
 0x971   : > { %v3631_v53 = vpop.f32.mrf.mxu0  ;;  %13092 = vst [vmem:[#allocation119_spill] sm:$0xff] %v10600_v15  ;;  %vm1215_vm12 = vcmp.le.f32.partialorder %v8115_v58, 1e-05 }
 0x972   : > { %3672 = vmax.xlane.f32.xlu0 %v10589_v43  ;;  %vm1231_vm13 = vmand %vm1199_vm11, %vm1215_vm12 }
 0x973   : > { %v3632_v23 = vpop.f32.mrf.mxu0  ;;  %v10616_v58 = vsel %vm1231_vm13, 0.0, %v13079_v55 }
 0x974   : > { %v10597_v44 = vadd.f32 %v3632_v23, %v10592_v5  ;;  %v10608_v23 = vsel %vm1230_vm10, 0.0, %v13079_v55  ;;  %v8116_v5 = vld [vmem:[%s9295_s30 + $0x78] sm:$0xff]  ;;  %13094 = vst [vmem:[#allocation155_spill] sm:$0xff] %v10616_v58 }
 0x975   : > { %v3634_v34 = vpop.f32.mrf.mxu0  ;;  %13093 = vst [vmem:[#allocation168_spill] sm:$0xff] %v10608_v23  ;;  %vm1216_vm15 = vcmp.le.f32.partialorder %v8116_v5, 1e-05 }
 0x976   : > { %3674 = vmax.xlane.f32.xlu1 %v10597_v44  ;;  %vm1232_vm0 = vmand %vm1200_vm14, %vm1216_vm15 }
 0x977   : > { %v3637_v53 = vpop.f32.mrf.mxu0  ;;  %v10623_v12 = vsel %vm1232_vm0, 0.0, %v13079_v55 }
 0x978   : > { %v10605_v40 = vadd.f32 %v3637_v53, %v10600_v15  ;;  %13095 = vst [vmem:[#allocation159_spill] sm:$0xff] %v10623_v12 }
 0x979   : > { %v3639_v47 = vpop.f32.mrf.mxu0 }
 0x97a   : > { %3676 = vmax.xlane.f32.xlu0 %v10605_v40 }
 0x97b   : > { %v3640_v34 = vpop.f32.mrf.mxu0 }
 0x97c   : > { %v10613_v59 = vadd.f32 %v3640_v34, %v10608_v23 }
 0x97d   : > { %v3642_v20 = vpop.f32.mrf.mxu0 }
 0x97e   : > { %3678 = vmax.xlane.f32.xlu1 %v10613_v59 }
 0x97f   : > { %v3645_v47 = vpop.f32.mrf.mxu0 }
 0x980   : > { %v10620_v53 = vadd.f32 %v3645_v47, %v10616_v58 }
 0x981   : > { %v3647_v15 = vpop.f32.mrf.mxu0 }
 0x982   : > { %3680 = vmax.xlane.f32.xlu0 %v10620_v53 }
 0x983   : > { %v3648_v5 = vpop.f32.mrf.mxu0 }
 0x984   : > { %v10627_v18 = vadd.f32 %v3648_v5, %v10623_v12 }
 0x985   : > { %v3650_v34 = vpop.f32.mrf.mxu0 }
 0x986   : > { %3682 = vmax.xlane.f32.xlu1 %v10627_v18 }
 0x9d3   : > { %v3653_v20 = vpop.xlane.xlu0 %3652 }
 0x9d4   : > { %v3684_v23 = vsub.f32 %v10509_v50, %v3653_v20 }
 0x9d6   : > { %v3700_v48 = vmul.f32 1.442695, %v3684_v23 }
 0x9d7   : > { %v3655_v29 = vpop.xlane.xlu1 %3654 }
 0x9d8   : > { %7812 = vpow2.f32 %v3700_v48  ;;  %v3685_v15 = vsub.f32 %v10517_v42, %v3655_v29 }
 0x9da   : > { %v3702_v47 = vmul.f32 1.442695, %v3685_v15 }
 0x9db   : > { %v3657_v55 = vpop.xlane.xlu0 %3656 }
 0x9dc   : > { %7814 = vpow2.f32 %v3702_v47  ;;  %v3686_v58 = vsub.f32 %v10525_v35, %v3657_v55 }
 0x9de   : > { %v3704_v25 = vmul.f32 1.442695, %v3686_v58 }
 0x9df   : > { %v3659_v31 = vpop.xlane.xlu1 %3658 }
 0x9e0   : > { %7816 = vpow2.f32 %v3704_v25  ;;  %v3687_v5 = vsub.f32 %v10533_v60, %v3659_v31 }
 0x9e2   : > { %v3706_v34 = vmul.f32 1.442695, %v3687_v5 }
 0x9e3   : > { %v3661_v12 = vpop.xlane.xlu0 %3660 }
 0x9e4   : > { %7818 = vpow2.f32 %v3706_v34  ;;  %v3688_v50 = vsub.f32 %v10541_v7, %v3661_v12 }
 0x9e5   : > { %v10635_v23 = vpop.eup %7812 }
 0x9e6   : > { %v3708_v48 = vmul.f32 1.442695, %v3688_v50  ;;  %3732 = vadd.xlane.f32.xlu0 %v10635_v23 }
 0x9e7   : > { %v3663_v29 = vpop.xlane.xlu1 %3662 }
 0x9e8   : > { %7820 = vpow2.f32 %v3708_v48  ;;  %v3689_v42 = vsub.f32 %v10549_v13, %v3663_v29 }
 0x9e9   : > { %v10639_v35 = vpop.eup %7814 }
 0x9ea   : > { %v3710_v58 = vmul.f32 1.442695, %v3689_v42  ;;  %3734 = vadd.xlane.f32.xlu1 %v10639_v35 }
 0x9eb   : > { %v3665_v31 = vpop.xlane.xlu0 %3664 }
 0x9ec   : > { %7822 = vpow2.f32 %v3710_v58  ;;  %v3690_v25 = vsub.f32 %v10557_v24, %v3665_v31 }
 0x9ed   : > { %v10643_v60 = vpop.eup %7816 }
 0x9ee   : > { %v3712_v12 = vmul.f32 1.442695, %v3690_v25  ;;  %3736 = vadd.xlane.f32.xlu0 %v10643_v60 }
 0x9ef   : > { %v3667_v7 = vpop.xlane.xlu1 %3666 }
 0x9f0   : > { %7824 = vpow2.f32 %v3712_v12  ;;  %v3691_v20 = vsub.f32 %v10565_v14, %v3667_v7 }
 0x9f1   : > { %v10647_v15 = vpop.eup %7818 }
 0x9f2   : > { %v3714_v13 = vmul.f32 1.442695, %v3691_v20  ;;  %3738 = vadd.xlane.f32.xlu1 %v10647_v15 }
 0x9f3   : > { %v3669_v47 = vpop.xlane.xlu0 %3668 }
 0x9f4   : > { %7826 = vpow2.f32 %v3714_v13  ;;  %v3692_v55 = vsub.f32 %v10573_v6, %v3669_v47 }
 0x9f5   : > { %v10651_v5 = vpop.eup %7820 }
 0x9f6   : > { %v3716_v24 = vmul.f32 1.442695, %v3692_v55  ;;  %3740 = vadd.xlane.f32.xlu0 %v10651_v5 }
 0x9f7   : > { %v3671_v34 = vpop.xlane.xlu1 %3670 }
 0x9f8   : > { %7828 = vpow2.f32 %v3716_v24  ;;  %v3693_v50 = vsub.f32 %v10581_v56, %v3671_v34 }
 0x9f9   : > { %v10655_v48 = vpop.eup %7822 }
 0x9fa   : > { %v3718_v14 = vmul.f32 1.442695, %v3693_v50  ;;  %3742 = vadd.xlane.f32.xlu1 %v10655_v48 }
 0x9fb   : > { %v3673_v29 = vpop.xlane.xlu0 %3672 }
 0x9fc   : > { %7830 = vpow2.f32 %v3718_v14  ;;  %v3694_v42 = vsub.f32 %v10589_v43, %v3673_v29 }
 0x9fd   : > { %v10659_v58 = vpop.eup %7824 }
 0x9fe   : > { %v3720_v6 = vmul.f32 1.442695, %v3694_v42  ;;  %3744 = vadd.xlane.f32.xlu0 %v10659_v58 }
 0x9ff   : > { %v3675_v31 = vpop.xlane.xlu1 %3674 }
 0xa00   : > { %7832 = vpow2.f32 %v3720_v6  ;;  %v3695_v25 = vsub.f32 %v10597_v44, %v3675_v31 }
 0xa01   : > { %v10663_v12 = vpop.eup %7826 }
 0xa02   : > { %v3722_v56 = vmul.f32 1.442695, %v3695_v25  ;;  %3746 = vadd.xlane.f32.xlu1 %v10663_v12 }
 0xa03   : > { %v3677_v7 = vpop.xlane.xlu0 %3676 }
 0xa04   : > { %7834 = vpow2.f32 %v3722_v56  ;;  %v3696_v20 = vsub.f32 %v10605_v40, %v3677_v7 }
 0xa05   : > { %v10667_v13 = vpop.eup %7828 }
 0xa06   : > { %v3724_v43 = vmul.f32 1.442695, %v3696_v20  ;;  %3748 = vadd.xlane.f32.xlu0 %v10667_v13 }
 0xa07   : > { %v3679_v47 = vpop.xlane.xlu1 %3678 }
 0xa08   : > { %7836 = vpow2.f32 %v3724_v43  ;;  %v3697_v55 = vsub.f32 %v10613_v59, %v3679_v47 }
 0xa09   : > { %v10671_v24 = vpop.eup %7830 }
 0xa0a   : > { %v3726_v44 = vmul.f32 1.442695, %v3697_v55  ;;  %3750 = vadd.xlane.f32.xlu1 %v10671_v24 }
 0xa0b   : > { %v3681_v34 = vpop.xlane.xlu0 %3680 }
 0xa0c   : > { %7838 = vpow2.f32 %v3726_v44  ;;  %v3698_v50 = vsub.f32 %v10620_v53, %v3681_v34 }
 0xa0d   : > { %v10675_v14 = vpop.eup %7832 }
 0xa0e   : > { %v3728_v40 = vmul.f32 1.442695, %v3698_v50  ;;  %3752 = vadd.xlane.f32.xlu0 %v10675_v14 }
 0xa0f   : > { %v3683_v29 = vpop.xlane.xlu1 %3682 }
 0xa10   : > { %7840 = vpow2.f32 %v3728_v40  ;;  %v3699_v42 = vsub.f32 %v10627_v18, %v3683_v29 }
 0xa11   : > { %v10679_v6 = vpop.eup %7834 }
 0xa12   : > { %v3730_v59 = vmul.f32 1.442695, %v3699_v42  ;;  %3754 = vadd.xlane.f32.xlu1 %v10679_v6 }
 0xa14   : > { %7842 = vpow2.f32 %v3730_v59 }
 0xa15   : > { %v10682_v31 = vpop.eup %7836 }
 0xa16   : > { %3756 = vadd.xlane.f32.xlu0 %v10682_v31 }
 0xa19   : > { %v10685_v53 = vpop.eup %7838 }
 0xa1a   : > { %3758 = vadd.xlane.f32.xlu1 %v10685_v53 }
 0xa1d   : > { %v10688_v25 = vpop.eup %7840 }
 0xa1e   : > { %3760 = vadd.xlane.f32.xlu0 %v10688_v25 }
 0xa21   : > { %v10691_v56 = vpop.eup %7842 }
 0xa22   : > { %3762 = vadd.xlane.f32.xlu1 %v10691_v56 }
 0xa6f   : > { %v3733_v18 = vpop.xlane.xlu0 %3732 }
 0xa70   : > { %7844 = vrcp.f32 %v3733_v18  ;;  %v8117_v18 = vld [vmem:[#allocation10 + $0x70] ss:$8 sps:$4 sm:$0xff]  }
 0xa73   : > { %v3735_v7 = vpop.xlane.xlu1 %3734 }
 0xa74   : > { %7846 = vrcp.f32 %v3735_v7  ;;  %v8118_v7 = vld [vmem:[#allocation10 + $0x64] ss:$8 sps:$4 sm:$0xff]  }
 0xa77   : > { %v3737_v20 = vpop.xlane.xlu0 %3736 }
 0xa78   : > { %7848 = vrcp.f32 %v3737_v20 }
 0xa7b   : > { %v3739_v43 = vpop.xlane.xlu1 %3738 }
 0xa7c   : > { %7850 = vrcp.f32 %v3739_v43 }
 0xa7d   : > { %v7845_v47 = vpop.eup %7844 }
 0xa7e   : > { %v3780_v34 = vmul.f32 %v7845_v47, %v10635_v23 }
 0xa7f   : > { %v3741_v55 = vpop.xlane.xlu0 %3740 }
 0xa80   : > { %7852 = vrcp.f32 %v3741_v55 }
 0xa81   : > { %v7847_v44 = vpop.eup %7846 }
 0xa82   : > { %v3781_v50 = vmul.f32 %v7847_v44, %v10639_v35  ;;  %v8119_v35 = vld [vmem:[#allocation10 + $0x60] ss:$8 sps:$4 sm:$0xff]   ;;  %v8120_v44 = vld [vmem:[#allocation10 + $0x54] ss:$8 sps:$4 sm:$0xff]  }
 0xa83   : > { %v3743_v40 = vpop.xlane.xlu1 %3742 }
 0xa84   : > { %7854 = vrcp.f32 %v3743_v40  ;;  %v3796_v29 = vpack.c.bf16 %v3781_v50, %v3780_v34  ;;  %v8121_v40 = vld [vmem:[#allocation10 + $0x50] ss:$8 sps:$4 sm:$0xff]  }
 0xa85   : > { %v7849_v42 = vpop.eup %7848 }
 0xa86   : > { %3853 = vmatmul.mubr.bf16.vlgmr.msra.gmra.mxu1 %v3796_v29  ;;  %v3782_v43 = vmul.f32 %v7849_v42, %v10643_v60  ;;  %v8122_v29 = vld [vmem:[#allocation10 + $0x44] ss:$8 sps:$4 sm:$0xff]  }
 0xa87   : > { %v3745_v59 = vpop.xlane.xlu0 %3744  ;;  %3862 = vmatprep.mubr.bf16.mxu1 %v13078_v16  ;;  %4337 = vmatpush1.bf16.msra.mxu1 %v8117_v18  ;;  %v8123_v18 = vld [vmem:[#allocation10 + $0x40] ss:$8 sps:$4 sm:$0xff]  }
 0xa88   : > { %4338 = vmatprep.subr.bf16.mxu1 %v8118_v7  ;;  %7856 = vrcp.f32 %v3745_v59 }
 0xa89   : > { %v7851_v20 = vpop.eup %7850 }
 0xa8a   : > { %v3783_v23 = vmul.f32 %v7851_v20, %v10647_v15  ;;  %v8124_v20 = vld [vmem:[#allocation10 + $0x34] ss:$8 sps:$4 sm:$0xff]  }
 0xa8b   : > { %v3747_v47 = vpop.xlane.xlu1 %3746  ;;  %4339 = vmatpush1.bf16.msra.mxu1 %v8119_v35  ;;  %v8126_v35 = vld [vmem:[#allocation10 + $0x24] ss:$8 sps:$4 sm:$0xff]  }
 0xa8c   : > { %7858 = vrcp.f32 %v3747_v47  ;;  %v3797_v55 = vpack.c.bf16 %v3783_v23, %v3782_v43  ;;  %4340 = vmatprep.subr.bf16.mxu1 %v8120_v44  ;;  %v8125_v47 = vld [vmem:[#allocation10 + $0x30] ss:$8 sps:$4 sm:$0xff]  }
 0xa8d   : > { %v7853_v34 = vpop.eup %7852 }
 0xa8e   : > { %3863 = vmatmul.mubr.bf16.gmra.mxu1 %v3797_v55  ;;  %v3784_v60 = vmul.f32 %v7853_v34, %v10651_v5  ;;  %v8127_v34 = vld [vmem:[#allocation10 + $0x20] ss:$8 sps:$4 sm:$0xff]  }
 0xa8f   : > { %v3749_v50 = vpop.xlane.xlu0 %3748  ;;  %3872 = vmatprep.mubr.bf16.mxu1 %v13078_v16  ;;  %4341 = vmatpush1.bf16.msra.mxu1 %v8121_v40  ;;  %v8128_v40 = vld [vmem:[#allocation10 + $0x14] ss:$8 sps:$4 sm:$0xff]  }
 0xa90   : > { %4342 = vmatprep.subr.bf16.mxu1 %v8122_v29  ;;  %7860 = vrcp.f32 %v3749_v50 }
 0xa91   : > { %v7855_v59 = vpop.eup %7854 }
 0xa92   : > { %v3785_v15 = vmul.f32 %v7855_v59, %v10655_v48 }
 0xa93   : > { %v3751_v42 = vpop.xlane.xlu1 %3750  ;;  %4343 = vmatpush1.bf16.msra.mxu1 %v8123_v18 }
 0xa94   : > { %7862 = vrcp.f32 %v3751_v42  ;;  %v3798_v7 = vpack.c.bf16 %v3785_v15, %v3784_v60  ;;  %4344 = vmatprep.subr.bf16.mxu1 %v8124_v20  ;;  %v8129_v60 = vld [vmem:[#allocation10 + $0x10] ss:$8 sps:$4 sm:$0xff]   ;;  %v8130_v15 = vld [vmem:[#allocation10 + $0x4] ss:$8 sps:$4 sm:$0xff]  }
 0xa95   : > { %v7857_v43 = vpop.eup %7856 }
 0xa96   : > { %3873 = vmatmul.mubr.bf16.gmra.mxu1 %v3798_v7  ;;  %v3786_v5 = vmul.f32 %v7857_v43, %v10659_v58  ;;  %v8131_v7 = vld [vmem:[#allocation10] ss:$8 sps:$4 sm:$0xff]   ;;  %v8132_v43 = vld [vmem:[#allocation10 + $0xf4] ss:$8 sps:$4 sm:$0xff]  }
 0xa97   : > { %v3753_v23 = vpop.xlane.xlu0 %3752  ;;  %3882 = vmatprep.mubr.bf16.mxu1 %v13078_v16  ;;  %4345 = vmatpush1.bf16.msra.mxu1 %v8125_v47 }
 0xa98   : > { %4346 = vmatprep.subr.bf16.mxu1 %v8126_v35  ;;  %7864 = vrcp.f32 %v3753_v23  ;;  %v8133_v35 = vld [vmem:[#allocation10 + $0xf0] ss:$8 sps:$4 sm:$0xff]  }
 0xa99   : > { %v7859_v55 = vpop.eup %7858 }
 0xa9a   : > { %v3787_v48 = vmul.f32 %v7859_v55, %v10663_v12  ;;  %v8134_v55 = vld [vmem:[#allocation10 + $0xe4] ss:$8 sps:$4 sm:$0xff]  }
 0xa9b   : > { %v3755_v44 = vpop.xlane.xlu1 %3754  ;;  %4347 = vmatpush1.bf16.msra.mxu1 %v8127_v34 }
 0xa9c   : > { %7866 = vrcp.f32 %v3755_v44  ;;  %v3799_v50 = vpack.c.bf16 %v3787_v48, %v3786_v5  ;;  %4348 = vmatprep.subr.bf16.mxu1 %v8128_v40  ;;  %v8135_v44 = vld [vmem:[#allocation10 + $0xe0] ss:$8 sps:$4 sm:$0xff]  }
 0xa9d   : > { %v7861_v29 = vpop.eup %7860 }
 0xa9e   : > { %3883 = vmatmul.mubr.bf16.gmra.mxu1 %v3799_v50  ;;  %v3788_v58 = vmul.f32 %v7861_v29, %v10667_v13  ;;  %v8136_v50 = vld [vmem:[#allocation10 + $0xd4] ss:$8 sps:$4 sm:$0xff]   ;;  %v8137_v29 = vld [vmem:[#allocation10 + $0xd0] ss:$8 sps:$4 sm:$0xff]  }
 0xa9f   : > { %v3757_v59 = vpop.xlane.xlu0 %3756  ;;  %3892 = vmatprep.mubr.bf16.mxu1 %v13078_v16  ;;  %4349 = vmatpush1.bf16.msra.mxu1 %v8129_v60 }
 0xaa0   : > { %4350 = vmatprep.subr.bf16.mxu1 %v8130_v15  ;;  %7868 = vrcp.f32 %v3757_v59  ;;  %v8138_v59 = vld [vmem:[#allocation10 + $0xc4] ss:$8 sps:$4 sm:$0xff]   ;;  %v8139_v15 = vld [vmem:[#allocation10 + $0xc0] ss:$8 sps:$4 sm:$0xff]  }
 0xaa1   : > { %v7863_v42 = vpop.eup %7862 }
 0xaa2   : > { %v3789_v12 = vmul.f32 %v7863_v42, %v10671_v24 }
 0xaa3   : > { %v3759_v18 = vpop.xlane.xlu1 %3758  ;;  %4351 = vmatpush1.bf16.msra.mxu1 %v8131_v7  ;;  %v8142_v7 = vld [vmem:[#allocation10 + $0xa4] ss:$8 sps:$4 sm:$0xff]  }
 0xaa4   : > { %7870 = vrcp.f32 %v3759_v18  ;;  %v3800_v20 = vpack.c.bf16 %v3789_v12, %v3788_v58  ;;  %4352 = vmatprep.subr.bf16.mxu1 %v8132_v43  ;;  %v8140_v58 = vld [vmem:[#allocation10 + $0xb4] ss:$8 sps:$4 sm:$0xff]   ;;  %v8141_v18 = vld [vmem:[#allocation10 + $0xb0] ss:$8 sps:$4 sm:$0xff]  }
 0xaa5   : > { %v7865_v23 = vpop.eup %7864 }
 0xaa6   : > { %3893 = vmatmul.mubr.bf16.gmra.mxu1 %v3800_v20  ;;  %v3790_v13 = vmul.f32 %v7865_v23, %v10675_v14  ;;  %v8143_v23 = vld [vmem:[#allocation10 + $0xa0] ss:$8 sps:$4 sm:$0xff]  }
 0xaa7   : > { %v3761_v47 = vpop.xlane.xlu0 %3760  ;;  %3902 = vmatprep.mubr.bf16.mxu1 %v13078_v16  ;;  %4353 = vmatpush2.bf16.msra.mxu1 %v8133_v35  ;;  %v8145_v35 = vld [vmem:[#allocation10 + $0x90] ss:$8 sps:$4 sm:$0xff]  }
 0xaa8   : > { %4354 = vmatprep.subr.bf16.mxu1 %v8134_v55  ;;  %7872 = vrcp.f32 %v3761_v47  ;;  %v8144_v47 = vld [vmem:[#allocation10 + $0x94] ss:$8 sps:$4 sm:$0xff]   ;;  %v8146_v55 = vld [vmem:[#allocation10 + $0x84] ss:$8 sps:$4 sm:$0xff]  }
 0xaa9   : > { %v7867_v5 = vpop.eup %7866 }
 0xaaa   : > { %v3791_v24 = vmul.f32 %v7867_v5, %v10679_v6  ;;  %v8147_v5 = vld [vmem:[#allocation10 + $0x80] ss:$8 sps:$4 sm:$0xff]  }
 0xaab   : > { %v3763_v48 = vpop.xlane.xlu1 %3762  ;;  %4355 = vmatpush2.bf16.msra.mxu1 %v8135_v44  ;;  %v10723_v44 = vstv %s7136_s24 }
 0xaac   : > { %7874 = vrcp.f32 %v3763_v48  ;;  %v3801_v34 = vpack.c.bf16 %v3791_v24, %v3790_v13  ;;  %4356 = vmatprep.subr.bf16.mxu1 %v8136_v50  ;;  %v8148_v13 = vld [vmem:[%s12544_s11 + $0x78] sm:$0xff]   ;;  %v3933_v24 = vmul.f32 1.55, %v10412_v52  ;;  %v13097_v52 = vld [vmem:[#allocation56_spill] sm:$0xff] }
 0xaad   : > { %v7869_v40 = vpop.eup %7868 }
 0xaae   : > { %3903 = vmatmul.mubr.bf16.gmra.mxu1 %v3801_v34  ;;  %v3792_v14 = vmul.f32 %v7869_v40, %v10682_v31  ;;  %v3934_v40 = vmul.f32 1.55, %v10415_v1 }
 0xaaf   : > { %3912 = vmatprep.mubr.bf16.mxu1 %v13078_v16  ;;  %4357 = vmatpush2.bf16.msra.mxu1 %v8137_v29 }
 0xab0   : > { %4358 = vmatprep.subr.bf16.mxu1 %v8138_v59  ;;  %v13096_v59 = vld [vmem:[#allocation25_spill] sm:$0xff] }
 0xab1   : > { %v7871_v60 = vpop.eup %7870 }
 0xab2   : > { %v3793_v6 = vmul.f32 %v7871_v60, %v10685_v53 }
 0xab3   : > { %4359 = vmatpush2.bf16.msra.mxu1 %v8139_v15 }
 0xab4   : > { %v3802_v42 = vpack.c.bf16 %v3793_v6, %v3792_v14  ;;  %4360 = vmatprep.subr.bf16.mxu1 %v8140_v58 }
 0xab5   : > { %v7873_v12 = vpop.eup %7872 }
 0xab6   : > { %3913 = vmatmul.mubr.bf16.gmra.mxu1 %v3802_v42  ;;  %v3794_v43 = vmul.f32 %v7873_v12, %v10688_v25  ;;  %v3935_v42 = vmul.f32 1.55, %v10418_v26 }
 0xab7   : > { %3922 = vmatprep.mubr.bf16.mxu1 %v13078_v16  ;;  %4361 = vmatpush2.bf16.msra.mxu1 %v8141_v18 }
 0xab8   : > { %4362 = vmatprep.subr.bf16.mxu1 %v8142_v7  ;;  %v3936_v7 = vmul.f32 1.55, %v10421_v21  ;;  %v13101_v21 = vld [vmem:[#allocation55_spill] sm:$0xff] }
 0xab9   : > { %v7875_v20 = vpop.eup %7874 }
 0xaba   : > { %v3795_v31 = vmul.f32 %v7875_v20, %v10691_v56  ;;  %v10720_v56 = vstv %s7041_s16 }
 0xabb   : > { %4363 = vmatpush2.bf16.msra.mxu1 %v8143_v23  ;;  %v1089_v60 = vmul.f32 %v10720_v56, %v13096_v59  ;;  %v1090_v12 = vmul.f32 %v10720_v56, %v13097_v52  ;;  %v13099_v23 = vld [vmem:[#allocation24_spill] sm:$0xff] }
 0xabc   : > { %v3803_v53 = vpack.c.bf16 %v3795_v31, %v3794_v43  ;;  %4364 = vmatprep.subr.bf16.mxu1 %v8144_v47 }
 0xabe   : > { %3923 = vmatmul.mubr.bf16.gmra.mxu1 %v3803_v53  ;;  %v1091_v53 = vmul.f32 %v10720_v56, %v13099_v23 }
 0xabf   : > { %4365 = vmatpush2.bf16.msra.mxu1 %v8145_v35 }
 0xac0   : > { %4366 = vmatprep.subr.bf16.mxu1 %v8146_v55 }
 0xac3   : > { %4367 = vmatpush2.bf16.msra.mxu1 %v8147_v5 }
 0xac4   : > { %7231 = vmatprep.subr.bf16.mxu1 %v8148_v13  ;;  %v1092_v13 = vmul.f32 %v10720_v56, %v13101_v21 }
 0xb46   : > { %v3854_v25 = vpop.f32.mrf.mxu1 }
 0xb47   : > { %v3965_v48 = vmul.f32 0.55, %v3854_v25  ;;  %v3937_v25 = vmul.f32 1.55, %v10388_v51  ;;  %v13104_v51 = vld [vmem:[#allocation27_spill] sm:$0xff] }
 0xb48   : > { %v3856_v34 = vpop.f32.mrf.mxu1  ;;  %v1093_v52 = vmul.f32 %v10720_v56, %v13104_v51 }
 0xb49   : > { %v3997_v50 = vsub.f32 %v3933_v24, %v3965_v48  ;;  %v3966_v29 = vmul.f32 0.55, %v3856_v34 }
 0xb4a   : > { %v3858_v14 = vpop.f32.mrf.mxu1 }
 0xb4b   : > { %v4031_v6 = vmul.f32 %v10723_v44, %v3997_v50  ;;  %v10729_v15 = vsub.f32 %v3934_v40, %v3966_v29  ;;  %v3967_v58 = vmul.f32 0.55, %v3858_v14  ;;  %v3938_v29 = vmul.f32 1.55, %v10391_v32 }
 0xb4c   : > { %v3860_v18 = vpop.f32.mrf.mxu1 }
 0xb4d   : > { %v10735_v20 = vadd.f32 %v4031_v6, %v1089_v60  ;;  %v4032_v1 = vmul.f32 %v10723_v44, %v10729_v15  ;;  %v3999_v43 = vsub.f32 %v3935_v42, %v3967_v58  ;;  %v3968_v31 = vmul.f32 0.55, %v3860_v18 }
 0xb4e   : > { %v3864_v47 = vpop.f32.mrf.mxu1  ;;  %v3939_v42 = vmul.f32 1.55, %v10394_v4 }
 0xb4f   : > { %13098 = vst [vmem:[#allocation156_spill] sm:$0xff] %v10735_v20  ;;  %v10741_v35 = vadd.f32 %v4032_v1, %v1090_v12  ;;  %v4033_v26 = vmul.f32 %v10723_v44, %v3999_v43  ;;  %v10744_v55 = vpack.c.bf16 %v3999_v43, %v3997_v50  ;;  %v10746_v5 = vsub.f32 %v3936_v7, %v3968_v31  ;;  %v13105_v12 = vld [vmem:[#allocation54_spill] sm:$0xff] }
 0xb50   : > { %v3969_v24 = vmul.f32 0.55, %v3864_v47  ;;  %v3866_v48 = vpop.f32.mrf.mxu1  ;;  %v1094_v18 = vmul.f32 %v10720_v56, %v13105_v12  ;;  %v3940_v31 = vmul.f32 1.55, %v10397_v8  ;;  %v3941_v8 = vmul.f32 1.55, %v10218_v0 }
 0xb51   : > { %13100 = vst [vmem:[#allocation158_spill] sm:$0xff] %v10741_v35  ;;  %v10751_v34 = vadd.f32 %v4033_v26, %v1091_v53  ;;  %v4034_v40 = vmul.f32 %v10723_v44, %v10746_v5  ;;  %v3970_v59 = vmul.f32 0.55, %v3866_v48  ;;  %v13106_v53 = vld [vmem:[#allocation26_spill] sm:$0xff]  ;;  %v1096_v48 = vmul.f32 %v10720_v56, %v13068_v57 }
 0xb52   : > { %v4001_v60 = vsub.f32 %v3937_v25, %v3969_v24  ;;  %v3868_v50 = vpop.f32.mrf.mxu1  ;;  %v1095_v4 = vmul.f32 %v10720_v56, %v13106_v53  ;;  %v3943_v57 = vmul.f32 1.55, %v10249_v30  ;;  %v3944_v53 = vmul.f32 1.55, %v10252_v37  ;;  %v13204_v35 = vld [vmem:[#allocation86_spill] sm:$0xff] }
 0xb53   : > { %13102 = vst [vmem:[#allocation160_spill] sm:$0xff] %v10751_v34  ;;  %v10756_v14 = vadd.f32 %v4034_v40, %v1092_v13  ;;  %v10758_v6 = vsub.f32 %v3938_v29, %v3970_v59  ;;  %v3971_v58 = vmul.f32 0.55, %v3868_v50 }
 0xb54   : > { %v4035_v7 = vmul.f32 %v10723_v44, %v4001_v60  ;;  %v3870_v1 = vpop.f32.mrf.mxu1 }
 0xb55   : > { %13103 = vst [vmem:[#allocation161_spill] sm:$0xff] %v10756_v14  ;;  %v4036_v32 = vmul.f32 %v10723_v44, %v10758_v6  ;;  %v4003_v43 = vsub.f32 %v3939_v42, %v3971_v58  ;;  %v3972_v23 = vmul.f32 0.55, %v3870_v1  ;;  %v3942_v42 = vmul.f32 1.55, %v10223_v63  ;;  %v13112_v1 = vld [vmem:[#allocation50_spill] sm:$0xff] }
 0xb56   : > { %v10771_v47 = vadd.f32 %v4035_v7, %v1093_v52  ;;  %v3874_v26 = vpop.f32.mrf.mxu1 }
 0xb57   : > { %v10773_v21 = vadd.f32 %v4036_v32, %v1094_v18  ;;  %v4037_v13 = vmul.f32 %v10723_v44, %v4003_v43  ;;  %v10776_v25 = vpack.c.bf16 %v4003_v43, %v4001_v60  ;;  %v10778_v24 = vsub.f32 %v3940_v31, %v3972_v23  ;;  %v13111_v18 = vld [vmem:[#allocation53_spill] sm:$0xff] }
 0xb58   : > { %13107 = vst [vmem:[#allocation113_spill] sm:$0xff] %v10771_v47  ;;  %v3973_v40 = vmul.f32 0.55, %v3874_v26  ;;  %v3876_v29 = vpop.f32.mrf.mxu1  ;;  %v1097_v7 = vmul.f32 %v10720_v56, %v13111_v18  ;;  %v1098_v32 = vmul.f32 %v10720_v56, %v13112_v1  ;;  %v3946_v18 = vmul.f32 1.55, %v10199_v45 }
 0xb59   : > { %13108 = vst [vmem:[#allocation114_spill] sm:$0xff] %v10773_v21  ;;  %v10783_v59 = vadd.f32 %v4037_v13, %v1095_v4  ;;  %v4038_v50 = vmul.f32 %v10723_v44, %v10778_v24  ;;  %v3974_v58 = vmul.f32 0.55, %v3876_v29  ;;  %v13114_v13 = vld [vmem:[#allocation51_spill] sm:$0xff] }
 0xb5a   : > { %v10788_v51 = vsub.f32 %v3941_v8, %v3973_v40  ;;  %v3878_v60 = vpop.f32.mrf.mxu1 }
 0xb5b   : > { %13109 = vst [vmem:[#allocation115_spill] sm:$0xff] %v10783_v59  ;;  %v10790_v52 = vadd.f32 %v4038_v50, %v1096_v48  ;;  %v10792_v12 = vsub.f32 %v3942_v42, %v3974_v58  ;;  %v3975_v0 = vmul.f32 0.55, %v3878_v60  ;;  %v1099_v48 = vmul.f32 %v10720_v56, %v13114_v13  ;;  %v13116_v50 = vld [vmem:[#allocation48_spill] sm:$0xff] }
 0xb5c   : > { %v4039_v63 = vmul.f32 %v10723_v44, %v10788_v51  ;;  %v3880_v43 = vpop.f32.mrf.mxu1  ;;  %v1100_v42 = vmul.f32 %v10720_v56, %v13116_v50  ;;  %v3945_v58 = vmul.f32 1.55, %v10191_v61 }
 0xb5d   : > { %13110 = vst [vmem:[#allocation116_spill] sm:$0xff] %v10790_v52  ;;  %v4040_v31 = vmul.f32 %v10723_v44, %v10792_v12  ;;  %v10803_v23 = vsub.f32 %v3943_v57, %v3975_v0  ;;  %v3976_v4 = vmul.f32 0.55, %v3880_v43 }
 0xb5e   : > { %v10806_v30 = vadd.f32 %v4039_v63, %v1097_v7  ;;  %v3884_v26 = vpop.f32.mrf.mxu1 }
 0xb5f   : > { %v10810_v8 = vadd.f32 %v4040_v31, %v1098_v32  ;;  %v4041_v40 = vmul.f32 %v10723_v44, %v10803_v23  ;;  %v10814_v29 = vsub.f32 %v3944_v53, %v3976_v4  ;;  %v3977_v37 = vmul.f32 0.55, %v3884_v26  ;;  %v13119_v53 = vld [vmem:[#allocation49_spill] sm:$0xff]  ;;  %v13120_v26 = vld [vmem:[#allocation46_spill] sm:$0xff] }
 0xb60   : > { %13113 = vst [vmem:[#allocation52_spill] sm:$0xff] %v10806_v30  ;;  %v3886_v60 = vpop.f32.mrf.mxu1  ;;  %v3947_v31 = vmul.f32 1.55, %v10205_v17  ;;  %v1101_v4 = vmul.f32 %v10720_v56, %v13119_v53  ;;  %v1102_v13 = vmul.f32 %v10720_v56, %v13120_v26  ;;  %v13124_v53 = vld [vmem:[#allocation44_spill] sm:$0xff] }
 0xb61   : > { %13115 = vst [vmem:[#allocation25_spill] sm:$0xff] %v10810_v8  ;;  %v10819_v57 = vadd.f32 %v4041_v40, %v1099_v48  ;;  %v4042_v0 = vmul.f32 %v10723_v44, %v10814_v29  ;;  %v3978_v7 = vmul.f32 0.55, %v3886_v60  ;;  %v10824_v1 = vsub.f32 %v3945_v58, %v3977_v37  ;;  %v13122_v60 = vld [vmem:[#allocation47_spill] sm:$0xff] }
 0xb62   : > { %v3888_v32 = vpop.f32.mrf.mxu1  ;;  %v3961_v8 = vmul.f32 1.55, %v10278_v3 }
 0xb63   : > { %13117 = vst [vmem:[#allocation56_spill] sm:$0xff] %v10819_v57  ;;  %v10826_v63 = vadd.f32 %v4042_v0, %v1100_v42  ;;  %v10828_v43 = vsub.f32 %v3946_v18, %v3978_v7  ;;  %v3979_v61 = vmul.f32 0.55, %v3888_v32  ;;  %v4043_v45 = vmul.f32 %v10723_v44, %v10824_v1 }
 0xb64   : > { %v3890_v48 = vpop.f32.mrf.mxu1  ;;  %v3948_v42 = vmul.f32 1.55, %v10208_v49  ;;  %v1103_v0 = vmul.f32 %v10720_v56, %v13122_v60 }
 0xb65   : > { %13118 = vst [vmem:[#allocation24_spill] sm:$0xff] %v10826_v63  ;;  %v4044_v40 = vmul.f32 %v10723_v44, %v10828_v43  ;;  %v10839_v50 = vsub.f32 %v3947_v31, %v3979_v61  ;;  %v3980_v58 = vmul.f32 0.55, %v3890_v48  ;;  %v10842_v17 = vadd.f32 %v4043_v45, %v1101_v4 }
 0xb66   : > { %v3894_v37 = vpop.f32.mrf.mxu1  ;;  %v1104_v31 = vmul.f32 %v10720_v56, %v13124_v53  ;;  %v3949_v61 = vmul.f32 1.55, %v10202_v46  ;;  %v3951_v53 = vmul.f32 1.55, %v10215_v10 }
 0xb67   : > { %13121 = vst [vmem:[#allocation55_spill] sm:$0xff] %v10842_v17  ;;  %v10846_v18 = vadd.f32 %v4044_v40, %v1102_v13  ;;  %v4045_v7 = vmul.f32 %v10723_v44, %v10839_v50  ;;  %v10850_v32 = vsub.f32 %v3948_v42, %v3980_v58  ;;  %v3981_v49 = vmul.f32 0.55, %v3894_v37  ;;  %v13127_v37 = vld [vmem:[#allocation45_spill] sm:$0xff]  ;;  %v13132_v17 = vld [vmem:[#allocation40_spill] sm:$0xff] }
 0xb68   : > { %v3896_v26 = vpop.f32.mrf.mxu1  ;;  %v3950_v13 = vmul.f32 1.55, %v10211_v38 }
 0xb69   : > { %13123 = vst [vmem:[#allocation27_spill] sm:$0xff] %v10846_v18  ;;  %v10855_v4 = vadd.f32 %v4045_v7, %v1103_v0  ;;  %v4046_v45 = vmul.f32 %v10723_v44, %v10850_v32  ;;  %v3982_v48 = vmul.f32 0.55, %v3896_v26  ;;  %v10860_v40 = vsub.f32 %v3949_v61, %v3981_v49  ;;  %v13128_v7 = vld [vmem:[#allocation42_spill] sm:$0xff] }
 0xb6a   : > { %v3898_v60 = vpop.f32.mrf.mxu1  ;;  %v1105_v0 = vmul.f32 %v10720_v56, %v13127_v37  ;;  %v1106_v18 = vmul.f32 %v10720_v56, %v13128_v7  ;;  %v3952_v49 = vmul.f32 1.55, %v10242_v36 }
 0xb6b   : > { %13125 = vst [vmem:[#allocation54_spill] sm:$0xff] %v10855_v4  ;;  %v10862_v42 = vadd.f32 %v4046_v45, %v1104_v31  ;;  %v10864_v58 = vsub.f32 %v3950_v13, %v3982_v48  ;;  %v3983_v46 = vmul.f32 0.55, %v3898_v60  ;;  %v4047_v38 = vmul.f32 %v10723_v44, %v10860_v40  ;;  %v13130_v48 = vld [vmem:[#allocation43_spill] sm:$0xff]  ;;  %v13143_v4 = vld [vmem:[#allocation37_spill] sm:$0xff] }
 0xb6c   : > { %v3900_v26 = vpop.f32.mrf.mxu1  ;;  %v1107_v60 = vmul.f32 %v10720_v56, %v13130_v48 }
 0xb6d   : > { %13126 = vst [vmem:[#allocation26_spill] sm:$0xff] %v10862_v42  ;;  %v4048_v61 = vmul.f32 %v10723_v44, %v10864_v58  ;;  %v10875_v31 = vsub.f32 %v3951_v53, %v3983_v46  ;;  %v3984_v45 = vmul.f32 0.55, %v3900_v26  ;;  %v10878_v10 = vadd.f32 %v4047_v38, %v1105_v0 }
 0xb6e   : > { %v3904_v13 = vpop.f32.mrf.mxu1  ;;  %v1108_v53 = vmul.f32 %v10720_v56, %v13132_v17  ;;  %v3953_v46 = vmul.f32 1.55, %v10245_v28  ;;  %v3955_v17 = vmul.f32 1.55, %v10281_v62 }
 0xb6f   : > { %13129 = vst [vmem:[#allocation53_spill] sm:$0xff] %v10878_v10  ;;  %v10882_v37 = vadd.f32 %v4048_v61, %v1106_v18  ;;  %v4049_v7 = vmul.f32 %v10723_v44, %v10875_v31  ;;  %v10886_v42 = vsub.f32 %v3952_v49, %v3984_v45  ;;  %v3985_v36 = vmul.f32 0.55, %v3904_v13  ;;  %v13135_v13 = vld [vmem:[#allocation41_spill] sm:$0xff] }
 0xb70   : > { %v3906_v26 = vpop.f32.mrf.mxu1  ;;  %v3954_v18 = vmul.f32 1.55, %v10271_v22 }
 0xb71   : > { %13131 = vst [vmem:[#allocation50_spill] sm:$0xff] %v10882_v37  ;;  %v10891_v0 = vadd.f32 %v4049_v7, %v1107_v60  ;;  %v4050_v38 = vmul.f32 %v10723_v44, %v10886_v42  ;;  %v3986_v61 = vmul.f32 0.55, %v3906_v26  ;;  %v10896_v48 = vsub.f32 %v3953_v46, %v3985_v36  ;;  %v13136_v7 = vld [vmem:[#allocation38_spill] sm:$0xff] }
 0xb72   : > { %v3908_v37 = vpop.f32.mrf.mxu1  ;;  %v1109_v60 = vmul.f32 %v10720_v56, %v13135_v13  ;;  %v1110_v10 = vmul.f32 %v10720_v56, %v13136_v7  ;;  %v3956_v36 = vmul.f32 1.55, %v10297_v19 }
 0xb73   : > { %13133 = vst [vmem:[#allocation51_spill] sm:$0xff] %v10891_v0  ;;  %v10898_v49 = vadd.f32 %v4050_v38, %v1108_v53  ;;  %v10900_v45 = vsub.f32 %v3954_v18, %v3986_v61  ;;  %v3987_v28 = vmul.f32 0.55, %v3908_v37  ;;  %v4051_v22 = vmul.f32 %v10723_v44, %v10896_v48  ;;  %v13138_v18 = vld [vmem:[#allocation39_spill] sm:$0xff]  ;;  %v13140_v0 = vld [vmem:[#allocation36_spill] sm:$0xff] }
 0xb74   : > { %v3910_v26 = vpop.f32.mrf.mxu1  ;;  %v1111_v61 = vmul.f32 %v10720_v56, %v13138_v18 }
 0xb75   : > { %13134 = vst [vmem:[#allocation48_spill] sm:$0xff] %v10898_v49  ;;  %v4052_v46 = vmul.f32 %v10723_v44, %v10900_v45  ;;  %v10911_v53 = vsub.f32 %v3955_v17, %v3987_v28  ;;  %v3988_v38 = vmul.f32 0.55, %v3910_v26  ;;  %v10914_v62 = vadd.f32 %v4051_v22, %v1109_v60 }
 0xb76   : > { %v3914_v37 = vpop.f32.mrf.mxu1  ;;  %v1112_v17 = vmul.f32 %v10720_v56, %v13140_v0  ;;  %v3957_v28 = vmul.f32 1.55, %v10307_v39  ;;  %v1113_v39 = vmul.f32 %v10720_v56, %v13143_v4 }
 0xb77   : > { %13137 = vst [vmem:[#allocation49_spill] sm:$0xff] %v10914_v62  ;;  %v10918_v13 = vadd.f32 %v4052_v46, %v1110_v10  ;;  %v4053_v7 = vmul.f32 %v10723_v44, %v10911_v53  ;;  %v10922_v49 = vsub.f32 %v3956_v36, %v3988_v38  ;;  %v3989_v19 = vmul.f32 0.55, %v3914_v37  ;;  %v13144_v37 = vld [vmem:[#allocation34_spill] sm:$0xff] }
 0xb78   : > { %v3916_v26 = vpop.f32.mrf.mxu1  ;;  %v3958_v10 = vmul.f32 1.55, %v10288_v54  ;;  %v3959_v38 = vmul.f32 1.55, %v10315_v27  ;;  %v13146_v27 = vld [vmem:[#allocation35_spill] sm:$0xff] }
 0xb79   : > { %13139 = vst [vmem:[#allocation46_spill] sm:$0xff] %v10918_v13  ;;  %v10927_v60 = vadd.f32 %v4053_v7, %v1111_v61  ;;  %v4054_v22 = vmul.f32 %v10723_v44, %v10922_v49  ;;  %v3990_v46 = vmul.f32 0.55, %v3916_v26  ;;  %v4021_v18 = vsub.f32 %v3957_v28, %v3989_v19 }
 0xb7a   : > { %v3918_v13 = vpop.f32.mrf.mxu1  ;;  %v1114_v61 = vmul.f32 %v10720_v56, %v13144_v37  ;;  %v3960_v28 = vmul.f32 1.55, %v10301_v11  ;;  %v13148_v37 = vld [vmem:[#allocation30_spill] sm:$0xff] }
 0xb7b   : > { %13141 = vst [vmem:[#allocation47_spill] sm:$0xff] %v10927_v60  ;;  %v10932_v62 = vadd.f32 %v4054_v22, %v1112_v17  ;;  %v4022_v36 = vsub.f32 %v3958_v10, %v3990_v46  ;;  %v3991_v0 = vmul.f32 0.55, %v3918_v13  ;;  %v4055_v7 = vmul.f32 %v10723_v44, %v4021_v18 }
 0xb7c   : > { %v3920_v60 = vpop.f32.mrf.mxu1  ;;  %v1115_v13 = vmul.f32 %v10720_v56, %v13146_v27 }
 0xb7d   : > { %13142 = vst [vmem:[#allocation44_spill] sm:$0xff] %v10932_v62  ;;  %v4056_v54 = vmul.f32 %v10723_v44, %v4022_v36  ;;  %v4023_v26 = vsub.f32 %v3959_v38, %v3991_v0  ;;  %v3992_v17 = vmul.f32 0.55, %v3920_v60  ;;  %v10942_v19 = vadd.f32 %v4055_v7, %v1113_v39 }
 0xb7e   : > { %v3924_v22 = vpop.f32.mrf.mxu1  ;;  %v1116_v62 = vmul.f32 %v10720_v56, %v13148_v37  ;;  %v3962_v39 = vmul.f32 1.55, %v10291_v41  ;;  %v13151_v37 = vld [vmem:[#allocation33_spill] sm:$0xff] }
 0xb7f   : > { %13145 = vst [vmem:[#allocation45_spill] sm:$0xff] %v10942_v19  ;;  %v10946_v10 = vadd.f32 %v4056_v54, %v1114_v61  ;;  %v4057_v4 = vmul.f32 %v10723_v44, %v4023_v26  ;;  %v4024_v46 = vsub.f32 %v3960_v28, %v3992_v17  ;;  %v3993_v38 = vmul.f32 0.55, %v3924_v22  ;;  %v13152_v22 = vld [vmem:[#allocation31_spill] sm:$0xff] }
 0xb80   : > { %v3926_v0 = vpop.f32.mrf.mxu1  ;;  %v3963_v28 = vmul.f32 1.55, %v10294_v33  ;;  %v1117_v3 = vmul.f32 %v10720_v56, %v13151_v37  ;;  %v13156_v37 = vld [vmem:[#allocation32_spill] sm:$0xff] }
 0xb81   : > { %13147 = vst [vmem:[#allocation42_spill] sm:$0xff] %v10946_v10  ;;  %v10952_v11 = vadd.f32 %v4057_v4, %v1115_v13  ;;  %v4058_v60 = vmul.f32 %v10723_v44, %v4024_v46  ;;  %v3994_v7 = vmul.f32 0.55, %v3926_v0  ;;  %v4025_v27 = vsub.f32 %v3961_v8, %v3993_v38 }
 0xb82   : > { %v3928_v61 = vpop.f32.mrf.mxu1  ;;  %v1118_v13 = vmul.f32 %v10720_v56, %v13152_v22  ;;  %v3964_v8 = vmul.f32 1.55, %v10304_v9  ;;  %v1120_v22 = vmul.f32 %v10720_v56, %v13156_v37  ;;  %v8176_v37 = vld [vmem:[#allocation8 + $0xd0] ss:$8 sps:$4 sm:$0xff]  }
 0xb83   : > { %13149 = vst [vmem:[#allocation43_spill] sm:$0xff] %v10952_v11  ;;  %v10956_v54 = vadd.f32 %v4058_v60, %v1116_v62  ;;  %v4026_v10 = vsub.f32 %v3962_v39, %v3994_v7  ;;  %v3995_v17 = vmul.f32 0.55, %v3928_v61  ;;  %v4059_v4 = vmul.f32 %v10723_v44, %v4025_v27  ;;  %v13154_v60 = vld [vmem:[#allocation29_spill] sm:$0xff] }
 0xb84   : > { %v3930_v19 = vpop.f32.mrf.mxu1  ;;  %v1119_v33 = vmul.f32 %v10720_v56, %v13154_v60  ;;  %v10993_v56 = vpack.c.bf16 %v10922_v49, %v10900_v45  ;;  %v11009_v49 = vpack.c.bf16 %v10875_v31, %v10860_v40  ;;  %v11013_v45 = vpack.c.bf16 %v10850_v32, %v10828_v43  ;;  %v8158_v40 = vld [vmem:[#allocation8 + $0x40] ss:$8 sps:$4 sm:$0xff]   ;;  %v8159_v31 = vld [vmem:[#allocation8 + $0x34] ss:$8 sps:$4 sm:$0xff]   ;;  %v8172_v60 = vld [vmem:[#allocation8 + $0xe4] ss:$8 sps:$4 sm:$0xff]  }
 0xb85   : > { %13150 = vst [vmem:[#allocation40_spill] sm:$0xff] %v10956_v54  ;;  %v4060_v41 = vmul.f32 %v10723_v44, %v4026_v10  ;;  %v4027_v0 = vsub.f32 %v3963_v28, %v3995_v17  ;;  %v3996_v62 = vmul.f32 0.55, %v3930_v19  ;;  %v10966_v38 = vadd.f32 %v4059_v4, %v1117_v3  ;;  %v8167_v4 = vld [vmem:[#allocation8 + $0x4] ss:$8 sps:$4 sm:$0xff]  }
 0xb86   : > { %v10985_v3 = vpack.c.bf16 %v4024_v46, %v4022_v36  ;;  %v11003_v36 = vpack.c.bf16 %v10886_v42, %v10864_v58  ;;  %v11019_v42 = vpack.c.bf16 %v10839_v50, %v10824_v1  ;;  %v11023_v58 = vpack.c.bf16 %v10814_v29, %v10792_v12  ;;  %v8155_v29 = vld [vmem:[%s8792_s19 + $0x8] sm:$0xff]   ;;  %v8156_v1 = vld [vmem:[#allocation8 + $0x50] ss:$8 sps:$4 sm:$0xff]  }
 0xb87   : > { %13153 = vst [vmem:[#allocation41_spill] sm:$0xff] %v10966_v38  ;;  %v10970_v39 = vadd.f32 %v4060_v41, %v1118_v13  ;;  %v4061_v7 = vmul.f32 %v10723_v44, %v4027_v0  ;;  %v4028_v61 = vsub.f32 %v3964_v8, %v3996_v62  ;;  %v10980_v9 = vpack.c.bf16 %v4027_v0, %v4025_v27  ;;  %v8157_v50 = vld [vmem:[#allocation8 + $0x44] ss:$8 sps:$4 sm:$0xff]   ;;  %v8165_v46 = vld [vmem:[%s8792_s19 + $0x18] sm:$0xff]   ;;  %v8168_v41 = vld [vmem:[#allocation8] ss:$8 sps:$4 sm:$0xff]  }
 0xb88   : > { %v10989_v13 = vpack.c.bf16 %v4023_v26, %v4021_v18  ;;  %v11029_v43 = vpack.c.bf16 %v10803_v23, %v10788_v51  ;;  %v11033_v32 = vpack.c.bf16 %v10778_v24, %v10758_v6  ;;  %v11039_v12 = vpack.c.bf16 %v10746_v5, %v10729_v15  ;;  %v8149_v51 = vld [vmem:[#allocation8 + $0x74] ss:$8 sps:$4 sm:$0xff]   ;;  %v8150_v23 = vld [vmem:[%s8792_s19] sm:$0xff]   ;;  %v8151_v6 = vld [vmem:[#allocation8 + $0x70] ss:$8 sps:$4 sm:$0xff]  }
 0xb89   : > { %13155 = vst [vmem:[#allocation38_spill] sm:$0xff] %v10970_v39  ;;  %v10975_v54 = vadd.f32 %v4061_v7, %v1119_v33  ;;  %v4062_v28 = vmul.f32 %v10723_v44, %v4028_v61  ;;  %v10978_v17 = vpack.c.bf16 %v4028_v61, %v4026_v10  ;;  %v10999_v44 = vpack.c.bf16 %v10911_v53, %v10896_v48  ;;  %v8152_v24 = vld [vmem:[#allocation8 + $0x64] ss:$8 sps:$4 sm:$0xff]   ;;  %v8153_v15 = vld [vmem:[#allocation8 + $0x60] ss:$8 sps:$4 sm:$0xff]   ;;  %v8160_v48 = vld [vmem:[%s8792_s19 + $0x10] sm:$0xff]  }
 0xb8a   : > { %v8154_v5 = vld [vmem:[#allocation8 + $0x54] ss:$8 sps:$4 sm:$0xff]   ;;  %v8161_v53 = vld [vmem:[#allocation8 + $0x30] ss:$8 sps:$4 sm:$0xff]   ;;  %v8162_v18 = vld [vmem:[#allocation8 + $0x24] ss:$8 sps:$4 sm:$0xff]  }
 0xb8b   : > { %13157 = vst [vmem:[#allocation39_spill] sm:$0xff] %v10975_v54  ;;  %v10982_v19 = vadd.f32 %v4062_v28, %v1120_v22  ;;  %4207 = vmatprep.subr.bf16.mxu0 %v10978_v17  ;;  %v8163_v26 = vld [vmem:[#allocation8 + $0x20] ss:$8 sps:$4 sm:$0xff]   ;;  %v8164_v10 = vld [vmem:[#allocation8 + $0x14] ss:$8 sps:$4 sm:$0xff]  }
 0xb8c   : > { %4208 = vmatpush1.bf16.msra.mxu0 %v10980_v9  ;;  %v8166_v27 = vld [vmem:[#allocation8 + $0x10] ss:$8 sps:$4 sm:$0xff]   ;;  %v8169_v0 = vld [vmem:[#allocation8 + $0xf4] ss:$8 sps:$4 sm:$0xff]   ;;  %v8170_v8 = vld [vmem:[%s8792_s19 + $0x20] sm:$0xff]  }
 0xb8d   : > { %13158 = vst [vmem:[#allocation36_spill] sm:$0xff] %v10982_v19  ;;  %4209 = vmatprep.subr.bf16.mxu0 %v10985_v3  ;;  %v8171_v62 = vld [vmem:[#allocation8 + $0xf0] ss:$8 sps:$4 sm:$0xff]   ;;  %v8173_v33 = vld [vmem:[#allocation8 + $0xe0] ss:$8 sps:$4 sm:$0xff]  }
 0xb8e   : > { %v8174_v7 = vld [vmem:[#allocation8 + $0xd4] ss:$8 sps:$4 sm:$0xff]   ;;  %v8175_v61 = vld [vmem:[%s8792_s19 + $0x28] sm:$0xff]  }
 0xb8f   : > { %v8177_v22 = vld [vmem:[#allocation8 + $0xc4] ss:$8 sps:$4 sm:$0xff]   ;;  %v8178_v28 = vld [vmem:[#allocation8 + $0xc0] ss:$8 sps:$4 sm:$0xff]  }
 0xb90   : > { %4210 = vmatpush1.bf16.msra.mxu0 %v10989_v13 }
 0xb91   : > { %4211 = vmatprep.subr.bf16.mxu0 %v10993_v56 }
 0xb94   : > { %4212 = vmatpush1.bf16.msra.mxu0 %v10999_v44 }
 0xb95   : > { %4213 = vmatprep.subr.bf16.mxu0 %v11003_v36 }
 0xb98   : > { %4214 = vmatpush1.bf16.msra.mxu0 %v11009_v49 }
 0xb99   : > { %4215 = vmatprep.subr.bf16.mxu0 %v11013_v45 }
 0xb9c   : > { %4216 = vmatpush1.bf16.msra.mxu0 %v11019_v42 }
 0xb9d   : > { %4217 = vmatprep.subr.bf16.mxu0 %v11023_v58 }
 0xba0   : > { %4218 = vmatpush1.bf16.msra.mxu0 %v11029_v43 }
 0xba1   : > { %4219 = vmatprep.subr.bf16.mxu0 %v11033_v32 }
 0xba4   : > { %4220 = vmatpush1.bf16.msra.mxu0 %v10776_v25 }
 0xba5   : > { %4221 = vmatprep.subr.bf16.mxu0 %v11039_v12 }
 0xba8   : > { %4222 = vmatpush1.bf16.msra.mxu0 %v10744_v55 }
 0xba9   : > { %4449 = vmatprep.subr.bf16.mxu0 %v8149_v51  ;;  %v8179_v51 = vld [vmem:[#allocation8 + $0xb4] ss:$8 sps:$4 sm:$0xff]  }
 0xbab   : > { %4240 = vmatmul.mubr.bf16.vlgmr.msra.gmra.mxu0 %v8150_v23  ;;  %v8180_v23 = vld [vmem:[%s8792_s19 + $0x30] sm:$0xff]  }
 0xbac   : > { %4450 = vmatpush1.bf16.msra.mxu0 %v8151_v6  ;;  %4249 = vmatprep.mubr.bf16.mxu0 %v13078_v16  ;;  %v8181_v6 = vld [vmem:[#allocation8 + $0xb0] ss:$8 sps:$4 sm:$0xff]  }
 0xbad   : > { %4451 = vmatprep.subr.bf16.mxu0 %v8152_v24  ;;  %v8182_v24 = vld [vmem:[#allocation8 + $0xa4] ss:$8 sps:$4 sm:$0xff]  }
 0xbb0   : > { %4452 = vmatpush1.bf16.msra.mxu0 %v8153_v15  ;;  %v8183_v15 = vld [vmem:[#allocation8 + $0xa0] ss:$8 sps:$4 sm:$0xff]  }
 0xbb1   : > { %4453 = vmatprep.subr.bf16.mxu0 %v8154_v5  ;;  %v8184_v5 = vld [vmem:[#allocation8 + $0x94] ss:$8 sps:$4 sm:$0xff]  }
 0xbb3   : > { %4250 = vmatmul.mubr.bf16.gmra.mxu0 %v8155_v29  ;;  %v8185_v29 = vld [vmem:[%s8792_s19 + $0x38] sm:$0xff]  }
 0xbb4   : > { %4454 = vmatpush1.bf16.msra.mxu0 %v8156_v1  ;;  %4259 = vmatprep.mubr.bf16.mxu0 %v13078_v16  ;;  %v8186_v1 = vld [vmem:[#allocation8 + $0x90] ss:$8 sps:$4 sm:$0xff]  }
 0xbb5   : > { %4455 = vmatprep.subr.bf16.mxu0 %v8157_v50  ;;  %v8187_v50 = vld [vmem:[#allocation8 + $0x84] ss:$8 sps:$4 sm:$0xff]  }
 0xbb8   : > { %4456 = vmatpush1.bf16.msra.mxu0 %v8158_v40  ;;  %v8188_v40 = vld [vmem:[#allocation8 + $0x80] ss:$8 sps:$4 sm:$0xff]  }
 0xbb9   : > { %4457 = vmatprep.subr.bf16.mxu0 %v8159_v31  ;;  %v8192_v31 = vld [vmem:[%s12544_s11 + $0x68] sm:$0xff]  }
 0xbbb   : > { %4260 = vmatmul.mubr.bf16.gmra.mxu0 %v8160_v48 }
 0xbbc   : > { %4458 = vmatpush1.bf16.msra.mxu0 %v8161_v53  ;;  %4269 = vmatprep.mubr.bf16.mxu0 %v13078_v16  ;;  %v8193_v53 = vld [vmem:[%s12544_s11 + $0x28] sm:$0xff]  }
 0xbbd   : > { %4459 = vmatprep.subr.bf16.mxu0 %v8162_v18 }
 0xbc0   : > { %4460 = vmatpush1.bf16.msra.mxu0 %v8163_v26  ;;  %v8194_v26 = vld [vmem:[%s12544_s11 + $0x60] sm:$0xff]  }
 0xbc1   : > { %4461 = vmatprep.subr.bf16.mxu0 %v8164_v10 }
 0xbc3   : > { %4270 = vmatmul.mubr.bf16.gmra.mxu0 %v8165_v46 }
 0xbc4   : > { %4462 = vmatpush1.bf16.msra.mxu0 %v8166_v27  ;;  %4279 = vmatprep.mubr.bf16.mxu0 %v13078_v16  ;;  %v8195_v27 = vld [vmem:[%s12544_s11 + $0x20] sm:$0xff]  }
 0xbc5   : > { %4463 = vmatprep.subr.bf16.mxu0 %v8167_v4 }
 0xbc8   : > { %4464 = vmatpush1.bf16.msra.mxu0 %v8168_v41 }
 0xbc9   : > { %4465 = vmatprep.subr.bf16.mxu0 %v8169_v0  ;;  %v8196_v0 = vld [vmem:[%s12544_s11 + $0x58] sm:$0xff]  }
 0xbcb   : > { %4280 = vmatmul.mubr.bf16.gmra.mxu0 %v8170_v8 }
 0xbcc   : > { %4466 = vmatpush2.bf16.msra.mxu0 %v8171_v62  ;;  %4289 = vmatprep.mubr.bf16.mxu0 %v13078_v16  ;;  %v8197_v62 = vld [vmem:[%s12544_s11 + $0x18] sm:$0xff]  }
 0xbcd   : > { %4467 = vmatprep.subr.bf16.mxu0 %v8172_v60 }
 0xbd0   : > { %4468 = vmatpush2.bf16.msra.mxu0 %v8173_v33  ;;  %v8198_v33 = vld [vmem:[%s12544_s11 + $0x50] sm:$0xff]  }
 0xbd1   : > { %4469 = vmatprep.subr.bf16.mxu0 %v8174_v7 }
 0xbd3   : > { %4290 = vmatmul.mubr.bf16.gmra.mxu0 %v8175_v61 }
 0xbd4   : > { %4470 = vmatpush2.bf16.msra.mxu0 %v8176_v37  ;;  %4299 = vmatprep.mubr.bf16.mxu0 %v13078_v16  ;;  %v8199_v37 = vld [vmem:[%s12544_s11 + $0x10] sm:$0xff]  }
 0xbd5   : > { %4471 = vmatprep.subr.bf16.mxu0 %v8177_v22 }
 0xbd8   : > { %4472 = vmatpush2.bf16.msra.mxu0 %v8178_v28 }
 0xbd9   : > { %4473 = vmatprep.subr.bf16.mxu0 %v8179_v51  ;;  %v8200_v51 = vld [vmem:[%s12544_s11 + $0x48] sm:$0xff]  }
 0xbdb   : > { %4300 = vmatmul.mubr.bf16.gmra.mxu0 %v8180_v23 }
 0xbdc   : > { %4474 = vmatpush2.bf16.msra.mxu0 %v8181_v6  ;;  %4309 = vmatprep.mubr.bf16.mxu0 %v13078_v16  ;;  %v8201_v6 = vld [vmem:[%s12544_s11 + $0x8] sm:$0xff]  }
 0xbdd   : > { %4475 = vmatprep.subr.bf16.mxu0 %v8182_v24 }
 0xbe0   : > { %4476 = vmatpush2.bf16.msra.mxu0 %v8183_v15  ;;  %v8202_v15 = vld [vmem:[%s12544_s11 + $0x40] sm:$0xff]  }
 0xbe1   : > { %4477 = vmatprep.subr.bf16.mxu0 %v8184_v5 }
 0xbe3   : > { %4310 = vmatmul.mubr.bf16.gmra.mxu0 %v8185_v29 }
 0xbe4   : > { %4478 = vmatpush2.bf16.msra.mxu0 %v8186_v1  ;;  %4481 = vmatprep.mubr.bf16.mxu0 %v11039_v12  ;;  %v8203_v1 = vld [vmem:[%s12544_s11] sm:$0xff]  }
 0xbe5   : > { %4479 = vmatprep.subr.bf16.mxu0 %v8187_v50 }
 0xbe8   : > { %4480 = vmatpush2.bf16.msra.mxu0 %v8188_v40 }
 0xbeb   : > { %4482 = vmatmul.mubr.bf16.vlgmr.msra.gmra.mxu0 %v10744_v55 }
 0xbec   : > { %4491 = vmatprep.mubr.bf16.mxu0 %v11033_v32 }
 0xbf3   : > { %4492 = vmatmul.mubr.bf16.gmra.mxu0 %v10776_v25 }
 0xbf4   : > { %4501 = vmatprep.mubr.bf16.mxu0 %v11023_v58 }
 0xbfb   : > { %4502 = vmatmul.mubr.bf16.gmra.mxu0 %v11029_v43  ;;  %v8191_v43 = vld [vmem:[%s12544_s11 + $0x30] sm:$0xff]  }
 0xbfc   : > { %4511 = vmatprep.mubr.bf16.mxu0 %v11013_v45 }
 0xc03   : > { %4512 = vmatmul.mubr.bf16.gmra.mxu0 %v11019_v42 }
 0xc04   : > { %4521 = vmatprep.mubr.bf16.mxu0 %v11003_v36 }
 0xc0b   : > { %4522 = vmatmul.mubr.bf16.gmra.mxu0 %v11009_v49 }
 0xc0c   : > { %4531 = vmatprep.mubr.bf16.mxu0 %v10993_v56 }
 0xc13   : > { %4532 = vmatmul.mubr.bf16.gmra.mxu0 %v10999_v44 }
 0xc14   : > { %4541 = vmatprep.mubr.bf16.mxu0 %v10985_v3  ;;  %v8189_v3 = vld [vmem:[%s12544_s11 + $0x38] sm:$0xff]  }
 0xc1b   : > { %4542 = vmatmul.mubr.bf16.gmra.mxu0 %v10989_v13 }
 0xc1c   : > { %4551 = vmatprep.mubr.bf16.mxu0 %v10978_v17 }
 0xc23   : > { %4552 = vmatmul.mubr.bf16.gmra.mxu0 %v10980_v9  ;;  %v8190_v9 = vld [vmem:[%s12544_s11 + $0x70] sm:$0xff]  }
 0xc24   : > { %5311 = vmatprep.mubr.bf16.mxu0 %v13078_v16 }
 0xc6b   : > { %v4241_v55 = vpop.f32.mrf.mxu0 }
 0xc6d   : > { %v4243_v25 = vpop.f32.mrf.mxu0 }
 0xc6f   : > { %v4245_v45 = vpop.f32.mrf.mxu0 }
 0xc70   : > { %v4320_v49 = vpack.c.bf16 %v4245_v45, %v4241_v55 }
 0xc71   : > { %v4247_v36 = vpop.f32.mrf.mxu0 }
 0xc72   : > { %v4321_v42 = vpack.c.bf16 %v4247_v36, %v4243_v25 }
 0xc73   : > { %v4251_v58 = vpop.f32.mrf.mxu0 }
 0xc74   : > { %4368 = vmatprep.mubr.bf16.mxu1 %v4321_v42 }
 0xc75   : > { %v4253_v56 = vpop.f32.mrf.mxu0  ;;  %4369 = vmatmul.mubr.bf16.vlgmr.msra.gmra.mxu1 %v4320_v49 }
 0xc76   : > { %7232 = vmatpush3.bf16.msra.mxu1 %v8189_v3 }
 0xc77   : > { %v4255_v17 = vpop.f32.mrf.mxu0  ;;  %7233 = vmatprep.subr.bf16.mxu1 %v8190_v9 }
 0xc78   : > { %v4322_v32 = vpack.c.bf16 %v4255_v17, %v4251_v58 }
 0xc79   : > { %v4257_v13 = vpop.f32.mrf.mxu0 }
 0xc7a   : > { %v4323_v44 = vpack.c.bf16 %v4257_v13, %v4253_v56  ;;  %7234 = vmatpush3.bf16.msra.mxu1 %v8191_v43 }
 0xc7b   : > { %v4261_v12 = vpop.f32.mrf.mxu0  ;;  %7235 = vmatprep.subr.bf16.mxu1 %v8192_v31 }
 0xc7c   : > { %4378 = vmatprep.mubr.bf16.mxu1 %v4323_v44 }
 0xc7d   : > { %v4263_v48 = vpop.f32.mrf.mxu0  ;;  %4379 = vmatmul.mubr.bf16.gmra.mxu1 %v4322_v32 }
 0xc7e   : > { %7236 = vmatpush3.bf16.msra.mxu1 %v8193_v53 }
 0xc7f   : > { %v4265_v18 = vpop.f32.mrf.mxu0  ;;  %7237 = vmatprep.subr.bf16.mxu1 %v8194_v26 }
 0xc80   : > { %v4324_v4 = vpack.c.bf16 %v4265_v18, %v4261_v12 }
 0xc81   : > { %v4267_v10 = vpop.f32.mrf.mxu0 }
 0xc82   : > { %v4325_v46 = vpack.c.bf16 %v4267_v10, %v4263_v48  ;;  %7238 = vmatpush3.bf16.msra.mxu1 %v8195_v27 }
 0xc83   : > { %v4271_v41 = vpop.f32.mrf.mxu0  ;;  %7239 = vmatprep.subr.bf16.mxu1 %v8196_v0 }
 0xc84   : > { %4388 = vmatprep.mubr.bf16.mxu1 %v4325_v46 }
 0xc85   : > { %v4273_v8 = vpop.f32.mrf.mxu0  ;;  %4389 = vmatmul.mubr.bf16.gmra.mxu1 %v4324_v4 }
 0xc86   : > { %7240 = vmatpush3.bf16.msra.mxu1 %v8197_v62 }
 0xc87   : > { %v4275_v60 = vpop.f32.mrf.mxu0  ;;  %7241 = vmatprep.subr.bf16.mxu1 %v8198_v33 }
 0xc88   : > { %v4326_v22 = vpack.c.bf16 %v4275_v60, %v4271_v41 }
 0xc89   : > { %v4277_v7 = vpop.f32.mrf.mxu0 }
 0xc8a   : > { %v4327_v61 = vpack.c.bf16 %v4277_v7, %v4273_v8  ;;  %7242 = vmatpush3.bf16.msra.mxu1 %v8199_v37 }
 0xc8b   : > { %v4281_v28 = vpop.f32.mrf.mxu0  ;;  %7243 = vmatprep.subr.bf16.mxu1 %v8200_v51 }
 0xc8c   : > { %4398 = vmatprep.mubr.bf16.mxu1 %v4327_v61 }
 0xc8d   : > { %v4283_v23 = vpop.f32.mrf.mxu0  ;;  %4399 = vmatmul.mubr.bf16.gmra.mxu1 %v4326_v22 }
 0xc8e   : > { %7244 = vmatpush3.bf16.msra.mxu1 %v8201_v6 }
 0xc8f   : > { %v4285_v24 = vpop.f32.mrf.mxu0  ;;  %7245 = vmatprep.subr.bf16.mxu1 %v8202_v15 }
 0xc90   : > { %v4328_v50 = vpack.c.bf16 %v4285_v24, %v4281_v28 }
 0xc91   : > { %v4287_v5 = vpop.f32.mrf.mxu0 }
 0xc92   : > { %v4329_v29 = vpack.c.bf16 %v4287_v5, %v4283_v23  ;;  %7246 = vmatpush3.bf16.msra.mxu1 %v8203_v1  ;;  %v13159_v1 = vld [vmem:[#allocation58_spill] sm:$0xff] }
 0xc93   : > { %v4291_v40 = vpop.f32.mrf.mxu0 }
 0xc94   : > { %4408 = vmatprep.mubr.bf16.mxu1 %v4329_v29 }
 0xc95   : > { %v4293_v55 = vpop.f32.mrf.mxu0  ;;  %4409 = vmatmul.mubr.bf16.gmra.mxu1 %v4328_v50 }
 0xc97   : > { %v4295_v25 = vpop.f32.mrf.mxu0 }
 0xc98   : > { %v4330_v42 = vpack.c.bf16 %v4295_v25, %v4291_v40 }
 0xc99   : > { %v4297_v45 = vpop.f32.mrf.mxu0 }
 0xc9a   : > { %v4331_v36 = vpack.c.bf16 %v4297_v45, %v4293_v55  ;;  %v13160_v55 = vld [vmem:[#allocation57_spill] sm:$0xff] }
 0xc9b   : > { %v4301_v49 = vpop.f32.mrf.mxu0 }
 0xc9c   : > { %4418 = vmatprep.mubr.bf16.mxu1 %v4331_v36 }
 0xc9d   : > { %v4303_v58 = vpop.f32.mrf.mxu0  ;;  %4419 = vmatmul.mubr.bf16.gmra.mxu1 %v4330_v42 }
 0xc9f   : > { %v4305_v56 = vpop.f32.mrf.mxu0 }
 0xca0   : > { %v4332_v9 = vpack.c.bf16 %v4305_v56, %v4301_v49 }
 0xca1   : > { %v4307_v3 = vpop.f32.mrf.mxu0 }
 0xca2   : > { %v4333_v17 = vpack.c.bf16 %v4307_v3, %v4303_v58 }
 0xca3   : > { %v4311_v13 = vpop.f32.mrf.mxu0 }
 0xca4   : > { %4428 = vmatprep.mubr.bf16.mxu1 %v4333_v17 }
 0xca5   : > { %v4313_v44 = vpop.f32.mrf.mxu0  ;;  %4429 = vmatmul.mubr.bf16.gmra.mxu1 %v4332_v9 }
 0xca7   : > { %v4315_v43 = vpop.f32.mrf.mxu0 }
 0xca8   : > { %v4334_v31 = vpack.c.bf16 %v4315_v43, %v4311_v13 }
 0xca9   : > { %v4317_v32 = vpop.f32.mrf.mxu0 }
 0xcaa   : > { %v4335_v12 = vpack.c.bf16 %v4317_v32, %v4313_v44 }
 0xcab   : > { %v4483_v48 = vpop.f32.mrf.mxu0 }
 0xcac   : > { %4438 = vmatprep.mubr.bf16.mxu1 %v4335_v12 }
 0xcad   : > { %4439 = vmatmul.mubr.bf16.gmra.mxu1 %v4334_v31  ;;  %v4485_v53 = vpop.f32.mrf.mxu0 }
 0xcaf   : > { %v4487_v18 = vpop.f32.mrf.mxu0 }
 0xcb1   : > { %v4489_v26 = vpop.f32.mrf.mxu0 }
 0xcb3   : > { %v4493_v10 = vpop.f32.mrf.mxu0 }
 0xcb5   : > { %v4495_v46 = vpop.f32.mrf.mxu0 }
 0xcb7   : > { %v4497_v27 = vpop.f32.mrf.mxu0 }
 0xcb9   : > { %v4499_v4 = vpop.f32.mrf.mxu0 }
 0xcbb   : > { %v4503_v41 = vpop.f32.mrf.mxu0 }
 0xcbd   : > { %v4505_v0 = vpop.f32.mrf.mxu0 }
 0xcbf   : > { %v4507_v8 = vpop.f32.mrf.mxu0 }
 0xcc1   : > { %v4509_v62 = vpop.f32.mrf.mxu0 }
 0xcc3   : > { %v11121_v60 = vpop.f32.mrf.mxu0 }
 0xcc5   : > { %v4515_v33 = vpop.f32.mrf.mxu0 }
 0xcc7   : > { %v4517_v7 = vpop.f32.mrf.mxu0 }
 0xcc9   : > { %v11123_v61 = vpop.f32.mrf.mxu0 }
 0xccb   : > { %v11125_v22 = vpop.f32.mrf.mxu0 }
 0xccd   : > { %v11127_v24 = vpop.f32.mrf.mxu0 }
 0xccf   : > { %v4527_v36 = vpop.f32.mrf.mxu0 }
 0xcd1   : > { %v4529_v13 = vpop.f32.mrf.mxu0 }
 0xd35   : > { %v4370_v37 = vpop.f32.mrf.mxu1 }
 0xd36   : > { %v4484_v15 = vadd.f32 %v4483_v48, %v4370_v37 }
 0xd37   : > { %v4372_v28 = vpop.f32.mrf.mxu1 }
 0xd38   : > { %v4486_v23 = vadd.f32 %v4485_v53, %v4372_v28  ;;  %v4562_v42 = vadd.f32 %v4484_v15, %v13159_v1 }
 0xd39   : > { %v4374_v51 = vpop.f32.mrf.mxu1 }
 0xd3a   : > { %v4488_v6 = vadd.f32 %v4487_v18, %v4374_v51  ;;  %v4563_v25 = vadd.f32 %v4486_v23, %v13160_v55  ;;  %v11142_v18 = vpop.f32.mrf.mxu0 }
 0xd3b   : > { %v4376_v5 = vpop.f32.mrf.mxu1 }
 0xd3c   : > { %v4490_v29 = vadd.f32 %v4489_v26, %v4376_v5  ;;  %v4564_v50 = vadd.f32 %v4488_v6, %v13159_v1 }
 0xd3d   : > { %v4380_v40 = vpop.f32.mrf.mxu1 }
 0xd3e   : > { %v4565_v45 = vadd.f32 %v4490_v29, %v13160_v55  ;;  %v11135_v56 = vpack.c.bf16 %v4564_v50, %v4562_v42  ;;  %v4494_v44 = vadd.f32 %v4493_v10, %v4380_v40 }
 0xd3f   : > { %v4382_v49 = vpop.f32.mrf.mxu1 }
 0xd40   : > { %v11133_v58 = vpack.c.bf16 %v4565_v45, %v4563_v25  ;;  %v4496_v17 = vadd.f32 %v4495_v46, %v4382_v49  ;;  %v4566_v26 = vadd.f32 %v4494_v44, %v13159_v1 }
 0xd41   : > { %v4384_v3 = vpop.f32.mrf.mxu1 }
 0xd42   : > { %v4498_v9 = vadd.f32 %v4497_v27, %v4384_v3  ;;  %4642 = vmatprep.mubr.bf16.mxu1 %v11133_v58  ;;  %v4567_v48 = vadd.f32 %v4496_v17, %v13160_v55 }
 0xd43   : > { %v4386_v43 = vpop.f32.mrf.mxu1  ;;  %4643 = vmatmul.mubr.bf16.vlgmr.msra.gmra.mxu1 %v11135_v56 }
 0xd44   : > { %v4500_v32 = vadd.f32 %v4499_v4, %v4386_v43  ;;  %v4568_v12 = vadd.f32 %v4498_v9, %v13159_v1  ;;  %v4535_v4 = vpop.f32.mrf.mxu0 }
 0xd45   : > { %v4390_v31 = vpop.f32.mrf.mxu1 }
 0xd46   : > { %v4569_v53 = vadd.f32 %v4500_v32, %v13160_v55  ;;  %v11147_v37 = vpack.c.bf16 %v4568_v12, %v4566_v26  ;;  %v4504_v23 = vadd.f32 %v4503_v41, %v4390_v31  ;;  %v4537_v25 = vpop.f32.mrf.mxu0 }
 0xd47   : > { %v4392_v46 = vpop.f32.mrf.mxu1 }
 0xd48   : > { %v11145_v27 = vpack.c.bf16 %v4569_v53, %v4567_v48  ;;  %v4506_v28 = vadd.f32 %v4505_v0, %v4392_v46  ;;  %v4570_v45 = vadd.f32 %v4504_v23, %v13159_v1 }
 0xd49   : > { %v4394_v10 = vpop.f32.mrf.mxu1 }
 0xd4a   : > { %v4508_v51 = vadd.f32 %v4507_v8, %v4394_v10  ;;  %4650 = vmatprep.mubr.bf16.mxu1 %v11145_v27  ;;  %v4571_v50 = vadd.f32 %v4506_v28, %v13160_v55 }
 0xd4b   : > { %v4396_v6 = vpop.f32.mrf.mxu1  ;;  %4651 = vmatmul.mubr.bf16.gmra.mxu1 %v11147_v37 }
 0xd4c   : > { %v4510_v15 = vadd.f32 %v4509_v62, %v4396_v6  ;;  %v4572_v5 = vadd.f32 %v4508_v51, %v13159_v1  ;;  %v4539_v62 = vpop.f32.mrf.mxu0 }
 0xd4d   : > { %v4400_v29 = vpop.f32.mrf.mxu1 }
 0xd4e   : > { %v4573_v40 = vadd.f32 %v4510_v15, %v13160_v55  ;;  %v11157_v42 = vpack.c.bf16 %v4572_v5, %v4570_v45  ;;  %v4514_v17 = vadd.f32 %v11121_v60, %v4400_v29  ;;  %v4543_v48 = vpop.f32.mrf.mxu0 }
 0xd4f   : > { %v4402_v0 = vpop.f32.mrf.mxu1 }
 0xd50   : > { %v11155_v8 = vpack.c.bf16 %v4573_v40, %v4571_v50  ;;  %v4516_v49 = vadd.f32 %v4515_v33, %v4402_v0  ;;  %v4574_v33 = vadd.f32 %v4514_v17, %v13159_v1 }
 0xd51   : > { %v4404_v41 = vpop.f32.mrf.mxu1 }
 0xd52   : > { %v4518_v3 = vadd.f32 %v4517_v7, %v4404_v41  ;;  %4658 = vmatprep.mubr.bf16.mxu1 %v11155_v8  ;;  %v4575_v12 = vadd.f32 %v4516_v49, %v13160_v55 }
 0xd53   : > { %v4406_v9 = vpop.f32.mrf.mxu1  ;;  %4659 = vmatmul.mubr.bf16.gmra.mxu1 %v11157_v42 }
 0xd54   : > { %v4520_v44 = vadd.f32 %v11123_v61, %v4406_v9  ;;  %v4576_v43 = vadd.f32 %v4518_v3, %v13159_v1  ;;  %v4545_v61 = vpop.f32.mrf.mxu0 }
 0xd55   : > { %v4410_v32 = vpop.f32.mrf.mxu1 }
 0xd56   : > { %v4577_v31 = vadd.f32 %v4520_v44, %v13160_v55  ;;  %v11169_v26 = vpack.c.bf16 %v4576_v43, %v4574_v33  ;;  %v4524_v28 = vadd.f32 %v11125_v22, %v4410_v32  ;;  %v4547_v50 = vpop.f32.mrf.mxu0 }
 0xd57   : > { %v4412_v7 = vpop.f32.mrf.mxu1 }
 0xd58   : > { %v11167_v53 = vpack.c.bf16 %v4577_v31, %v4575_v12  ;;  %v4526_v46 = vadd.f32 %v11127_v24, %v4412_v7  ;;  %v4578_v24 = vadd.f32 %v4524_v28, %v13159_v1  ;;  %v4549_v49 = vpop.f32.mrf.mxu0 }
 0xd59   : > { %v4414_v60 = vpop.f32.mrf.mxu1 }
 0xd5a   : > { %v4528_v10 = vadd.f32 %v4527_v36, %v4414_v60  ;;  %4666 = vmatprep.mubr.bf16.mxu1 %v11167_v53  ;;  %v4579_v5 = vadd.f32 %v4526_v46, %v13160_v55  ;;  %v4553_v12 = vpop.f32.mrf.mxu0 }
 0xd5b   : > { %v4416_v51 = vpop.f32.mrf.mxu1  ;;  %4667 = vmatmul.mubr.bf16.gmra.mxu1 %v11169_v26 }
 0xd5c   : > { %v4530_v23 = vadd.f32 %v4529_v13, %v4416_v51  ;;  %v4580_v6 = vadd.f32 %v4528_v10, %v13159_v1 }
 0xd5d   : > { %v4420_v15 = vpop.f32.mrf.mxu1 }
 0xd5e   : > { %v4581_v29 = vadd.f32 %v4530_v23, %v13160_v55  ;;  %v4602_v45 = vpack.c.bf16 %v4580_v6, %v4578_v24  ;;  %v4534_v13 = vadd.f32 %v11142_v18, %v4420_v15  ;;  %v4555_v18 = vpop.f32.mrf.mxu0 }
 0xd5f   : > { %v4422_v36 = vpop.f32.mrf.mxu1 }
 0xd60   : > { %v4603_v40 = vpack.c.bf16 %v4581_v29, %v4579_v5  ;;  %v4536_v41 = vadd.f32 %v4535_v4, %v4422_v36  ;;  %v4582_v31 = vadd.f32 %v4534_v13, %v13159_v1  ;;  %v4557_v5 = vpop.f32.mrf.mxu0 }
 0xd61   : > { %v4424_v0 = vpop.f32.mrf.mxu1 }
 0xd62   : > { %v4538_v22 = vadd.f32 %v4537_v25, %v4424_v0  ;;  %4674 = vmatprep.mubr.bf16.mxu1 %v4603_v40  ;;  %v4583_v43 = vadd.f32 %v4536_v41, %v13160_v55 }
 0xd63   : > { %v4426_v3 = vpop.f32.mrf.mxu1  ;;  %4675 = vmatmul.mubr.bf16.gmra.mxu1 %v4602_v45 }
 0xd64   : > { %v4540_v17 = vadd.f32 %v4539_v62, %v4426_v3  ;;  %v4584_v9 = vadd.f32 %v4538_v22, %v13159_v1 }
 0xd65   : > { %v4430_v44 = vpop.f32.mrf.mxu1 }
 0xd66   : > { %v4585_v32 = vadd.f32 %v4540_v17, %v13160_v55  ;;  %v4604_v25 = vpack.c.bf16 %v4584_v9, %v4582_v31  ;;  %v4544_v10 = vadd.f32 %v4543_v48, %v4430_v44  ;;  %v4559_v48 = vpop.f32.mrf.mxu0 }
 0xd67   : > { %v4432_v33 = vpop.f32.mrf.mxu1 }
 0xd68   : > { %v4605_v4 = vpack.c.bf16 %v4585_v32, %v4583_v43  ;;  %v4546_v60 = vadd.f32 %v4545_v61, %v4432_v33  ;;  %v4586_v29 = vadd.f32 %v4544_v10, %v13159_v1 }
 0xd69   : > { %v4434_v7 = vpop.f32.mrf.mxu1 }
 0xd6a   : > { %v4548_v46 = vadd.f32 %v4547_v50, %v4434_v7  ;;  %4682 = vmatprep.mubr.bf16.mxu1 %v4605_v4  ;;  %v4587_v6 = vadd.f32 %v4546_v60, %v13160_v55 }
 0xd6b   : > { %v4436_v62 = vpop.f32.mrf.mxu1  ;;  %4683 = vmatmul.mubr.bf16.gmra.mxu1 %v4604_v25 }
 0xd6c   : > { %v4550_v28 = vadd.f32 %v4549_v49, %v4436_v62  ;;  %v4588_v51 = vadd.f32 %v4548_v46, %v13159_v1 }
 0xd6d   : > { %v4440_v23 = vpop.f32.mrf.mxu1 }
 0xd6e   : > { %v4589_v15 = vadd.f32 %v4550_v28, %v13160_v55  ;;  %v4606_v61 = vpack.c.bf16 %v4588_v51, %v4586_v29  ;;  %v4554_v22 = vadd.f32 %v4553_v12, %v4440_v23 }
 0xd6f   : > { %v4442_v24 = vpop.f32.mrf.mxu1 }
 0xd70   : > { %v4607_v36 = vpack.c.bf16 %v4589_v15, %v4587_v6  ;;  %v4556_v0 = vadd.f32 %v4555_v18, %v4442_v24  ;;  %v4590_v44 = vadd.f32 %v4554_v22, %v13159_v1 }
 0xd71   : > { %v4444_v50 = vpop.f32.mrf.mxu1 }
 0xd72   : > { %v4558_v41 = vadd.f32 %v4557_v5, %v4444_v50  ;;  %4690 = vmatprep.mubr.bf16.mxu1 %v4607_v36  ;;  %v4591_v17 = vadd.f32 %v4556_v0, %v13160_v55 }
 0xd73   : > { %v4446_v49 = vpop.f32.mrf.mxu1  ;;  %4691 = vmatmul.mubr.bf16.gmra.mxu1 %v4606_v61 }
 0xd74   : > { %v4560_v13 = vadd.f32 %v4559_v48, %v4446_v49  ;;  %v4592_v3 = vadd.f32 %v4558_v41, %v13159_v1 }
 0xd76   : > { %v4593_v9 = vadd.f32 %v4560_v13, %v13160_v55  ;;  %v4608_v32 = vpack.c.bf16 %v4592_v3, %v4590_v44 }
 0xd78   : > { %v4609_v43 = vpack.c.bf16 %v4593_v9, %v4591_v17 }
 0xd7a   : > { %4698 = vmatprep.mubr.bf16.mxu1 %v4609_v43  ;;  %5279 = vmatprep.subr.bf16.mxu0 %v4609_v43 }
 0xd7b   : > { %4699 = vmatmul.mubr.bf16.gmra.mxu1 %v4608_v32  ;;  %5280 = vmatpush1.bf16.msra.mxu0 %v4608_v32 }
 0xd7c   : > { %5281 = vmatprep.subr.bf16.mxu0 %v4607_v36 }
 0xd7f   : > { %5282 = vmatpush1.bf16.msra.mxu0 %v4606_v61 }
 0xd80   : > { %5283 = vmatprep.subr.bf16.mxu0 %v4605_v4 }
 0xd83   : > { %5284 = vmatpush1.bf16.msra.mxu0 %v4604_v25 }
 0xd84   : > { %5285 = vmatprep.subr.bf16.mxu0 %v4603_v40 }
 0xd87   : > { %5286 = vmatpush1.bf16.msra.mxu0 %v4602_v45 }
 0xd88   : > { %5287 = vmatprep.subr.bf16.mxu0 %v11167_v53 }
 0xd8b   : > { %5288 = vmatpush1.bf16.msra.mxu0 %v11169_v26 }
 0xd8c   : > { %5289 = vmatprep.subr.bf16.mxu0 %v11155_v8 }
 0xd8f   : > { %5290 = vmatpush1.bf16.msra.mxu0 %v11157_v42 }
 0xd90   : > { %5291 = vmatprep.subr.bf16.mxu0 %v11145_v27 }
 0xd93   : > { %5292 = vmatpush1.bf16.msra.mxu0 %v11147_v37 }
 0xd94   : > { %5293 = vmatprep.subr.bf16.mxu0 %v11133_v58 }
 0xd97   : > { %5294 = vmatpush1.bf16.msra.mxu0 %v11135_v56 }
 0xe03   : > { %v7247_v1 = vpop.f32.mrf.mxu1 }
 0xe05   : > { %v7248_v55 = vpop.f32.mrf.mxu1 }
 0xe06   : > { %v7249_v40 = vadd.f32 %v7248_v55, %v7247_v1 }
 0xe07   : > { %v7250_v45 = vpop.f32.mrf.mxu1 }
 0xe08   : > { %4723 = vrot.lane.b32.xlu0 %v7249_v40, %s8499_s8 }
 0xe09   : > { %v7251_v53 = vpop.f32.mrf.mxu1 }
 0xe0a   : > { %v7252_v26 = vadd.f32 %v7251_v53, %v7250_v45 }
 0xe0b   : > { %v7253_v12 = vpop.f32.mrf.mxu1 }
 0xe0c   : > { %4725 = vrot.lane.b32.xlu1 %v7252_v26, %s8499_s8 }
 0xe0d   : > { %v7254_v8 = vpop.f32.mrf.mxu1 }
 0xe0e   : > { %v7255_v42 = vadd.f32 %v7254_v8, %v7253_v12 }
 0xe0f   : > { %v7256_v27 = vpop.f32.mrf.mxu1 }
 0xe10   : > { %4727 = vrot.lane.b32.xlu1 %v7255_v42, %s8499_s8 }
 0xe11   : > { %v7257_v37 = vpop.f32.mrf.mxu1 }
 0xe12   : > { %v7258_v58 = vadd.f32 %v7257_v37, %v7256_v27 }
 0xe13   : > { %v7259_v31 = vpop.f32.mrf.mxu1 }
 0xe14   : > { %4729 = vrot.lane.b32.xlu0 %v7258_v58, %s8499_s8 }
 0xe15   : > { %v7260_v56 = vpop.f32.mrf.mxu1 }
 0xe16   : > { %v7261_v33 = vadd.f32 %v7260_v56, %v7259_v31 }
 0xe17   : > { %v7262_v4 = vpop.f32.mrf.mxu1 }
 0xe18   : > { %4731 = vrot.lane.b32.xlu1 %v7261_v33, %s8499_s8 }
 0xe19   : > { %v7263_v25 = vpop.f32.mrf.mxu1 }
 0xe1a   : > { %v7264_v7 = vadd.f32 %v7263_v25, %v7262_v4 }
 0xe1b   : > { %v7265_v60 = vpop.f32.mrf.mxu1 }
 0xe1c   : > { %4733 = vrot.lane.b32.xlu0 %v7264_v7, %s8499_s8 }
 0xe1d   : > { %v7266_v46 = vpop.f32.mrf.mxu1 }
 0xe1e   : > { %v7267_v18 = vadd.f32 %v7266_v46, %v7265_v60 }
 0xe1f   : > { %v7268_v10 = vpop.f32.mrf.mxu1 }
 0xe20   : > { %4735 = vrot.lane.b32.xlu1 %v7267_v18, %s8499_s8 }
 0xe21   : > { %v7269_v62 = vpop.f32.mrf.mxu1 }
 0xe22   : > { %v7270_v28 = vadd.f32 %v7269_v62, %v7268_v10 }
 0xe23   : > { %v7271_v51 = vpop.f32.mrf.mxu1 }
 0xe24   : > { %4737 = vrot.lane.b32.xlu0 %v7270_v28, %s8499_s8 }
 0xe25   : > { %v7272_v23 = vpop.f32.mrf.mxu1 }
 0xe26   : > { %v7273_v6 = vadd.f32 %v7272_v23, %v7271_v51  ;;  %v13161_v51 = vld [vmem:[#allocation59_spill] sm:$0xff]  ;;  %v13162_v23 = vld [vmem:[#allocation66_spill] sm:$0xff] }
 0xe27   : > { %v7274_v15 = vpop.f32.mrf.mxu1 }
 0xe28   : > { %4739 = vrot.lane.b32.xlu1 %v7273_v6, %s8499_s8 }
 0xe29   : > { %v7275_v5 = vpop.f32.mrf.mxu1 }
 0xe2a   : > { %v7276_v29 = vadd.f32 %v7275_v5, %v7274_v15  ;;  %v13163_v15 = vld [vmem:[#allocation60_spill] sm:$0xff]  ;;  %v13164_v5 = vld [vmem:[#allocation67_spill] sm:$0xff] }
 0xe2b   : > { %v7277_v24 = vpop.f32.mrf.mxu1 }
 0xe2c   : > { %4741 = vrot.lane.b32.xlu0 %v7276_v29, %s8499_s8 }
 0xe2d   : > { %v7278_v36 = vpop.f32.mrf.mxu1 }
 0xe2e   : > { %v7279_v61 = vadd.f32 %v7278_v36, %v7277_v24  ;;  %v13165_v24 = vld [vmem:[#allocation61_spill] sm:$0xff] }
 0xe2f   : > { %v7280_v50 = vpop.f32.mrf.mxu1  ;;  %v4153_v36 = vmul.f32 %v13165_v24, %v13162_v23 }
 0xe30   : > { %4743 = vrot.lane.b32.xlu1 %v7279_v61, %s8499_s8 }
 0xe31   : > { %v7281_v0 = vpop.f32.mrf.mxu1 }
 0xe32   : > { %v7282_v41 = vadd.f32 %v7281_v0, %v7280_v50 }
 0xe33   : > { %v7283_v48 = vpop.f32.mrf.mxu1 }
 0xe34   : > { %4745 = vrot.lane.b32.xlu0 %v7282_v41, %s8499_s8 }
 0xe35   : > { %v7284_v22 = vpop.f32.mrf.mxu1 }
 0xe36   : > { %v7285_v49 = vadd.f32 %v7284_v22, %v7283_v48  ;;  %v13167_v48 = vld [vmem:[#allocation63_spill] sm:$0xff] }
 0xe37   : > { %v7286_v13 = vpop.f32.mrf.mxu1  ;;  %v4095_v22 = vmul.f32 %v13167_v48, %v13161_v51 }
 0xe38   : > { %4747 = vrot.lane.b32.xlu1 %v7285_v49, %s8499_s8 }
 0xe39   : > { %v7287_v3 = vpop.f32.mrf.mxu1 }
 0xe3a   : > { %v7288_v17 = vadd.f32 %v7287_v3, %v7286_v13  ;;  %v4143_v3 = vmul.f32 %v13165_v24, %v13167_v48 }
 0xe3b   : > { %v7289_v9 = vpop.f32.mrf.mxu1 }
 0xe3c   : > { %4749 = vrot.lane.b32.xlu0 %v7288_v17, %s8499_s8 }
 0xe3d   : > { %v7290_v44 = vpop.f32.mrf.mxu1 }
 0xe3e   : > { %v7291_v43 = vadd.f32 %v7290_v44, %v7289_v9 }
 0xe3f   : > { %v7292_v32 = vpop.f32.mrf.mxu1 }
 0xe40   : > { %4751 = vrot.lane.b32.xlu1 %v7291_v43, %s8499_s8 }
 0xe41   : > { %v7293_v1 = vpop.f32.mrf.mxu1 }
 0xe42   : > { %v7294_v55 = vadd.f32 %v7293_v1, %v7292_v32  ;;  %v13170_v1 = vld [vmem:[#allocation71_spill] sm:$0xff] }
 0xe44   : > { %4753 = vrot.lane.b32.xlu0 %v7294_v55, %s8499_s8  ;;  %4804 = vperm.xlu1 %7551, %v7249_v40   ;;  %s7137_s8 = sld [smem:[#allocation16 + $0x8]] }
 0xe48   : > { %4808 = vperm.xlu0 %7550, %v7252_v26   ;;  %4812 = vperm.xlu1 %7551, %v7255_v42  }
 0xe4c   : > { %4816 = vperm.xlu0 %7550, %v7258_v58   ;;  %4820 = vperm.xlu1 %7551, %v7261_v33  }
 0xe50   : > { %4824 = vperm.xlu0 %7550, %v7264_v7   ;;  %4828 = vperm.xlu1 %7551, %v7267_v18  }
 0xe54   : > { %4832 = vperm.xlu0 %7550, %v7270_v28  }
 0xe58   : > { %4836 = vperm.xlu0 %7550, %v7273_v6   ;;  %v4105_v6 = vmul.f32 %v13162_v23, %v13161_v51 }
 0xe5c   : > { %4840 = vperm.xlu0 %7550, %v7276_v29   ;;  %v4121_v29 = vmul.f32 %v13164_v5, %v13163_v15 }
 0xe5e   : > { %v11240_v9 = vadd.f32 %v4121_v29, %v4105_v6 }
 0xe60   : > { %4844 = vperm.xlu0 %7550, %v7279_v61   ;;  %v13166_v61 = vld [vmem:[#allocation62_spill] sm:$0xff] }
 0xe61   : > { %v4169_v50 = vmul.f32 %v13164_v5, %v13166_v61 }
 0xe63   : > { %v11242_v44 = vadd.f32 %v4169_v50, %v4153_v36  ;;  %v13180_v50 = vld [vmem:[#allocation64_spill] sm:$0xff] }
 0xe64   : > { %4848 = vperm.xlu0 %7550, %v7282_v41   ;;  %v4897_v48 = vmul.f32 %v11240_v9, %v13180_v50 }
 0xe68   : > { %4852 = vperm.xlu0 %7550, %v7285_v49   ;;  %v13168_v49 = vld [vmem:[#allocation65_spill] sm:$0xff] }
 0xe69   : > { %v4111_v13 = vmul.f32 %v13168_v49, %v13163_v15 }
 0xe6c   : > { %4856 = vperm.xlu0 %7550, %v7288_v17   ;;  %v4159_v17 = vmul.f32 %v13168_v49, %v13166_v61 }
 0xe70   : > { %4860 = vperm.xlu0 %7550, %v7291_v43   ;;  %v13169_v43 = vld [vmem:[#allocation70_spill] sm:$0xff] }
 0xe71   : > { %v4096_v32 = vmul.f32 %v13169_v43, %v13161_v51 }
 0xe74   : > { %4864 = vperm.xlu0 %7550, %v7294_v55   ;;  %v4112_v55 = vmul.f32 %v13170_v1, %v13163_v15 }
 0xe76   : > { %v11276_v5 = vadd.f32 %v4112_v55, %v4096_v32  ;;  %v13185_v55 = vld [vmem:[#allocation78_spill] sm:$0xff] }
 0xe78   : > { %13177 = vst [vmem:[#allocation35_spill] sm:$0xff] %v11276_v5 }
 0xe7a   : > { %v4724_v45 = vpop.permute.xlu0 %4723 }
 0xe7b   : > { %4771 = vxpose.xlu1.b32.start [1/16] (narrow) %v4724_v45, 8  ;;  %v4144_v45 = vmul.f32 %v13165_v24, %v13169_v43 }
 0xe7e   : > { %v4726_v53 = vpop.permute.xlu1 %4725 }
 0xe7f   : > { %4772 = vxpose.xlu1.b32.cont [2/16] (narrow) %v4726_v53, 8  ;;  %v4160_v53 = vmul.f32 %v13170_v1, %v13166_v61 }
 0xe81   : > { %v11278_v29 = vadd.f32 %v4160_v53, %v4144_v45  ;;  %v4099_v45 = vmul.f32 %v13185_v55, %v13161_v51  ;;  %v13186_v53 = vld [vmem:[#allocation79_spill] sm:$0xff] }
 0xe82   : > { %v4728_v40 = vpop.permute.xlu1 %4727 }
 0xe83   : > { %4773 = vxpose.xlu1.b32.cont [3/16] (narrow) %v4728_v40, 8  ;;  %v13171_v40 = vld [vmem:[#allocation72_spill] sm:$0xff]  ;;  %13178 = vst [vmem:[#allocation30_spill] sm:$0xff] %v11278_v29 }
 0xe86   : > { %v4730_v26 = vpop.permute.xlu0 %4729 }
 0xe87   : > { %4774 = vxpose.xlu1.b32.cont [4/16] (narrow) %v4730_v26, 8  ;;  %v4097_v26 = vmul.f32 %v13171_v40, %v13161_v51 }
 0xe8a   : > { %v4732_v12 = vpop.permute.xlu1 %4731 }
 0xe8b   : > { %4775 = vxpose.xlu1.b32.cont [5/16] (narrow) %v4732_v12, 8  ;;  %v13172_v12 = vld [vmem:[#allocation73_spill] sm:$0xff] }
 0xe8e   : > { %v4734_v8 = vpop.permute.xlu0 %4733 }
 0xe8f   : > { %4776 = vxpose.xlu1.b32.cont [6/16] (narrow) %v4734_v8, 8  ;;  %v4113_v8 = vmul.f32 %v13172_v12, %v13163_v15 }
 0xe91   : > { %v11280_v36 = vadd.f32 %v4113_v8, %v4097_v26  ;;  %v4147_v26 = vmul.f32 %v13165_v24, %v13185_v55  ;;  %v13187_v8 = vld [vmem:[#allocation23_spill] sm:$0xff]  ;;  %v13189_v55 = vld [vmem:[#allocation81_spill] sm:$0xff] }
 0xe92   : > { %v4736_v42 = vpop.permute.xlu1 %4735 }
 0xe93   : > { %4777 = vxpose.xlu1.b32.cont [7/16] (narrow) %v4736_v42, 8  ;;  %v4145_v42 = vmul.f32 %v13165_v24, %v13171_v40  ;;  %13179 = vst [vmem:[#allocation33_spill] sm:$0xff] %v11280_v36  ;;  %v4115_v40 = vmul.f32 %v13186_v53, %v13163_v15 }
 0xe95   : > { %v11328_v63 = vadd.f32 %v4115_v40, %v4099_v45 }
 0xe96   : > { %v4738_v27 = vpop.permute.xlu0 %4737 }
 0xe97   : > { %4778 = vxpose.xlu1.b32.cont [8/16] (narrow) %v4738_v27, 8  ;;  %v4161_v27 = vmul.f32 %v13172_v12, %v13166_v61  ;;  %v4163_v12 = vmul.f32 %v13186_v53, %v13166_v61  ;;  %v4116_v53 = vmul.f32 %v13189_v55, %v13163_v15 }
 0xe99   : > { %v11330_v30 = vadd.f32 %v4163_v12, %v4147_v26  ;;  %v13191_v26 = vld [vmem:[#allocation84_spill] sm:$0xff] }
 0xe9a   : > { %v4740_v37 = vpop.permute.xlu1 %4739 }
 0xe9b   : > { %4779 = vxpose.xlu1.b32.cont [9/16] (narrow) %v4740_v37, 8  ;;  %v13173_v37 = vld [vmem:[#allocation74_spill] sm:$0xff] }
 0xe9e   : > { %v4742_v58 = vpop.permute.xlu0 %4741 }
 0xe9f   : > { %4780 = vxpose.xlu1.b32.cont [10/16] (narrow) %v4742_v58, 8  ;;  %v4098_v58 = vmul.f32 %v13173_v37, %v13161_v51 }
 0xea2   : > { %v4744_v31 = vpop.permute.xlu1 %4743 }
 0xea3   : > { %4781 = vxpose.xlu1.b32.cont [11/16] (narrow) %v4744_v31, 8  ;;  %v13174_v31 = vld [vmem:[#allocation75_spill] sm:$0xff] }
 0xea6   : > { %v4746_v56 = vpop.permute.xlu0 %4745 }
 0xea7   : > { %4782 = vxpose.xlu1.b32.cont [12/16] (narrow) %v4746_v56, 8  ;;  %v4114_v56 = vmul.f32 %v13174_v31, %v13163_v15 }
 0xea9   : > { %v11286_v49 = vadd.f32 %v4114_v56, %v4098_v58  ;;  %v4889_v58 = vmul.f32 %v11280_v36, %v13180_v50 }
 0xeaa   : > { %v4748_v33 = vpop.permute.xlu1 %4747 }
 0xeab   : > { %4783 = vxpose.xlu1.b32.cont [13/16] (narrow) %v4748_v33, 8  ;;  %v11264_v33 = vadd.f32 %v4111_v13, %v4095_v22  ;;  %v11284_v22 = vadd.f32 %v4161_v27, %v4145_v42  ;;  %13182 = vst [vmem:[#allocation29_spill] sm:$0xff] %v11286_v49  ;;  %v13183_v13 = vld [vmem:[#allocation69_spill] sm:$0xff]  ;;  %v4888_v27 = vmul.f32 %v11276_v5, %v13180_v50  ;;  %v13213_v5 = vld [vmem:[#allocation104_spill] sm:$0xff] }
 0xead   : > { %13175 = vst [vmem:[#allocation37_spill] sm:$0xff] %v11264_v33  ;;  %13181 = vst [vmem:[#allocation31_spill] sm:$0xff] %v11284_v22  ;;  %v4921_v56 = vmul.f32 %v11284_v22, %v13183_v13 }
 0xeae   : > { %v4750_v4 = vpop.permute.xlu0 %4749 }
 0xeaf   : > { %4784 = vxpose.xlu1.b32.cont [14/16] (narrow) %v4750_v4, 8  ;;  %v11266_v4 = vadd.f32 %v4159_v17, %v4143_v3  ;;  %v4929_v3 = vmul.f32 %v11242_v44, %v13183_v13  ;;  %v4887_v17 = vmul.f32 %v11264_v33, %v13180_v50  ;;  %v4125_v33 = vmul.f32 %v13213_v5, %v13163_v15 }
 0xeb1   : > { %13176 = vst [vmem:[#allocation34_spill] sm:$0xff] %v11266_v4  ;;  %v4919_v43 = vmul.f32 %v11266_v4, %v13183_v13 }
 0xeb2   : > { %v4752_v25 = vpop.permute.xlu1 %4751 }
 0xeb3   : > { %4785 = vxpose.xlu1.b32.cont [15/16] (narrow) %v4752_v25, 8  ;;  %v4146_v25 = vmul.f32 %v13165_v24, %v13173_v37  ;;  %v4920_v37 = vmul.f32 %v11278_v29, %v13183_v13 }
 0xeb6   : > { %v4754_v7 = vpop.permute.xlu0 %4753 }
 0xeb7   : > { %4786 = vxpose.xlu1.b32.end [16/16] (narrow) %v4754_v7, 8  ;;  %v4162_v7 = vmul.f32 %v13174_v31, %v13166_v61 }
 0xeb9   : > { %v11294_v32 = vadd.f32 %v4162_v7, %v4146_v25  ;;  %v4890_v25 = vmul.f32 %v11286_v49, %v13180_v50  ;;  %v13188_v7 = vld [vmem:[#allocation80_spill] sm:$0xff]  ;;  %v4173_v49 = vmul.f32 %v13213_v5, %v13166_v61 }
 0xebb   : > { %13184 = vst [vmem:[#allocation32_spill] sm:$0xff] %v11294_v32  ;;  %v4922_v11 = vmul.f32 %v11294_v32, %v13183_v13 }
 0xebf   : > { %v4805_v18 = vpop.permute.xlu1 %4804 }
 0xec3   : > { %v4809_v60 = vpop.permute.xlu0 %4808  ;;  %v4813_v62 = vpop.permute.xlu1 %4812 }
 0xec7   : > { %v4817_v46 = vpop.permute.xlu0 %4816  ;;  %v11228_v0 = vpop.permute.xlu1 %4820 }
 0xecb   : > { %v11216_v10 = vpop.permute.xlu0 %4824  ;;  %v11272_v23 = vpop.permute.xlu1 %4828 }
 0xecf   : > { %v11218_v28 = vpop.permute.xlu0 %4832 }
 0xed3   : > { %v11230_v41 = vpop.permute.xlu0 %4836 }
 0xed7   : > { %v11274_v6 = vpop.permute.xlu0 %4840 }
 0xedb   : > { %v4845_v31 = vpop.permute.xlu0 %4844 }
 0xef7   : > { %v4787_v1 = vpop.trf.xlu1 }
 0xef8   : > { %v11305_v42 = vrot.slane %v4787_v1, %v13187_v8  ;;  %v4100_v1 = vmul.f32 %v13188_v7, %v13161_v51 }
 0xefa   : > { %v4881_v8 = vadd.f32 %v11305_v42, %v4845_v31  ;;  %v4871_v19 = vadd.f32 %v11305_v42, %v4805_v18  ;;  %v4872_v39 = vadd.f32 %v11305_v42, %v4809_v60  ;;  %v4873_v54 = vadd.f32 %v11305_v42, %v4813_v62 }
 0xefb   : > { %v4874_v38 = vadd.f32 %v11305_v42, %v4817_v46  ;;  %v11332_v31 = vadd.f32 %v4116_v53, %v4100_v1  ;;  %v4148_v60 = vmul.f32 %v13165_v24, %v13188_v7  ;;  %v4164_v18 = vmul.f32 %v13189_v55, %v13166_v61  ;;  %v13190_v46 = vld [vmem:[#allocation82_spill] sm:$0xff]  ;;  %v13193_v55 = vld [vmem:[#allocation87_spill] sm:$0xff] }
 0xefc   : > { %v4913_v57 = vadd.f32 %v4897_v48, %v4881_v8  ;;  %v4903_v21 = vadd.f32 %v4887_v17, %v4871_v19  ;;  %v4904_v52 = vadd.f32 %v4888_v27, %v4872_v39  ;;  %v4905_v47 = vadd.f32 %v4889_v58, %v4873_v54  ;;  %v13194_v8 = vld [vmem:[#allocation76_spill] sm:$0xff] }
 0xefd   : > { %v4101_v62 = vmul.f32 %v13190_v46, %v13161_v51  ;;  %v4117_v48 = vmul.f32 %v13191_v26, %v13163_v15  ;;  %v4906_v19 = vadd.f32 %v4890_v25, %v4874_v38  ;;  %v4875_v54 = vadd.f32 %v11305_v42, %v11228_v0 }
 0xefe   : > { %v4945_v59 = vadd.f32 %v4929_v3, %v4913_v57  ;;  %v4935_v45 = vadd.f32 %v4919_v43, %v4903_v21  ;;  %v4936_v40 = vadd.f32 %v4920_v37, %v4904_v52  ;;  %v4891_v39 = vmul.f32 %v11328_v63, %v13180_v50  ;;  %v13192_v37 = vld [vmem:[#allocation85_spill] sm:$0xff] }
 0xeff   : > { %v4923_v17 = vmul.f32 %v11330_v30, %v13183_v13  ;;  %v4937_v7 = vadd.f32 %v4921_v56, %v4905_v47  ;;  %v11348_v57 = vadd.f32 %v4164_v18, %v4148_v60  ;;  %v4892_v21 = vmul.f32 %v11332_v31, %v13180_v50  ;;  %v13195_v18 = vld [vmem:[#allocation68_spill] sm:$0xff] }
 0xf00   : > { %v4961_v12 = vmul.f32 0.01, %v4945_v59  ;;  %v4951_v27 = vmul.f32 0.01, %v4935_v45  ;;  %v4952_v58 = vmul.f32 0.01, %v4936_v40  ;;  %v4149_v52 = vmul.f32 %v13165_v24, %v13190_v46 }
 0xf01   : > { %v4165_v38 = vmul.f32 %v13191_v26, %v13166_v61  ;;  %v11356_v43 = vadd.f32 %v4117_v48, %v4101_v62  ;;  %v4102_v25 = vmul.f32 %v13192_v37, %v13161_v51  ;;  %v4938_v1 = vadd.f32 %v4922_v11, %v4906_v19  ;;  %v13196_v48 = vld [vmem:[#allocation88_spill] sm:$0xff] }
 0xf02   : > { %v4977_v0 = vmax.f32 %v4945_v59, %v4961_v12  ;;  %v4967_v3 = vmax.f32 %v4935_v45, %v4951_v27  ;;  %v4907_v47 = vadd.f32 %v4891_v39, %v4875_v54  ;;  %v4876_v56 = vadd.f32 %v11305_v42, %v11216_v10 }
 0xf03   : > { %v4118_v53 = vmul.f32 %v13193_v55, %v13163_v15  ;;  %v4968_v59 = vmax.f32 %v4936_v40, %v4952_v58  ;;  %v4953_v62 = vmul.f32 0.01, %v4937_v7  ;;  %v4924_v45 = vmul.f32 %v11348_v57, %v13183_v13  ;;  %v13197_v40 = vld [vmem:[#allocation90_spill] sm:$0xff] }
 0xf04   : > { %v11365_v60 = vadd.f32 %v4977_v0, %v13194_v8  ;;  %v11368_v46 = vadd.f32 %v4967_v3, %v13195_v18  ;;  %v4150_v11 = vmul.f32 %v13165_v24, %v13192_v37  ;;  %v4166_v10 = vmul.f32 %v13193_v55, %v13166_v61  ;;  %v13198_v0 = vld [vmem:[#allocation77_spill] sm:$0xff] }
 0xf05   : > { %v11378_v26 = vadd.f32 %v4165_v38, %v4149_v52  ;;  %v4103_v19 = vmul.f32 %v13196_v48, %v13161_v51  ;;  %v4119_v54 = vmul.f32 %v13197_v40, %v13163_v15  ;;  %v4908_v39 = vadd.f32 %v4892_v21, %v4876_v56 }
 0xf06   : > { %5019 = vmax.xlane.f32.xlu1 %v11365_v60  ;;  %4999 = vmax.xlane.f32.xlu0 %v11368_v46  ;;  %v4877_v12 = vadd.f32 %v11305_v42, %v11272_v23  ;;  %v4893_v27 = vmul.f32 %v11356_v43, %v13180_v50  ;;  %v11388_v58 = vadd.f32 %v4118_v53, %v4102_v25  ;;  %v4954_v38 = vmul.f32 0.01, %v4938_v1  ;;  %v13199_v25 = vld [vmem:[#allocation91_spill] sm:$0xff]  ;;  %v13200_v53 = vld [vmem:[#allocation93_spill] sm:$0xff] }
 0xf07   : > { %v11391_v3 = vadd.f32 %v4968_v59, %v13198_v0  ;;  %v4969_v52 = vmax.f32 %v4937_v7, %v4953_v62  ;;  %v4939_v37 = vadd.f32 %v4923_v17, %v4907_v47  ;;  %v11393_v55 = vadd.f32 %v4166_v10, %v4150_v11  ;;  %v13201_v62 = vld [vmem:[#allocation83_spill] sm:$0xff] }
 0xf08   : > { %v4151_v8 = vmul.f32 %v13165_v24, %v13196_v48  ;;  %v11398_v21 = vadd.f32 %v4119_v54, %v4103_v19  ;;  %v4167_v23 = vmul.f32 %v13197_v40, %v13166_v61  ;;  %v4104_v56 = vmul.f32 %v13199_v25, %v13161_v51 }
 0xf09   : > { %v4120_v7 = vmul.f32 %v13200_v53, %v13163_v15  ;;  %v4940_v18 = vadd.f32 %v4924_v45, %v4908_v39  ;;  %v4909_v17 = vadd.f32 %v4893_v27, %v4877_v12  ;;  %v4925_v47 = vmul.f32 %v11378_v26, %v13183_v13  ;;  %v13202_v45 = vld [vmem:[#allocation94_spill] sm:$0xff]  ;;  %v4849_v39 = vpop.permute.xlu0 %4848 }
 0xf0a   : > { %5001 = vmax.xlane.f32.xlu0 %v11391_v3  ;;  %v4894_v59 = vmul.f32 %v11388_v58, %v13180_v50  ;;  %v11411_v11 = vadd.f32 %v4969_v52, %v13201_v62  ;;  %v4970_v10 = vmax.f32 %v4938_v1, %v4954_v38  ;;  %v4955_v48 = vmul.f32 0.01, %v4939_v37  ;;  %v13203_v1 = vld [vmem:[#allocation96_spill] sm:$0xff] }
 0xf0b   : > { %v4878_v19 = vadd.f32 %v11305_v42, %v11218_v28  ;;  %v4926_v40 = vmul.f32 %v11393_v55, %v13183_v13  ;;  %v4106_v54 = vmul.f32 %v13202_v45, %v13161_v51  ;;  %v11420_v12 = vadd.f32 %v4167_v23, %v4151_v8 }
 0xf0c   : > { %v4895_v27 = vmul.f32 %v11398_v21, %v13180_v50  ;;  %v11424_v0 = vadd.f32 %v4120_v7, %v4104_v56  ;;  %v4122_v52 = vmul.f32 %v13203_v1, %v13163_v15  ;;  %v4956_v28 = vmul.f32 0.01, %v4940_v18  ;;  %v13205_v7 = vld [vmem:[#allocation97_spill] sm:$0xff] }
 0xf0d   : > { %v4941_v38 = vadd.f32 %v4925_v47, %v4909_v17  ;;  %v4152_v62 = vmul.f32 %v13165_v24, %v13199_v25  ;;  %v4168_v14 = vmul.f32 %v13200_v53, %v13166_v61  ;;  %v11433_v34 = vadd.f32 %v4970_v10, %v13204_v35 }
 0xf0e   : > { %5003 = vmax.xlane.f32.xlu0 %v11411_v11  ;;  %v4971_v8 = vmax.f32 %v4939_v37, %v4955_v48  ;;  %v4910_v23 = vadd.f32 %v4894_v59, %v4878_v19  ;;  %v4879_v56 = vadd.f32 %v11305_v42, %v11230_v41  ;;  %v4107_v20 = vmul.f32 %v13205_v7, %v13161_v51  ;;  %v4853_v48 = vpop.permute.xlu0 %4852  ;;  %v13207_v19 = vld [vmem:[#allocation89_spill] sm:$0xff] }
 0xf0f   : > { %v4123_v17 = vmul.f32 %v13206_v2, %v13163_v15  ;;  %v4927_v25 = vmul.f32 %v11420_v12, %v13183_v13  ;;  %v11444_v53 = vadd.f32 %v4122_v52, %v4106_v54  ;;  %v4154_v35 = vmul.f32 %v13165_v24, %v13202_v45 }
 0xf10   : > { %v4170_v37 = vmul.f32 %v13203_v1, %v13166_v61  ;;  %v4972_v41 = vmax.f32 %v4940_v18, %v4956_v28  ;;  %v4957_v47 = vmul.f32 0.01, %v4941_v38  ;;  %v11450_v59 = vadd.f32 %v4168_v14, %v4152_v62  ;;  %v13209_v62 = vld [vmem:[#allocation92_spill] sm:$0xff] }
 0xf11   : > { %v4896_v10 = vmul.f32 %v11424_v0, %v13180_v50  ;;  %v11455_v29 = vadd.f32 %v4971_v8, %v13207_v19  ;;  %v4942_v4 = vadd.f32 %v4926_v40, %v4910_v23  ;;  %v4911_v54 = vadd.f32 %v4895_v27, %v4879_v56  ;;  %v13208_v40 = vld [vmem:[#allocation99_spill] sm:$0xff]  ;;  %v13210_v23 = vld [vmem:[#allocation101_spill] sm:$0xff] }
 0xf12   : > { %5005 = vmax.xlane.f32.xlu0 %v11433_v34  ;;  %v4880_v52 = vadd.f32 %v11305_v42, %v11274_v6  ;;  %v11459_v45 = vadd.f32 %v4123_v17, %v4107_v20  ;;  %v4155_v18 = vmul.f32 %v13165_v24, %v13205_v7  ;;  %v11464_v14 = vadd.f32 %v4170_v37, %v4154_v35 }
 0xf13   : > { %v4898_v1 = vmul.f32 %v11444_v53, %v13180_v50  ;;  %v4171_v28 = vmul.f32 %v13206_v2, %v13166_v61  ;;  %v4108_v27 = vmul.f32 %v13208_v40, %v13161_v51  ;;  %v11473_v6 = vadd.f32 %v4972_v41, %v13209_v62  ;;  %v4857_v41 = vpop.permute.xlu0 %4856 }
 0xf14   : > { %v4973_v20 = vmax.f32 %v4941_v38, %v4957_v47  ;;  %v4928_v8 = vmul.f32 %v11450_v59, %v13183_v13  ;;  %v4124_v56 = vmul.f32 %v13210_v23, %v13163_v15  ;;  %v4958_v7 = vmul.f32 0.01, %v4942_v4 }
 0xf15   : > { %v4943_v17 = vadd.f32 %v4927_v25, %v4911_v54  ;;  %v4912_v35 = vadd.f32 %v4896_v10, %v4880_v52  ;;  %v4882_v37 = vadd.f32 %v11305_v42, %v4849_v39  ;;  %v4899_v2 = vmul.f32 %v11459_v45, %v13180_v50  ;;  %v13211_v10 = vld [vmem:[#allocation102_spill] sm:$0xff]  ;;  %v13212_v54 = vld [vmem:[#allocation95_spill] sm:$0xff] }
 0xf16   : > { %5007 = vmax.xlane.f32.xlu0 %v11455_v29  ;;  %v4156_v19 = vmul.f32 %v13165_v24, %v13208_v40  ;;  %v4930_v38 = vmul.f32 %v11464_v14, %v13183_v13  ;;  %v11487_v47 = vadd.f32 %v4171_v28, %v4155_v18  ;;  %v4172_v25 = vmul.f32 %v13210_v23, %v13166_v61 }
 0xf17   : > { %v4109_v39 = vmul.f32 %v13211_v10, %v13161_v51  ;;  %v11494_v52 = vadd.f32 %v4973_v20, %v13212_v54  ;;  %v4883_v62 = vadd.f32 %v11305_v42, %v4853_v48  ;;  %v11497_v40 = vadd.f32 %v4124_v56, %v4108_v27  ;;  %v13214_v20 = vld [vmem:[#allocation105_spill] sm:$0xff] }
 0xf18   : > { %v4974_v32 = vmax.f32 %v4942_v4, %v4958_v7  ;;  %v4959_v22 = vmul.f32 0.01, %v4943_v17  ;;  %v4944_v18 = vadd.f32 %v4928_v8, %v4912_v35  ;;  %v4914_v28 = vadd.f32 %v4898_v1, %v4882_v37  ;;  %v13215_v4 = vld [vmem:[#allocation107_spill] sm:$0xff]  ;;  %v4861_v37 = vpop.permute.xlu0 %4860 }
 0xf19   : > { %v4157_v23 = vmul.f32 %v13165_v24, %v13211_v10  ;;  %v4931_v48 = vmul.f32 %v11487_v47, %v13183_v13  ;;  %v11508_v27 = vadd.f32 %v4172_v25, %v4156_v19  ;;  %v4110_v56 = vmul.f32 %v13214_v20, %v13161_v51  ;;  %v13216_v10 = vld [vmem:[#allocation100_spill] sm:$0xff] }
 0xf1a   : > { %5009 = vmax.xlane.f32.xlu0 %v11473_v6  ;;  %v4126_v8 = vmul.f32 %v13215_v4, %v13163_v15  ;;  %v4915_v1 = vadd.f32 %v4899_v2, %v4883_v62  ;;  %v4884_v7 = vadd.f32 %v11305_v42, %v4857_v41  ;;  %v4900_v35 = vmul.f32 %v11497_v40, %v13180_v50 }
 0xf1b   : > { %v11517_v5 = vadd.f32 %v4125_v33, %v4109_v39  ;;  %v11520_v54 = vadd.f32 %v4974_v32, %v13216_v10  ;;  %v4975_v19 = vmax.f32 %v4943_v17, %v4959_v22  ;;  %v4960_v25 = vmul.f32 0.01, %v4944_v18  ;;  %v13217_v17 = vld [vmem:[#allocation103_spill] sm:$0xff]  ;;  %v13219_v10 = vld [vmem:[#allocation108_spill] sm:$0xff] }
 0xf1c   : > { %v4946_v36 = vadd.f32 %v4930_v38, %v4914_v28  ;;  %v4932_v51 = vmul.f32 %v11508_v27, %v13183_v13  ;;  %v11525_v15 = vadd.f32 %v4173_v49, %v4157_v23  ;;  %v11527_v2 = vadd.f32 %v4126_v8, %v4110_v56  ;;  %v4865_v23 = vpop.permute.xlu0 %4864 }
 0xf1d   : > { %v4158_v33 = vmul.f32 %v13165_v24, %v13214_v20  ;;  %v4916_v41 = vadd.f32 %v4900_v35, %v4884_v7  ;;  %v4885_v39 = vadd.f32 %v11305_v42, %v4861_v37  ;;  %v4901_v22 = vmul.f32 %v11517_v5, %v13180_v50 }
 0xf1e   : > { %5011 = vmax.xlane.f32.xlu0 %v11494_v52  ;;  %v4174_v32 = vmul.f32 %v13215_v4, %v13166_v61  ;;  %v11537_v38 = vadd.f32 %v4975_v19, %v13217_v17  ;;  %v4976_v62 = vmax.f32 %v4944_v18, %v4960_v25  ;;  %v4962_v49 = vmul.f32 0.01, %v4946_v36  ;;  %v13218_v4 = vld [vmem:[#allocation106_spill] sm:$0xff] }
 0xf1f   : > { %v4947_v28 = vadd.f32 %v4931_v48, %v4915_v1  ;;  %v4933_v24 = vmul.f32 %v11525_v15, %v13183_v13  ;;  %v4917_v20 = vadd.f32 %v4901_v22, %v4885_v39  ;;  %v4886_v8 = vadd.f32 %v11305_v42, %v4865_v23  ;;  %v13223_v23 = vld [vmem:[#allocation112_spill] sm:$0xff] }
 0xf20   : > { %v11542_v56 = vadd.f32 %v4174_v32, %v4158_v33  ;;  %v4902_v61 = vmul.f32 %v11527_v2, %v13180_v50  ;;  %v11548_v7 = vadd.f32 %v4976_v62, %v13218_v4  ;;  %v4978_v18 = vmax.f32 %v4946_v36, %v4962_v49  ;;  %v13220_v50 = vld [vmem:[#allocation109_spill] sm:$0xff]  ;;  %v13222_v62 = vld [vmem:[#allocation111_spill] sm:$0xff] }
 0xf21   : > { %v4963_v35 = vmul.f32 0.01, %v4947_v28  ;;  %v4948_v48 = vadd.f32 %v4932_v51, %v4916_v41  ;;  %v4949_v33 = vadd.f32 %v4933_v24, %v4917_v20  ;;  %v13221_v41 = vld [vmem:[#allocation110_spill] sm:$0xff] }
 0xf22   : > { %5013 = vmax.xlane.f32.xlu0 %v11520_v54  ;;  %v4918_v1 = vadd.f32 %v4902_v61, %v4886_v8  ;;  %v4934_v37 = vmul.f32 %v11542_v56, %v13183_v13  ;;  %v11554_v19 = vadd.f32 %v4978_v18, %v13219_v10 }
 0xf23   : > { %v4979_v25 = vmax.f32 %v4947_v28, %v4963_v35  ;;  %v4964_v42 = vmul.f32 0.01, %v4948_v48  ;;  %v4965_v22 = vmul.f32 0.01, %v4949_v33 }
 0xf24   : > { %v4950_v51 = vadd.f32 %v4934_v37, %v4918_v1 }
 0xf25   : > { %v11558_v39 = vadd.f32 %v4979_v25, %v13220_v50  ;;  %v4980_v36 = vmax.f32 %v4948_v48, %v4964_v42  ;;  %v4981_v13 = vmax.f32 %v4949_v33, %v4965_v22 }
 0xf26   : > { %5015 = vmax.xlane.f32.xlu0 %v11537_v38  ;;  %v4966_v17 = vmul.f32 0.01, %v4950_v51 }
 0xf27   : > { %v11562_v32 = vadd.f32 %v4980_v36, %v13221_v41  ;;  %v11566_v49 = vadd.f32 %v4981_v13, %v13222_v62 }
 0xf28   : > { %v4982_v28 = vmax.f32 %v4950_v51, %v4966_v17 }
 0xf2a   : > { %5017 = vmax.xlane.f32.xlu0 %v11548_v7  ;;  %v11570_v24 = vadd.f32 %v4982_v28, %v13223_v23 }
 0xf2e   : > { %5021 = vmax.xlane.f32.xlu0 %v11554_v19 }
 0xf32   : > { %5023 = vmax.xlane.f32.xlu0 %v11558_v39 }
 0xf36   : > { %5025 = vmax.xlane.f32.xlu0 %v11562_v32 }
 0xf3a   : > { %5027 = vmax.xlane.f32.xlu0 %v11566_v49 }
 0xf3e   : > { %5029 = vmax.xlane.f32.xlu0 %v11570_v24 }
 0xf8f   : > { %v5000_v20 = vpop.xlane.xlu0 %4999  ;;  %v5020_v62 = vpop.xlane.xlu1 %5019 }
 0xf90   : > { %v5031_v8 = vsub.f32 %v11368_v46, %v5000_v20  ;;  %v5041_v20 = vsub.f32 %v11365_v60, %v5020_v62 }
 0xf92   : > { %v5047_v61 = vmul.f32 1.442695, %v5031_v8 }
 0xf93   : > { %v5002_v4 = vpop.xlane.xlu0 %5001 }
 0xf94   : > { %v5032_v18 = vsub.f32 %v11391_v3, %v5002_v4  ;;  %7876 = vpow2.f32 %v5047_v61 }
 0xf96   : > { %v5049_v35 = vmul.f32 1.442695, %v5032_v18  ;;  %v5067_v18 = vmul.f32 1.442695, %v5041_v20 }
 0xf97   : > { %v5004_v48 = vpop.xlane.xlu0 %5003 }
 0xf98   : > { %7878 = vpow2.f32 %v5049_v35  ;;  %v5033_v1 = vsub.f32 %v11411_v11, %v5004_v48 }
 0xf9a   : > { %v5051_v37 = vmul.f32 1.442695, %v5033_v1 }
 0xf9b   : > { %v5006_v10 = vpop.xlane.xlu0 %5005 }
 0xf9c   : > { %7880 = vpow2.f32 %v5051_v37  ;;  %v5034_v25 = vsub.f32 %v11433_v34, %v5006_v10 }
 0xf9e   : > { %v5053_v42 = vmul.f32 1.442695, %v5034_v25 }
 0xf9f   : > { %v5008_v33 = vpop.xlane.xlu0 %5007 }
 0xfa0   : > { %7882 = vpow2.f32 %v5053_v42  ;;  %v5035_v46 = vsub.f32 %v11455_v29, %v5008_v33 }
 0xfa1   : > { %v11578_v50 = vpop.eup %7876 }
 0xfa2   : > { %v5055_v36 = vmul.f32 1.442695, %v5035_v46  ;;  %5079 = vadd.xlane.f32.xlu0 %v11578_v50 }
 0xfa3   : > { %v5010_v3 = vpop.xlane.xlu0 %5009 }
 0xfa4   : > { %7884 = vpow2.f32 %v5055_v36  ;;  %v5036_v22 = vsub.f32 %v11473_v6, %v5010_v3 }
 0xfa5   : > { %v11582_v11 = vpop.eup %7878 }
 0xfa6   : > { %v5057_v51 = vmul.f32 1.442695, %v5036_v22  ;;  %5081 = vadd.xlane.f32.xlu0 %v11582_v11 }
 0xfa7   : > { %v5012_v34 = vpop.xlane.xlu0 %5011 }
 0xfa8   : > { %7886 = vpow2.f32 %v5057_v51  ;;  %v5037_v41 = vsub.f32 %v11494_v52, %v5012_v34 }
 0xfa9   : > { %v11586_v13 = vpop.eup %7880 }
 0xfaa   : > { %v5059_v29 = vmul.f32 1.442695, %v5037_v41  ;;  %5083 = vadd.xlane.f32.xlu0 %v11586_v13 }
 0xfab   : > { %v5014_v17 = vpop.xlane.xlu0 %5013 }
 0xfac   : > { %7888 = vpow2.f32 %v5059_v29  ;;  %v5038_v28 = vsub.f32 %v11520_v54, %v5014_v17 }
 0xfad   : > { %v11590_v6 = vpop.eup %7882 }
 0xfae   : > { %v5061_v23 = vmul.f32 1.442695, %v5038_v28  ;;  %5085 = vadd.xlane.f32.xlu0 %v11590_v6 }
 0xfaf   : > { %v5016_v8 = vpop.xlane.xlu0 %5015 }
 0xfb0   : > { %7890 = vpow2.f32 %v5061_v23  ;;  %v5039_v52 = vsub.f32 %v11537_v38, %v5016_v8 }
 0xfb1   : > { %v11595_v61 = vpop.eup %7884 }
 0xfb2   : > { %v5063_v4 = vmul.f32 1.442695, %v5039_v52  ;;  %5087 = vadd.xlane.f32.xlu0 %v11595_v61 }
 0xfb3   : > { %v5018_v35 = vpop.xlane.xlu0 %5017 }
 0xfb4   : > { %7892 = vpow2.f32 %v5063_v4  ;;  %v5040_v54 = vsub.f32 %v11548_v7, %v5018_v35 }
 0xfb5   : > { %v11599_v48 = vpop.eup %7886  ;;  %7894 = vpow2.f32 %v5067_v18 }
 0xfb6   : > { %v5065_v1 = vmul.f32 1.442695, %v5040_v54  ;;  %5089 = vadd.xlane.f32.xlu1 %v11599_v48 }
 0xfb7   : > { %v5022_v60 = vpop.xlane.xlu0 %5021 }
 0xfb8   : > { %7896 = vpow2.f32 %v5065_v1  ;;  %v5042_v38 = vsub.f32 %v11554_v19, %v5022_v60 }
 0xfb9   : > { %v11603_v37 = vpop.eup %7888 }
 0xfba   : > { %v5069_v10 = vmul.f32 1.442695, %v5042_v38  ;;  %5091 = vadd.xlane.f32.xlu0 %v11603_v37 }
 0xfbb   : > { %v5024_v25 = vpop.xlane.xlu0 %5023 }
 0xfbc   : > { %7898 = vpow2.f32 %v5069_v10  ;;  %v5043_v42 = vsub.f32 %v11558_v39, %v5024_v25 }
 0xfbd   : > { %v11607_v7 = vpop.eup %7890 }
 0xfbe   : > { %v5071_v33 = vmul.f32 1.442695, %v5043_v42  ;;  %5093 = vadd.xlane.f32.xlu1 %v11607_v7 }
 0xfbf   : > { %v5026_v46 = vpop.xlane.xlu0 %5025 }
 0xfc0   : > { %7900 = vpow2.f32 %v5071_v33  ;;  %v5044_v36 = vsub.f32 %v11562_v32, %v5026_v46 }
 0xfc1   : > { %v11611_v3 = vpop.eup %7892 }
 0xfc2   : > { %v5073_v19 = vmul.f32 1.442695, %v5044_v36  ;;  %5095 = vadd.xlane.f32.xlu0 %v11611_v3  ;;  %v11614_v51 = vpop.eup %7894 }
 0xfc3   : > { %v5028_v22 = vpop.xlane.xlu0 %5027 }
 0xfc4   : > { %7902 = vpow2.f32 %v5073_v19  ;;  %v5045_v39 = vsub.f32 %v11566_v49, %v5028_v22 }
 0xfc5   : > { %v11617_v34 = vpop.eup %7896 }
 0xfc6   : > { %v5075_v41 = vmul.f32 1.442695, %v5045_v39  ;;  %5099 = vadd.xlane.f32.xlu0 %v11614_v51  ;;  %5097 = vadd.xlane.f32.xlu1 %v11617_v34 }
 0xfc7   : > { %v5030_v29 = vpop.xlane.xlu0 %5029 }
 0xfc8   : > { %7904 = vpow2.f32 %v5075_v41  ;;  %v5046_v32 = vsub.f32 %v11570_v24, %v5030_v29 }
 0xfc9   : > { %v11622_v17 = vpop.eup %7898 }
 0xfca   : > { %v5077_v62 = vmul.f32 1.442695, %v5046_v32  ;;  %5101 = vadd.xlane.f32.xlu1 %v11622_v17 }
 0xfcc   : > { %7906 = vpow2.f32 %v5077_v62 }
 0xfcd   : > { %v11625_v28 = vpop.eup %7900 }
 0xfce   : > { %5103 = vadd.xlane.f32.xlu0 %v11625_v28 }
 0xfd1   : > { %v11628_v49 = vpop.eup %7902 }
 0xfd2   : > { %5105 = vadd.xlane.f32.xlu1 %v11628_v49 }
 0xfd5   : > { %v11631_v23 = vpop.eup %7904 }
 0xfd6   : > { %5107 = vadd.xlane.f32.xlu0 %v11631_v23 }
 0xfd9   : > { %v11634_v20 = vpop.eup %7906 }
 0xfda   : > { %5109 = vadd.xlane.f32.xlu1 %v11634_v20 }
0x102b   : > { %v5080_v24 = vpop.xlane.xlu0 %5079 }
0x102c   : > { %7908 = vrcp.f32 %v5080_v24 }
0x102f   : > { %v5082_v8 = vpop.xlane.xlu0 %5081 }
0x1030   : > { %7910 = vrcp.f32 %v5082_v8 }
0x1033   : > { %v5084_v52 = vpop.xlane.xlu0 %5083 }
0x1034   : > { %7912 = vrcp.f32 %v5084_v52 }
0x1037   : > { %v5086_v4 = vpop.xlane.xlu0 %5085 }
0x1038   : > { %7914 = vrcp.f32 %v5086_v4 }
0x1039   : > { %v7909_v18 = vpop.eup %7908 }
0x103a   : > { %v11638_v1 = vmul.f32 %v7909_v18, %v11578_v50 }
0x103b   : > { %v5088_v35 = vpop.xlane.xlu0 %5087 }
0x103c   : > { %7916 = vrcp.f32 %v5088_v35 }
0x103d   : > { %v7911_v54 = vpop.eup %7910 }
0x103e   : > { %v11641_v60 = vmul.f32 %v7911_v54, %v11582_v11 }
0x103f   : > { %v5090_v38 = vpop.xlane.xlu1 %5089 }
0x1040   : > { %7918 = vrcp.f32 %v5090_v38  ;;  %v5143_v10 = vpack.c.bf16 %v11641_v60, %v11638_v1 }
0x1041   : > { %v7913_v42 = vpop.eup %7912 }
0x1042   : > { %5312 = vmatmul.mubr.bf16.vlgmr.msra.gmra.mxu0 %v5143_v10  ;;  %v11647_v36 = vmul.f32 %v7913_v42, %v11586_v13 }
0x1043   : > { %v5092_v25 = vpop.xlane.xlu0 %5091  ;;  %5321 = vmatprep.mubr.bf16.mxu0 %v13078_v16 }
0x1044   : > { %7920 = vrcp.f32 %v5092_v25 }
0x1045   : > { %v7915_v33 = vpop.eup %7914 }
0x1046   : > { %v11650_v50 = vmul.f32 %v7915_v33, %v11590_v6 }
0x1047   : > { %v5094_v46 = vpop.xlane.xlu1 %5093 }
0x1048   : > { %7922 = vrcp.f32 %v5094_v46  ;;  %v5144_v11 = vpack.c.bf16 %v11650_v50, %v11647_v36 }
0x1049   : > { %v7917_v19 = vpop.eup %7916 }
0x104a   : > { %5322 = vmatmul.mubr.bf16.gmra.mxu0 %v5144_v11  ;;  %v11656_v41 = vmul.f32 %v7917_v19, %v11595_v61 }
0x104b   : > { %v5096_v22 = vpop.xlane.xlu0 %5095  ;;  %5331 = vmatprep.mubr.bf16.mxu0 %v13078_v16 }
0x104c   : > { %7924 = vrcp.f32 %v5096_v22 }
0x104d   : > { %v7919_v39 = vpop.eup %7918 }
0x104e   : > { %v11659_v13 = vmul.f32 %v7919_v39, %v11599_v48 }
0x104f   : > { %v5098_v29 = vpop.xlane.xlu1 %5097  ;;  %v5100_v24 = vpop.xlane.xlu0 %5099 }
0x1050   : > { %7926 = vrcp.f32 %v5098_v29  ;;  %v5145_v6 = vpack.c.bf16 %v11659_v13, %v11656_v41 }
0x1051   : > { %v7921_v32 = vpop.eup %7920 }
0x1052   : > { %5332 = vmatmul.mubr.bf16.gmra.mxu0 %v5145_v6  ;;  %v11665_v52 = vmul.f32 %v7921_v32, %v11603_v37 }
0x1053   : > { %v5102_v62 = vpop.xlane.xlu1 %5101  ;;  %5341 = vmatprep.mubr.bf16.mxu0 %v13078_v16 }
0x1054   : > { %7928 = vrcp.f32 %v5102_v62 }
0x1055   : > { %v7923_v8 = vpop.eup %7922  ;;  %7930 = vrcp.f32 %v5100_v24 }
0x1056   : > { %v11668_v61 = vmul.f32 %v7923_v8, %v11607_v7 }
0x1057   : > { %v5104_v18 = vpop.xlane.xlu0 %5103 }
0x1058   : > { %v5146_v48 = vpack.c.bf16 %v11668_v61, %v11665_v52 }
0x1059   : > { %v7925_v4 = vpop.eup %7924 }
0x105a   : > { %5342 = vmatmul.mubr.bf16.gmra.mxu0 %v5146_v48  ;;  %v5135_v38 = vmul.f32 %v7925_v4, %v11611_v3 }
0x105b   : > { %v5106_v35 = vpop.xlane.xlu1 %5105  ;;  %5351 = vmatprep.mubr.bf16.mxu0 %v13078_v16 }
0x105c   : > { %7932 = vrcp.f32 %v5106_v35 }
0x105d   : > { %v7927_v54 = vpop.eup %7926  ;;  %7934 = vrcp.f32 %v5104_v18  ;;  %v13230_v18 = vld [vmem:[#allocation34_spill] sm:$0xff] }
0x105e   : > { %v5136_v37 = vmul.f32 %v7927_v54, %v11617_v34  ;;  %v5199_v35 = vmul.f32 %v11638_v1, %v13230_v18  ;;  %v13231_v54 = vld [vmem:[#allocation30_spill] sm:$0xff] }
0x105f   : > { %v5108_v10 = vpop.xlane.xlu0 %5107 }
0x1060   : > { %7936 = vrcp.f32 %v5108_v10  ;;  %v5147_v7 = vpack.c.bf16 %v5136_v37, %v5135_v38  ;;  %v5160_v48 = vmul.f32 %v5136_v37, %v11424_v0  ;;  %v5155_v0 = vmul.f32 %v11656_v41, %v11328_v63 }
0x1061   : > { %v7929_v25 = vpop.eup %7928 }
0x1062   : > { %5352 = vmatmul.mubr.bf16.gmra.mxu0 %v5147_v7  ;;  %v7931_v33 = vpop.eup %7930  ;;  %v5138_v46 = vmul.f32 %v7929_v25, %v11622_v17 }
0x1063   : > { %v5110_v42 = vpop.xlane.xlu1 %5109  ;;  %5361 = vmatprep.mubr.bf16.mxu0 %v13078_v16  ;;  %v5137_v11 = vmul.f32 %v7931_v33, %v11614_v51 }
0x1064   : > { %7938 = vrcp.f32 %v5110_v42 }
0x1065   : > { %v5148_v19 = vpack.c.bf16 %v5138_v46, %v5137_v11 }
0x1069   : > { %v7933_v22 = vpop.eup %7932 }
0x106a   : > { %5362 = vmatmul.mubr.bf16.gmra.mxu0 %v5148_v19  ;;  %v7935_v3 = vpop.eup %7934  ;;  %v5140_v39 = vmul.f32 %v7933_v22, %v11628_v49 }
0x106b   : > { %5371 = vmatprep.mubr.bf16.mxu0 %v13078_v16  ;;  %v5139_v6 = vmul.f32 %v7935_v3, %v11625_v28 }
0x106d   : > { %v7937_v34 = vpop.eup %7936  ;;  %v5149_v24 = vpack.c.bf16 %v5140_v39, %v5139_v6  ;;  %v5163_v28 = vmul.f32 %v5139_v6, %v11459_v45  ;;  %v5162_v45 = vmul.f32 %v5138_v46, %v11444_v53  ;;  %v5157_v53 = vmul.f32 %v11665_v52, %v11356_v43 }
0x106e   : > { %v5141_v29 = vmul.f32 %v7937_v34, %v11631_v23  ;;  %v5156_v43 = vmul.f32 %v11659_v13, %v11332_v31  ;;  %v13227_v31 = vld [vmem:[#allocation32_spill] sm:$0xff] }
0x1070   : > { %v5165_v32 = vmul.f32 %v5141_v29, %v11517_v5  ;;  %v5213_v8 = vmul.f32 %v5141_v29, %v11525_v15  ;;  %v5164_v5 = vmul.f32 %v5140_v39, %v11497_v40  ;;  %v5212_v15 = vmul.f32 %v5140_v39, %v11508_v27 }
0x1071   : > { %v7939_v62 = vpop.eup %7938  ;;  %v5210_v40 = vmul.f32 %v5138_v46, %v11464_v14  ;;  %v5207_v27 = vmul.f32 %v5135_v38, %v11420_v12  ;;  %v5206_v12 = vmul.f32 %v11668_v61, %v11393_v55  ;;  %v13225_v55 = vld [vmem:[#allocation29_spill] sm:$0xff] }
0x1072   : > { %5195 = vadd.xlane.f32.xlu0 %v5165_v32  ;;  %v5142_v51 = vmul.f32 %v7939_v62, %v11634_v20  ;;  %5372 = vmatmul.mubr.bf16.gmra.mxu0 %v5149_v24  ;;  %v5211_v20 = vmul.f32 %v5139_v6, %v11487_v47  ;;  %v5159_v47 = vmul.f32 %v5135_v38, %v11398_v21 }
0x1073   : > { %5381 = vmatprep.mubr.bf16.mxu0 %v13078_v16  ;;  %v5205_v21 = vmul.f32 %v11665_v52, %v11378_v26  ;;  %v5204_v26 = vmul.f32 %v11659_v13, %v11348_v57  ;;  %v5154_v63 = vmul.f32 %v11650_v50, %v13225_v55  ;;  %v13226_v52 = vld [vmem:[#allocation31_spill] sm:$0xff] }
0x1074   : > { %v5166_v17 = vmul.f32 %v5142_v51, %v11527_v2  ;;  %v5214_v49 = vmul.f32 %v5142_v51, %v11542_v56  ;;  %v5150_v23 = vpack.c.bf16 %v5142_v51, %v5141_v29  ;;  %v5161_v2 = vmul.f32 %v5137_v11, %v11240_v9  ;;  %v13229_v57 = vld [vmem:[#allocation35_spill] sm:$0xff] }
0x1075   : > { %v5209_v56 = vmul.f32 %v5137_v11, %v11242_v44  ;;  %v5208_v9 = vmul.f32 %v5136_v37, %v11450_v59  ;;  %v5158_v44 = vmul.f32 %v11668_v61, %v11388_v58  ;;  %v5203_v59 = vmul.f32 %v11656_v41, %v11330_v30  ;;  %v13224_v58 = vld [vmem:[#allocation33_spill] sm:$0xff] }
0x1076   : > { %5197 = vadd.xlane.f32.xlu1 %v5166_v17  ;;  %5243 = vadd.xlane.f32.xlu0 %v5213_v8  ;;  %v5153_v14 = vmul.f32 %v11647_v36, %v13224_v58  ;;  %v5201_v61 = vmul.f32 %v11647_v36, %v13226_v52  ;;  %v5202_v30 = vmul.f32 %v11650_v50, %v13227_v31  ;;  %v13228_v41 = vld [vmem:[#allocation37_spill] sm:$0xff] }
0x1077   : > { %v5151_v4 = vmul.f32 %v11638_v1, %v13228_v41  ;;  %v5152_v13 = vmul.f32 %v11641_v60, %v13229_v57  ;;  %v5200_v36 = vmul.f32 %v11641_v60, %v13231_v54 }
0x107a   : > { %5245 = vadd.xlane.f32.xlu1 %v5214_v49  ;;  %5191 = vadd.xlane.f32.xlu0 %v5163_v28 }
0x107b   : > { %5382 = vmatmul.mubr.bf16.gmra.mxu0 %v5150_v23 }
0x107c   : > { %6009 = vmatprep.mubr.bf16.mxu0 %v13078_v16 }
0x107e   : > { %5193 = vadd.xlane.f32.xlu1 %v5164_v5  ;;  %5239 = vadd.xlane.f32.xlu0 %v5211_v20 }
0x1082   : > { %5241 = vadd.xlane.f32.xlu1 %v5212_v15  ;;  %5187 = vadd.xlane.f32.xlu0 %v5161_v2 }
0x1086   : > { %5189 = vadd.xlane.f32.xlu1 %v5162_v45  ;;  %5235 = vadd.xlane.f32.xlu0 %v5209_v56 }
0x108a   : > { %5237 = vadd.xlane.f32.xlu1 %v5210_v40  ;;  %5183 = vadd.xlane.f32.xlu0 %v5159_v47 }
0x108e   : > { %5185 = vadd.xlane.f32.xlu1 %v5160_v48  ;;  %5231 = vadd.xlane.f32.xlu0 %v5207_v27  ;;  %v13238_v27 = vld [vmem:[#allocation131_spill] sm:$0xff] }
0x1092   : > { %5233 = vadd.xlane.f32.xlu1 %v5208_v9  ;;  %5179 = vadd.xlane.f32.xlu0 %v5157_v53  ;;  %v13239_v53 = vld [vmem:[#allocation28_spill] sm:$0xff] }
0x1096   : > { %5181 = vadd.xlane.f32.xlu1 %v5158_v44  ;;  %5227 = vadd.xlane.f32.xlu0 %v5205_v21 }
0x109a   : > { %5229 = vadd.xlane.f32.xlu1 %v5206_v12  ;;  %5175 = vadd.xlane.f32.xlu0 %v5155_v0 }
0x109e   : > { %5177 = vadd.xlane.f32.xlu1 %v5156_v43  ;;  %5223 = vadd.xlane.f32.xlu0 %v5203_v59  ;;  %v13243_v43 = vld [vmem:[#allocation135_spill] sm:$0xff] }
0x10a2   : > { %5225 = vadd.xlane.f32.xlu1 %v5204_v26  ;;  %5171 = vadd.xlane.f32.xlu0 %v5153_v14  ;;  %v13244_v26 = vld [vmem:[#allocation142_spill] sm:$0xff] }
0x10a6   : > { %5173 = vadd.xlane.f32.xlu1 %v5154_v63  ;;  %5219 = vadd.xlane.f32.xlu0 %v5201_v61 }
0x10aa   : > { %5221 = vadd.xlane.f32.xlu1 %v5202_v30  ;;  %5167 = vadd.xlane.f32.xlu0 %v5151_v4 }
0x10ae   : > { %5169 = vadd.xlane.f32.xlu1 %v5152_v13  ;;  %5215 = vadd.xlane.f32.xlu0 %v5199_v35 }
0x10b2   : > { %5217 = vadd.xlane.f32.xlu1 %v5200_v36 }
0x10fb   : > { %v5196_v38 = vpop.xlane.xlu0 %5195 }
0x10fc   : > { %v11766_v9 = vmul.f32 %v5196_v38, %v13238_v27  ;;  %v11769_v44 = vmul.f32 %v5196_v38, %v13239_v53 }
0x10fe   : > { %13240 = vst [vmem:[#allocation61_spill] sm:$0xff] %v11769_v44 }
0x10ff   : > { %v5198_v37 = vpop.xlane.xlu1 %5197  ;;  %v5244_v50 = vpop.xlane.xlu0 %5243 }
0x1100   : > { %v11772_v12 = vmul.f32 %v5198_v37, %v13238_v27  ;;  %v11775_v0 = vmul.f32 %v5198_v37, %v13239_v53  ;;  %v11778_v59 = vmul.f32 %v5244_v50, %v13243_v43  ;;  %v11781_v58 = vmul.f32 %v5244_v50, %v13244_v26 }
0x1102   : > { %v11733_v10 = vpop.f32.mrf.mxu0  ;;  %13241 = vst [vmem:[#allocation62_spill] sm:$0xff] %v11772_v12  ;;  %13242 = vst [vmem:[#allocation63_spill] sm:$0xff] %v11775_v0 }
0x1103   : > { %13232 = vst [vmem:[#allocation58_spill] sm:$0xff] %v11733_v10  ;;  %v5246_v7 = vpop.xlane.xlu1 %5245  ;;  %v5192_v25 = vpop.xlane.xlu0 %5191  ;;  %13245 = vst [vmem:[#allocation65_spill] sm:$0xff] %v11781_v58 }
0x1104   : > { %v11735_v42 = vpop.f32.mrf.mxu0  ;;  %v11784_v55 = vmul.f32 %v5246_v7, %v13243_v43  ;;  %v11787_v63 = vmul.f32 %v5246_v7, %v13244_v26  ;;  %v11790_v52 = vmul.f32 %v5192_v25, %v13238_v27  ;;  %v11793_v61 = vmul.f32 %v5192_v25, %v13239_v53 }
0x1105   : > { %13233 = vst [vmem:[#allocation57_spill] sm:$0xff] %v11735_v42 }
0x1106   : > { %v11737_v33 = vpop.f32.mrf.mxu0  ;;  %13246 = vst [vmem:[#allocation70_spill] sm:$0xff] %v11784_v55  ;;  %13247 = vst [vmem:[#allocation71_spill] sm:$0xff] %v11787_v63 }
0x1107   : > { %13234 = vst [vmem:[#allocation59_spill] sm:$0xff] %v11737_v33  ;;  %v5194_v46 = vpop.xlane.xlu1 %5193  ;;  %v5240_v11 = vpop.xlane.xlu0 %5239 }
0x1108   : > { %v11739_v1 = vpop.f32.mrf.mxu0  ;;  %v11798_v41 = vmul.f32 %v5194_v46, %v13238_v27  ;;  %v11801_v4 = vmul.f32 %v5194_v46, %v13239_v53  ;;  %v11804_v57 = vmul.f32 %v5240_v11, %v13243_v43  ;;  %v11808_v18 = vmul.f32 %v5240_v11, %v13244_v26 }
0x1109   : > { %13235 = vst [vmem:[#allocation66_spill] sm:$0xff] %v11739_v1 }
0x110a   : > { %v11741_v19 = vpop.f32.mrf.mxu0  ;;  %13248 = vst [vmem:[#allocation72_spill] sm:$0xff] %v11804_v57  ;;  %13249 = vst [vmem:[#allocation73_spill] sm:$0xff] %v11808_v18 }
0x110b   : > { %v5242_v22 = vpop.xlane.xlu1 %5241  ;;  %v5188_v60 = vpop.xlane.xlu0 %5187 }
0x110c   : > { %v11743_v3 = vpop.f32.mrf.mxu0  ;;  %v11811_v35 = vmul.f32 %v5242_v22, %v13243_v43  ;;  %v11814_v54 = vmul.f32 %v5242_v22, %v13244_v26  ;;  %v5267_v36 = vmul.f32 %v5188_v60, %v13238_v27  ;;  %v11818_v37 = vmul.f32 %v5188_v60, %v13239_v53 }
0x110e   : > { %v11745_v34 = vpop.f32.mrf.mxu0  ;;  %13250 = vst [vmem:[#allocation74_spill] sm:$0xff] %v11811_v35  ;;  %13251 = vst [vmem:[#allocation75_spill] sm:$0xff] %v11814_v54 }
0x110f   : > { %13236 = vst [vmem:[#allocation60_spill] sm:$0xff] %v11745_v34  ;;  %v5190_v39 = vpop.xlane.xlu1 %5189  ;;  %v5236_v29 = vpop.xlane.xlu0 %5235 }
0x1110   : > { %v11747_v6 = vpop.f32.mrf.mxu0  ;;  %v11821_v50 = vmul.f32 %v5190_v39, %v13238_v27  ;;  %v11824_v7 = vmul.f32 %v5190_v39, %v13239_v53  ;;  %v11828_v46 = vmul.f32 %v5236_v29, %v13243_v43  ;;  %v11831_v11 = vmul.f32 %v5236_v29, %v13244_v26 }
0x1111   : > { %13237 = vst [vmem:[#allocation67_spill] sm:$0xff] %v11747_v6 }
0x1112   : > { %v11749_v32 = vpop.f32.mrf.mxu0 }
0x1113   : > { %v11751_v62 = vpop.xlane.xlu1 %5237  ;;  %v5184_v24 = vpop.xlane.xlu0 %5183 }
0x1114   : > { %v11753_v51 = vpop.f32.mrf.mxu0  ;;  %v5263_v22 = vmul.f32 %v5184_v24, %v13238_v27  ;;  %v5264_v1 = vmul.f32 %v5184_v24, %v13239_v53 }
0x1116   : > { %v11755_v17 = vpop.f32.mrf.mxu0 }
0x1117   : > { %v5186_v8 = vpop.xlane.xlu1 %5185  ;;  %v5232_v49 = vpop.xlane.xlu0 %5231 }
0x1118   : > { %v11757_v28 = vpop.f32.mrf.mxu0  ;;  %v5265_v33 = vmul.f32 %v5186_v8, %v13238_v27  ;;  %v5266_v39 = vmul.f32 %v5186_v8, %v13239_v53  ;;  %v5408_v63 = vmul.f32 %v5232_v49, %v13243_v43  ;;  %v5409_v12 = vmul.f32 %v5232_v49, %v13244_v26 }
0x111a   : > { %v5343_v23 = vpop.f32.mrf.mxu0 }
0x111b   : > { %v11759_v5 = vpop.xlane.xlu1 %5233  ;;  %v5180_v20 = vpop.xlane.xlu0 %5179 }
0x111c   : > { %v5345_v15 = vpop.f32.mrf.mxu0  ;;  %v5259_v13 = vmul.f32 %v5180_v20, %v13238_v27  ;;  %v5260_v16 = vmul.f32 %v5180_v20, %v13239_v53 }
0x111e   : > { %v11761_v2 = vpop.f32.mrf.mxu0  ;;  %v5344_v42 = vadd.f32 %v5343_v23, %v5259_v13  ;;  %v5346_v8 = vadd.f32 %v5345_v15, %v5260_v16 }
0x111f   : > { %v5182_v56 = vpop.xlane.xlu1 %5181  ;;  %v5228_v40 = vpop.xlane.xlu0 %5227 }
0x1120   : > { %v11763_v45 = vpop.f32.mrf.mxu0  ;;  %v5404_v25 = vmul.f32 %v5228_v40, %v13243_v43  ;;  %v5261_v55 = vmul.f32 %v5182_v56, %v13238_v27  ;;  %v5262_v29 = vmul.f32 %v5182_v56, %v13239_v53  ;;  %v5405_v58 = vmul.f32 %v5228_v40, %v13244_v26 }
0x1121   : > { %v5410_v56 = vmul.f32 %v11759_v5, %v13243_v43 }
0x1122   : > { %v5353_v47 = vpop.f32.mrf.mxu0  ;;  %v5436_v24 = vadd.f32 %v5404_v25, %v5344_v42  ;;  %v5411_v42 = vmul.f32 %v11759_v5, %v13244_v26  ;;  %v5348_v16 = vadd.f32 %v11761_v2, %v5261_v55  ;;  %v5437_v15 = vadd.f32 %v5405_v58, %v5346_v8 }
0x1123   : > { %v5230_v14 = vpop.xlane.xlu1 %5229  ;;  %v5176_v31 = vpop.xlane.xlu0 %5175  ;;  %v5354_v44 = vadd.f32 %v5353_v47, %v5263_v22  ;;  %v5350_v47 = vadd.f32 %v11763_v45, %v5262_v29 }
0x1124   : > { %v5355_v48 = vpop.f32.mrf.mxu0  ;;  %v5255_v35 = vmul.f32 %v5176_v31, %v13238_v27  ;;  %v5406_v23 = vmul.f32 %v5230_v14, %v13243_v43  ;;  %v5407_v13 = vmul.f32 %v5230_v14, %v13244_v26  ;;  %v5256_v40 = vmul.f32 %v5176_v31, %v13239_v53 }
0x1125   : > { %v5356_v6 = vadd.f32 %v5355_v48, %v5264_v1  ;;  %v5468_v1 = vmax.f32 %v5436_v24, 0.0  ;;  %v5440_v48 = vadd.f32 %v5408_v63, %v5354_v44  ;;  %v5469_v29 = vmax.f32 %v5437_v15, 0.0 }
0x1126   : > { %v5357_v21 = vpop.f32.mrf.mxu0  ;;  %v5334_v25 = vadd.f32 %v11749_v32, %v5255_v35  ;;  %v5336_v2 = vadd.f32 %v11753_v51, %v5256_v40 }
0x1127   : > { %v5178_v10 = vpop.xlane.xlu1 %5177  ;;  %v5224_v0 = vpop.xlane.xlu0 %5223  ;;  %v5358_v54 = vadd.f32 %v5357_v21, %v5265_v33  ;;  %v5438_v33 = vadd.f32 %v5406_v23, %v5348_v16  ;;  %v5439_v21 = vadd.f32 %v5407_v13, %v5350_v47  ;;  %v5441_v57 = vadd.f32 %v5409_v12, %v5356_v6 }
0x1128   : > { %v11795_v30 = vpop.f32.mrf.mxu0  ;;  %v5400_v49 = vmul.f32 %v5224_v0, %v13243_v43  ;;  %v5401_v22 = vmul.f32 %v5224_v0, %v13244_v26  ;;  %v5257_v18 = vmul.f32 %v5178_v10, %v13238_v27  ;;  %v5258_v45 = vmul.f32 %v5178_v10, %v13239_v53 }
0x1129   : > { %v5442_v58 = vadd.f32 %v5410_v56, %v5358_v54  ;;  %v5360_v44 = vadd.f32 %v11795_v30, %v5266_v39  ;;  %v5500_v35 = vmul.f32 0.7, %v5468_v1  ;;  %v5472_v6 = vmax.f32 %v5440_v48, 0.0 }
0x112a   : > { %v5363_v38 = vpop.f32.mrf.mxu0  ;;  %v5432_v55 = vadd.f32 %v5400_v49, %v5334_v25  ;;  %v5433_v12 = vadd.f32 %v5401_v22, %v5336_v2  ;;  %v5470_v8 = vmax.f32 %v5438_v33, 0.0  ;;  %v5471_v23 = vmax.f32 %v5439_v21, 0.0 }
0x112b   : > { %v5226_v31 = vpop.xlane.xlu1 %5225  ;;  %v5364_v32 = vadd.f32 %v5363_v38, %v5267_v36  ;;  %v5473_v51 = vmax.f32 %v5441_v57, 0.0  ;;  %v5338_v54 = vadd.f32 %v11755_v17, %v5257_v18  ;;  %v5414_v10 = vmul.f32 %v11751_v62, %v13243_v43  ;;  %v5172_v16 = vpop.xlane.xlu0 %5171  ;;  %v13252_v18 = vld [vmem:[#allocation132_spill] sm:$0xff] }
0x112c   : > { %v11835_v60 = vpop.f32.mrf.mxu0  ;;  %v5402_v0 = vmul.f32 %v5226_v31, %v13243_v43  ;;  %v5403_v24 = vmul.f32 %v5226_v31, %v13244_v26  ;;  %v5474_v13 = vmax.f32 %v5442_v58, 0.0  ;;  %v5340_v30 = vadd.f32 %v11757_v28, %v5258_v45  ;;  %v13253_v45 = vld [vmem:[#allocation133_spill] sm:$0xff] }
0x112d   : > { %v5464_v36 = vmax.f32 %v5432_v55, 0.0  ;;  %v5415_v39 = vmul.f32 %v11751_v62, %v13244_v26  ;;  %v5443_v56 = vadd.f32 %v5411_v42, %v5360_v44  ;;  %v5444_v40 = vadd.f32 %v11828_v46, %v5364_v32 }
0x112e   : > { %v11844_v20 = vpop.f32.mrf.mxu0  ;;  %v5434_v49 = vadd.f32 %v5402_v0, %v5338_v54  ;;  %v5501_v15 = vmul.f32 0.7, %v5469_v29  ;;  %v5504_v57 = vmul.f32 0.7, %v5472_v6  ;;  %v5465_v47 = vmax.f32 %v5433_v12, 0.0  ;;  %v13254_v29 = vld [vmem:[#allocation137_spill] sm:$0xff] }
0x112f   : > { %v5435_v17 = vadd.f32 %v5403_v24, %v5340_v30  ;;  %v11882_v1 = vadd.f32 %v5500_v35, %v13252_v18  ;;  %v5502_v48 = vmul.f32 0.7, %v5470_v8  ;;  %v5503_v25 = vmul.f32 0.7, %v5471_v23  ;;  %v13255_v35 = vld [vmem:[#allocation134_spill] sm:$0xff]  ;;  %v13256_v12 = vld [vmem:[#allocation136_spill] sm:$0xff] }
0x1130   : > { %v11850_v34 = vpop.f32.mrf.mxu0  ;;  %v5505_v28 = vmul.f32 0.7, %v5473_v51  ;;  %v5506_v22 = vmul.f32 0.7, %v5474_v13  ;;  %v5496_v31 = vmul.f32 0.7, %v5464_v36  ;;  %v5251_v33 = vmul.f32 %v5172_v16, %v13238_v27 }
0x1131   : > { %v5366_v62 = vadd.f32 %v11835_v60, %v11818_v37  ;;  %v5475_v42 = vmax.f32 %v5443_v56, 0.0  ;;  %v5476_v21 = vmax.f32 %v5444_v40, 0.0  ;;  %v5466_v2 = vmax.f32 %v5434_v49, 0.0  ;;  %v13257_v60 = vld [vmem:[#allocation138_spill] sm:$0xff]  ;;  %v13259_v23 = vld [vmem:[#allocation127_spill] sm:$0xff] }
0x1132   : > { %v11860_v14 = vpop.f32.mrf.mxu0  ;;  %v5368_v58 = vadd.f32 %v11844_v20, %v11821_v50  ;;  %v11890_v55 = vadd.f32 %v5501_v15, %v13253_v45  ;;  %v11893_v44 = vadd.f32 %v5504_v57, %v13254_v29  ;;  %v5497_v32 = vmul.f32 0.7, %v5465_v47  ;;  %v13258_v50 = vld [vmem:[#allocation139_spill] sm:$0xff]  ;;  %v5174_v15 = vpop.xlane.xlu1 %5173  ;;  %v13260_v47 = vld [vmem:[#allocation128_spill] sm:$0xff] }
0x1133   : > { %v5467_v0 = vmax.f32 %v5435_v17, 0.0  ;;  %v11896_v6 = vadd.f32 %v5502_v48, %v13255_v35  ;;  %v11899_v37 = vadd.f32 %v5503_v25, %v13256_v12  ;;  %v11902_v24 = vadd.f32 %v5505_v28, %v13257_v60  ;;  %v5220_v57 = vpop.xlane.xlu0 %5219  ;;  %v13266_v45 = vld [vmem:[#allocation72_spill] sm:$0xff]  ;;  %v13269_v35 = vld [vmem:[#allocation67_spill] sm:$0xff] }
0x1134   : > { %v11865_v5 = vpop.f32.mrf.mxu0  ;;  %v5252_v8 = vmul.f32 %v5172_v16, %v13239_v53  ;;  %v11906_v20 = vadd.f32 %v5506_v22, %v13258_v50  ;;  %v11909_v51 = vadd.f32 %v5496_v31, %v13259_v23  ;;  %v5324_v54 = vadd.f32 %v11741_v19, %v5251_v33 }
0x1135   : > { %v5445_v13 = vadd.f32 %v11831_v11, %v5366_v62  ;;  %v5507_v36 = vmul.f32 0.7, %v5475_v42  ;;  %v5508_v56 = vmul.f32 0.7, %v5476_v21  ;;  %v5498_v40 = vmul.f32 0.7, %v5466_v2 }
0x1136   : > { %v11871_v63 = vpop.f32.mrf.mxu0  ;;  %v5446_v49 = vadd.f32 %v5414_v10, %v5368_v58  ;;  %v11914_v17 = vadd.f32 %v5497_v32, %v13260_v47  ;;  %v5499_v16 = vmul.f32 0.7, %v5467_v0  ;;  %v5370_v18 = vadd.f32 %v11850_v34, %v11824_v7  ;;  %v13263_v62 = vld [vmem:[#allocation73_spill] sm:$0xff]  ;;  %v13265_v2 = vld [vmem:[#allocation130_spill] sm:$0xff]  ;;  %v13268_v32 = vld [vmem:[#allocation60_spill] sm:$0xff]  ;;  %v5222_v60 = vpop.xlane.xlu1 %5221 }
0x1137   : > { %v5376_v48 = vadd.f32 %v11865_v5, %v11793_v61  ;;  %v5326_v19 = vadd.f32 %v11743_v3, %v5252_v8  ;;  %v5374_v11 = vadd.f32 %v11860_v14, %v11790_v52  ;;  %v5477_v28 = vmax.f32 %v5445_v13, 0.0  ;;  %v13261_v14 = vld [vmem:[#allocation140_spill] sm:$0xff]  ;;  %v13264_v42 = vld [vmem:[#allocation129_spill] sm:$0xff]  ;;  %v13272_v47 = vld [vmem:[#allocation62_spill] sm:$0xff] }
0x1138   : > { %v5379_v38 = vpop.f32.mrf.mxu0  ;;  %v5253_v22 = vmul.f32 %v5174_v15, %v13238_v27  ;;  %v5254_v31 = vmul.f32 %v5174_v15, %v13239_v53  ;;  %v5396_v33 = vmul.f32 %v5220_v57, %v13243_v43  ;;  %v5478_v7 = vmax.f32 %v5446_v49, 0.0  ;;  %v13271_v15 = vld [vmem:[#allocation61_spill] sm:$0xff] }
0x1139   : > { %v5380_v25 = vadd.f32 %v5379_v38, %v11801_v4  ;;  %v5397_v61 = vmul.f32 %v5220_v57, %v13244_v26  ;;  %v5378_v3 = vadd.f32 %v11871_v63, %v11798_v41  ;;  %v11933_v4 = vadd.f32 %v5507_v36, %v13261_v14  ;;  %v13267_v41 = vld [vmem:[#allocation75_spill] sm:$0xff]  ;;  %v13270_v36 = vld [vmem:[#allocation74_spill] sm:$0xff] }
0x113a   : > { %v5447_v38 = vadd.f32 %v5415_v39, %v5370_v18  ;;  %v11940_v21 = vadd.f32 %v5498_v40, %v13264_v42  ;;  %v11943_v58 = vadd.f32 %v5499_v16, %v13265_v2  ;;  %v5448_v29 = vadd.f32 %v13266_v45, %v5374_v11 }
0x113b   : > { %v5383_v46 = vpop.f32.mrf.mxu0  ;;  %v5451_v63 = vadd.f32 %v13267_v41, %v5380_v25  ;;  %v5328_v0 = vadd.f32 %v13268_v32, %v5253_v22  ;;  %v5330_v12 = vadd.f32 %v13269_v35, %v5254_v31  ;;  %v5510_v50 = vmul.f32 0.7, %v5478_v7  ;;  %v13273_v25 = vld [vmem:[#allocation63_spill] sm:$0xff]  ;;  %v13278_v32 = vld [vmem:[#allocation150_spill] sm:$0xff] }
0x113c   : > { %v5384_v10 = vadd.f32 %v5383_v46, %v11766_v9  ;;  %v13262_v9 = vld [vmem:[#allocation141_spill] sm:$0xff]  ;;  %v5449_v46 = vadd.f32 %v13263_v62, %v5376_v48  ;;  %v11949_v23 = vadd.f32 %v5396_v33, %v5324_v54  ;;  %v11951_v13 = vadd.f32 %v5397_v61, %v5326_v19  ;;  %v5168_v54 = vpop.xlane.xlu0 %5167  ;;  %v13275_v33 = vld [vmem:[#allocation70_spill] sm:$0xff]  ;;  %v13276_v61 = vld [vmem:[#allocation143_spill] sm:$0xff] }
0x113d   : > { %v5385_v30 = vpop.f32.mrf.mxu0  ;;  %v11936_v5 = vadd.f32 %v5508_v56, %v13262_v9  ;;  %v5450_v56 = vadd.f32 %v13270_v36, %v5378_v3  ;;  %v5479_v40 = vmax.f32 %v5447_v38, 0.0  ;;  %v5480_v18 = vmax.f32 %v5448_v29, 0.0  ;;  %v13274_v19 = vld [vmem:[#allocation65_spill] sm:$0xff] }
0x113e   : > { %v5452_v52 = vadd.f32 %v11778_v59, %v5384_v10  ;;  %v5509_v59 = vmul.f32 0.7, %v5477_v28  ;;  %v5481_v49 = vmax.f32 %v5449_v46, 0.0  ;;  %v5386_v57 = vadd.f32 %v5385_v30, %v13271_v15  ;;  %v13280_v15 = vld [vmem:[#allocation147_spill] sm:$0xff] }
0x113f   : > { %v5387_v34 = vpop.f32.mrf.mxu0  ;;  %v5398_v48 = vmul.f32 %v5222_v60, %v13243_v43  ;;  %v5483_v11 = vmax.f32 %v5451_v63, 0.0  ;;  %v5399_v28 = vmul.f32 %v5222_v60, %v13244_v26  ;;  %v5460_v30 = vmax.f32 %v11949_v23, 0.0  ;;  %v5170_v63 = vpop.xlane.xlu1 %5169 }
0x1140   : > { %v5484_v8 = vmax.f32 %v5452_v52, 0.0  ;;  %v5388_v16 = vadd.f32 %v5387_v34, %v13272_v47  ;;  %v5453_v31 = vadd.f32 %v13274_v19, %v5386_v57  ;;  %v11962_v3 = vadd.f32 %v5509_v59, %v13276_v61  ;;  %v13277_v52 = vld [vmem:[#allocation71_spill] sm:$0xff] }
0x1141   : > { %v5389_v39 = vpop.f32.mrf.mxu0  ;;  %v5482_v34 = vmax.f32 %v5450_v56, 0.0  ;;  %v5511_v9 = vmul.f32 0.7, %v5479_v40  ;;  %v5513_v38 = vmul.f32 0.7, %v5481_v49  ;;  %v5247_v2 = vmul.f32 %v5168_v54, %v13238_v27  ;;  %v13281_v47 = vld [vmem:[#allocation151_spill] sm:$0xff] }
0x1142   : > { %v5390_v10 = vadd.f32 %v5389_v39, %v13273_v25  ;;  %v5516_v22 = vmul.f32 0.7, %v5484_v8  ;;  %v5454_v7 = vadd.f32 %v13275_v33, %v5388_v16  ;;  %v5485_v62 = vmax.f32 %v5453_v31, 0.0  ;;  %v13279_v8 = vld [vmem:[#allocation144_spill] sm:$0xff]  ;;  %v13283_v25 = vld [vmem:[#allocation145_spill] sm:$0xff] }
0x1143   : > { %v5512_v42 = vmul.f32 0.7, %v5480_v18  ;;  %v5515_v45 = vmul.f32 0.7, %v5483_v11  ;;  %v5248_v41 = vmul.f32 %v5168_v54, %v13239_v53  ;;  %v11972_v39 = vadd.f32 %v5510_v50, %v13279_v8  ;;  %v13282_v18 = vld [vmem:[#allocation152_spill] sm:$0xff]  ;;  %v13284_v50 = vld [vmem:[#allocation58_spill] sm:$0xff] }
0x1144   : > { %v5455_v14 = vadd.f32 %v13277_v52, %v5390_v10  ;;  %v5486_v46 = vmax.f32 %v5454_v7, 0.0  ;;  %v11969_v59 = vadd.f32 %v5516_v22, %v13278_v32  ;;  %v5517_v35 = vmul.f32 0.7, %v5485_v62  ;;  %v13286_v22 = vld [vmem:[#allocation153_spill] sm:$0xff] }
0x1145   : > { %v11974_v36 = vadd.f32 %v5398_v48, %v5328_v0  ;;  %v5514_v56 = vmul.f32 0.7, %v5482_v34  ;;  %v11976_v49 = vadd.f32 %v5399_v28, %v5330_v12  ;;  %v11979_v57 = vadd.f32 %v5513_v38, %v13280_v15  ;;  %v13285_v0 = vld [vmem:[#allocation149_spill] sm:$0xff]  ;;  %v13287_v28 = vld [vmem:[#allocation146_spill] sm:$0xff]  ;;  %v13289_v34 = vld [vmem:[#allocation148_spill] sm:$0xff] }
0x1146   : > { %v5487_v29 = vmax.f32 %v5455_v14, 0.0  ;;  %v5518_v60 = vmul.f32 0.7, %v5486_v46  ;;  %v11982_v16 = vadd.f32 %v5517_v35, %v13281_v47  ;;  %v11988_v10 = vadd.f32 %v5511_v9, %v13283_v25  ;;  %v13288_v31 = vld [vmem:[#allocation57_spill] sm:$0xff]  ;;  %v5216_v14 = vpop.xlane.xlu0 %5215  ;;  %v13290_v47 = vld [vmem:[#allocation59_spill] sm:$0xff] }
0x1147   : > { %v5314_v54 = vadd.f32 %v13284_v50, %v5247_v2  ;;  %v11992_v48 = vadd.f32 %v5515_v45, %v13285_v0  ;;  %v11998_v19 = vadd.f32 %v5512_v42, %v13287_v28  ;;  %v5316_v33 = vadd.f32 %v13288_v31, %v5248_v41  ;;  %v5218_v42 = vpop.xlane.xlu1 %5217 }
0x1148   : > { %v5519_v40 = vmul.f32 0.7, %v5487_v29  ;;  %v11985_v11 = vadd.f32 %v5518_v60, %v13282_v18  ;;  %v5580_v7 = vmul.f32 %v11969_v59, %v11969_v59  ;;  %v5581_v61 = vmul.f32 %v11982_v16, %v11982_v16 }
0x1149   : > { %v12006_v52 = vadd.f32 %v5514_v56, %v13289_v34  ;;  %v5249_v46 = vmul.f32 %v5170_v63, %v13238_v27  ;;  %v5577_v29 = vmul.f32 %v11979_v57, %v11979_v57  ;;  %v5250_v41 = vmul.f32 %v5170_v63, %v13239_v53 }
0x114a   : > { %v11995_v12 = vadd.f32 %v5519_v40, %v13286_v22  ;;  %v5582_v38 = vmul.f32 %v11985_v11, %v11985_v11  ;;  %v5626_v2 = vadd.f32 %v5581_v61, %v5580_v7  ;;  %v5975_v45 = vpack.c.bf16 %v11985_v11, %v11969_v59  ;;  %v13291_v22 = vld [vmem:[#allocation66_spill] sm:$0xff] }
0x114b   : > { %v5974_v35 = vpack.c.bf16 %v11992_v48, %v11979_v57  ;;  %v5579_v60 = vmul.f32 %v11992_v48, %v11992_v48  ;;  %v5461_v27 = vmax.f32 %v11951_v13, 0.0  ;;  %v5392_v8 = vmul.f32 %v5216_v14, %v13243_v43 }
0x114c   : > { %v5976_v9 = vpack.c.bf16 %v11995_v12, %v11982_v16  ;;  %v5583_v62 = vmul.f32 %v11995_v12, %v11995_v12  ;;  %v5393_v56 = vmul.f32 %v5216_v14, %v13244_v26  ;;  %5627 = vadd.xlane.f32.xlu0 %v5626_v2  ;;  %v5576_v40 = vmul.f32 %v11998_v19, %v11998_v19 }
0x114d   : > { %v5462_v53 = vmax.f32 %v11974_v36, 0.0  ;;  %v5394_v63 = vmul.f32 %v5218_v42, %v13243_v43  ;;  %v5395_v15 = vmul.f32 %v5218_v42, %v13244_v26  ;;  %v5578_v13 = vmul.f32 %v12006_v52, %v12006_v52 }
0x114e   : > { %5977 = vmatprep.subr.bf16.mxu0 %v5976_v9  ;;  %v5629_v32 = vadd.f32 %v5583_v62, %v5582_v38  ;;  %v5318_v18 = vadd.f32 %v13290_v47, %v5249_v46  ;;  %v5620_v25 = vadd.f32 %v5577_v29, %v5576_v40  ;;  %v5973_v50 = vpack.c.bf16 %v12006_v52, %v11998_v19 }
0x114f   : > { %5978 = vmatpush1.bf16.msra.mxu0 %v5975_v45  ;;  %v5573_v0 = vmul.f32 %v11962_v3, %v11962_v3  ;;  %v5320_v36 = vadd.f32 %v13291_v22, %v5250_v41  ;;  %v5623_v28 = vadd.f32 %v5579_v60, %v5578_v13  ;;  %v5972_v43 = vpack.c.bf16 %v11988_v10, %v11962_v3  ;;  %v13294_v22 = vld [vmem:[#allocation126_spill] sm:$0xff] }
0x1150   : > { %5630 = vadd.xlane.f32.xlu1 %v5629_v32  ;;  %5979 = vmatprep.subr.bf16.mxu0 %v5974_v35  ;;  %v5575_v26 = vmul.f32 %v11988_v10, %v11988_v10  ;;  %v5463_v31 = vmax.f32 %v11976_v49, 0.0  ;;  %v5424_v7 = vadd.f32 %v5392_v8, %v5314_v54  ;;  %v5425_v61 = vadd.f32 %v5393_v56, %v5316_v33 }
0x1151   : > { %5621 = vadd.xlane.f32.xlu0 %v5620_v25  ;;  %v5572_v34 = vmul.f32 %v11936_v5, %v11936_v5  ;;  %v5426_v14 = vadd.f32 %v5394_v63, %v5318_v18  ;;  %v5427_v9 = vadd.f32 %v5395_v15, %v5320_v36  ;;  %v5574_v38 = vmul.f32 %v11972_v39, %v11972_v39  ;;  %v13292_v18 = vld [vmem:[#allocation124_spill] sm:$0xff] }
0x1152   : > { %v5492_v62 = vmul.f32 0.7, %v5460_v30  ;;  %v5971_v49 = vpack.c.bf16 %v11972_v39, %v11936_v5  ;;  %v5569_v54 = vmul.f32 %v11902_v24, %v11902_v24  ;;  %v5493_v33 = vmul.f32 0.7, %v5461_v27 }
0x1153   : > { %5980 = vmatpush1.bf16.msra.mxu0 %v5973_v50  ;;  %v5614_v46 = vadd.f32 %v5573_v0, %v5572_v34  ;;  %v5617_v42 = vadd.f32 %v5575_v26, %v5574_v38  ;;  %v5970_v2 = vpack.c.bf16 %v11933_v4, %v11902_v24  ;;  %v5571_v45 = vmul.f32 %v11933_v4, %v11933_v4  ;;  %v13293_v50 = vld [vmem:[#allocation125_spill] sm:$0xff] }
0x1154   : > { %5624 = vadd.xlane.f32.xlu1 %v5623_v28  ;;  %5981 = vmatprep.subr.bf16.mxu0 %v5972_v43  ;;  %v5494_v29 = vmul.f32 0.7, %v5462_v53  ;;  %v5495_v41 = vmul.f32 0.7, %v5463_v31  ;;  %v5456_v32 = vmax.f32 %v5424_v7, 0.0  ;;  %v5568_v23 = vmul.f32 %v11893_v44, %v11893_v44  ;;  %v13295_v43 = vld [vmem:[#allocation170_spill] sm:$0xff] }
0x1155   : > { %5615 = vadd.xlane.f32.xlu0 %v5614_v46  ;;  %v5457_v30 = vmax.f32 %v5425_v61, 0.0  ;;  %v5458_v35 = vmax.f32 %v5426_v14, 0.0  ;;  %v5459_v60 = vmax.f32 %v5427_v9, 0.0  ;;  %v5570_v27 = vmul.f32 %v11906_v20, %v11906_v20 }
0x1156   : > { %v5608_v8 = vadd.f32 %v5569_v54, %v5568_v23  ;;  %v5969_v56 = vpack.c.bf16 %v11906_v20, %v11893_v44  ;;  %v5564_v40 = vmul.f32 %v11882_v1, %v11882_v1  ;;  %v5565_v53 = vmul.f32 %v11890_v55, %v11890_v55 }
0x1157   : > { %5982 = vmatpush1.bf16.msra.mxu0 %v5971_v49  ;;  %v5611_v63 = vadd.f32 %v5571_v45, %v5570_v27  ;;  %v5968_v15 = vpack.c.bf16 %v11899_v37, %v11890_v55  ;;  %v5566_v13 = vmul.f32 %v11896_v6, %v11896_v6  ;;  %v5567_v47 = vmul.f32 %v11899_v37, %v11899_v37 }
0x1158   : > { %5618 = vadd.xlane.f32.xlu1 %v5617_v42  ;;  %5983 = vmatprep.subr.bf16.mxu0 %v5970_v2  ;;  %v12076_v25 = vadd.f32 %v5492_v62, %v13292_v18  ;;  %v12079_v0 = vadd.f32 %v5493_v33, %v13293_v50  ;;  %v12082_v36 = vadd.f32 %v5494_v29, %v13294_v22  ;;  %v5488_v28 = vmul.f32 0.7, %v5456_v32  ;;  %v13296_v33 = vld [vmem:[#allocation120_spill] sm:$0xff]  ;;  %v13297_v2 = vld [vmem:[#allocation121_spill] sm:$0xff]  ;;  %v13298_v29 = vld [vmem:[#allocation122_spill] sm:$0xff] }
0x1159   : > { %5609 = vadd.xlane.f32.xlu0 %v5608_v8  ;;  %v12085_v26 = vadd.f32 %v5495_v41, %v13295_v43  ;;  %v5489_v31 = vmul.f32 0.7, %v5457_v30  ;;  %v5490_v7 = vmul.f32 0.7, %v5458_v35  ;;  %v5491_v61 = vmul.f32 0.7, %v5459_v60 }
0x115a   : > { %v5602_v34 = vadd.f32 %v5565_v53, %v5564_v40  ;;  %v5967_v14 = vpack.c.bf16 %v11896_v6, %v11882_v1  ;;  %v5560_v9 = vmul.f32 %v11909_v51, %v11909_v51  ;;  %v5561_v38 = vmul.f32 %v11914_v17, %v11914_v17  ;;  %v13299_v32 = vld [vmem:[#allocation123_spill] sm:$0xff] }
0x115b   : > { %5984 = vmatpush1.bf16.msra.mxu0 %v5969_v56  ;;  %v5605_v62 = vadd.f32 %v5567_v47, %v5566_v13  ;;  %v5966_v46 = vpack.c.bf16 %v11943_v58, %v11914_v17  ;;  %v5562_v49 = vmul.f32 %v11940_v21, %v11940_v21  ;;  %v5563_v54 = vmul.f32 %v11943_v58, %v11943_v58 }
0x115c   : > { %5612 = vadd.xlane.f32.xlu1 %v5611_v63  ;;  %5985 = vmatprep.subr.bf16.mxu0 %v5968_v15  ;;  %v12100_v42 = vadd.f32 %v5488_v28, %v13296_v33  ;;  %v12103_v45 = vadd.f32 %v5489_v31, %v13297_v2  ;;  %v12106_v41 = vadd.f32 %v5490_v7, %v13298_v29 }
0x115d   : > { %5603 = vadd.xlane.f32.xlu0 %v5602_v34  ;;  %v12109_v23 = vadd.f32 %v5491_v61, %v13299_v32  ;;  %v5596_v30 = vadd.f32 %v5561_v38, %v5560_v9  ;;  %v5965_v35 = vpack.c.bf16 %v11940_v21, %v11909_v51  ;;  %v5556_v60 = vmul.f32 %v12076_v25, %v12076_v25 }
0x115e   : > { %v5557_v27 = vmul.f32 %v12079_v0, %v12079_v0  ;;  %v5599_v8 = vadd.f32 %v5563_v54, %v5562_v49  ;;  %v5964_v56 = vpack.c.bf16 %v12085_v26, %v12079_v0  ;;  %v5558_v40 = vmul.f32 %v12082_v36, %v12082_v36 }
0x115f   : > { %5986 = vmatpush1.bf16.msra.mxu0 %v5967_v14  ;;  %v5559_v53 = vmul.f32 %v12085_v26, %v12085_v26  ;;  %v5963_v15 = vpack.c.bf16 %v12082_v36, %v12076_v25  ;;  %v5552_v13 = vmul.f32 %v12100_v42, %v12100_v42  ;;  %v5553_v47 = vmul.f32 %v12103_v45, %v12103_v45 }
0x1160   : > { %5606 = vadd.xlane.f32.xlu1 %v5605_v62  ;;  %5987 = vmatprep.subr.bf16.mxu0 %v5966_v46  ;;  %v5590_v63 = vadd.f32 %v5557_v27, %v5556_v60  ;;  %v5962_v50 = vpack.c.bf16 %v12109_v23, %v12103_v45  ;;  %v5554_v22 = vmul.f32 %v12106_v41, %v12106_v41 }
0x1161   : > { %5597 = vadd.xlane.f32.xlu0 %v5596_v30  ;;  %v5593_v18 = vadd.f32 %v5559_v53, %v5558_v40  ;;  %v5555_v28 = vmul.f32 %v12109_v23, %v12109_v23  ;;  %v5584_v43 = vadd.f32 %v5553_v47, %v5552_v13  ;;  %v5961_v31 = vpack.c.bf16 %v12106_v41, %v12100_v42 }
0x1163   : > { %5988 = vmatpush1.bf16.msra.mxu0 %v5965_v35  ;;  %v5587_v7 = vadd.f32 %v5555_v28, %v5554_v22 }
0x1164   : > { %5600 = vadd.xlane.f32.xlu1 %v5599_v8  ;;  %5989 = vmatprep.subr.bf16.mxu0 %v5964_v56 }
0x1165   : > { %5591 = vadd.xlane.f32.xlu0 %v5590_v63 }
0x1167   : > { %5990 = vmatpush1.bf16.msra.mxu0 %v5963_v15 }
0x1168   : > { %5594 = vadd.xlane.f32.xlu1 %v5593_v18  ;;  %5991 = vmatprep.subr.bf16.mxu0 %v5962_v50 }
0x1169   : > { %5585 = vadd.xlane.f32.xlu0 %v5584_v43 }
0x116b   : > { %5992 = vmatpush1.bf16.msra.mxu0 %v5961_v31 }
0x116c   : > { %5588 = vadd.xlane.f32.xlu1 %v5587_v7 }
0x11d5   : > { %v5628_v61 = vpop.xlane.xlu0 %5627 }
0x11d6   : > { %v5646_v34 = vmax.f32 %v5628_v61, 1e-24 }
0x11d8   : > { %7940 = vrsqrt.f32 %v5646_v34 }
0x11d9   : > { %v5631_v14 = vpop.xlane.xlu1 %5630 }
0x11da   : > { %v5647_v9 = vmax.f32 %v5631_v14, 1e-24  ;;  %v5622_v38 = vpop.xlane.xlu0 %5621 }
0x11db   : > { %v5644_v62 = vmax.f32 %v5622_v38, 1e-24 }
0x11dc   : > { %7942 = vrsqrt.f32 %v5647_v9 }
0x11dd   : > { %v5625_v46 = vpop.xlane.xlu1 %5624  ;;  %7944 = vrsqrt.f32 %v5644_v62 }
0x11de   : > { %v5645_v49 = vmax.f32 %v5625_v46, 1e-24  ;;  %v5616_v54 = vpop.xlane.xlu0 %5615 }
0x11df   : > { %v5642_v33 = vmax.f32 %v5616_v54, 1e-24 }
0x11e0   : > { %7946 = vrsqrt.f32 %v5645_v49 }
0x11e1   : > { %v5619_v2 = vpop.xlane.xlu1 %5618  ;;  %7948 = vrsqrt.f32 %v5642_v33 }
0x11e2   : > { %v5643_v29 = vmax.f32 %v5619_v2, 1e-24  ;;  %v5610_v32 = vpop.xlane.xlu0 %5609 }
0x11e3   : > { %v5640_v27 = vmax.f32 %v5610_v32, 1e-24 }
0x11e4   : > { %7950 = vrsqrt.f32 %v5643_v29 }
0x11e5   : > { %v5613_v30 = vpop.xlane.xlu1 %5612  ;;  %v7941_v60 = vpop.eup %7940 }
0x11e6   : > { %v5641_v35 = vmax.f32 %v5613_v30, 1e-24  ;;  %v5604_v8 = vpop.xlane.xlu0 %5603  ;;  %v5693_v53 = vmul.f32 %v7941_v60, %v11982_v16  ;;  %v5692_v15 = vmul.f32 %v7941_v60, %v11969_v59 }
0x11e7   : > { %v5638_v14 = vmax.f32 %v5604_v8, 1e-24 }
0x11e8   : > { %7952 = vrsqrt.f32 %v5641_v35 }
0x11e9   : > { %v7943_v56 = vpop.eup %7942  ;;  %v5607_v40 = vpop.xlane.xlu1 %5606  ;;  %7954 = vrsqrt.f32 %v5640_v27 }
0x11ea   : > { %v5695_v63 = vmul.f32 %v7943_v56, %v11995_v12  ;;  %v5694_v13 = vmul.f32 %v7943_v56, %v11985_v11  ;;  %v7945_v47 = vpop.eup %7944  ;;  %v5598_v18 = vpop.xlane.xlu0 %5597  ;;  %v5639_v31 = vmax.f32 %v5607_v40, 1e-24 }
0x11eb   : > { %v5689_v7 = vmul.f32 %v7945_v47, %v11979_v57  ;;  %v5688_v33 = vmul.f32 %v7945_v47, %v11998_v19  ;;  %v5636_v40 = vmax.f32 %v5598_v18, 1e-24 }
0x11ec   : > { %v12141_v50 = vpack.c.bf16 %v5695_v63, %v5693_v53  ;;  %v12143_v22 = vpack.c.bf16 %v5694_v13, %v5692_v15  ;;  %7956 = vrsqrt.f32 %v5639_v31 }
0x11ed   : > { %v7947_v28 = vpop.eup %7946  ;;  %v5601_v43 = vpop.xlane.xlu1 %5600  ;;  %7958 = vrsqrt.f32 %v5638_v14 }
0x11ee   : > { %5712 = vmatprep.subr.bf16.mxu1 %v12141_v50  ;;  %v5691_v61 = vmul.f32 %v7947_v28, %v11992_v48  ;;  %v7949_v34 = vpop.eup %7948  ;;  %v5592_v9 = vpop.xlane.xlu0 %5591  ;;  %v5690_v49 = vmul.f32 %v7947_v28, %v12006_v52  ;;  %v5637_v27 = vmax.f32 %v5601_v43, 1e-24 }
0x11ef   : > { %5713 = vmatpush1.bf16.xpose.msra.mxu1 %v12143_v22  ;;  %v5685_v29 = vmul.f32 %v7949_v34, %v11962_v3  ;;  %v5684_v13 = vmul.f32 %v7949_v34, %v11936_v5  ;;  %v5634_v18 = vmax.f32 %v5592_v9, 1e-24 }
0x11f0   : > { %v12149_v38 = vpack.c.bf16 %v5691_v61, %v5689_v7  ;;  %v12156_v35 = vpack.c.bf16 %v5690_v49, %v5688_v33 }
0x11f1   : > { %v7951_v62 = vpop.eup %7950  ;;  %v5595_v46 = vpop.xlane.xlu1 %5594 }
0x11f2   : > { %5714 = vmatprep.subr.bf16.mxu1 %v12149_v38  ;;  %v5687_v54 = vmul.f32 %v7951_v62, %v11988_v10  ;;  %v5586_v2 = vpop.xlane.xlu0 %5585  ;;  %v5686_v63 = vmul.f32 %v7951_v62, %v11972_v39  ;;  %v5635_v43 = vmax.f32 %v5595_v46, 1e-24 }
0x11f3   : > { %v5632_v32 = vmax.f32 %v5586_v2, 1e-24 }
0x11f4   : > { %v12158_v56 = vpack.c.bf16 %v5687_v54, %v5685_v29  ;;  %v5706_v28 = vpack.c.bf16 %v5686_v63, %v5684_v13 }
0x11f5   : > { %v5589_v30 = vpop.xlane.xlu1 %5588  ;;  %v7953_v60 = vpop.eup %7952  ;;  %7960 = vrsqrt.f32 %v5632_v32 }
0x11f6   : > { %v5633_v8 = vmax.f32 %v5589_v30, 1e-24  ;;  %v7955_v53 = vpop.eup %7954  ;;  %v5683_v15 = vmul.f32 %v7953_v60, %v11933_v4  ;;  %v5682_v14 = vmul.f32 %v7953_v60, %v11906_v20 }
0x11f7   : > { %5715 = vmatpush1.bf16.xpose.msra.mxu1 %v12156_v35  ;;  %v5681_v47 = vmul.f32 %v7955_v53, %v11902_v24  ;;  %v5680_v49 = vmul.f32 %v7955_v53, %v11893_v44 }
0x11f8   : > { %7962 = vrsqrt.f32 %v5633_v8  ;;  %5716 = vmatprep.subr.bf16.mxu1 %v12158_v56 }
0x11f9   : > { %7964 = vrsqrt.f32 %v5637_v27  ;;  %v5705_v31 = vpack.c.bf16 %v5683_v15, %v5681_v47  ;;  %v7957_v7 = vpop.eup %7956  ;;  %v5704_v2 = vpack.c.bf16 %v5682_v14, %v5680_v49 }
0x11fa   : > { %7966 = vrsqrt.f32 %v5636_v40  ;;  %v7959_v61 = vpop.eup %7958  ;;  %v5679_v62 = vmul.f32 %v7957_v7, %v11899_v37  ;;  %v5678_v27 = vmul.f32 %v7957_v7, %v11896_v6 }
0x11fb   : > { %7968 = vrsqrt.f32 %v5635_v43  ;;  %v5677_v34 = vmul.f32 %v7959_v61, %v11890_v55  ;;  %v5676_v40 = vmul.f32 %v7959_v61, %v11882_v1 }
0x11fc   : > { %7970 = vrsqrt.f32 %v5634_v18 }
0x11fd   : > { %v5703_v46 = vpack.c.bf16 %v5679_v62, %v5677_v34  ;;  %v5702_v63 = vpack.c.bf16 %v5678_v27, %v5676_v40 }
0x11ff   : > { %5717 = vmatpush1.bf16.xpose.msra.mxu1 %v5706_v28 }
0x1200   : > { %5718 = vmatprep.subr.bf16.mxu1 %v5705_v31 }
0x1202   : > { %v7961_v54 = vpop.eup %7960 }
0x1203   : > { %v5665_v29 = vmul.f32 %v7961_v54, %v12103_v45 }
0x1205   : > { %v7963_v33 = vpop.eup %7962 }
0x1206   : > { %v5667_v9 = vmul.f32 %v7963_v33, %v12109_v23  ;;  %v7965_v32 = vpop.eup %7964 }
0x1207   : > { %5719 = vmatpush1.bf16.xpose.msra.mxu1 %v5704_v2  ;;  %v7967_v60 = vpop.eup %7966  ;;  %v5675_v8 = vmul.f32 %v7965_v32, %v11943_v58  ;;  %v5674_v43 = vmul.f32 %v7965_v32, %v11940_v21  ;;  %v5664_v32 = vmul.f32 %v7961_v54, %v12100_v42 }
0x1208   : > { %5720 = vmatprep.subr.bf16.mxu1 %v5703_v46  ;;  %v5697_v30 = vpack.c.bf16 %v5667_v9, %v5665_v29  ;;  %v5673_v53 = vmul.f32 %v7967_v60, %v11914_v17  ;;  %v7969_v13 = vpop.eup %7968  ;;  %v5672_v14 = vmul.f32 %v7967_v60, %v11909_v51  ;;  %v5666_v9 = vmul.f32 %v7963_v33, %v12106_v41  ;;  %v13300_v33 = vld [vmem:[#allocation171_spill] sm:$0xff] }
0x1209   : > { %v7971_v47 = vpop.eup %7970  ;;  %v5671_v18 = vmul.f32 %v7969_v13, %v12085_v26  ;;  %v5670_v61 = vmul.f32 %v7969_v13, %v12082_v36 }
0x120a   : > { %5744 = vmatprep.mubr.bf16.mxu1 %v5697_v30  ;;  %v5701_v15 = vpack.c.bf16 %v5675_v8, %v5673_v53  ;;  %v5669_v7 = vmul.f32 %v7971_v47, %v12079_v0  ;;  %v5700_v62 = vpack.c.bf16 %v5674_v43, %v5672_v14  ;;  %v5668_v34 = vmul.f32 %v7971_v47, %v12076_v25  ;;  %v13303_v8 = vld [vmem:[#allocation162_spill] sm:$0xff] }
0x120b   : > { %v5696_v27 = vpack.c.bf16 %v5666_v9, %v5664_v32  ;;  %v13307_v9 = vld [vmem:[#allocation157_spill] sm:$0xff] }
0x120c   : > { %v5699_v49 = vpack.c.bf16 %v5671_v18, %v5669_v7  ;;  %v5698_v29 = vpack.c.bf16 %v5670_v61, %v5668_v34  ;;  %v13305_v18 = vld [vmem:[#allocation154_spill] sm:$0xff] }
0x120f   : > { %5721 = vmatpush1.bf16.xpose.msra.mxu1 %v5702_v63 }
0x1210   : > { %5722 = vmatprep.subr.bf16.mxu1 %v5701_v15 }
0x1217   : > { %5723 = vmatpush1.bf16.xpose.msra.mxu1 %v5700_v62 }
0x1218   : > { %5724 = vmatprep.subr.bf16.mxu1 %v5699_v49 }
0x121f   : > { %5725 = vmatpush1.bf16.xpose.msra.mxu1 %v5698_v29 }
0x1220   : > { %5726 = vmatprep.subr.bf16.mxu1 %v5697_v30 }
0x1227   : > { %5727 = vmatpush1.bf16.xpose.msra.mxu1 %v5696_v27 }
0x122e   : > { %5745 = vmatmul.mubr.bf16.vlgmr.msra.gmra.mxu1 %v5696_v27 }
0x122f   : > { %5752 = vmatprep.mubr.bf16.mxu1 %v5699_v49  ;;  %v13306_v49 = vld [vmem:[#allocation166_spill] sm:$0xff] }
0x1236   : > { %5753 = vmatmul.mubr.bf16.gmra.mxu1 %v5698_v29 }
0x1237   : > { %5760 = vmatprep.mubr.bf16.mxu1 %v5701_v15  ;;  %v13304_v15 = vld [vmem:[#allocation164_spill] sm:$0xff] }
0x123e   : > { %5761 = vmatmul.mubr.bf16.gmra.mxu1 %v5700_v62 }
0x123f   : > { %5768 = vmatprep.mubr.bf16.mxu1 %v5703_v46 }
0x1246   : > { %5769 = vmatmul.mubr.bf16.gmra.mxu1 %v5702_v63 }
0x1247   : > { %5776 = vmatprep.mubr.bf16.mxu1 %v5705_v31 }
0x124e   : > { %5777 = vmatmul.mubr.bf16.gmra.mxu1 %v5704_v2  ;;  %v13301_v2 = vld [vmem:[#allocation163_spill] sm:$0xff] }
0x124f   : > { %5784 = vmatprep.mubr.bf16.mxu1 %v12158_v56 }
0x1256   : > { %5785 = vmatmul.mubr.bf16.gmra.mxu1 %v5706_v28 }
0x1257   : > { %5792 = vmatprep.mubr.bf16.mxu1 %v12149_v38 }
0x125e   : > { %5793 = vmatmul.mubr.bf16.gmra.mxu1 %v12156_v35  ;;  %v13302_v35 = vld [vmem:[#allocation117_spill] sm:$0xff] }
0x125f   : > { %5800 = vmatprep.mubr.bf16.mxu1 %v12141_v50 }
0x1266   : > { %5801 = vmatmul.mubr.bf16.gmra.mxu1 %v12143_v22 }
0x12ee   : > { %v5746_v54 = vpop.f32.mrf.mxu1 }
0x12ef   : > { %v12190_v30 = vadd.f32 %v5746_v54, %v13300_v33  ;;  %v13308_v33 = vld [vmem:[#allocation167_spill] sm:$0xff] }
0x12f0   : > { %v5748_v60 = vpop.f32.mrf.mxu1 }
0x12f1   : > { %5809 = vmax.xlane.f32.xlu0 %v12190_v30 }
0x12f2   : > { %v5749_v31 = vpop.f32.mrf.mxu1 }
0x12f3   : > { %v12194_v46 = vadd.f32 %v5749_v31, %v13301_v2 }
0x12f4   : > { %v5751_v56 = vpop.f32.mrf.mxu1 }
0x12f5   : > { %5811 = vmax.xlane.f32.xlu1 %v12194_v46  ;;  %v13309_v56 = vld [vmem:[#allocation165_spill] sm:$0xff] }
0x12f6   : > { %v5754_v38 = vpop.f32.mrf.mxu1 }
0x12f7   : > { %v12198_v28 = vadd.f32 %v5754_v38, %v13302_v35 }
0x12f8   : > { %v5756_v50 = vpop.f32.mrf.mxu1 }
0x12f9   : > { %5813 = vmax.xlane.f32.xlu0 %v12198_v28 }
0x12fa   : > { %v5757_v22 = vpop.f32.mrf.mxu1 }
0x12fb   : > { %v12202_v40 = vadd.f32 %v5757_v22, %v13303_v8  ;;  %v13310_v22 = vld [vmem:[#allocation169_spill] sm:$0xff] }
0x12fc   : > { %v5759_v53 = vpop.f32.mrf.mxu1 }
0x12fd   : > { %5815 = vmax.xlane.f32.xlu1 %v12202_v40 }
0x12fe   : > { %v5762_v63 = vpop.f32.mrf.mxu1 }
0x12ff   : > { %v12206_v13 = vadd.f32 %v5762_v63, %v13304_v15  ;;  %v13311_v15 = vld [vmem:[#allocation118_spill] sm:$0xff] }
0x1300   : > { %v5764_v47 = vpop.f32.mrf.mxu1 }
0x1301   : > { %5817 = vmax.xlane.f32.xlu0 %v12206_v13 }
0x1302   : > { %v5765_v43 = vpop.f32.mrf.mxu1 }
0x1303   : > { %v12210_v14 = vadd.f32 %v5765_v43, %v13305_v18 }
0x1304   : > { %v5767_v7 = vpop.f32.mrf.mxu1 }
0x1305   : > { %5819 = vmax.xlane.f32.xlu1 %v12210_v14  ;;  %v13312_v7 = vld [vmem:[#allocation119_spill] sm:$0xff] }
0x1306   : > { %v5770_v62 = vpop.f32.mrf.mxu1 }
0x1307   : > { %v12214_v61 = vadd.f32 %v5770_v62, %v13306_v49 }
0x1308   : > { %v5772_v34 = vpop.f32.mrf.mxu1 }
0x1309   : > { %5821 = vmax.xlane.f32.xlu0 %v12214_v61 }
0x130a   : > { %v5773_v29 = vpop.f32.mrf.mxu1 }
0x130b   : > { %v12218_v32 = vadd.f32 %v5773_v29, %v13307_v9  ;;  %v13313_v29 = vld [vmem:[#allocation168_spill] sm:$0xff] }
0x130c   : > { %v5775_v27 = vpop.f32.mrf.mxu1 }
0x130d   : > { %5823 = vmax.xlane.f32.xlu1 %v12218_v32 }
0x130e   : > { %v5778_v54 = vpop.f32.mrf.mxu1 }
0x130f   : > { %v12222_v60 = vadd.f32 %v5778_v54, %v13308_v33  ;;  %v13314_v33 = vld [vmem:[#allocation155_spill] sm:$0xff] }
0x1310   : > { %v5780_v31 = vpop.f32.mrf.mxu1 }
0x1311   : > { %5825 = vmax.xlane.f32.xlu0 %v12222_v60 }
0x1312   : > { %v5781_v2 = vpop.f32.mrf.mxu1 }
0x1313   : > { %v12226_v38 = vadd.f32 %v5781_v2, %v13309_v56 }
0x1314   : > { %v5783_v35 = vpop.f32.mrf.mxu1 }
0x1315   : > { %5827 = vmax.xlane.f32.xlu1 %v12226_v38  ;;  %v13315_v35 = vld [vmem:[#allocation159_spill] sm:$0xff] }
0x1316   : > { %v5786_v50 = vpop.f32.mrf.mxu1 }
0x1317   : > { %v12230_v8 = vadd.f32 %v5786_v50, %v13310_v22 }
0x1318   : > { %v5788_v53 = vpop.f32.mrf.mxu1 }
0x1319   : > { %5829 = vmax.xlane.f32.xlu0 %v12230_v8 }
0x131a   : > { %v5789_v63 = vpop.f32.mrf.mxu1 }
0x131b   : > { %v12234_v47 = vadd.f32 %v5789_v63, %v13311_v15 }
0x131c   : > { %v5791_v43 = vpop.f32.mrf.mxu1 }
0x131d   : > { %5831 = vmax.xlane.f32.xlu1 %v12234_v47 }
0x131e   : > { %v5794_v18 = vpop.f32.mrf.mxu1 }
0x131f   : > { %v12238_v62 = vadd.f32 %v5794_v18, %v13312_v7 }
0x1320   : > { %v5796_v49 = vpop.f32.mrf.mxu1 }
0x1321   : > { %5833 = vmax.xlane.f32.xlu0 %v12238_v62 }
0x1322   : > { %v5797_v34 = vpop.f32.mrf.mxu1 }
0x1323   : > { %v12242_v9 = vadd.f32 %v5797_v34, %v13313_v29 }
0x1324   : > { %v5799_v27 = vpop.f32.mrf.mxu1 }
0x1325   : > { %5835 = vmax.xlane.f32.xlu1 %v12242_v9 }
0x1326   : > { %v5802_v54 = vpop.f32.mrf.mxu1 }
0x1327   : > { %v12246_v31 = vadd.f32 %v5802_v54, %v13314_v33 }
0x1328   : > { %v5804_v2 = vpop.f32.mrf.mxu1 }
0x1329   : > { %5837 = vmax.xlane.f32.xlu0 %v12246_v31 }
0x132a   : > { %v5805_v56 = vpop.f32.mrf.mxu1 }
0x132b   : > { %v12250_v50 = vadd.f32 %v5805_v56, %v13315_v35 }
0x132c   : > { %v5807_v22 = vpop.f32.mrf.mxu1 }
0x132d   : > { %5839 = vmax.xlane.f32.xlu1 %v12250_v50 }
0x137a   : > { %v5810_v53 = vpop.xlane.xlu0 %5809 }
0x137b   : > { %v5841_v63 = vsub.f32 %v12190_v30, %v5810_v53 }
0x137d   : > { %v5857_v15 = vmul.f32 1.442695, %v5841_v63 }
0x137e   : > { %v5812_v43 = vpop.xlane.xlu1 %5811 }
0x137f   : > { %7972 = vpow2.f32 %v5857_v15  ;;  %v5842_v18 = vsub.f32 %v12194_v46, %v5812_v43 }
0x1381   : > { %v5859_v7 = vmul.f32 1.442695, %v5842_v18 }
0x1382   : > { %v5814_v49 = vpop.xlane.xlu0 %5813 }
0x1383   : > { %7974 = vpow2.f32 %v5859_v7  ;;  %v5843_v34 = vsub.f32 %v12198_v28, %v5814_v49 }
0x1385   : > { %v5861_v29 = vmul.f32 1.442695, %v5843_v34 }
0x1386   : > { %v5816_v27 = vpop.xlane.xlu1 %5815 }
0x1387   : > { %7976 = vpow2.f32 %v5861_v29  ;;  %v5844_v54 = vsub.f32 %v12202_v40, %v5816_v27 }
0x1389   : > { %v5863_v33 = vmul.f32 1.442695, %v5844_v54 }
0x138a   : > { %v5818_v2 = vpop.xlane.xlu0 %5817 }
0x138b   : > { %7978 = vpow2.f32 %v5863_v33  ;;  %v5845_v30 = vsub.f32 %v12206_v13, %v5818_v2 }
0x138c   : > { %v12258_v56 = vpop.eup %7972 }
0x138d   : > { %v5865_v35 = vmul.f32 1.442695, %v5845_v30  ;;  %5889 = vadd.xlane.f32.xlu0 %v12258_v56 }
0x138e   : > { %v5820_v46 = vpop.xlane.xlu1 %5819 }
0x138f   : > { %7980 = vpow2.f32 %v5865_v35  ;;  %v5846_v22 = vsub.f32 %v12210_v14, %v5820_v46 }
0x1390   : > { %v12262_v28 = vpop.eup %7974 }
0x1391   : > { %v5867_v53 = vmul.f32 1.442695, %v5846_v22  ;;  %5891 = vadd.xlane.f32.xlu1 %v12262_v28 }
0x1392   : > { %v5822_v40 = vpop.xlane.xlu0 %5821 }
0x1393   : > { %7982 = vpow2.f32 %v5867_v53  ;;  %v5847_v63 = vsub.f32 %v12214_v61, %v5822_v40 }
0x1394   : > { %v12266_v15 = vpop.eup %7976 }
0x1395   : > { %v5869_v13 = vmul.f32 1.442695, %v5847_v63  ;;  %5893 = vadd.xlane.f32.xlu0 %v12266_v15 }
0x1396   : > { %v5824_v43 = vpop.xlane.xlu1 %5823 }
0x1397   : > { %7984 = vpow2.f32 %v5869_v13  ;;  %v5848_v18 = vsub.f32 %v12218_v32, %v5824_v43 }
0x1398   : > { %v12270_v7 = vpop.eup %7978 }
0x1399   : > { %v5871_v14 = vmul.f32 1.442695, %v5848_v18  ;;  %5895 = vadd.xlane.f32.xlu1 %v12270_v7 }
0x139a   : > { %v5826_v49 = vpop.xlane.xlu0 %5825 }
0x139b   : > { %7986 = vpow2.f32 %v5871_v14  ;;  %v5849_v34 = vsub.f32 %v12222_v60, %v5826_v49 }
0x139c   : > { %v12274_v29 = vpop.eup %7980 }
0x139d   : > { %v5873_v61 = vmul.f32 1.442695, %v5849_v34  ;;  %5897 = vadd.xlane.f32.xlu0 %v12274_v29 }
0x139e   : > { %v5828_v27 = vpop.xlane.xlu1 %5827 }
0x139f   : > { %7988 = vpow2.f32 %v5873_v61  ;;  %v5850_v54 = vsub.f32 %v12226_v38, %v5828_v27 }
0x13a0   : > { %v12278_v33 = vpop.eup %7982 }
0x13a1   : > { %v5875_v32 = vmul.f32 1.442695, %v5850_v54  ;;  %5899 = vadd.xlane.f32.xlu1 %v12278_v33 }
0x13a2   : > { %v5830_v2 = vpop.xlane.xlu0 %5829 }
0x13a3   : > { %7990 = vpow2.f32 %v5875_v32  ;;  %v5851_v30 = vsub.f32 %v12230_v8, %v5830_v2 }
0x13a4   : > { %v12282_v35 = vpop.eup %7984 }
0x13a5   : > { %v5877_v60 = vmul.f32 1.442695, %v5851_v30  ;;  %5901 = vadd.xlane.f32.xlu0 %v12282_v35 }
0x13a6   : > { %v5832_v46 = vpop.xlane.xlu1 %5831 }
0x13a7   : > { %7992 = vpow2.f32 %v5877_v60  ;;  %v5852_v22 = vsub.f32 %v12234_v47, %v5832_v46  ;;  %v7693_v46 = vld [vmem:[#allocation13 + $0x38] sm:$0xff]  }
0x13a8   : > { %v12286_v53 = vpop.eup %7986 }
0x13a9   : > { %v5879_v38 = vmul.f32 1.442695, %v5852_v22  ;;  %5903 = vadd.xlane.f32.xlu1 %v12286_v53  ;;  %v7694_v22 = vld [vmem:[#allocation13 + $0x70] sm:$0xff]  }
0x13aa   : > { %v5834_v40 = vpop.xlane.xlu0 %5833 }
0x13ab   : > { %7994 = vpow2.f32 %v5879_v38  ;;  %v5853_v63 = vsub.f32 %v12238_v62, %v5834_v40  ;;  %v7695_v38 = vld [vmem:[#allocation13 + $0x30] sm:$0xff]   ;;  %v7696_v40 = vld [vmem:[#allocation13 + $0x68] sm:$0xff]  }
0x13ac   : > { %v12290_v13 = vpop.eup %7988 }
0x13ad   : > { %v5881_v8 = vmul.f32 1.442695, %v5853_v63  ;;  %5905 = vadd.xlane.f32.xlu0 %v12290_v13  ;;  %v7697_v63 = vld [vmem:[#allocation13 + $0x28] sm:$0xff]  }
0x13ae   : > { %v5836_v43 = vpop.xlane.xlu1 %5835 }
0x13af   : > { %7996 = vpow2.f32 %v5881_v8  ;;  %v5854_v18 = vsub.f32 %v12242_v9, %v5836_v43  ;;  %v7698_v8 = vld [vmem:[#allocation13 + $0x60] sm:$0xff]  }
0x13b0   : > { %v12294_v14 = vpop.eup %7990  ;;  %v7699_v43 = vld [vmem:[#allocation13 + $0x20] sm:$0xff]  }
0x13b1   : > { %v5883_v47 = vmul.f32 1.442695, %v5854_v18  ;;  %5907 = vadd.xlane.f32.xlu1 %v12294_v14 }
0x13b2   : > { %v5838_v49 = vpop.xlane.xlu0 %5837 }
0x13b3   : > { %7998 = vpow2.f32 %v5883_v47  ;;  %v5855_v34 = vsub.f32 %v12246_v31, %v5838_v49 }
0x13b4   : > { %v12298_v61 = vpop.eup %7992 }
0x13b5   : > { %v5885_v62 = vmul.f32 1.442695, %v5855_v34  ;;  %5909 = vadd.xlane.f32.xlu0 %v12298_v61 }
0x13b6   : > { %v5840_v27 = vpop.xlane.xlu1 %5839 }
0x13b7   : > { %8000 = vpow2.f32 %v5885_v62  ;;  %v5856_v54 = vsub.f32 %v12250_v50, %v5840_v27  ;;  %v7692_v50 = vld [vmem:[#allocation13 + $0x78] sm:$0xff]  }
0x13b8   : > { %v12302_v32 = vpop.eup %7994  ;;  %7295 = vmatprep.subr.bf16.mxu1 %v7692_v50 }
0x13b9   : > { %v5887_v9 = vmul.f32 1.442695, %v5856_v54  ;;  %5911 = vadd.xlane.f32.xlu1 %v12302_v32  ;;  %7296 = vmatpush3.bf16.msra.mxu1 %v7693_v46 }
0x13ba   : > { %7297 = vmatprep.subr.bf16.mxu1 %v7694_v22 }
0x13bb   : > { %8002 = vpow2.f32 %v5887_v9 }
0x13bc   : > { %v12305_v2 = vpop.eup %7996 }
0x13bd   : > { %5913 = vadd.xlane.f32.xlu0 %v12305_v2  ;;  %7298 = vmatpush3.bf16.msra.mxu1 %v7695_v38 }
0x13be   : > { %7299 = vmatprep.subr.bf16.mxu1 %v7696_v40 }
0x13c0   : > { %v12308_v31 = vpop.eup %7998 }
0x13c1   : > { %5915 = vadd.xlane.f32.xlu1 %v12308_v31  ;;  %7300 = vmatpush3.bf16.msra.mxu1 %v7697_v63  ;;  %v13316_v63 = vmov 0  }
0x13c2   : > { %7301 = vmatprep.subr.bf16.mxu1 %v7698_v8 }
0x13c4   : > { %v12311_v30 = vpop.eup %8000 }
0x13c5   : > { %5917 = vadd.xlane.f32.xlu0 %v12311_v30  ;;  %7302 = vmatpush3.bf16.msra.mxu1 %v7699_v43 }
0x13c8   : > { %v12314_v60 = vpop.eup %8002 }
0x13c9   : > { %5919 = vadd.xlane.f32.xlu1 %v12314_v60 }
0x1416   : > { %v5890_v18 = vpop.xlane.xlu0 %5889 }
0x1417   : > { %8004 = vrcp.f32 %v5890_v18 }
0x141a   : > { %v5892_v47 = vpop.xlane.xlu1 %5891 }
0x141b   : > { %8006 = vrcp.f32 %v5892_v47 }
0x141e   : > { %v5894_v49 = vpop.xlane.xlu0 %5893 }
0x141f   : > { %8008 = vrcp.f32 %v5894_v49 }
0x1422   : > { %v5896_v34 = vpop.xlane.xlu1 %5895 }
0x1423   : > { %8010 = vrcp.f32 %v5896_v34 }
0x1424   : > { %v8005_v62 = vpop.eup %8004 }
0x1425   : > { %v5937_v9 = vmul.f32 %v8005_v62, %v12258_v56 }
0x1426   : > { %v5898_v27 = vpop.xlane.xlu0 %5897 }
0x1427   : > { %8012 = vrcp.f32 %v5898_v27 }
0x1428   : > { %v8007_v54 = vpop.eup %8006 }
0x1429   : > { %v5938_v50 = vmul.f32 %v8007_v54, %v12262_v28 }
0x142a   : > { %v5900_v46 = vpop.xlane.xlu1 %5899 }
0x142b   : > { %v5953_v22 = vpack.c.bf16 %v5938_v50, %v5937_v9  ;;  %8014 = vrcp.f32 %v5900_v46 }
0x142c   : > { %v8009_v38 = vpop.eup %8008 }
0x142d   : > { %6010 = vmatmul.mubr.bf16.vlgmr.msra.gmra.mxu0 %v5953_v22  ;;  %v5939_v43 = vmul.f32 %v8009_v38, %v12266_v15 }
0x142e   : > { %v5902_v40 = vpop.xlane.xlu0 %5901  ;;  %6019 = vmatprep.mubr.bf16.mxu0 %v13316_v63 }
0x142f   : > { %8016 = vrcp.f32 %v5902_v40 }
0x1430   : > { %v8011_v8 = vpop.eup %8010 }
0x1431   : > { %v5940_v18 = vmul.f32 %v8011_v8, %v12270_v7 }
0x1432   : > { %v5904_v47 = vpop.xlane.xlu1 %5903 }
0x1433   : > { %8018 = vrcp.f32 %v5904_v47  ;;  %v5954_v56 = vpack.c.bf16 %v5940_v18, %v5939_v43 }
0x1434   : > { %v8013_v28 = vpop.eup %8012 }
0x1435   : > { %6020 = vmatmul.mubr.bf16.gmra.mxu0 %v5954_v56  ;;  %v5941_v62 = vmul.f32 %v8013_v28, %v12274_v29 }
0x1436   : > { %v5906_v49 = vpop.xlane.xlu0 %5905  ;;  %6029 = vmatprep.mubr.bf16.mxu0 %v13316_v63 }
0x1437   : > { %8020 = vrcp.f32 %v5906_v49 }
0x1438   : > { %v8015_v34 = vpop.eup %8014 }
0x1439   : > { %v5942_v27 = vmul.f32 %v8015_v34, %v12278_v33 }
0x143a   : > { %v5908_v54 = vpop.xlane.xlu1 %5907 }
0x143b   : > { %8022 = vrcp.f32 %v5908_v54  ;;  %v5955_v9 = vpack.c.bf16 %v5942_v27, %v5941_v62 }
0x143c   : > { %v8017_v15 = vpop.eup %8016 }
0x143d   : > { %6030 = vmatmul.mubr.bf16.gmra.mxu0 %v5955_v9  ;;  %v5943_v46 = vmul.f32 %v8017_v15, %v12282_v35 }
0x143e   : > { %v5910_v7 = vpop.xlane.xlu0 %5909  ;;  %6039 = vmatprep.mubr.bf16.mxu0 %v13316_v63 }
0x143f   : > { %8024 = vrcp.f32 %v5910_v7 }
0x1440   : > { %v8019_v50 = vpop.eup %8018 }
0x1441   : > { %v5944_v22 = vmul.f32 %v8019_v50, %v12286_v53 }
0x1442   : > { %v5912_v38 = vpop.xlane.xlu1 %5911 }
0x1443   : > { %8026 = vrcp.f32 %v5912_v38  ;;  %v5956_v40 = vpack.c.bf16 %v5944_v22, %v5943_v46  ;;  %v7700_v22 = vld [vmem:[#allocation13 + $0x58] sm:$0xff]  }
0x1444   : > { %v8021_v29 = vpop.eup %8020  ;;  %v7701_v38 = vld [vmem:[#allocation13 + $0x18] sm:$0xff]   ;;  %7303 = vmatprep.subr.bf16.mxu1 %v7700_v22 }
0x1445   : > { %6040 = vmatmul.mubr.bf16.gmra.mxu0 %v5956_v40  ;;  %v5945_v43 = vmul.f32 %v8021_v29, %v12290_v13  ;;  %7304 = vmatpush3.bf16.msra.mxu1 %v7701_v38  ;;  %v7702_v40 = vld [vmem:[#allocation13 + $0x50] sm:$0xff]   ;;  %v7705_v29 = vld [vmem:[#allocation13 + $0x8] sm:$0xff]  }
0x1446   : > { %v5914_v33 = vpop.xlane.xlu0 %5913  ;;  %6049 = vmatprep.mubr.bf16.mxu0 %v13316_v63  ;;  %7305 = vmatprep.subr.bf16.mxu1 %v7702_v40  ;;  %v13318_v40 = vld [vmem:[#allocation160_spill] sm:$0xff] }
0x1447   : > { %8028 = vrcp.f32 %v5914_v33  ;;  %v7706_v33 = vld [vmem:[#allocation13 + $0x40] sm:$0xff]  }
0x1448   : > { %v8023_v8 = vpop.eup %8022 }
0x1449   : > { %v5946_v18 = vmul.f32 %v8023_v8, %v12294_v14  ;;  %v12348_v8 = vld [vmem:[#allocation14 + $0x28] sm:$0xff]  }
0x144a   : > { %v5916_v47 = vpop.xlane.xlu1 %5915 }
0x144b   : > { %8030 = vrcp.f32 %v5916_v47  ;;  %v5957_v56 = vpack.c.bf16 %v5946_v18, %v5945_v43  ;;  %v6090_v18 = vmul.f32 1.55, %v12100_v42 }
0x144c   : > { %v8025_v35 = vpop.eup %8024 }
0x144d   : > { %6050 = vmatmul.mubr.bf16.gmra.mxu0 %v5957_v56  ;;  %v5947_v49 = vmul.f32 %v8025_v35, %v12298_v61 }
0x144e   : > { %v5918_v53 = vpop.xlane.xlu0 %5917  ;;  %6059 = vmatprep.mubr.bf16.mxu0 %v13316_v63 }
0x144f   : > { %8032 = vrcp.f32 %v5918_v53 }
0x1450   : > { %v8027_v28 = vpop.eup %8026 }
0x1451   : > { %v5948_v34 = vmul.f32 %v8027_v28, %v12302_v32  ;;  %v12354_v28 = vstv %s7137_s8 }
0x1452   : > { %v5920_v62 = vpop.xlane.xlu1 %5919 }
0x1453   : > { %8034 = vrcp.f32 %v5920_v62  ;;  %v5958_v27 = vpack.c.bf16 %v5948_v34, %v5947_v49  ;;  %v6091_v49 = vmul.f32 1.55, %v12103_v45  ;;  %v6092_v62 = vmul.f32 1.55, %v12106_v41  ;;  %v13317_v41 = vld [vmem:[#allocation156_spill] sm:$0xff] }
0x1454   : > { %v8029_v13 = vpop.eup %8028  ;;  %v6094_v45 = vmul.f32 1.55, %v12076_v25 }
0x1455   : > { %6060 = vmatmul.mubr.bf16.gmra.mxu0 %v5958_v27  ;;  %v5949_v54 = vmul.f32 %v8029_v13, %v12305_v2  ;;  %v7703_v2 = vld [vmem:[#allocation13 + $0x10] sm:$0xff]  }
0x1456   : > { %6069 = vmatprep.mubr.bf16.mxu0 %v13316_v63  ;;  %7306 = vmatpush3.bf16.msra.mxu1 %v7703_v2 }
0x1458   : > { %v8031_v14 = vpop.eup %8030 }
0x1459   : > { %v5950_v9 = vmul.f32 %v8031_v14, %v12308_v31  ;;  %v7704_v31 = vld [vmem:[#allocation13 + $0x48] sm:$0xff]  }
0x145a   : > { %7307 = vmatprep.subr.bf16.mxu1 %v7704_v31 }
0x145b   : > { %v5959_v15 = vpack.c.bf16 %v5950_v9, %v5949_v54  ;;  %7308 = vmatpush3.bf16.msra.mxu1 %v7705_v29 }
0x145c   : > { %v8033_v7 = vpop.eup %8032  ;;  %7309 = vmatprep.subr.bf16.mxu1 %v7706_v33 }
0x145d   : > { %6070 = vmatmul.mubr.bf16.gmra.mxu0 %v5959_v15  ;;  %v5951_v32 = vmul.f32 %v8033_v7, %v12311_v30  ;;  %v12340_v30 = vld [vmem:[#allocation14 + $0x38] sm:$0xff]   ;;  %v6093_v15 = vmul.f32 1.55, %v12109_v23  ;;  %v6095_v23 = vmul.f32 1.55, %v12079_v0 }
0x145e   : > { %6079 = vmatprep.mubr.bf16.mxu0 %v13316_v63  ;;  %v7707_v63 = vld [vmem:[#allocation13] sm:$0xff]   ;;  %7375 = vmatprep.subr.bf16.mxu0 %v12340_v30 }
0x145f   : > { %7310 = vmatpush3.bf16.msra.mxu1 %v7707_v63  ;;  %7376 = vmatpush3.bf16.msra.mxu0 %v12340_v30 }
0x1460   : > { %v8035_v61 = vpop.eup %8034  ;;  %7407 = vmatprep.subr.bf16.mxu1 %v12340_v30 }
0x1461   : > { %v5952_v50 = vmul.f32 %v8035_v61, %v12314_v60  ;;  %v12342_v60 = vld [vmem:[#allocation14 + $0x30] sm:$0xff]  }
0x1462   : > { %7377 = vmatprep.subr.bf16.mxu0 %v12342_v60 }
0x1463   : > { %v5960_v46 = vpack.c.bf16 %v5952_v50, %v5951_v32  ;;  %7378 = vmatpush3.bf16.msra.mxu0 %v12342_v60 }
0x1464   : > { %7379 = vmatprep.subr.bf16.mxu0 %v12348_v8 }
0x1465   : > { %6080 = vmatmul.mubr.bf16.gmra.mxu0 %v5960_v46 }
0x1467   : > { %7380 = vmatpush3.bf16.msra.mxu0 %v12348_v8 }
0x14ed   : > { %v6011_v43 = vpop.f32.mrf.mxu0 }
0x14ee   : > { %v6122_v47 = vmul.f32 0.55, %v6011_v43 }
0x14ef   : > { %v6013_v56 = vpop.f32.mrf.mxu0 }
0x14f0   : > { %v6154_v35 = vsub.f32 %v6090_v18, %v6122_v47  ;;  %v6123_v53 = vmul.f32 0.55, %v6013_v56  ;;  %v6096_v18 = vmul.f32 1.55, %v12082_v36 }
0x14f1   : > { %v6015_v34 = vpop.f32.mrf.mxu0 }
0x14f2   : > { %v6124_v27 = vmul.f32 0.55, %v6015_v34  ;;  %v6155_v13 = vsub.f32 %v6091_v49, %v6123_v53  ;;  %v6188_v54 = vmul.f32 %v12354_v28, %v6154_v35  ;;  %v13319_v53 = vld [vmem:[#allocation158_spill] sm:$0xff]  ;;  %v13320_v49 = vld [vmem:[#allocation161_spill] sm:$0xff] }
0x14f3   : > { %v6017_v14 = vpop.f32.mrf.mxu0 }
0x14f4   : > { %v6156_v9 = vsub.f32 %v6092_v62, %v6124_v27  ;;  %v6125_v42 = vmul.f32 0.55, %v6017_v14  ;;  %v6189_v46 = vmul.f32 %v12354_v28, %v6155_v13  ;;  %v6220_v38 = vadd.f32 %v6188_v54, %v13317_v41 }
0x14f5   : > { %v6021_v7 = vpop.f32.mrf.mxu0  ;;  %v6097_v27 = vmul.f32 1.55, %v12085_v26 }
0x14f6   : > { %v6190_v61 = vmul.f32 %v12354_v28, %v6156_v9  ;;  %v6157_v32 = vsub.f32 %v6093_v15, %v6125_v42  ;;  %v6126_v50 = vmul.f32 0.55, %v6021_v7  ;;  %v6221_v25 = vadd.f32 %v6189_v46, %v13319_v53 }
0x14f7   : > { %v6023_v22 = vpop.f32.mrf.mxu0  ;;  %v6098_v7 = vmul.f32 1.55, %v11909_v51  ;;  %v13323_v51 = vld [vmem:[#allocation116_spill] sm:$0xff] }
0x14f8   : > { %v6222_v2 = vadd.f32 %v6190_v61, %v13318_v40  ;;  %v6191_v31 = vmul.f32 %v12354_v28, %v6157_v32  ;;  %v6127_v29 = vmul.f32 0.55, %v6023_v22  ;;  %v6158_v33 = vsub.f32 %v6094_v45, %v6126_v50  ;;  %v13321_v32 = vld [vmem:[#allocation115_spill] sm:$0xff]  ;;  %v13322_v45 = vld [vmem:[#allocation113_spill] sm:$0xff] }
0x14f9   : > { %v6025_v63 = vpop.f32.mrf.mxu0 }
0x14fa   : > { %v6252_v43 = vpack.c.bf16 %v6222_v2, %v6220_v38  ;;  %v6128_v47 = vmul.f32 0.55, %v6025_v63  ;;  %v6159_v56 = vsub.f32 %v6095_v23, %v6127_v29  ;;  %v6223_v34 = vadd.f32 %v6191_v31, %v13320_v49  ;;  %v13324_v63 = vld [vmem:[#allocation114_spill] sm:$0xff] }
0x14fb   : > { %v6027_v35 = vpop.f32.mrf.mxu0  ;;  %v6192_v14 = vmul.f32 %v12354_v28, %v6158_v33  ;;  %v6099_v38 = vmul.f32 1.55, %v11914_v17  ;;  %v6100_v2 = vmul.f32 1.55, %v11940_v21 }
0x14fc   : > { %v6160_v62 = vsub.f32 %v6096_v18, %v6128_v47  ;;  %v6129_v13 = vmul.f32 0.55, %v6027_v35  ;;  %v6253_v9 = vpack.c.bf16 %v6223_v34, %v6221_v25  ;;  %v6193_v36 = vmul.f32 %v12354_v28, %v6159_v56 }
0x14fd   : > { %v6031_v54 = vpop.f32.mrf.mxu0  ;;  %v6224_v22 = vadd.f32 %v6192_v14, %v13322_v45  ;;  %v6101_v56 = vmul.f32 1.55, %v11943_v58  ;;  %v13325_v58 = vld [vmem:[#allocation56_spill] sm:$0xff] }
0x14fe   : > { %v6194_v0 = vmul.f32 %v12354_v28, %v6160_v62  ;;  %v6161_v15 = vsub.f32 %v6097_v27, %v6129_v13  ;;  %v6130_v42 = vmul.f32 0.55, %v6031_v54  ;;  %6435 = vmatprep.mubr.bf16.mxu1 %v6253_v9  ;;  %v6225_v18 = vadd.f32 %v6193_v36, %v13324_v63  ;;  %v13326_v9 = vld [vmem:[#allocation52_spill] sm:$0xff] }
0x14ff   : > { %v6033_v61 = vpop.f32.mrf.mxu0  ;;  %6436 = vmatmul.mubr.bf16.vlgmr.msra.gmra.mxu1 %v6252_v43  ;;  %v6102_v62 = vmul.f32 1.55, %v11882_v1  ;;  %v6104_v36 = vmul.f32 1.55, %v11896_v6  ;;  %v13327_v1 = vld [vmem:[#allocation24_spill] sm:$0xff] }
0x1500   : > { %v6226_v50 = vadd.f32 %v6194_v0, %v13321_v32  ;;  %v6195_v46 = vmul.f32 %v12354_v28, %v6161_v15  ;;  %v6131_v26 = vmul.f32 0.55, %v6033_v61  ;;  %v6162_v41 = vsub.f32 %v6098_v7, %v6130_v42  ;;  %7415 = vmatpush3.bf16.msra.mxu1 %v12340_v30 }
0x1501   : > { %v6035_v40 = vpop.f32.mrf.mxu0  ;;  %7408 = vmatprep.subr.bf16.mxu1 %v12342_v60  ;;  %v6103_v15 = vmul.f32 1.55, %v11890_v55 }
0x1502   : > { %v6132_v31 = vmul.f32 0.55, %v6035_v40  ;;  %v6227_v29 = vadd.f32 %v6195_v46, %v13323_v51  ;;  %v6163_v33 = vsub.f32 %v6099_v38, %v6131_v26  ;;  %v6254_v43 = vpack.c.bf16 %v6226_v50, %v6224_v22  ;;  %v13328_v46 = vld [vmem:[#allocation25_spill] sm:$0xff] }
0x1503   : > { %v6037_v23 = vpop.f32.mrf.mxu0  ;;  %v6196_v17 = vmul.f32 %v12354_v28, %v6162_v41  ;;  %v6105_v41 = vmul.f32 1.55, %v11899_v37 }
0x1504   : > { %v6164_v47 = vsub.f32 %v6100_v2, %v6132_v31  ;;  %v6133_v35 = vmul.f32 0.55, %v6037_v23  ;;  %v6255_v30 = vpack.c.bf16 %v6227_v29, %v6225_v18  ;;  %7416 = vmatpush3.bf16.msra.mxu1 %v12342_v60  ;;  %v6197_v34 = vmul.f32 %v12354_v28, %v6163_v33  ;;  %v13329_v23 = vld [vmem:[#allocation54_spill] sm:$0xff] }
0x1505   : > { %v6041_v53 = vpop.f32.mrf.mxu0  ;;  %7409 = vmatprep.subr.bf16.mxu1 %v12348_v8  ;;  %v6228_v60 = vadd.f32 %v6196_v17, %v13326_v9  ;;  %v6106_v29 = vmul.f32 1.55, %v11893_v44 }
0x1506   : > { %v6198_v21 = vmul.f32 %v12354_v28, %v6164_v47  ;;  %v6165_v25 = vsub.f32 %v6101_v56, %v6133_v35  ;;  %v6134_v49 = vmul.f32 0.55, %v6041_v53  ;;  %6443 = vmatprep.mubr.bf16.mxu1 %v6255_v30  ;;  %v6229_v26 = vadd.f32 %v6197_v34, %v13328_v46  ;;  %v13332_v34 = vld [vmem:[#allocation27_spill] sm:$0xff] }
0x1507   : > { %v6043_v27 = vpop.f32.mrf.mxu0  ;;  %6444 = vmatmul.mubr.bf16.gmra.mxu1 %v6254_v43  ;;  %v13330_v43 = vld [vmem:[#allocation55_spill] sm:$0xff]  ;;  %v6107_v35 = vmul.f32 1.55, %v11902_v24  ;;  %v6108_v53 = vmul.f32 1.55, %v11906_v20 }
0x1508   : > { %v6230_v13 = vadd.f32 %v6198_v21, %v13325_v58  ;;  %v6199_v14 = vmul.f32 %v12354_v28, %v6165_v25  ;;  %v6135_v54 = vmul.f32 0.55, %v6043_v27  ;;  %v6166_v0 = vsub.f32 %v6102_v62, %v6134_v49  ;;  %7417 = vmatpush3.bf16.msra.mxu1 %v12348_v8  ;;  %v13331_v21 = vld [vmem:[#allocation26_spill] sm:$0xff] }
0x1509   : > { %v6045_v42 = vpop.f32.mrf.mxu0 }
0x150a   : > { %v6136_v7 = vmul.f32 0.55, %v6045_v42  ;;  %v6231_v61 = vadd.f32 %v6199_v14, %v13327_v1  ;;  %v6167_v32 = vsub.f32 %v6103_v15, %v6135_v54  ;;  %v6256_v45 = vpack.c.bf16 %v6230_v13, %v6228_v60 }
0x150b   : > { %v6047_v50 = vpop.f32.mrf.mxu0  ;;  %v6200_v40 = vmul.f32 %v12354_v28, %v6166_v0  ;;  %v6109_v13 = vmul.f32 1.55, %v11933_v4  ;;  %v6110_v42 = vmul.f32 1.55, %v11936_v5 }
0x150c   : > { %v6168_v22 = vsub.f32 %v6104_v36, %v6136_v7  ;;  %v6137_v38 = vmul.f32 0.55, %v6047_v50  ;;  %v6257_v2 = vpack.c.bf16 %v6231_v61, %v6229_v26  ;;  %v6201_v51 = vmul.f32 %v12354_v28, %v6167_v32  ;;  %v13333_v7 = vld [vmem:[#allocation51_spill] sm:$0xff]  ;;  %v13334_v32 = vld [vmem:[#allocation53_spill] sm:$0xff] }
0x150d   : > { %v6051_v55 = vpop.f32.mrf.mxu0  ;;  %v6232_v47 = vadd.f32 %v6200_v40, %v13330_v43  ;;  %v6111_v26 = vmul.f32 1.55, %v11962_v3  ;;  %v6114_v43 = vmul.f32 1.55, %v11998_v19 }
0x150e   : > { %v6202_v8 = vmul.f32 %v12354_v28, %v6168_v22  ;;  %v6169_v31 = vsub.f32 %v6105_v41, %v6137_v38  ;;  %v6138_v6 = vmul.f32 0.55, %v6051_v55  ;;  %6451 = vmatprep.mubr.bf16.mxu1 %v6257_v2  ;;  %v6233_v62 = vadd.f32 %v6201_v51, %v13332_v34  ;;  %v13335_v38 = vld [vmem:[#allocation48_spill] sm:$0xff]  ;;  %v13336_v2 = vld [vmem:[#allocation50_spill] sm:$0xff] }
0x150f   : > { %v6053_v33 = vpop.f32.mrf.mxu0  ;;  %6452 = vmatmul.mubr.bf16.gmra.mxu1 %v6256_v45  ;;  %v6112_v22 = vmul.f32 1.55, %v11972_v39  ;;  %v6113_v51 = vmul.f32 1.55, %v11988_v10 }
0x1510   : > { %v6234_v63 = vadd.f32 %v6202_v8, %v13329_v23  ;;  %v6203_v18 = vmul.f32 %v12354_v28, %v6169_v31  ;;  %v6139_v37 = vmul.f32 0.55, %v6053_v33  ;;  %v6170_v56 = vsub.f32 %v6106_v29, %v6138_v6 }
0x1511   : > { %v6055_v17 = vpop.f32.mrf.mxu0 }
0x1512   : > { %v6140_v30 = vmul.f32 0.55, %v6055_v17  ;;  %v6235_v25 = vadd.f32 %v6203_v18, %v13331_v21  ;;  %v6171_v44 = vsub.f32 %v6107_v35, %v6139_v37  ;;  %v6258_v27 = vpack.c.bf16 %v6234_v63, %v6232_v47 }
0x1513   : > { %v6057_v49 = vpop.f32.mrf.mxu0  ;;  %v6204_v54 = vmul.f32 %v12354_v28, %v6170_v56  ;;  %v13337_v56 = vld [vmem:[#allocation47_spill] sm:$0xff] }
0x1514   : > { %v6172_v58 = vsub.f32 %v6108_v53, %v6140_v30  ;;  %v6141_v14 = vmul.f32 0.55, %v6057_v49  ;;  %v6259_v60 = vpack.c.bf16 %v6235_v25, %v6233_v62  ;;  %v6205_v15 = vmul.f32 %v12354_v28, %v6171_v44  ;;  %v13338_v53 = vld [vmem:[#allocation49_spill] sm:$0xff]  ;;  %v13339_v62 = vld [vmem:[#allocation44_spill] sm:$0xff] }
0x1515   : > { %v6061_v9 = vpop.f32.mrf.mxu0  ;;  %v6236_v50 = vadd.f32 %v6204_v54, %v13334_v32  ;;  %v6115_v25 = vmul.f32 1.55, %v11979_v57  ;;  %v6116_v49 = vmul.f32 1.55, %v12006_v52  ;;  %v6118_v52 = vmul.f32 1.55, %v11969_v59 }
0x1516   : > { %v6206_v24 = vmul.f32 %v12354_v28, %v6172_v58  ;;  %v6173_v0 = vsub.f32 %v6109_v13, %v6141_v14  ;;  %v6142_v20 = vmul.f32 0.55, %v6061_v9  ;;  %6459 = vmatprep.mubr.bf16.mxu1 %v6259_v60  ;;  %v6237_v8 = vadd.f32 %v6205_v15, %v13336_v2  ;;  %v13340_v13 = vld [vmem:[#allocation46_spill] sm:$0xff] }
0x1517   : > { %v6063_v36 = vpop.f32.mrf.mxu0  ;;  %6460 = vmatmul.mubr.bf16.gmra.mxu1 %v6258_v27  ;;  %v6117_v60 = vmul.f32 1.55, %v11992_v48  ;;  %v6120_v59 = vmul.f32 1.55, %v11985_v11  ;;  %v13344_v2 = vld [vmem:[#allocation42_spill] sm:$0xff]  ;;  %v13345_v11 = vld [vmem:[#allocation41_spill] sm:$0xff] }
0x1518   : > { %v6238_v1 = vadd.f32 %v6206_v24, %v13333_v7  ;;  %v6207_v61 = vmul.f32 %v12354_v28, %v6173_v0  ;;  %v6143_v4 = vmul.f32 0.55, %v6063_v36  ;;  %v6174_v46 = vsub.f32 %v6110_v42, %v6142_v20 }
0x1519   : > { %v6065_v45 = vpop.f32.mrf.mxu0 }
0x151a   : > { %v6144_v41 = vmul.f32 0.55, %v6065_v45  ;;  %v6239_v40 = vadd.f32 %v6207_v61, %v13335_v38  ;;  %v6175_v5 = vsub.f32 %v6111_v26, %v6143_v4  ;;  %v6260_v31 = vpack.c.bf16 %v6238_v1, %v6236_v50  ;;  %v13341_v4 = vld [vmem:[#allocation43_spill] sm:$0xff]  ;;  %v13342_v26 = vld [vmem:[#allocation45_spill] sm:$0xff] }
0x151b   : > { %v6067_v55 = vpop.f32.mrf.mxu0  ;;  %v6208_v33 = vmul.f32 %v12354_v28, %v6174_v46  ;;  %v6119_v61 = vmul.f32 1.55, %v11982_v16 }
0x151c   : > { %v6176_v6 = vsub.f32 %v6112_v22, %v6144_v41  ;;  %v6145_v29 = vmul.f32 0.55, %v6067_v55  ;;  %v6261_v63 = vpack.c.bf16 %v6239_v40, %v6237_v8  ;;  %v6209_v37 = vmul.f32 %v12354_v28, %v6175_v5  ;;  %v13343_v40 = vld [vmem:[#allocation40_spill] sm:$0xff] }
0x151d   : > { %v6071_v23 = vpop.f32.mrf.mxu0  ;;  %v6240_v30 = vadd.f32 %v6208_v33, %v13338_v53  ;;  %v7711_v53 = vld [vmem:[#allocation14 + $0x20] sm:$0xff]  }
0x151e   : > { %v6210_v3 = vmul.f32 %v12354_v28, %v6176_v6  ;;  %v6177_v18 = vsub.f32 %v6113_v51, %v6145_v29  ;;  %v6146_v39 = vmul.f32 0.55, %v6071_v23  ;;  %6467 = vmatprep.mubr.bf16.mxu1 %v6261_v63  ;;  %v6241_v14 = vadd.f32 %v6209_v37, %v13340_v13  ;;  %7381 = vmatprep.subr.bf16.mxu0 %v7711_v53 }
0x151f   : > { %v6073_v47 = vpop.f32.mrf.mxu0  ;;  %6468 = vmatmul.mubr.bf16.gmra.mxu1 %v6260_v31  ;;  %v6121_v51 = vmul.f32 1.55, %v11995_v12  ;;  %7410 = vmatprep.subr.bf16.mxu1 %v7711_v53 }
0x1520   : > { %v6242_v35 = vadd.f32 %v6210_v3, %v13337_v56  ;;  %v6211_v17 = vmul.f32 %v12354_v28, %v6177_v18  ;;  %v6147_v10 = vmul.f32 0.55, %v6073_v47  ;;  %v6178_v21 = vsub.f32 %v6114_v43, %v6146_v39  ;;  %v13346_v39 = vld [vmem:[#allocation39_spill] sm:$0xff]  ;;  %v13347_v47 = vld [vmem:[#allocation38_spill] sm:$0xff]  ;;  %7382 = vmatpush3.bf16.msra.mxu0 %v7711_v53  ;;  %7418 = vmatpush3.bf16.msra.mxu1 %v7711_v53 }
0x1521   : > { %v6075_v44 = vpop.f32.mrf.mxu0 }
0x1522   : > { %v6148_v34 = vmul.f32 0.55, %v6075_v44  ;;  %v6243_v27 = vadd.f32 %v6211_v17, %v13339_v62  ;;  %v6179_v19 = vsub.f32 %v6115_v25, %v6147_v10  ;;  %v6262_v54 = vpack.c.bf16 %v6242_v35, %v6240_v30  ;;  %v13348_v35 = vld [vmem:[#allocation36_spill] sm:$0xff]  ;;  %v7712_v30 = vld [vmem:[#allocation14 + $0x18] sm:$0xff]   ;;  %v7715_v25 = vld [vmem:[#allocation14] sm:$0xff]  }
0x1523   : > { %v6077_v58 = vpop.f32.mrf.mxu0  ;;  %v6212_v0 = vmul.f32 %v12354_v28, %v6178_v21  ;;  %7383 = vmatprep.subr.bf16.mxu0 %v7712_v30  ;;  %7411 = vmatprep.subr.bf16.mxu1 %v7712_v30  ;;  %v7714_v21 = vld [vmem:[#allocation14 + $0x8] sm:$0xff]  }
0x1524   : > { %v6180_v9 = vsub.f32 %v6116_v49, %v6148_v34  ;;  %v6149_v24 = vmul.f32 0.55, %v6077_v58  ;;  %v6263_v15 = vpack.c.bf16 %v6243_v27, %v6241_v14  ;;  %v6213_v7 = vmul.f32 %v12354_v28, %v6179_v19  ;;  %7384 = vmatpush3.bf16.msra.mxu0 %v7712_v30  ;;  %7419 = vmatpush3.bf16.msra.mxu1 %v7712_v30  ;;  %v12459_v27 = vld [vmem:[%s12547_s14] ss:$0 sm:$0xff] }
0x1525   : > { %v6081_v20 = vpop.f32.mrf.mxu0  ;;  %v6244_v45 = vadd.f32 %v6212_v0, %v13342_v26 }
0x1526   : > { %v6214_v57 = vmul.f32 %v12354_v28, %v6180_v9  ;;  %v6181_v42 = vsub.f32 %v6117_v60, %v6149_v24  ;;  %v6150_v36 = vmul.f32 0.55, %v6081_v20  ;;  %6475 = vmatprep.mubr.bf16.mxu1 %v6263_v15  ;;  %v6245_v8 = vadd.f32 %v6213_v7, %v13344_v2 }
0x1527   : > { %v6083_v1 = vpop.f32.mrf.mxu0  ;;  %6476 = vmatmul.mubr.bf16.gmra.mxu1 %v6262_v54 }
0x1528   : > { %v6246_v32 = vadd.f32 %v6214_v57, %v13341_v4  ;;  %v6215_v48 = vmul.f32 %v12354_v28, %v6181_v42  ;;  %v6182_v50 = vsub.f32 %v6118_v52, %v6150_v36  ;;  %v6151_v46 = vmul.f32 0.55, %v6083_v1 }
0x1529   : > { %v6085_v22 = vpop.f32.mrf.mxu0 }
0x152a   : > { %v6183_v41 = vsub.f32 %v6119_v61, %v6151_v46  ;;  %v6152_v38 = vmul.f32 0.55, %v6085_v22  ;;  %v6247_v5 = vadd.f32 %v6215_v48, %v13343_v40  ;;  %v6264_v16 = vpack.c.bf16 %v6246_v32, %v6244_v45 }
0x152b   : > { %v6087_v55 = vpop.f32.mrf.mxu0  ;;  %v6216_v31 = vmul.f32 %v12354_v28, %v6182_v50 }
0x152c   : > { %v6184_v6 = vsub.f32 %v6120_v59, %v6152_v38  ;;  %v6153_v29 = vmul.f32 0.55, %v6087_v55  ;;  %v6265_v33 = vpack.c.bf16 %v6247_v5, %v6245_v8  ;;  %v6217_v23 = vmul.f32 %v12354_v28, %v6183_v41 }
0x152d   : > { %v6248_v18 = vadd.f32 %v6216_v31, %v13345_v11 }
0x152e   : > { %v6218_v63 = vmul.f32 %v12354_v28, %v6184_v6  ;;  %v6185_v3 = vsub.f32 %v6121_v51, %v6153_v29  ;;  %6483 = vmatprep.mubr.bf16.mxu1 %v6265_v33  ;;  %v6249_v56 = vadd.f32 %v6217_v23, %v13347_v47 }
0x152f   : > { %6484 = vmatmul.mubr.bf16.gmra.mxu1 %v6264_v16 }
0x1530   : > { %v6250_v37 = vadd.f32 %v6218_v63, %v13346_v39  ;;  %v6219_v43 = vmul.f32 %v12354_v28, %v6185_v3  ;;  %v7713_v28 = vld [vmem:[#allocation14 + $0x10] sm:$0xff]  }
0x1531   : > { %7385 = vmatprep.subr.bf16.mxu0 %v7713_v28  ;;  %7412 = vmatprep.subr.bf16.mxu1 %v7713_v28 }
0x1532   : > { %v6251_v17 = vadd.f32 %v6219_v43, %v13348_v35  ;;  %v6266_v12 = vpack.c.bf16 %v6250_v37, %v6248_v18  ;;  %7386 = vmatpush3.bf16.msra.mxu0 %v7713_v28  ;;  %7420 = vmatpush3.bf16.msra.mxu1 %v7713_v28 }
0x1533   : > { %7387 = vmatprep.subr.bf16.mxu0 %v7714_v21  ;;  %7413 = vmatprep.subr.bf16.mxu1 %v7714_v21 }
0x1534   : > { %v6267_v10 = vpack.c.bf16 %v6251_v17, %v6249_v56 }
0x1536   : > { %6491 = vmatprep.mubr.bf16.mxu1 %v6267_v10  ;;  %7388 = vmatpush3.bf16.msra.mxu0 %v7714_v21 }
0x1537   : > { %6492 = vmatmul.mubr.bf16.gmra.mxu1 %v6266_v12  ;;  %7389 = vmatprep.subr.bf16.mxu0 %v7715_v25 }
0x1538   : > { %7421 = vmatpush3.bf16.msra.mxu1 %v7714_v21 }
0x1539   : > { %7414 = vmatprep.subr.bf16.mxu1 %v7715_v25 }
0x153a   : > { %7390 = vmatpush3.bf16.msra.mxu0 %v7715_v25 }
0x153c   : > { %7422 = vmatpush3.bf16.msra.mxu1 %v7715_v25 }
0x15bf   : > { %v7311_v44 = vpop.f32.mrf.mxu1 }
0x15c1   : > { %v7312_v49 = vpop.f32.mrf.mxu1 }
0x15c2   : > { %v7313_v62 = vadd.f32 %v7312_v49, %v7311_v44 }
0x15c3   : > { %v7314_v34 = vpop.f32.mrf.mxu1 }
0x15c4   : > { %v6438_v14 = vadd.f32 %v7313_v62, %v12459_v27 }
0x15c5   : > { %v7315_v19 = vpop.f32.mrf.mxu1 }
0x15c6   : > { %v7316_v58 = vadd.f32 %v7315_v19, %v7314_v34 }
0x15c7   : > { %v7317_v13 = vpop.f32.mrf.mxu1 }
0x15c8   : > { %v6441_v54 = vadd.f32 %v7316_v58, %v12459_v27 }
0x15c9   : > { %v7318_v9 = vpop.f32.mrf.mxu1 }
0x15ca   : > { %v6500_v60 = vpack.c.bf16 %v6441_v54, %v6438_v14  ;;  %v7319_v0 = vadd.f32 %v7318_v9, %v7317_v13  ;;  %v12480_v9 = vld [vmem:[%s13349_s18] ss:$0 sm:$0xff] }
0x15cb   : > { %v7320_v24 = vpop.f32.mrf.mxu1 }
0x15cc   : > { %7391 = vmatprep.mubr.bf16.mxu0 %v6500_v60  ;;  %v6446_v42 = vadd.f32 %v7319_v0, %v12459_v27 }
0x15cd   : > { %v7321_v20 = vpop.f32.mrf.mxu1 }
0x15ce   : > { %v7322_v15 = vadd.f32 %v7321_v20, %v7320_v24 }
0x15cf   : > { %v7323_v57 = vpop.f32.mrf.mxu1 }
0x15d0   : > { %v6449_v52 = vadd.f32 %v7322_v15, %v12459_v27 }
0x15d1   : > { %v7324_v36 = vpop.f32.mrf.mxu1 }
0x15d2   : > { %v6501_v7 = vpack.c.bf16 %v6449_v52, %v6446_v42  ;;  %v7325_v61 = vadd.f32 %v7324_v36, %v7323_v57 }
0x15d3   : > { %v7326_v1 = vpop.f32.mrf.mxu1 }
0x15d4   : > { %7392 = vmatmul.mubr.bf16.vlgmr.msra.gmra.mxu0 %v6501_v7  ;;  %v6454_v50 = vadd.f32 %v7325_v61, %v12459_v27 }
0x15d5   : > { %v7327_v4 = vpop.f32.mrf.mxu1 }
0x15d6   : > { %v7328_v32 = vadd.f32 %v7327_v4, %v7326_v1 }
0x15d7   : > { %v7329_v48 = vpop.f32.mrf.mxu1 }
0x15d8   : > { %v6457_v46 = vadd.f32 %v7328_v32, %v12459_v27 }
0x15d9   : > { %v7330_v26 = vpop.f32.mrf.mxu1 }
0x15da   : > { %v6502_v45 = vpack.c.bf16 %v6457_v46, %v6454_v50  ;;  %v7331_v41 = vadd.f32 %v7330_v26, %v7329_v48 }
0x15db   : > { %v7332_v22 = vpop.f32.mrf.mxu1 }
0x15dc   : > { %7395 = vmatprep.mubr.bf16.mxu0 %v6502_v45  ;;  %v6462_v5 = vadd.f32 %v7331_v41, %v12459_v27 }
0x15dd   : > { %v7333_v59 = vpop.f32.mrf.mxu1 }
0x15de   : > { %v7334_v38 = vadd.f32 %v7333_v59, %v7332_v22 }
0x15df   : > { %v7335_v40 = vpop.f32.mrf.mxu1 }
0x15e0   : > { %v6465_v55 = vadd.f32 %v7334_v38, %v12459_v27 }
0x15e1   : > { %v7336_v2 = vpop.f32.mrf.mxu1 }
0x15e2   : > { %v6503_v8 = vpack.c.bf16 %v6465_v55, %v6462_v5  ;;  %v7337_v31 = vadd.f32 %v7336_v2, %v7335_v40 }
0x15e3   : > { %v7338_v16 = vpop.f32.mrf.mxu1 }
0x15e4   : > { %7396 = vmatmul.mubr.bf16.gmra.mxu0 %v6503_v8  ;;  %v6470_v33 = vadd.f32 %v7337_v31, %v12459_v27 }
0x15e5   : > { %v7339_v6 = vpop.f32.mrf.mxu1 }
0x15e6   : > { %v7340_v51 = vadd.f32 %v7339_v6, %v7338_v16 }
0x15e7   : > { %v7341_v29 = vpop.f32.mrf.mxu1 }
0x15e8   : > { %v6473_v23 = vadd.f32 %v7340_v51, %v12459_v27 }
0x15e9   : > { %v7342_v63 = vpop.f32.mrf.mxu1 }
0x15ea   : > { %v6504_v3 = vpack.c.bf16 %v6473_v23, %v6470_v33  ;;  %v7343_v18 = vadd.f32 %v7342_v63, %v7341_v29 }
0x15eb   : > { %v7344_v11 = vpop.f32.mrf.mxu1 }
0x15ec   : > { %7399 = vmatprep.mubr.bf16.mxu0 %v6504_v3  ;;  %v6478_v47 = vadd.f32 %v7343_v18, %v12459_v27 }
0x15ed   : > { %v7345_v39 = vpop.f32.mrf.mxu1 }
0x15ee   : > { %v7346_v37 = vadd.f32 %v7345_v39, %v7344_v11 }
0x15ef   : > { %v7347_v43 = vpop.f32.mrf.mxu1 }
0x15f0   : > { %v6481_v56 = vadd.f32 %v7346_v37, %v12459_v27 }
0x15f1   : > { %v7348_v35 = vpop.f32.mrf.mxu1 }
0x15f2   : > { %v6505_v17 = vpack.c.bf16 %v6481_v56, %v6478_v47  ;;  %v7349_v10 = vadd.f32 %v7348_v35, %v7347_v43 }
0x15f3   : > { %v7350_v12 = vpop.f32.mrf.mxu1 }
0x15f4   : > { %7400 = vmatmul.mubr.bf16.gmra.mxu0 %v6505_v17  ;;  %v6486_v21 = vadd.f32 %v7349_v10, %v12459_v27 }
0x15f5   : > { %v7351_v53 = vpop.f32.mrf.mxu1 }
0x15f6   : > { %v7352_v30 = vadd.f32 %v7351_v53, %v7350_v12 }
0x15f7   : > { %v7353_v28 = vpop.f32.mrf.mxu1 }
0x15f8   : > { %v6489_v25 = vadd.f32 %v7352_v30, %v12459_v27 }
0x15f9   : > { %v7354_v44 = vpop.f32.mrf.mxu1 }
0x15fa   : > { %v6506_v49 = vpack.c.bf16 %v6489_v25, %v6486_v21  ;;  %v7355_v62 = vadd.f32 %v7354_v44, %v7353_v28 }
0x15fb   : > { %v7356_v34 = vpop.f32.mrf.mxu1 }
0x15fc   : > { %7403 = vmatprep.mubr.bf16.mxu1 %v6506_v49  ;;  %v6494_v13 = vadd.f32 %v7355_v62, %v12459_v27 }
0x15fd   : > { %v7357_v19 = vpop.f32.mrf.mxu1 }
0x15fe   : > { %v7358_v58 = vadd.f32 %v7357_v19, %v7356_v34 }
0x1600   : > { %v6497_v14 = vadd.f32 %v7358_v58, %v12459_v27 }
0x1602   : > { %v6507_v54 = vpack.c.bf16 %v6497_v14, %v6494_v13 }
0x1604   : > { %7404 = vmatmul.mubr.bf16.vlgmr.msra.gmra.mxu1 %v6507_v54 }
0x1694   : > { %v7393_v60 = vpop.f32.mrf.mxu0 }
0x1695   : > { %v6622_v24 = vadd.f32 %v7393_v60, %v12480_v9 }
0x1696   : > { %v6613_v0 = vpop.f32.mrf.mxu0 }
0x1697   : > { %v6678_v20 = vsub.f32 0.0, %v6622_v24  ;;  %v6614_v15 = vadd.f32 %v12480_v9, %v6613_v0 }
0x1698   : > { %v7394_v57 = vpop.f32.mrf.mxu0 }
0x1699   : > { %v6696_v42 = vmul.f32 1.442695, %v6678_v20  ;;  %v6676_v52 = vsub.f32 0.0, %v6614_v15  ;;  %v6625_v36 = vadd.f32 %v7394_v57, %v12480_v9 }
0x169a   : > { %v6616_v27 = vpop.f32.mrf.mxu0 }
0x169b   : > { %8036 = vpow2.f32 %v6696_v42  ;;  %v6692_v7 = vmul.f32 1.442695, %v6676_v52  ;;  %v6679_v1 = vsub.f32 0.0, %v6625_v36  ;;  %v6617_v61 = vadd.f32 %v12480_v9, %v6616_v27 }
0x169d   : > { %8038 = vpow2.f32 %v6692_v7  ;;  %v6698_v4 = vmul.f32 1.442695, %v6679_v1  ;;  %v6677_v32 = vsub.f32 0.0, %v6617_v61 }
0x169f   : > { %8040 = vpow2.f32 %v6698_v4  ;;  %v6694_v48 = vmul.f32 1.442695, %v6677_v32 }
0x16a1   : > { %8042 = vpow2.f32 %v6694_v48 }
0x16a4   : > { %v7397_v50 = vpop.f32.mrf.mxu0 }
0x16a5   : > { %v6638_v46 = vadd.f32 %v7397_v50, %v12480_v9 }
0x16a6   : > { %v6629_v26 = vpop.f32.mrf.mxu0 }
0x16a7   : > { %v6682_v45 = vsub.f32 0.0, %v6638_v46  ;;  %v6630_v22 = vadd.f32 %v12480_v9, %v6629_v26 }
0x16a8   : > { %v8037_v41 = vpop.eup %8036  ;;  %v7398_v59 = vpop.f32.mrf.mxu0 }
0x16a9   : > { %v6726_v38 = vadd.f32 1.0, %v8037_v41  ;;  %v6704_v40 = vmul.f32 1.442695, %v6682_v45  ;;  %v6680_v5 = vsub.f32 0.0, %v6630_v22  ;;  %v6641_v55 = vadd.f32 %v7398_v59, %v12480_v9 }
0x16aa   : > { %v8039_v2 = vpop.eup %8038  ;;  %v6632_v8 = vpop.f32.mrf.mxu0 }
0x16ab   : > { %8044 = vrcp.f32 %v6726_v38  ;;  %v6724_v16 = vadd.f32 1.0, %v8039_v2  ;;  %v6700_v31 = vmul.f32 1.442695, %v6680_v5  ;;  %v6683_v6 = vsub.f32 0.0, %v6641_v55 }
0x16ac   : > { %v8041_v51 = vpop.eup %8040  ;;  %8046 = vpow2.f32 %v6704_v40  ;;  %v6633_v29 = vadd.f32 %v12480_v9, %v6632_v8 }
0x16ad   : > { %8048 = vrcp.f32 %v6724_v16  ;;  %v6727_v33 = vadd.f32 1.0, %v8041_v51  ;;  %v6706_v23 = vmul.f32 1.442695, %v6683_v6 }
0x16ae   : > { %v8043_v63 = vpop.eup %8042  ;;  %8050 = vpow2.f32 %v6700_v31  ;;  %v6681_v3 = vsub.f32 0.0, %v6633_v29 }
0x16af   : > { %8052 = vrcp.f32 %v6727_v33  ;;  %v6725_v11 = vadd.f32 1.0, %v8043_v63 }
0x16b0   : > { %8054 = vpow2.f32 %v6706_v23  ;;  %v6702_v18 = vmul.f32 1.442695, %v6681_v3 }
0x16b1   : > { %8056 = vrcp.f32 %v6725_v11 }
0x16b2   : > { %8058 = vpow2.f32 %v6702_v18 }
0x16b4   : > { %v7401_v39 = vpop.f32.mrf.mxu0 }
0x16b5   : > { %v6654_v37 = vadd.f32 %v7401_v39, %v12480_v9 }
0x16b6   : > { %v6645_v43 = vpop.f32.mrf.mxu0 }
0x16b7   : > { %v6686_v47 = vsub.f32 0.0, %v6654_v37  ;;  %v6646_v56 = vadd.f32 %v12480_v9, %v6645_v43 }
0x16b8   : > { %v8045_v35 = vpop.eup %8044  ;;  %v7402_v17 = vpop.f32.mrf.mxu0 }
0x16b9   : > { %v8047_v12 = vpop.eup %8046  ;;  %6774 = vst [vmem:[%s12495_s25 + $0x10] sm:$0xff] %v8045_v35  ;;  %v6712_v10 = vmul.f32 1.442695, %v6686_v47  ;;  %v6684_v53 = vsub.f32 0.0, %v6646_v56  ;;  %v6657_v30 = vadd.f32 %v7402_v17, %v12480_v9 }
0x16ba   : > { %v8049_v28 = vpop.eup %8048  ;;  %v6730_v21 = vadd.f32 1.0, %v8047_v12  ;;  %v6648_v25 = vpop.f32.mrf.mxu0 }
0x16bb   : > { %v8051_v44 = vpop.eup %8050  ;;  %6772 = vst [vmem:[%s12495_s25] sm:$0xff] %v8049_v28  ;;  %8060 = vpow2.f32 %v6712_v10  ;;  %v6708_v49 = vmul.f32 1.442695, %v6684_v53  ;;  %v6687_v34 = vsub.f32 0.0, %v6657_v30  ;;  %v6649_v62 = vadd.f32 %v12480_v9, %v6648_v25 }
0x16bc   : > { %v8053_v19 = vpop.eup %8052  ;;  %8062 = vrcp.f32 %v6730_v21  ;;  %v6728_v58 = vadd.f32 1.0, %v8051_v44 }
0x16bd   : > { %v8055_v13 = vpop.eup %8054  ;;  %6775 = vst [vmem:[%s12495_s25 + $0x18] sm:$0xff] %v8053_v19  ;;  %8064 = vpow2.f32 %v6708_v49  ;;  %v6714_v14 = vmul.f32 1.442695, %v6687_v34  ;;  %v6685_v54 = vsub.f32 0.0, %v6649_v62 }
0x16be   : > { %v8057_v60 = vpop.eup %8056  ;;  %8066 = vrcp.f32 %v6728_v58  ;;  %v6731_v24 = vadd.f32 1.0, %v8055_v13 }
0x16bf   : > { %v8059_v0 = vpop.eup %8058  ;;  %6773 = vst [vmem:[%s12495_s25 + $0x8] sm:$0xff] %v8057_v60  ;;  %8068 = vpow2.f32 %v6714_v14  ;;  %v6710_v20 = vmul.f32 1.442695, %v6685_v54 }
0x16c0   : > { %8070 = vrcp.f32 %v6731_v24  ;;  %v6729_v15 = vadd.f32 1.0, %v8059_v0 }
0x16c1   : > { %8072 = vpow2.f32 %v6710_v20 }
0x16c2   : > { %8074 = vrcp.f32 %v6729_v15 }
0x16c4   : > { %v7405_v57 = vpop.f32.mrf.mxu1 }
0x16c5   : > { %v6670_v42 = vadd.f32 %v7405_v57, %v12480_v9 }
0x16c6   : > { %v6661_v52 = vpop.f32.mrf.mxu1 }
0x16c7   : > { %v6690_v36 = vsub.f32 0.0, %v6670_v42  ;;  %v6662_v27 = vadd.f32 %v12480_v9, %v6661_v52 }
0x16c8   : > { %v8061_v7 = vpop.eup %8060  ;;  %v7406_v1 = vpop.f32.mrf.mxu1 }
0x16c9   : > { %v8063_v61 = vpop.eup %8062  ;;  %v6734_v4 = vadd.f32 1.0, %v8061_v7  ;;  %v6720_v32 = vmul.f32 1.442695, %v6690_v36  ;;  %v6688_v48 = vsub.f32 0.0, %v6662_v27  ;;  %v6673_v50 = vadd.f32 %v7406_v1, %v12480_v9 }
0x16ca   : > { %v8065_v46 = vpop.eup %8064  ;;  %6778 = vst [vmem:[%s12495_s25 + $0x30] sm:$0xff] %v8063_v61  ;;  %v6664_v26 = vpop.f32.mrf.mxu1 }
0x16cb   : > { %v8067_v45 = vpop.eup %8066  ;;  %8076 = vrcp.f32 %v6734_v4  ;;  %v6732_v22 = vadd.f32 1.0, %v8065_v46  ;;  %v6716_v41 = vmul.f32 1.442695, %v6688_v48  ;;  %v6691_v59 = vsub.f32 0.0, %v6673_v50 }
0x16cc   : > { %v8069_v38 = vpop.eup %8068  ;;  %6776 = vst [vmem:[%s12495_s25 + $0x20] sm:$0xff] %v8067_v45  ;;  %8078 = vpow2.f32 %v6720_v32  ;;  %v6665_v40 = vadd.f32 %v12480_v9, %v6664_v26 }
0x16cd   : > { %v8071_v5 = vpop.eup %8070  ;;  %8080 = vrcp.f32 %v6732_v22  ;;  %v6735_v55 = vadd.f32 1.0, %v8069_v38  ;;  %v6722_v2 = vmul.f32 1.442695, %v6691_v59 }
0x16ce   : > { %v8073_v8 = vpop.eup %8072  ;;  %6779 = vst [vmem:[%s12495_s25 + $0x38] sm:$0xff] %v8071_v5  ;;  %8082 = vpow2.f32 %v6716_v41  ;;  %v6689_v16 = vsub.f32 0.0, %v6665_v40 }
0x16cf   : > { %v8075_v31 = vpop.eup %8074  ;;  %8084 = vrcp.f32 %v6735_v55  ;;  %v6733_v6 = vadd.f32 1.0, %v8073_v8 }
0x16d0   : > { %6777 = vst [vmem:[%s12495_s25 + $0x28] sm:$0xff] %v8075_v31  ;;  %8086 = vpow2.f32 %v6722_v2  ;;  %v6718_v51 = vmul.f32 1.442695, %v6689_v16 }
0x16d1   : > { %8088 = vrcp.f32 %v6733_v6 }
0x16d2   : > { %8090 = vpow2.f32 %v6718_v51 }
0x16d8   : > { %v8077_v9 = vpop.eup %8076 }
0x16d9   : > { %v8079_v29 = vpop.eup %8078  ;;  %6782 = vst [vmem:[%s12495_s25 + $0x50] sm:$0xff] %v8077_v9 }
0x16da   : > { %v8081_v33 = vpop.eup %8080  ;;  %v6738_v23 = vadd.f32 1.0, %v8079_v29 }
0x16db   : > { %v8083_v63 = vpop.eup %8082  ;;  %6780 = vst [vmem:[%s12495_s25 + $0x40] sm:$0xff] %v8081_v33 }
0x16dc   : > { %v8085_v3 = vpop.eup %8084  ;;  %8092 = vrcp.f32 %v6738_v23  ;;  %v6736_v11 = vadd.f32 1.0, %v8083_v63 }
0x16dd   : > { %v8087_v18 = vpop.eup %8086  ;;  %6783 = vst [vmem:[%s12495_s25 + $0x58] sm:$0xff] %v8085_v3 }
0x16de   : > { %v8089_v39 = vpop.eup %8088  ;;  %8094 = vrcp.f32 %v6736_v11  ;;  %v6739_v37 = vadd.f32 1.0, %v8087_v18 }
0x16df   : > { %v8091_v43 = vpop.eup %8090  ;;  %6781 = vst [vmem:[%s12495_s25 + $0x48] sm:$0xff] %v8089_v39 }
0x16e0   : > { %8096 = vrcp.f32 %v6739_v37  ;;  %v6737_v47 = vadd.f32 1.0, %v8091_v43 }
0x16e2   : > { %8098 = vrcp.f32 %v6737_v47 }
0x16e9   : > { %v8093_v56 = vpop.eup %8092 }
0x16ea   : > { %6786 = vst [vmem:[%s12495_s25 + $0x70] sm:$0xff] %v8093_v56 }
0x16eb   : > { %v8095_v35 = vpop.eup %8094 }
0x16ec   : > { %6784 = vst [vmem:[%s12495_s25 + $0x60] sm:$0xff] %v8095_v35 }
0x16ed   : > { %v8097_v17 = vpop.eup %8096 }
0x16ee   : > { %6787 = vst [vmem:[%s12495_s25 + $0x78] sm:$0xff] %v8097_v17 }
0x16ef   : > { %v8099_v12 = vpop.eup %8098 }
0x16f0   : > { %6785 = vst [vmem:[%s12495_s25 + $0x68] sm:$0xff] %v8099_v12 }
0x16f1 PF: > { %p33_p5 = scmp.ge.s32.totalorder %s8732_s26, 4   ;;  %s13351_s27 = smov %s8475_s28 }
0x16f2   : > { %s13352_s28 = smov %s8479_s29  ;;  %s13353_s29 = smov %s8744_s23 }
0x16f3   : > { %s13354_s30 = smov %s8732_s26  ;;  %35 = sbr.rel (!%p33_p5) target bundleno = 19 (0x13), region = 178 }
0x16f8   :  { %6810 = vsyncpa [#allocation3], 1 }
0x16f9   :  { %6812 = vsyncpa [#allocation3 + $0x1], 1 }
0x16fa   :  { %6813 = vsyncpa [#allocation6], 1 }
0x16fb   :  { %6814 = vsyncpa [#allocation9], 1 }
0x16fc   :  { %6815 = vsyncpa [#allocation12], 1 }
0x16fd   :  { %6816 = vsyncpa [#allocation15], 1 }
0x16fe   :  { %6817 = vsyncpa [#allocation4], 1 }
0x16ff   :  { %6819 = vsyncpa [#allocation4 + $0x1], 1 }

</bundles_post_ra>
